<compile_context>
chip_gen: v7x
topology: tpu7x:2x2x1
jax: 0.10.0
libtpu: 0.0.40
codegen_flags: <defaults>
</compile_context>

<pallas_src>
import math

import jax
import jax.numpy as jnp
from jax.experimental import pallas as pl
from jax.experimental.pallas import tpu as pltpu

NOUT_PAD = 128  # lane-dense width for the final Linear(512, n_actions) output


# ----------------------------------------------------------------------------
# Fused forward builder
# ----------------------------------------------------------------------------
def make_fused_forward(*, batch, n_actions, n_channels, img_height, img_width,
                       state_history):
    """Returns forward(x, kernel_params) backed by one fused pallas_call."""
    B, H, W = batch, img_height, img_width
    assert H == W, "testQModel needs square images (flatten == fc1 in_features)"
    c0 = n_channels * state_history
    c1, c2, c3, hid = 32, 64, 64, 512

    # conv geometry exactly as in the PyTorch module
    k1, s1, p1 = 8, 4, (3 * H + 4) // 2
    k2, s2, p2 = 4, 2, (H + 2) // 2
    k3, s3, p3 = 3, 1, 1

    def osz(n, k, s, p):
        return (n + 2 * p - k) // s + 1

    oh1, ow1 = osz(H, k1, s1, p1), osz(W, k1, s1, p1)
    oh2, ow2 = osz(oh1, k2, s2, p2), osz(ow1, k2, s2, p2)
    oh3, ow3 = osz(oh2, k3, s3, p3), osz(ow2, k3, s3, p3)
    assert (oh3, ow3) == (H, W), "conv tower must preserve the spatial size"
    assert s2 == 2 and s3 == 1

    kc1, kc2, kc3 = c0 * k1 * k1, c1 * k2 * k2, c2 * k3 * k3
    m1, m2, m3 = B * oh1 * ow1, B * oh2 * ow2, B * oh3 * ow3
    feat = oh3 * ow3 * c3

    # conv2's padded input is stored parity-split: padded coord h = 2*hh + hp.
    HPAD2, WPAD2 = oh1 + 2 * p2, ow1 + 2 * p2
    HHALF2, WHALF2 = (HPAD2 + 1) // 2, (WPAD2 + 1) // 2
    HPAD3, WPAD3 = oh2 + 2 * p3, ow2 + 2 * p3
    assert (k2 - 1) // 2 + oh2 <= HHALF2 and (k2 - 1) // 2 + ow2 <= WHALF2

    # conv1's output columns are grouped by w-parity so each group lands in a
    # contiguous run of "half" coordinates of the parity-split scratch.
    wo_groups = [[wo for wo in range(ow1) if wo % 2 == g] for g in (0, 1)]
    wo_perm = wo_groups[0] + wo_groups[1]
    for wos in wo_groups:
        assert all(wos[j] - wos[0] == 2 * j for j in range(len(wos)))

    # ------------------------------- kernel ----------------------------------
    def kernel(cols1_ref, w1_ref, b1_ref, w2_ref, b2_ref, w3_ref, b3_ref,
               wl1_ref, bl1_ref, wl2_ref, bl2_ref, out_ref,
               pad2_ref, pad3_ref):
        f32 = jnp.float32

        # conv1 + ReLU: one matmul on the pre-built im2col matrix.
        y1 = jnp.dot(cols1_ref[...], w1_ref[...], preferred_element_type=f32)
        y1 = jnp.maximum(y1 + b1_ref[...], 0.0)              # [m1, c1]

        # Scatter conv1 output into conv2's zero-padded, parity-split input.
        pad2_ref[...] = jnp.zeros_like(pad2_ref)
        for b in range(B):
            for ho in range(oh1):
                h = ho + p2
                hpar, hhalf = h % 2, h // 2
                base = (b * oh1 + ho) * ow1
                off = 0
                for wos in wo_groups:
                    w0 = wos[0] + p2
                    wpar, wlo = w0 % 2, w0 // 2
                    n = len(wos)
                    pad2_ref[b, hpar, hhalf, wpar, wlo:wlo + n, :] = (
                        y1[base + off:base + off + n, :])
                    off += n

        # conv2 (stride 2) + ReLU: in-kernel im2col (static slices) -> matmul.
        pieces2 = []
        for kh in range(k2):
            for kw in range(k2):
                patch = pad2_ref[:, kh % 2, kh // 2:kh // 2 + oh2,
                                 kw % 2, kw // 2:kw // 2 + ow2, :]
                pieces2.append(patch.reshape(m2, c1))
        cols2 = jnp.concatenate(pieces2, axis=-1)            # [m2, kc2]
        y2 = jnp.dot(cols2, w2_ref[...], preferred_element_type=f32)
        y2 = jnp.maximum(y2 + b2_ref[...], 0.0)              # [m2, c2]

        # conv3 (stride 1) + ReLU: plain padded scratch, static slices.
        pad3_ref[...] = jnp.zeros_like(pad3_ref)
        pad3_ref[:, p3:p3 + oh2, p3:p3 + ow2, :] = y2.reshape(B, oh2, ow2, c2)
        pieces3 = []
        for kh in range(k3):
            for kw in range(k3):
                patch = pad3_ref[:, kh:kh + oh3, kw:kw + ow3, :]
                pieces3.append(patch.reshape(m3, c2))
        cols3 = jnp.concatenate(pieces3, axis=-1)            # [m3, kc3]
        y3 = jnp.dot(cols3, w3_ref[...], preferred_element_type=f32)
        y3 = jnp.maximum(y3 + b3_ref[...], 0.0)              # [m3, c3]

        # Flatten to one feature row per batch element (order matches the
        # row-permuted fc1 weight prepared at init).
        y3r = y3.reshape(B, oh3, ow3, c3)
        flat = jnp.concatenate(
            [y3r[:, hh, ww, :] for hh in range(oh3) for ww in range(ow3)],
            axis=-1)                                         # [B, feat]

        # fc1 (bf16 weight, f32 accumulate) + ReLU, then fc2 (lane-padded N).
        h1 = jnp.dot(flat.astype(jnp.bfloat16), wl1_ref[...],
                     preferred_element_type=f32)
        h1 = jnp.maximum(h1 + bl1_ref[...], 0.0)             # [B, hid]
        out = jnp.dot(h1, wl2_ref[...], preferred_element_type=f32)
        out_ref[...] = out + bl2_ref[...]                    # [B, NOUT_PAD]

    flops = 2 * (m1 * kc1 * c1 + m2 * kc2 * c2 + m3 * kc3 * c3
                 + B * feat * hid + B * hid * NOUT_PAD)
    bytes_accessed = 4 * (m1 * kc1 + kc1 * c1 + kc2 * c2 + kc3 * c3
                          + hid * NOUT_PAD + B * NOUT_PAD
                          + c1 + c2 + c3 + hid + NOUT_PAD) + 2 * feat * hid

    fused = pl.pallas_call(
        kernel,
        out_shape=jax.ShapeDtypeStruct((B, NOUT_PAD), jnp.float32),
        in_specs=[
            pl.BlockSpec((m1, kc1), lambda: (0, 0)),         # conv1 im2col
            pl.BlockSpec((kc1, c1), lambda: (0, 0)),         # conv1 weight
            pl.BlockSpec((1, c1), lambda: (0, 0)),           # conv1 bias
            pl.BlockSpec((kc2, c2), lambda: (0, 0)),         # conv2 weight
            pl.BlockSpec((1, c2), lambda: (0, 0)),           # conv2 bias
            pl.BlockSpec((kc3, c3), lambda: (0, 0)),         # conv3 weight
            pl.BlockSpec((1, c3), lambda: (0, 0)),           # conv3 bias
            pl.BlockSpec((feat, hid), lambda: (0, 0)),       # fc1 weight (bf16)
            pl.BlockSpec((1, hid), lambda: (0, 0)),          # fc1 bias
            pl.BlockSpec((hid, NOUT_PAD), lambda: (0, 0)),   # fc2 weight (padded)
            pl.BlockSpec((1, NOUT_PAD), lambda: (0, 0)),     # fc2 bias (padded)
        ],
        out_specs=pl.BlockSpec((B, NOUT_PAD), lambda: (0, 0)),
        scratch_shapes=[
            pltpu.VMEM((B, 2, HHALF2, 2, WHALF2, c1), jnp.float32),
            pltpu.VMEM((B, HPAD3, WPAD3, c2), jnp.float32),
        ],
        compiler_params=pltpu.CompilerParams(
            vmem_limit_bytes=32 * 1024 * 1024),
        cost_estimate=pl.CostEstimate(flops=int(flops), transcendentals=0,
                                      bytes_accessed=int(bytes_accessed)),
    )

    wo_perm_arr = jnp.asarray(wo_perm, dtype=jnp.int32)

    def im2col_conv1(x):
        """NCHW input -> conv1 im2col; rows ordered (b, ho, [even wo, odd wo]),
        columns in PyTorch (ci, kh, kw) order."""
        xp = jnp.pad(x, ((0, 0), (0, 0), (p1, p1), (p1, p1)))
        patches = []
        for kh in range(k1):
            for kw in range(k1):
                patches.append(
                    xp[:, :, kh:kh + s1 * oh1:s1, kw:kw + s1 * ow1:s1])
        cols = jnp.stack(patches, axis=2)                 # [B, c0, k1*k1, oh1, ow1]
        cols = cols.reshape(B, kc1, oh1, ow1)
        cols = jnp.transpose(cols, (0, 2, 3, 1))          # [B, oh1, ow1, kc1]
        cols = jnp.take(cols, wo_perm_arr, axis=2)        # w-parity grouping
        return cols.reshape(m1, kc1)

    def forward(x, kernel_params):
        (w1m, b1r, w2m, b2r, w3m, b3r, wl1p, bl1r, wl2p, bl2r) = kernel_params
        cols1 = im2col_conv1(x.astype(jnp.float32))
        out = fused(cols1, w1m, b1r, w2m, b2r, w3m, b3r,
                    wl1p, bl1r, wl2p, bl2r)
        return out[:, :n_actions]

    return forward


# ----------------------------------------------------------------------------
# One-time parameter preparation (outside the jitted forward)
# ----------------------------------------------------------------------------
def prepare_params(params, *, img_height, img_width, n_actions):
    """Converts PyTorch-layout parameters to the kernel layout, once."""
    (w1, b1), (w2, b2), (w3, b3), (wl1, bl1), (wl2, bl2) = params
    f32 = jnp.float32
    c1, c2, c3 = w1.shape[0], w2.shape[0], w3.shape[0]
    hid = wl1.shape[0]

    w1m = w1.reshape(c1, -1).T.astype(f32)                              # [(ci,kh,kw), c1]
    w2m = jnp.transpose(w2, (2, 3, 1, 0)).reshape(-1, c2).astype(f32)   # [(kh,kw,ci), c2]
    w3m = jnp.transpose(w3, (2, 3, 1, 0)).reshape(-1, c3).astype(f32)   # [(kh,kw,ci), c3]

    # fc1: fold PyTorch's (c, h, w) flatten order into a row permutation so the
    # kernel flattens its channels-last activations directly; store as bf16.
    wl1p = (wl1.reshape(hid, c3, img_height, img_width)
                .transpose(2, 3, 1, 0)                                  # [h, w, c, hid]
                .reshape(img_height * img_width * c3, hid)
                .astype(jnp.bfloat16))
    # fc2: pre-transpose and zero-pad to 128 lanes (lane-dense output store).
    wl2p = jnp.zeros((hid, NOUT_PAD), f32).at[:, :n_actions].set(wl2.T.astype(f32))
    bl2p = jnp.zeros((1, NOUT_PAD), f32).at[0, :n_actions].set(bl2.astype(f32))

    return (w1m, b1.reshape(1, -1).astype(f32),
            w2m, b2.reshape(1, -1).astype(f32),
            w3m, b3.reshape(1, -1).astype(f32),
            wl1p, bl1.reshape(1, -1).astype(f32),
            wl2p, bl2p)


# ----------------------------------------------------------------------------
# Deterministic parameter init (PyTorch-style uniform fan-in bounds)
# ----------------------------------------------------------------------------
def _init_conv(key, cout, cin, k):
    kw, kb = jax.random.split(key)
    bound = 1.0 / math.sqrt(cin * k * k)
    w = jax.random.uniform(kw, (cout, cin, k, k), jnp.float32, -bound, bound)
    b = jax.random.uniform(kb, (cout,), jnp.float32, -bound, bound)
    return w, b


def _init_linear(key, out_f, in_f):
    kw, kb = jax.random.split(key)
    bound = 1.0 / math.sqrt(in_f)
    w = jax.random.uniform(kw, (out_f, in_f), jnp.float32, -bound, bound)
    b = jax.random.uniform(kb, (out_f,), jnp.float32, -bound, bound)
    return w, b


def make_params(key, n_actions, n_channels, img_height, img_width, state_history):
    cin = n_channels * state_history
    k1, k2, k3, k4, k5 = jax.random.split(key, 5)
    return [
        _init_conv(k1, 32, cin, 8),
        _init_conv(k2, 64, 32, 4),
        _init_conv(k3, 64, 64, 3),
        _init_linear(k4, 512, img_height * img_width * 64),
        _init_linear(k5, n_actions, 512),
    ]


if __name__ == "__main__":
    batch = 2
    n_channels = 1
    state_history = 4
    img_height = img_width = 8
    n_actions = 4

    key = jax.random.PRNGKey(0)
    k_params, k_x = jax.random.split(key)
    params = make_params(k_params, n_actions, n_channels, img_height,
                         img_width, state_history)
    kparams = prepare_params(params, img_height=img_height,
                             img_width=img_width, n_actions=n_actions)

    x = jax.random.normal(
        k_x, (batch, n_channels * state_history, img_height, img_width),
        dtype=jnp.float32)

    forward = make_fused_forward(batch=batch, n_actions=n_actions,
                                 n_channels=n_channels, img_height=img_height,
                                 img_width=img_width,
                                 state_history=state_history)
    fwd = jax.jit(forward)
    out = jax.block_until_ready(fwd(x, kparams))
    assert out.shape == (batch, n_actions), out.shape
    print("KERNEL_OK")
</pallas_src>

<mosaic_0001>
module attributes {stable_mosaic.version = 11 : i64} {
  func.func @kernel(%arg0: memref<128x256xf32, #tpu.memory_space<vmem>>, %arg1: memref<256x32xf32, #tpu.memory_space<vmem>>, %arg2: memref<1x32xf32, #tpu.memory_space<vmem>>, %arg3: memref<512x64xf32, #tpu.memory_space<vmem>>, %arg4: memref<1x64xf32, #tpu.memory_space<vmem>>, %arg5: memref<576x64xf32, #tpu.memory_space<vmem>>, %arg6: memref<1x64xf32, #tpu.memory_space<vmem>>, %arg7: memref<4096x512xbf16, #tpu.memory_space<vmem>>, %arg8: memref<1x512xf32, #tpu.memory_space<vmem>>, %arg9: memref<512x128xf32, #tpu.memory_space<vmem>>, %arg10: memref<1x128xf32, #tpu.memory_space<vmem>>, %arg11: memref<2x128xf32, #tpu.memory_space<vmem>>, %arg12: memref<2x2x9x2x9x32xf32, #tpu.memory_space<vmem>>, %arg13: memref<2x10x10x64xf32, #tpu.memory_space<vmem>>) attributes {dimension_semantics = [], scalar_prefetch = 0 : i64, scratch_operands = 2 : i64, tpu.core_type = #tpu.core_type<tc>} {
    %c0 = arith.constant 0 : index
    %c0_0 = arith.constant 0 : index
    %0 = vector.load %arg0[%c0, %c0_0] : memref<128x256xf32, #tpu.memory_space<vmem>>, vector<128x256xf32>
    %c0_1 = arith.constant 0 : index
    %c0_2 = arith.constant 0 : index
    %1 = vector.load %arg1[%c0_1, %c0_2] : memref<256x32xf32, #tpu.memory_space<vmem>>, vector<256x32xf32>
    %cst = arith.constant dense<0.000000e+00> : vector<128x32xf32>
    %2 = tpu.matmul %0, %1, %cst {dimension_numbers = #tpu.dot_dimension_numbers<[1], [0], [0], [1], [0, 0, 1, 1], [], []>} : vector<128x256xf32>, vector<256x32xf32>, vector<128x32xf32> -> vector<128x32xf32>
    %c0_3 = arith.constant 0 : index
    %c0_4 = arith.constant 0 : index
    %3 = vector.load %arg2[%c0_3, %c0_4] : memref<1x32xf32, #tpu.memory_space<vmem>>, vector<1x32xf32>
    %4 = vector.broadcast %3 : vector<1x32xf32> to vector<128x32xf32>
    %5 = arith.addf %2, %4 : vector<128x32xf32>
    %cst_5 = arith.constant 0.000000e+00 : f32
    %6 = vector.broadcast %cst_5 : f32 to vector<128x32xf32>
    %7 = arith.maximumf %5, %6 : vector<128x32xf32>
    %cst_6 = arith.constant 0.000000e+00 : f32
    %8 = vector.broadcast %cst_6 : f32 to vector<2x2x9x2x9x32xf32>
    %c0_7 = arith.constant 0 : index
    %c0_8 = arith.constant 0 : index
    %c0_9 = arith.constant 0 : index
    %c0_10 = arith.constant 0 : index
    %c0_11 = arith.constant 0 : index
    %c0_12 = arith.constant 0 : index
    %9 = vector.load %arg12[%c0_7, %c0_8, %c0_9, %c0_10, %c0_11, %c0_12] : memref<2x2x9x2x9x32xf32, #tpu.memory_space<vmem>>, vector<2x2x9x2x9x32xf32>
    tpu.vector_store %arg12[%c0_7, %c0_8, %c0_9, %c0_10, %c0_11, %c0_12], %8 {strides = array<i32>} : memref<2x2x9x2x9x32xf32, #tpu.memory_space<vmem>>, vector<2x2x9x2x9x32xf32>,
    %10 = vector.extract_strided_slice %7 {offsets = [0, 0], sizes = [4, 32], strides = [1, 1]} : vector<128x32xf32> to vector<4x32xf32>
    %c0_13 = arith.constant 0 : index
    %c1 = arith.constant 1 : index
    %c2 = arith.constant 2 : index
    %c1_14 = arith.constant 1 : index
    %c2_15 = arith.constant 2 : index
    %c0_16 = arith.constant 0 : index
    %11 = vector.load %arg12[%c0_13, %c1, %c2, %c1_14, %c2_15, %c0_16] : memref<2x2x9x2x9x32xf32, #tpu.memory_space<vmem>>, vector<1x1x1x1x4x32xf32>
    %12 = vector.shape_cast %11 : vector<1x1x1x1x4x32xf32> to vector<4x32xf32>
    %13 = vector.shape_cast %10 : vector<4x32xf32> to vector<1x1x1x1x4x32xf32>
    tpu.vector_store %arg12[%c0_13, %c1, %c2, %c1_14, %c2_15, %c0_16], %13 {strides = array<i32>} : memref<2x2x9x2x9x32xf32, #tpu.memory_space<vmem>>, vector<1x1x1x1x4x32xf32>,
    %14 = vector.extract_strided_slice %7 {offsets = [4, 0], sizes = [4, 32], strides = [1, 1]} : vector<128x32xf32> to vector<4x32xf32>
    %c0_17 = arith.constant 0 : index
    %c1_18 = arith.constant 1 : index
    %c2_19 = arith.constant 2 : index
    %c0_20 = arith.constant 0 : index
    %c3 = arith.constant 3 : index
    %c0_21 = arith.constant 0 : index
    %15 = vector.load %arg12[%c0_17, %c1_18, %c2_19, %c0_20, %c3, %c0_21] : memref<2x2x9x2x9x32xf32, #tpu.memory_space<vmem>>, vector<1x1x1x1x4x32xf32>
    %16 = vector.shape_cast %15 : vector<1x1x1x1x4x32xf32> to vector<4x32xf32>
    %17 = vector.shape_cast %14 : vector<4x32xf32> to vector<1x1x1x1x4x32xf32>
    tpu.vector_store %arg12[%c0_17, %c1_18, %c2_19, %c0_20, %c3, %c0_21], %17 {strides = array<i32>} : memref<2x2x9x2x9x32xf32, #tpu.memory_space<vmem>>, vector<1x1x1x1x4x32xf32>,
    %18 = vector.extract_strided_slice %7 {offsets = [8, 0], sizes = [4, 32], strides = [1, 1]} : vector<128x32xf32> to vector<4x32xf32>
    %c0_22 = arith.constant 0 : index
    %c0_23 = arith.constant 0 : index
    %c3_24 = arith.constant 3 : index
    %c1_25 = arith.constant 1 : index
    %c2_26 = arith.constant 2 : index
    %c0_27 = arith.constant 0 : index
    %19 = vector.load %arg12[%c0_22, %c0_23, %c3_24, %c1_25, %c2_26, %c0_27] : memref<2x2x9x2x9x32xf32, #tpu.memory_space<vmem>>, vector<1x1x1x1x4x32xf32>
    %20 = vector.shape_cast %19 : vector<1x1x1x1x4x32xf32> to vector<4x32xf32>
    %21 = vector.shape_cast %18 : vector<4x32xf32> to vector<1x1x1x1x4x32xf32>
    tpu.vector_store %arg12[%c0_22, %c0_23, %c3_24, %c1_25, %c2_26, %c0_27], %21 {strides = array<i32>} : memref<2x2x9x2x9x32xf32, #tpu.memory_space<vmem>>, vector<1x1x1x1x4x32xf32>,
    %22 = vector.extract_strided_slice %7 {offsets = [12, 0], sizes = [4, 32], strides = [1, 1]} : vector<128x32xf32> to vector<4x32xf32>
    %c0_28 = arith.constant 0 : index
    %c0_29 = arith.constant 0 : index
    %c3_30 = arith.constant 3 : index
    %c0_31 = arith.constant 0 : index
    %c3_32 = arith.constant 3 : index
    %c0_33 = arith.constant 0 : index
    %23 = vector.load %arg12[%c0_28, %c0_29, %c3_30, %c0_31, %c3_32, %c0_33] : memref<2x2x9x2x9x32xf32, #tpu.memory_space<vmem>>, vector<1x1x1x1x4x32xf32>
    %24 = vector.shape_cast %23 : vector<1x1x1x1x4x32xf32> to vector<4x32xf32>
    %25 = vector.shape_cast %22 : vector<4x32xf32> to vector<1x1x1x1x4x32xf32>
    tpu.vector_store %arg12[%c0_28, %c0_29, %c3_30, %c0_31, %c3_32, %c0_33], %25 {strides = array<i32>} : memref<2x2x9x2x9x32xf32, #tpu.memory_space<vmem>>, vector<1x1x1x1x4x32xf32>,
    %26 = vector.extract_strided_slice %7 {offsets = [16, 0], sizes = [4, 32], strides = [1, 1]} : vector<128x32xf32> to vector<4x32xf32>
    %c0_34 = arith.constant 0 : index
    %c1_35 = arith.constant 1 : index
    %c3_36 = arith.constant 3 : index
    %c1_37 = arith.constant 1 : index
    %c2_38 = arith.constant 2 : index
    %c0_39 = arith.constant 0 : index
    %27 = vector.load %arg12[%c0_34, %c1_35, %c3_36, %c1_37, %c2_38, %c0_39] : memref<2x2x9x2x9x32xf32, #tpu.memory_space<vmem>>, vector<1x1x1x1x4x32xf32>
    %28 = vector.shape_cast %27 : vector<1x1x1x1x4x32xf32> to vector<4x32xf32>
    %29 = vector.shape_cast %26 : vector<4x32xf32> to vector<1x1x1x1x4x32xf32>
    tpu.vector_store %arg12[%c0_34, %c1_35, %c3_36, %c1_37, %c2_38, %c0_39], %29 {strides = array<i32>} : memref<2x2x9x2x9x32xf32, #tpu.memory_space<vmem>>, vector<1x1x1x1x4x32xf32>,
    %30 = vector.extract_strided_slice %7 {offsets = [20, 0], sizes = [4, 32], strides = [1, 1]} : vector<128x32xf32> to vector<4x32xf32>
    %c0_40 = arith.constant 0 : index
    %c1_41 = arith.constant 1 : index
    %c3_42 = arith.constant 3 : index
    %c0_43 = arith.constant 0 : index
    %c3_44 = arith.constant 3 : index
    %c0_45 = arith.constant 0 : index
    %31 = vector.load %arg12[%c0_40, %c1_41, %c3_42, %c0_43, %c3_44, %c0_45] : memref<2x2x9x2x9x32xf32, #tpu.memory_space<vmem>>, vector<1x1x1x1x4x32xf32>
    %32 = vector.shape_cast %31 : vector<1x1x1x1x4x32xf32> to vector<4x32xf32>
    %33 = vector.shape_cast %30 : vector<4x32xf32> to vector<1x1x1x1x4x32xf32>
    tpu.vector_store %arg12[%c0_40, %c1_41, %c3_42, %c0_43, %c3_44, %c0_45], %33 {strides = array<i32>} : memref<2x2x9x2x9x32xf32, #tpu.memory_space<vmem>>, vector<1x1x1x1x4x32xf32>,
    %34 = vector.extract_strided_slice %7 {offsets = [24, 0], sizes = [4, 32], strides = [1, 1]} : vector<128x32xf32> to vector<4x32xf32>
    %c0_46 = arith.constant 0 : index
    %c0_47 = arith.constant 0 : index
    %c4 = arith.constant 4 : index
    %c1_48 = arith.constant 1 : index
    %c2_49 = arith.constant 2 : index
    %c0_50 = arith.constant 0 : index
    %35 = vector.load %arg12[%c0_46, %c0_47, %c4, %c1_48, %c2_49, %c0_50] : memref<2x2x9x2x9x32xf32, #tpu.memory_space<vmem>>, vector<1x1x1x1x4x32xf32>
    %36 = vector.shape_cast %35 : vector<1x1x1x1x4x32xf32> to vector<4x32xf32>
    %37 = vector.shape_cast %34 : vector<4x32xf32> to vector<1x1x1x1x4x32xf32>
    tpu.vector_store %arg12[%c0_46, %c0_47, %c4, %c1_48, %c2_49, %c0_50], %37 {strides = array<i32>} : memref<2x2x9x2x9x32xf32, #tpu.memory_space<vmem>>, vector<1x1x1x1x4x32xf32>,
    %38 = vector.extract_strided_slice %7 {offsets = [28, 0], sizes = [4, 32], strides = [1, 1]} : vector<128x32xf32> to vector<4x32xf32>
    %c0_51 = arith.constant 0 : index
    %c0_52 = arith.constant 0 : index
    %c4_53 = arith.constant 4 : index
    %c0_54 = arith.constant 0 : index
    %c3_55 = arith.constant 3 : index
    %c0_56 = arith.constant 0 : index
    %39 = vector.load %arg12[%c0_51, %c0_52, %c4_53, %c0_54, %c3_55, %c0_56] : memref<2x2x9x2x9x32xf32, #tpu.memory_space<vmem>>, vector<1x1x1x1x4x32xf32>
    %40 = vector.shape_cast %39 : vector<1x1x1x1x4x32xf32> to vector<4x32xf32>
    %41 = vector.shape_cast %38 : vector<4x32xf32> to vector<1x1x1x1x4x32xf32>
    tpu.vector_store %arg12[%c0_51, %c0_52, %c4_53, %c0_54, %c3_55, %c0_56], %41 {strides = array<i32>} : memref<2x2x9x2x9x32xf32, #tpu.memory_space<vmem>>, vector<1x1x1x1x4x32xf32>,
    %42 = vector.extract_strided_slice %7 {offsets = [32, 0], sizes = [4, 32], strides = [1, 1]} : vector<128x32xf32> to vector<4x32xf32>
    %c0_57 = arith.constant 0 : index
    %c1_58 = arith.constant 1 : index
    %c4_59 = arith.constant 4 : index
    %c1_60 = arith.constant 1 : index
    %c2_61 = arith.constant 2 : index
    %c0_62 = arith.constant 0 : index
    %43 = vector.load %arg12[%c0_57, %c1_58, %c4_59, %c1_60, %c2_61, %c0_62] : memref<2x2x9x2x9x32xf32, #tpu.memory_space<vmem>>, vector<1x1x1x1x4x32xf32>
    %44 = vector.shape_cast %43 : vector<1x1x1x1x4x32xf32> to vector<4x32xf32>
    %45 = vector.shape_cast %42 : vector<4x32xf32> to vector<1x1x1x1x4x32xf32>
    tpu.vector_store %arg12[%c0_57, %c1_58, %c4_59, %c1_60, %c2_61, %c0_62], %45 {strides = array<i32>} : memref<2x2x9x2x9x32xf32, #tpu.memory_space<vmem>>, vector<1x1x1x1x4x32xf32>,
    %46 = vector.extract_strided_slice %7 {offsets = [36, 0], sizes = [4, 32], strides = [1, 1]} : vector<128x32xf32> to vector<4x32xf32>
    %c0_63 = arith.constant 0 : index
    %c1_64 = arith.constant 1 : index
    %c4_65 = arith.constant 4 : index
    %c0_66 = arith.constant 0 : index
    %c3_67 = arith.constant 3 : index
    %c0_68 = arith.constant 0 : index
    %47 = vector.load %arg12[%c0_63, %c1_64, %c4_65, %c0_66, %c3_67, %c0_68] : memref<2x2x9x2x9x32xf32, #tpu.memory_space<vmem>>, vector<1x1x1x1x4x32xf32>
    %48 = vector.shape_cast %47 : vector<1x1x1x1x4x32xf32> to vector<4x32xf32>
    %49 = vector.shape_cast %46 : vector<4x32xf32> to vector<1x1x1x1x4x32xf32>
    tpu.vector_store %arg12[%c0_63, %c1_64, %c4_65, %c0_66, %c3_67, %c0_68], %49 {strides = array<i32>} : memref<2x2x9x2x9x32xf32, #tpu.memory_space<vmem>>, vector<1x1x1x1x4x32xf32>,
    %50 = vector.extract_strided_slice %7 {offsets = [40, 0], sizes = [4, 32], strides = [1, 1]} : vector<128x32xf32> to vector<4x32xf32>
    %c0_69 = arith.constant 0 : index
    %c0_70 = arith.constant 0 : index
    %c5 = arith.constant 5 : index
    %c1_71 = arith.constant 1 : index
    %c2_72 = arith.constant 2 : index
    %c0_73 = arith.constant 0 : index
    %51 = vector.load %arg12[%c0_69, %c0_70, %c5, %c1_71, %c2_72, %c0_73] : memref<2x2x9x2x9x32xf32, #tpu.memory_space<vmem>>, vector<1x1x1x1x4x32xf32>
    %52 = vector.shape_cast %51 : vector<1x1x1x1x4x32xf32> to vector<4x32xf32>
    %53 = vector.shape_cast %50 : vector<4x32xf32> to vector<1x1x1x1x4x32xf32>
    tpu.vector_store %arg12[%c0_69, %c0_70, %c5, %c1_71, %c2_72, %c0_73], %53 {strides = array<i32>} : memref<2x2x9x2x9x32xf32, #tpu.memory_space<vmem>>, vector<1x1x1x1x4x32xf32>,
    %54 = vector.extract_strided_slice %7 {offsets = [44, 0], sizes = [4, 32], strides = [1, 1]} : vector<128x32xf32> to vector<4x32xf32>
    %c0_74 = arith.constant 0 : index
    %c0_75 = arith.constant 0 : index
    %c5_76 = arith.constant 5 : index
    %c0_77 = arith.constant 0 : index
    %c3_78 = arith.constant 3 : index
    %c0_79 = arith.constant 0 : index
    %55 = vector.load %arg12[%c0_74, %c0_75, %c5_76, %c0_77, %c3_78, %c0_79] : memref<2x2x9x2x9x32xf32, #tpu.memory_space<vmem>>, vector<1x1x1x1x4x32xf32>
    %56 = vector.shape_cast %55 : vector<1x1x1x1x4x32xf32> to vector<4x32xf32>
    %57 = vector.shape_cast %54 : vector<4x32xf32> to vector<1x1x1x1x4x32xf32>
    tpu.vector_store %arg12[%c0_74, %c0_75, %c5_76, %c0_77, %c3_78, %c0_79], %57 {strides = array<i32>} : memref<2x2x9x2x9x32xf32, #tpu.memory_space<vmem>>, vector<1x1x1x1x4x32xf32>,
    %58 = vector.extract_strided_slice %7 {offsets = [48, 0], sizes = [4, 32], strides = [1, 1]} : vector<128x32xf32> to vector<4x32xf32>
    %c0_80 = arith.constant 0 : index
    %c1_81 = arith.constant 1 : index
    %c5_82 = arith.constant 5 : index
    %c1_83 = arith.constant 1 : index
    %c2_84 = arith.constant 2 : index
    %c0_85 = arith.constant 0 : index
    %59 = vector.load %arg12[%c0_80, %c1_81, %c5_82, %c1_83, %c2_84, %c0_85] : memref<2x2x9x2x9x32xf32, #tpu.memory_space<vmem>>, vector<1x1x1x1x4x32xf32>
    %60 = vector.shape_cast %59 : vector<1x1x1x1x4x32xf32> to vector<4x32xf32>
    %61 = vector.shape_cast %58 : vector<4x32xf32> to vector<1x1x1x1x4x32xf32>
    tpu.vector_store %arg12[%c0_80, %c1_81, %c5_82, %c1_83, %c2_84, %c0_85], %61 {strides = array<i32>} : memref<2x2x9x2x9x32xf32, #tpu.memory_space<vmem>>, vector<1x1x1x1x4x32xf32>,
    %62 = vector.extract_strided_slice %7 {offsets = [52, 0], sizes = [4, 32], strides = [1, 1]} : vector<128x32xf32> to vector<4x32xf32>
    %c0_86 = arith.constant 0 : index
    %c1_87 = arith.constant 1 : index
    %c5_88 = arith.constant 5 : index
    %c0_89 = arith.constant 0 : index
    %c3_90 = arith.constant 3 : index
    %c0_91 = arith.constant 0 : index
    %63 = vector.load %arg12[%c0_86, %c1_87, %c5_88, %c0_89, %c3_90, %c0_91] : memref<2x2x9x2x9x32xf32, #tpu.memory_space<vmem>>, vector<1x1x1x1x4x32xf32>
    %64 = vector.shape_cast %63 : vector<1x1x1x1x4x32xf32> to vector<4x32xf32>
    %65 = vector.shape_cast %62 : vector<4x32xf32> to vector<1x1x1x1x4x32xf32>
    tpu.vector_store %arg12[%c0_86, %c1_87, %c5_88, %c0_89, %c3_90, %c0_91], %65 {strides = array<i32>} : memref<2x2x9x2x9x32xf32, #tpu.memory_space<vmem>>, vector<1x1x1x1x4x32xf32>,
    %66 = vector.extract_strided_slice %7 {offsets = [56, 0], sizes = [4, 32], strides = [1, 1]} : vector<128x32xf32> to vector<4x32xf32>
    %c0_92 = arith.constant 0 : index
    %c0_93 = arith.constant 0 : index
    %c6 = arith.constant 6 : index
    %c1_94 = arith.constant 1 : index
    %c2_95 = arith.constant 2 : index
    %c0_96 = arith.constant 0 : index
    %67 = vector.load %arg12[%c0_92, %c0_93, %c6, %c1_94, %c2_95, %c0_96] : memref<2x2x9x2x9x32xf32, #tpu.memory_space<vmem>>, vector<1x1x1x1x4x32xf32>
    %68 = vector.shape_cast %67 : vector<1x1x1x1x4x32xf32> to vector<4x32xf32>
    %69 = vector.shape_cast %66 : vector<4x32xf32> to vector<1x1x1x1x4x32xf32>
    tpu.vector_store %arg12[%c0_92, %c0_93, %c6, %c1_94, %c2_95, %c0_96], %69 {strides = array<i32>} : memref<2x2x9x2x9x32xf32, #tpu.memory_space<vmem>>, vector<1x1x1x1x4x32xf32>,
    %70 = vector.extract_strided_slice %7 {offsets = [60, 0], sizes = [4, 32], strides = [1, 1]} : vector<128x32xf32> to vector<4x32xf32>
    %c0_97 = arith.constant 0 : index
    %c0_98 = arith.constant 0 : index
    %c6_99 = arith.constant 6 : index
    %c0_100 = arith.constant 0 : index
    %c3_101 = arith.constant 3 : index
    %c0_102 = arith.constant 0 : index
    %71 = vector.load %arg12[%c0_97, %c0_98, %c6_99, %c0_100, %c3_101, %c0_102] : memref<2x2x9x2x9x32xf32, #tpu.memory_space<vmem>>, vector<1x1x1x1x4x32xf32>
    %72 = vector.shape_cast %71 : vector<1x1x1x1x4x32xf32> to vector<4x32xf32>
    %73 = vector.shape_cast %70 : vector<4x32xf32> to vector<1x1x1x1x4x32xf32>
    tpu.vector_store %arg12[%c0_97, %c0_98, %c6_99, %c0_100, %c3_101, %c0_102], %73 {strides = array<i32>} : memref<2x2x9x2x9x32xf32, #tpu.memory_space<vmem>>, vector<1x1x1x1x4x32xf32>,
    %74 = vector.extract_strided_slice %7 {offsets = [64, 0], sizes = [4, 32], strides = [1, 1]} : vector<128x32xf32> to vector<4x32xf32>
    %c1_103 = arith.constant 1 : index
    %c1_104 = arith.constant 1 : index
    %c2_105 = arith.constant 2 : index
    %c1_106 = arith.constant 1 : index
    %c2_107 = arith.constant 2 : index
    %c0_108 = arith.constant 0 : index
    %75 = vector.load %arg12[%c1_103, %c1_104, %c2_105, %c1_106, %c2_107, %c0_108] : memref<2x2x9x2x9x32xf32, #tpu.memory_space<vmem>>, vector<1x1x1x1x4x32xf32>
    %76 = vector.shape_cast %75 : vector<1x1x1x1x4x32xf32> to vector<4x32xf32>
    %77 = vector.shape_cast %74 : vector<4x32xf32> to vector<1x1x1x1x4x32xf32>
    tpu.vector_store %arg12[%c1_103, %c1_104, %c2_105, %c1_106, %c2_107, %c0_108], %77 {strides = array<i32>} : memref<2x2x9x2x9x32xf32, #tpu.memory_space<vmem>>, vector<1x1x1x1x4x32xf32>,
    %78 = vector.extract_strided_slice %7 {offsets = [68, 0], sizes = [4, 32], strides = [1, 1]} : vector<128x32xf32> to vector<4x32xf32>
    %c1_109 = arith.constant 1 : index
    %c1_110 = arith.constant 1 : index
    %c2_111 = arith.constant 2 : index
    %c0_112 = arith.constant 0 : index
    %c3_113 = arith.constant 3 : index
    %c0_114 = arith.constant 0 : index
    %79 = vector.load %arg12[%c1_109, %c1_110, %c2_111, %c0_112, %c3_113, %c0_114] : memref<2x2x9x2x9x32xf32, #tpu.memory_space<vmem>>, vector<1x1x1x1x4x32xf32>
    %80 = vector.shape_cast %79 : vector<1x1x1x1x4x32xf32> to vector<4x32xf32>
    %81 = vector.shape_cast %78 : vector<4x32xf32> to vector<1x1x1x1x4x32xf32>
    tpu.vector_store %arg12[%c1_109, %c1_110, %c2_111, %c0_112, %c3_113, %c0_114], %81 {strides = array<i32>} : memref<2x2x9x2x9x32xf32, #tpu.memory_space<vmem>>, vector<1x1x1x1x4x32xf32>,
    %82 = vector.extract_strided_slice %7 {offsets = [72, 0], sizes = [4, 32], strides = [1, 1]} : vector<128x32xf32> to vector<4x32xf32>
    %c1_115 = arith.constant 1 : index
    %c0_116 = arith.constant 0 : index
    %c3_117 = arith.constant 3 : index
    %c1_118 = arith.constant 1 : index
    %c2_119 = arith.constant 2 : index
    %c0_120 = arith.constant 0 : index
    %83 = vector.load %arg12[%c1_115, %c0_116, %c3_117, %c1_118, %c2_119, %c0_120] : memref<2x2x9x2x9x32xf32, #tpu.memory_space<vmem>>, vector<1x1x1x1x4x32xf32>
    %84 = vector.shape_cast %83 : vector<1x1x1x1x4x32xf32> to vector<4x32xf32>
    %85 = vector.shape_cast %82 : vector<4x32xf32> to vector<1x1x1x1x4x32xf32>
    tpu.vector_store %arg12[%c1_115, %c0_116, %c3_117, %c1_118, %c2_119, %c0_120], %85 {strides = array<i32>} : memref<2x2x9x2x9x32xf32, #tpu.memory_space<vmem>>, vector<1x1x1x1x4x32xf32>,
    %86 = vector.extract_strided_slice %7 {offsets = [76, 0], sizes = [4, 32], strides = [1, 1]} : vector<128x32xf32> to vector<4x32xf32>
    %c1_121 = arith.constant 1 : index
    %c0_122 = arith.constant 0 : index
    %c3_123 = arith.constant 3 : index
    %c0_124 = arith.constant 0 : index
    %c3_125 = arith.constant 3 : index
    %c0_126 = arith.constant 0 : index
    %87 = vector.load %arg12[%c1_121, %c0_122, %c3_123, %c0_124, %c3_125, %c0_126] : memref<2x2x9x2x9x32xf32, #tpu.memory_space<vmem>>, vector<1x1x1x1x4x32xf32>
    %88 = vector.shape_cast %87 : vector<1x1x1x1x4x32xf32> to vector<4x32xf32>
    %89 = vector.shape_cast %86 : vector<4x32xf32> to vector<1x1x1x1x4x32xf32>
    tpu.vector_store %arg12[%c1_121, %c0_122, %c3_123, %c0_124, %c3_125, %c0_126], %89 {strides = array<i32>} : memref<2x2x9x2x9x32xf32, #tpu.memory_space<vmem>>, vector<1x1x1x1x4x32xf32>,
    %90 = vector.extract_strided_slice %7 {offsets = [80, 0], sizes = [4, 32], strides = [1, 1]} : vector<128x32xf32> to vector<4x32xf32>
    %c1_127 = arith.constant 1 : index
    %c1_128 = arith.constant 1 : index
    %c3_129 = arith.constant 3 : index
    %c1_130 = arith.constant 1 : index
    %c2_131 = arith.constant 2 : index
    %c0_132 = arith.constant 0 : index
    %91 = vector.load %arg12[%c1_127, %c1_128, %c3_129, %c1_130, %c2_131, %c0_132] : memref<2x2x9x2x9x32xf32, #tpu.memory_space<vmem>>, vector<1x1x1x1x4x32xf32>
    %92 = vector.shape_cast %91 : vector<1x1x1x1x4x32xf32> to vector<4x32xf32>
    %93 = vector.shape_cast %90 : vector<4x32xf32> to vector<1x1x1x1x4x32xf32>
    tpu.vector_store %arg12[%c1_127, %c1_128, %c3_129, %c1_130, %c2_131, %c0_132], %93 {strides = array<i32>} : memref<2x2x9x2x9x32xf32, #tpu.memory_space<vmem>>, vector<1x1x1x1x4x32xf32>,
    %94 = vector.extract_strided_slice %7 {offsets = [84, 0], sizes = [4, 32], strides = [1, 1]} : vector<128x32xf32> to vector<4x32xf32>
    %c1_133 = arith.constant 1 : index
    %c1_134 = arith.constant 1 : index
    %c3_135 = arith.constant 3 : index
    %c0_136 = arith.constant 0 : index
    %c3_137 = arith.constant 3 : index
    %c0_138 = arith.constant 0 : index
    %95 = vector.load %arg12[%c1_133, %c1_134, %c3_135, %c0_136, %c3_137, %c0_138] : memref<2x2x9x2x9x32xf32, #tpu.memory_space<vmem>>, vector<1x1x1x1x4x32xf32>
    %96 = vector.shape_cast %95 : vector<1x1x1x1x4x32xf32> to vector<4x32xf32>
    %97 = vector.shape_cast %94 : vector<4x32xf32> to vector<1x1x1x1x4x32xf32>
    tpu.vector_store %arg12[%c1_133, %c1_134, %c3_135, %c0_136, %c3_137, %c0_138], %97 {strides = array<i32>} : memref<2x2x9x2x9x32xf32, #tpu.memory_space<vmem>>, vector<1x1x1x1x4x32xf32>,
    %98 = vector.extract_strided_slice %7 {offsets = [88, 0], sizes = [4, 32], strides = [1, 1]} : vector<128x32xf32> to vector<4x32xf32>
    %c1_139 = arith.constant 1 : index
    %c0_140 = arith.constant 0 : index
    %c4_141 = arith.constant 4 : index
    %c1_142 = arith.constant 1 : index
    %c2_143 = arith.constant 2 : index
    %c0_144 = arith.constant 0 : index
    %99 = vector.load %arg12[%c1_139, %c0_140, %c4_141, %c1_142, %c2_143, %c0_144] : memref<2x2x9x2x9x32xf32, #tpu.memory_space<vmem>>, vector<1x1x1x1x4x32xf32>
    %100 = vector.shape_cast %99 : vector<1x1x1x1x4x32xf32> to vector<4x32xf32>
    %101 = vector.shape_cast %98 : vector<4x32xf32> to vector<1x1x1x1x4x32xf32>
    tpu.vector_store %arg12[%c1_139, %c0_140, %c4_141, %c1_142, %c2_143, %c0_144], %101 {strides = array<i32>} : memref<2x2x9x2x9x32xf32, #tpu.memory_space<vmem>>, vector<1x1x1x1x4x32xf32>,
    %102 = vector.extract_strided_slice %7 {offsets = [92, 0], sizes = [4, 32], strides = [1, 1]} : vector<128x32xf32> to vector<4x32xf32>
    %c1_145 = arith.constant 1 : index
    %c0_146 = arith.constant 0 : index
    %c4_147 = arith.constant 4 : index
    %c0_148 = arith.constant 0 : index
    %c3_149 = arith.constant 3 : index
    %c0_150 = arith.constant 0 : index
    %103 = vector.load %arg12[%c1_145, %c0_146, %c4_147, %c0_148, %c3_149, %c0_150] : memref<2x2x9x2x9x32xf32, #tpu.memory_space<vmem>>, vector<1x1x1x1x4x32xf32>
    %104 = vector.shape_cast %103 : vector<1x1x1x1x4x32xf32> to vector<4x32xf32>
    %105 = vector.shape_cast %102 : vector<4x32xf32> to vector<1x1x1x1x4x32xf32>
    tpu.vector_store %arg12[%c1_145, %c0_146, %c4_147, %c0_148, %c3_149, %c0_150], %105 {strides = array<i32>} : memref<2x2x9x2x9x32xf32, #tpu.memory_space<vmem>>, vector<1x1x1x1x4x32xf32>,
    %106 = vector.extract_strided_slice %7 {offsets = [96, 0], sizes = [4, 32], strides = [1, 1]} : vector<128x32xf32> to vector<4x32xf32>
    %c1_151 = arith.constant 1 : index
    %c1_152 = arith.constant 1 : index
    %c4_153 = arith.constant 4 : index
    %c1_154 = arith.constant 1 : index
    %c2_155 = arith.constant 2 : index
    %c0_156 = arith.constant 0 : index
    %107 = vector.load %arg12[%c1_151, %c1_152, %c4_153, %c1_154, %c2_155, %c0_156] : memref<2x2x9x2x9x32xf32, #tpu.memory_space<vmem>>, vector<1x1x1x1x4x32xf32>
    %108 = vector.shape_cast %107 : vector<1x1x1x1x4x32xf32> to vector<4x32xf32>
    %109 = vector.shape_cast %106 : vector<4x32xf32> to vector<1x1x1x1x4x32xf32>
    tpu.vector_store %arg12[%c1_151, %c1_152, %c4_153, %c1_154, %c2_155, %c0_156], %109 {strides = array<i32>} : memref<2x2x9x2x9x32xf32, #tpu.memory_space<vmem>>, vector<1x1x1x1x4x32xf32>,
    %110 = vector.extract_strided_slice %7 {offsets = [100, 0], sizes = [4, 32], strides = [1, 1]} : vector<128x32xf32> to vector<4x32xf32>
    %c1_157 = arith.constant 1 : index
    %c1_158 = arith.constant 1 : index
    %c4_159 = arith.constant 4 : index
    %c0_160 = arith.constant 0 : index
    %c3_161 = arith.constant 3 : index
    %c0_162 = arith.constant 0 : index
    %111 = vector.load %arg12[%c1_157, %c1_158, %c4_159, %c0_160, %c3_161, %c0_162] : memref<2x2x9x2x9x32xf32, #tpu.memory_space<vmem>>, vector<1x1x1x1x4x32xf32>
    %112 = vector.shape_cast %111 : vector<1x1x1x1x4x32xf32> to vector<4x32xf32>
    %113 = vector.shape_cast %110 : vector<4x32xf32> to vector<1x1x1x1x4x32xf32>
    tpu.vector_store %arg12[%c1_157, %c1_158, %c4_159, %c0_160, %c3_161, %c0_162], %113 {strides = array<i32>} : memref<2x2x9x2x9x32xf32, #tpu.memory_space<vmem>>, vector<1x1x1x1x4x32xf32>,
    %114 = vector.extract_strided_slice %7 {offsets = [104, 0], sizes = [4, 32], strides = [1, 1]} : vector<128x32xf32> to vector<4x32xf32>
    %c1_163 = arith.constant 1 : index
    %c0_164 = arith.constant 0 : index
    %c5_165 = arith.constant 5 : index
    %c1_166 = arith.constant 1 : index
    %c2_167 = arith.constant 2 : index
    %c0_168 = arith.constant 0 : index
    %115 = vector.load %arg12[%c1_163, %c0_164, %c5_165, %c1_166, %c2_167, %c0_168] : memref<2x2x9x2x9x32xf32, #tpu.memory_space<vmem>>, vector<1x1x1x1x4x32xf32>
    %116 = vector.shape_cast %115 : vector<1x1x1x1x4x32xf32> to vector<4x32xf32>
    %117 = vector.shape_cast %114 : vector<4x32xf32> to vector<1x1x1x1x4x32xf32>
    tpu.vector_store %arg12[%c1_163, %c0_164, %c5_165, %c1_166, %c2_167, %c0_168], %117 {strides = array<i32>} : memref<2x2x9x2x9x32xf32, #tpu.memory_space<vmem>>, vector<1x1x1x1x4x32xf32>,
    %118 = vector.extract_strided_slice %7 {offsets = [108, 0], sizes = [4, 32], strides = [1, 1]} : vector<128x32xf32> to vector<4x32xf32>
    %c1_169 = arith.constant 1 : index
    %c0_170 = arith.constant 0 : index
    %c5_171 = arith.constant 5 : index
    %c0_172 = arith.constant 0 : index
    %c3_173 = arith.constant 3 : index
    %c0_174 = arith.constant 0 : index
    %119 = vector.load %arg12[%c1_169, %c0_170, %c5_171, %c0_172, %c3_173, %c0_174] : memref<2x2x9x2x9x32xf32, #tpu.memory_space<vmem>>, vector<1x1x1x1x4x32xf32>
    %120 = vector.shape_cast %119 : vector<1x1x1x1x4x32xf32> to vector<4x32xf32>
    %121 = vector.shape_cast %118 : vector<4x32xf32> to vector<1x1x1x1x4x32xf32>
    tpu.vector_store %arg12[%c1_169, %c0_170, %c5_171, %c0_172, %c3_173, %c0_174], %121 {strides = array<i32>} : memref<2x2x9x2x9x32xf32, #tpu.memory_space<vmem>>, vector<1x1x1x1x4x32xf32>,
    %122 = vector.extract_strided_slice %7 {offsets = [112, 0], sizes = [4, 32], strides = [1, 1]} : vector<128x32xf32> to vector<4x32xf32>
    %c1_175 = arith.constant 1 : index
    %c1_176 = arith.constant 1 : index
    %c5_177 = arith.constant 5 : index
    %c1_178 = arith.constant 1 : index
    %c2_179 = arith.constant 2 : index
    %c0_180 = arith.constant 0 : index
    %123 = vector.load %arg12[%c1_175, %c1_176, %c5_177, %c1_178, %c2_179, %c0_180] : memref<2x2x9x2x9x32xf32, #tpu.memory_space<vmem>>, vector<1x1x1x1x4x32xf32>
    %124 = vector.shape_cast %123 : vector<1x1x1x1x4x32xf32> to vector<4x32xf32>
    %125 = vector.shape_cast %122 : vector<4x32xf32> to vector<1x1x1x1x4x32xf32>
    tpu.vector_store %arg12[%c1_175, %c1_176, %c5_177, %c1_178, %c2_179, %c0_180], %125 {strides = array<i32>} : memref<2x2x9x2x9x32xf32, #tpu.memory_space<vmem>>, vector<1x1x1x1x4x32xf32>,
    %126 = vector.extract_strided_slice %7 {offsets = [116, 0], sizes = [4, 32], strides = [1, 1]} : vector<128x32xf32> to vector<4x32xf32>
    %c1_181 = arith.constant 1 : index
    %c1_182 = arith.constant 1 : index
    %c5_183 = arith.constant 5 : index
    %c0_184 = arith.constant 0 : index
    %c3_185 = arith.constant 3 : index
    %c0_186 = arith.constant 0 : index
    %127 = vector.load %arg12[%c1_181, %c1_182, %c5_183, %c0_184, %c3_185, %c0_186] : memref<2x2x9x2x9x32xf32, #tpu.memory_space<vmem>>, vector<1x1x1x1x4x32xf32>
    %128 = vector.shape_cast %127 : vector<1x1x1x1x4x32xf32> to vector<4x32xf32>
    %129 = vector.shape_cast %126 : vector<4x32xf32> to vector<1x1x1x1x4x32xf32>
    tpu.vector_store %arg12[%c1_181, %c1_182, %c5_183, %c0_184, %c3_185, %c0_186], %129 {strides = array<i32>} : memref<2x2x9x2x9x32xf32, #tpu.memory_space<vmem>>, vector<1x1x1x1x4x32xf32>,
    %130 = vector.extract_strided_slice %7 {offsets = [120, 0], sizes = [4, 32], strides = [1, 1]} : vector<128x32xf32> to vector<4x32xf32>
    %c1_187 = arith.constant 1 : index
    %c0_188 = arith.constant 0 : index
    %c6_189 = arith.constant 6 : index
    %c1_190 = arith.constant 1 : index
    %c2_191 = arith.constant 2 : index
    %c0_192 = arith.constant 0 : index
    %131 = vector.load %arg12[%c1_187, %c0_188, %c6_189, %c1_190, %c2_191, %c0_192] : memref<2x2x9x2x9x32xf32, #tpu.memory_space<vmem>>, vector<1x1x1x1x4x32xf32>
    %132 = vector.shape_cast %131 : vector<1x1x1x1x4x32xf32> to vector<4x32xf32>
    %133 = vector.shape_cast %130 : vector<4x32xf32> to vector<1x1x1x1x4x32xf32>
    tpu.vector_store %arg12[%c1_187, %c0_188, %c6_189, %c1_190, %c2_191, %c0_192], %133 {strides = array<i32>} : memref<2x2x9x2x9x32xf32, #tpu.memory_space<vmem>>, vector<1x1x1x1x4x32xf32>,
    %134 = vector.extract_strided_slice %7 {offsets = [124, 0], sizes = [4, 32], strides = [1, 1]} : vector<128x32xf32> to vector<4x32xf32>
    %c1_193 = arith.constant 1 : index
    %c0_194 = arith.constant 0 : index
    %c6_195 = arith.constant 6 : index
    %c0_196 = arith.constant 0 : index
    %c3_197 = arith.constant 3 : index
    %c0_198 = arith.constant 0 : index
    %135 = vector.load %arg12[%c1_193, %c0_194, %c6_195, %c0_196, %c3_197, %c0_198] : memref<2x2x9x2x9x32xf32, #tpu.memory_space<vmem>>, vector<1x1x1x1x4x32xf32>
    %136 = vector.shape_cast %135 : vector<1x1x1x1x4x32xf32> to vector<4x32xf32>
    %137 = vector.shape_cast %134 : vector<4x32xf32> to vector<1x1x1x1x4x32xf32>
    tpu.vector_store %arg12[%c1_193, %c0_194, %c6_195, %c0_196, %c3_197, %c0_198], %137 {strides = array<i32>} : memref<2x2x9x2x9x32xf32, #tpu.memory_space<vmem>>, vector<1x1x1x1x4x32xf32>,
    %c0_199 = arith.constant 0 : index
    %c0_200 = arith.constant 0 : index
    %c0_201 = arith.constant 0 : index
    %c0_202 = arith.constant 0 : index
    %c0_203 = arith.constant 0 : index
    %c0_204 = arith.constant 0 : index
    %138 = vector.load %arg12[%c0_199, %c0_200, %c0_201, %c0_202, %c0_203, %c0_204] : memref<2x2x9x2x9x32xf32, #tpu.memory_space<vmem>>, vector<2x1x8x1x8x32xf32>
    %139 = vector.shape_cast %138 : vector<2x1x8x1x8x32xf32> to vector<2x8x8x32xf32>
    %140 = vector.shape_cast %139 : vector<2x8x8x32xf32> to vector<128x32xf32>
    %c0_205 = arith.constant 0 : index
    %c0_206 = arith.constant 0 : index
    %c0_207 = arith.constant 0 : index
    %c1_208 = arith.constant 1 : index
    %c0_209 = arith.constant 0 : index
    %c0_210 = arith.constant 0 : index
    %141 = vector.load %arg12[%c0_205, %c0_206, %c0_207, %c1_208, %c0_209, %c0_210] : memref<2x2x9x2x9x32xf32, #tpu.memory_space<vmem>>, vector<2x1x8x1x8x32xf32>
    %142 = vector.shape_cast %141 : vector<2x1x8x1x8x32xf32> to vector<2x8x8x32xf32>
    %143 = vector.shape_cast %142 : vector<2x8x8x32xf32> to vector<128x32xf32>
    %c0_211 = arith.constant 0 : index
    %c0_212 = arith.constant 0 : index
    %c0_213 = arith.constant 0 : index
    %c0_214 = arith.constant 0 : index
    %c1_215 = arith.constant 1 : index
    %c0_216 = arith.constant 0 : index
    %144 = vector.load %arg12[%c0_211, %c0_212, %c0_213, %c0_214, %c1_215, %c0_216] : memref<2x2x9x2x9x32xf32, #tpu.memory_space<vmem>>, vector<2x1x8x1x8x32xf32>
    %145 = vector.shape_cast %144 : vector<2x1x8x1x8x32xf32> to vector<2x8x8x32xf32>
    %146 = vector.shape_cast %145 : vector<2x8x8x32xf32> to vector<128x32xf32>
    %c0_217 = arith.constant 0 : index
    %c0_218 = arith.constant 0 : index
    %c0_219 = arith.constant 0 : index
    %c1_220 = arith.constant 1 : index
    %c1_221 = arith.constant 1 : index
    %c0_222 = arith.constant 0 : index
    %147 = vector.load %arg12[%c0_217, %c0_218, %c0_219, %c1_220, %c1_221, %c0_222] : memref<2x2x9x2x9x32xf32, #tpu.memory_space<vmem>>, vector<2x1x8x1x8x32xf32>
    %148 = vector.shape_cast %147 : vector<2x1x8x1x8x32xf32> to vector<2x8x8x32xf32>
    %149 = vector.shape_cast %148 : vector<2x8x8x32xf32> to vector<128x32xf32>
    %c0_223 = arith.constant 0 : index
    %c1_224 = arith.constant 1 : index
    %c0_225 = arith.constant 0 : index
    %c0_226 = arith.constant 0 : index
    %c0_227 = arith.constant 0 : index
    %c0_228 = arith.constant 0 : index
    %150 = vector.load %arg12[%c0_223, %c1_224, %c0_225, %c0_226, %c0_227, %c0_228] : memref<2x2x9x2x9x32xf32, #tpu.memory_space<vmem>>, vector<2x1x8x1x8x32xf32>
    %151 = vector.shape_cast %150 : vector<2x1x8x1x8x32xf32> to vector<2x8x8x32xf32>
    %152 = vector.shape_cast %151 : vector<2x8x8x32xf32> to vector<128x32xf32>
    %c0_229 = arith.constant 0 : index
    %c1_230 = arith.constant 1 : index
    %c0_231 = arith.constant 0 : index
    %c1_232 = arith.constant 1 : index
    %c0_233 = arith.constant 0 : index
    %c0_234 = arith.constant 0 : index
    %153 = vector.load %arg12[%c0_229, %c1_230, %c0_231, %c1_232, %c0_233, %c0_234] : memref<2x2x9x2x9x32xf32, #tpu.memory_space<vmem>>, vector<2x1x8x1x8x32xf32>
    %154 = vector.shape_cast %153 : vector<2x1x8x1x8x32xf32> to vector<2x8x8x32xf32>
    %155 = vector.shape_cast %154 : vector<2x8x8x32xf32> to vector<128x32xf32>
    %c0_235 = arith.constant 0 : index
    %c1_236 = arith.constant 1 : index
    %c0_237 = arith.constant 0 : index
    %c0_238 = arith.constant 0 : index
    %c1_239 = arith.constant 1 : index
    %c0_240 = arith.constant 0 : index
    %156 = vector.load %arg12[%c0_235, %c1_236, %c0_237, %c0_238, %c1_239, %c0_240] : memref<2x2x9x2x9x32xf32, #tpu.memory_space<vmem>>, vector<2x1x8x1x8x32xf32>
    %157 = vector.shape_cast %156 : vector<2x1x8x1x8x32xf32> to vector<2x8x8x32xf32>
    %158 = vector.shape_cast %157 : vector<2x8x8x32xf32> to vector<128x32xf32>
    %c0_241 = arith.constant 0 : index
    %c1_242 = arith.constant 1 : index
    %c0_243 = arith.constant 0 : index
    %c1_244 = arith.constant 1 : index
    %c1_245 = arith.constant 1 : index
    %c0_246 = arith.constant 0 : index
    %159 = vector.load %arg12[%c0_241, %c1_242, %c0_243, %c1_244, %c1_245, %c0_246] : memref<2x2x9x2x9x32xf32, #tpu.memory_space<vmem>>, vector<2x1x8x1x8x32xf32>
    %160 = vector.shape_cast %159 : vector<2x1x8x1x8x32xf32> to vector<2x8x8x32xf32>
    %161 = vector.shape_cast %160 : vector<2x8x8x32xf32> to vector<128x32xf32>
    %c0_247 = arith.constant 0 : index
    %c0_248 = arith.constant 0 : index
    %c1_249 = arith.constant 1 : index
    %c0_250 = arith.constant 0 : index
    %c0_251 = arith.constant 0 : index
    %c0_252 = arith.constant 0 : index
    %162 = vector.load %arg12[%c0_247, %c0_248, %c1_249, %c0_250, %c0_251, %c0_252] : memref<2x2x9x2x9x32xf32, #tpu.memory_space<vmem>>, vector<2x1x8x1x8x32xf32>
    %163 = vector.shape_cast %162 : vector<2x1x8x1x8x32xf32> to vector<2x8x8x32xf32>
    %164 = vector.shape_cast %163 : vector<2x8x8x32xf32> to vector<128x32xf32>
    %c0_253 = arith.constant 0 : index
    %c0_254 = arith.constant 0 : index
    %c1_255 = arith.constant 1 : index
    %c1_256 = arith.constant 1 : index
    %c0_257 = arith.constant 0 : index
    %c0_258 = arith.constant 0 : index
    %165 = vector.load %arg12[%c0_253, %c0_254, %c1_255, %c1_256, %c0_257, %c0_258] : memref<2x2x9x2x9x32xf32, #tpu.memory_space<vmem>>, vector<2x1x8x1x8x32xf32>
    %166 = vector.shape_cast %165 : vector<2x1x8x1x8x32xf32> to vector<2x8x8x32xf32>
    %167 = vector.shape_cast %166 : vector<2x8x8x32xf32> to vector<128x32xf32>
    %c0_259 = arith.constant 0 : index
    %c0_260 = arith.constant 0 : index
    %c1_261 = arith.constant 1 : index
    %c0_262 = arith.constant 0 : index
    %c1_263 = arith.constant 1 : index
    %c0_264 = arith.constant 0 : index
    %168 = vector.load %arg12[%c0_259, %c0_260, %c1_261, %c0_262, %c1_263, %c0_264] : memref<2x2x9x2x9x32xf32, #tpu.memory_space<vmem>>, vector<2x1x8x1x8x32xf32>
    %169 = vector.shape_cast %168 : vector<2x1x8x1x8x32xf32> to vector<2x8x8x32xf32>
    %170 = vector.shape_cast %169 : vector<2x8x8x32xf32> to vector<128x32xf32>
    %c0_265 = arith.constant 0 : index
    %c0_266 = arith.constant 0 : index
    %c1_267 = arith.constant 1 : index
    %c1_268 = arith.constant 1 : index
    %c1_269 = arith.constant 1 : index
    %c0_270 = arith.constant 0 : index
    %171 = vector.load %arg12[%c0_265, %c0_266, %c1_267, %c1_268, %c1_269, %c0_270] : memref<2x2x9x2x9x32xf32, #tpu.memory_space<vmem>>, vector<2x1x8x1x8x32xf32>
    %172 = vector.shape_cast %171 : vector<2x1x8x1x8x32xf32> to vector<2x8x8x32xf32>
    %173 = vector.shape_cast %172 : vector<2x8x8x32xf32> to vector<128x32xf32>
    %c0_271 = arith.constant 0 : index
    %c1_272 = arith.constant 1 : index
    %c1_273 = arith.constant 1 : index
    %c0_274 = arith.constant 0 : index
    %c0_275 = arith.constant 0 : index
    %c0_276 = arith.constant 0 : index
    %174 = vector.load %arg12[%c0_271, %c1_272, %c1_273, %c0_274, %c0_275, %c0_276] : memref<2x2x9x2x9x32xf32, #tpu.memory_space<vmem>>, vector<2x1x8x1x8x32xf32>
    %175 = vector.shape_cast %174 : vector<2x1x8x1x8x32xf32> to vector<2x8x8x32xf32>
    %176 = vector.shape_cast %175 : vector<2x8x8x32xf32> to vector<128x32xf32>
    %c0_277 = arith.constant 0 : index
    %c1_278 = arith.constant 1 : index
    %c1_279 = arith.constant 1 : index
    %c1_280 = arith.constant 1 : index
    %c0_281 = arith.constant 0 : index
    %c0_282 = arith.constant 0 : index
    %177 = vector.load %arg12[%c0_277, %c1_278, %c1_279, %c1_280, %c0_281, %c0_282] : memref<2x2x9x2x9x32xf32, #tpu.memory_space<vmem>>, vector<2x1x8x1x8x32xf32>
    %178 = vector.shape_cast %177 : vector<2x1x8x1x8x32xf32> to vector<2x8x8x32xf32>
    %179 = vector.shape_cast %178 : vector<2x8x8x32xf32> to vector<128x32xf32>
    %c0_283 = arith.constant 0 : index
    %c1_284 = arith.constant 1 : index
    %c1_285 = arith.constant 1 : index
    %c0_286 = arith.constant 0 : index
    %c1_287 = arith.constant 1 : index
    %c0_288 = arith.constant 0 : index
    %180 = vector.load %arg12[%c0_283, %c1_284, %c1_285, %c0_286, %c1_287, %c0_288] : memref<2x2x9x2x9x32xf32, #tpu.memory_space<vmem>>, vector<2x1x8x1x8x32xf32>
    %181 = vector.shape_cast %180 : vector<2x1x8x1x8x32xf32> to vector<2x8x8x32xf32>
    %182 = vector.shape_cast %181 : vector<2x8x8x32xf32> to vector<128x32xf32>
    %c0_289 = arith.constant 0 : index
    %c1_290 = arith.constant 1 : index
    %c1_291 = arith.constant 1 : index
    %c1_292 = arith.constant 1 : index
    %c1_293 = arith.constant 1 : index
    %c0_294 = arith.constant 0 : index
    %183 = vector.load %arg12[%c0_289, %c1_290, %c1_291, %c1_292, %c1_293, %c0_294] : memref<2x2x9x2x9x32xf32, #tpu.memory_space<vmem>>, vector<2x1x8x1x8x32xf32>
    %184 = vector.shape_cast %183 : vector<2x1x8x1x8x32xf32> to vector<2x8x8x32xf32>
    %185 = vector.shape_cast %184 : vector<2x8x8x32xf32> to vector<128x32xf32>
    %186 = tpu.concatenate %140, %143, %146, %149, %152, %155, %158, %161, %164, %167, %170, %173, %176, %179, %182, %185 in 1 : vector<128x32xf32>, vector<128x32xf32>, vector<128x32xf32>, vector<128x32xf32>, vector<128x32xf32>, vector<128x32xf32>, vector<128x32xf32>, vector<128x32xf32>, vector<128x32xf32>, vector<128x32xf32>, vector<128x32xf32>, vector<128x32xf32>, vector<128x32xf32>, vector<128x32xf32>, vector<128x32xf32>, vector<128x32xf32> -> vector<128x512xf32>
    %c0_295 = arith.constant 0 : index
    %c0_296 = arith.constant 0 : index
    %187 = vector.load %arg3[%c0_295, %c0_296] : memref<512x64xf32, #tpu.memory_space<vmem>>, vector<512x64xf32>
    %cst_297 = arith.constant dense<0.000000e+00> : vector<128x64xf32>
    %188 = tpu.matmul %186, %187, %cst_297 {dimension_numbers = #tpu.dot_dimension_numbers<[1], [0], [0], [1], [0, 0, 1, 1], [], []>} : vector<128x512xf32>, vector<512x64xf32>, vector<128x64xf32> -> vector<128x64xf32>
    %c0_298 = arith.constant 0 : index
    %c0_299 = arith.constant 0 : index
    %189 = vector.load %arg4[%c0_298, %c0_299] : memref<1x64xf32, #tpu.memory_space<vmem>>, vector<1x64xf32>
    %190 = vector.broadcast %189 : vector<1x64xf32> to vector<128x64xf32>
    %191 = arith.addf %188, %190 : vector<128x64xf32>
    %cst_300 = arith.constant 0.000000e+00 : f32
    %192 = vector.broadcast %cst_300 : f32 to vector<128x64xf32>
    %193 = arith.maximumf %191, %192 : vector<128x64xf32>
    %cst_301 = arith.constant 0.000000e+00 : f32
    %194 = vector.broadcast %cst_301 : f32 to vector<2x10x10x64xf32>
    %c0_302 = arith.constant 0 : index
    %c0_303 = arith.constant 0 : index
    %c0_304 = arith.constant 0 : index
    %c0_305 = arith.constant 0 : index
    %195 = vector.load %arg13[%c0_302, %c0_303, %c0_304, %c0_305] : memref<2x10x10x64xf32, #tpu.memory_space<vmem>>, vector<2x10x10x64xf32>
    tpu.vector_store %arg13[%c0_302, %c0_303, %c0_304, %c0_305], %194 {strides = array<i32>} : memref<2x10x10x64xf32, #tpu.memory_space<vmem>>, vector<2x10x10x64xf32>,
    %196 = vector.shape_cast %193 : vector<128x64xf32> to vector<2x8x8x64xf32>
    %c0_306 = arith.constant 0 : index
    %c1_307 = arith.constant 1 : index
    %c1_308 = arith.constant 1 : index
    %c0_309 = arith.constant 0 : index
    %197 = vector.load %arg13[%c0_306, %c1_307, %c1_308, %c0_309] : memref<2x10x10x64xf32, #tpu.memory_space<vmem>>, vector<2x8x8x64xf32>
    tpu.vector_store %arg13[%c0_306, %c1_307, %c1_308, %c0_309], %196 {strides = array<i32>} : memref<2x10x10x64xf32, #tpu.memory_space<vmem>>, vector<2x8x8x64xf32>,
    %c0_310 = arith.constant 0 : index
    %c0_311 = arith.constant 0 : index
    %c0_312 = arith.constant 0 : index
    %c0_313 = arith.constant 0 : index
    %198 = vector.load %arg13[%c0_310, %c0_311, %c0_312, %c0_313] : memref<2x10x10x64xf32, #tpu.memory_space<vmem>>, vector<2x8x8x64xf32>
    %199 = vector.shape_cast %198 : vector<2x8x8x64xf32> to vector<128x64xf32>
    %c0_314 = arith.constant 0 : index
    %c0_315 = arith.constant 0 : index
    %c1_316 = arith.constant 1 : index
    %c0_317 = arith.constant 0 : index
    %200 = vector.load %arg13[%c0_314, %c0_315, %c1_316, %c0_317] : memref<2x10x10x64xf32, #tpu.memory_space<vmem>>, vector<2x8x8x64xf32>
    %201 = vector.shape_cast %200 : vector<2x8x8x64xf32> to vector<128x64xf32>
    %c0_318 = arith.constant 0 : index
    %c0_319 = arith.constant 0 : index
    %c2_320 = arith.constant 2 : index
    %c0_321 = arith.constant 0 : index
    %202 = vector.load %arg13[%c0_318, %c0_319, %c2_320, %c0_321] : memref<2x10x10x64xf32, #tpu.memory_space<vmem>>, vector<2x8x8x64xf32>
    %203 = vector.shape_cast %202 : vector<2x8x8x64xf32> to vector<128x64xf32>
    %c0_322 = arith.constant 0 : index
    %c1_323 = arith.constant 1 : index
    %c0_324 = arith.constant 0 : index
    %c0_325 = arith.constant 0 : index
    %204 = vector.load %arg13[%c0_322, %c1_323, %c0_324, %c0_325] : memref<2x10x10x64xf32, #tpu.memory_space<vmem>>, vector<2x8x8x64xf32>
    %205 = vector.shape_cast %204 : vector<2x8x8x64xf32> to vector<128x64xf32>
    %c0_326 = arith.constant 0 : index
    %c1_327 = arith.constant 1 : index
    %c1_328 = arith.constant 1 : index
    %c0_329 = arith.constant 0 : index
    %206 = vector.load %arg13[%c0_326, %c1_327, %c1_328, %c0_329] : memref<2x10x10x64xf32, #tpu.memory_space<vmem>>, vector<2x8x8x64xf32>
    %207 = vector.shape_cast %206 : vector<2x8x8x64xf32> to vector<128x64xf32>
    %c0_330 = arith.constant 0 : index
    %c1_331 = arith.constant 1 : index
    %c2_332 = arith.constant 2 : index
    %c0_333 = arith.constant 0 : index
    %208 = vector.load %arg13[%c0_330, %c1_331, %c2_332, %c0_333] : memref<2x10x10x64xf32, #tpu.memory_space<vmem>>, vector<2x8x8x64xf32>
    %209 = vector.shape_cast %208 : vector<2x8x8x64xf32> to vector<128x64xf32>
    %c0_334 = arith.constant 0 : index
    %c2_335 = arith.constant 2 : index
    %c0_336 = arith.constant 0 : index
    %c0_337 = arith.constant 0 : index
    %210 = vector.load %arg13[%c0_334, %c2_335, %c0_336, %c0_337] : memref<2x10x10x64xf32, #tpu.memory_space<vmem>>, vector<2x8x8x64xf32>
    %211 = vector.shape_cast %210 : vector<2x8x8x64xf32> to vector<128x64xf32>
    %c0_338 = arith.constant 0 : index
    %c2_339 = arith.constant 2 : index
    %c1_340 = arith.constant 1 : index
    %c0_341 = arith.constant 0 : index
    %212 = vector.load %arg13[%c0_338, %c2_339, %c1_340, %c0_341] : memref<2x10x10x64xf32, #tpu.memory_space<vmem>>, vector<2x8x8x64xf32>
    %213 = vector.shape_cast %212 : vector<2x8x8x64xf32> to vector<128x64xf32>
    %c0_342 = arith.constant 0 : index
    %c2_343 = arith.constant 2 : index
    %c2_344 = arith.constant 2 : index
    %c0_345 = arith.constant 0 : index
    %214 = vector.load %arg13[%c0_342, %c2_343, %c2_344, %c0_345] : memref<2x10x10x64xf32, #tpu.memory_space<vmem>>, vector<2x8x8x64xf32>
    %215 = vector.shape_cast %214 : vector<2x8x8x64xf32> to vector<128x64xf32>
    %216 = tpu.concatenate %199, %201, %203, %205, %207, %209, %211, %213, %215 in 1 : vector<128x64xf32>, vector<128x64xf32>, vector<128x64xf32>, vector<128x64xf32>, vector<128x64xf32>, vector<128x64xf32>, vector<128x64xf32>, vector<128x64xf32>, vector<128x64xf32> -> vector<128x576xf32>
    %c0_346 = arith.constant 0 : index
    %c0_347 = arith.constant 0 : index
    %217 = vector.load %arg5[%c0_346, %c0_347] : memref<576x64xf32, #tpu.memory_space<vmem>>, vector<576x64xf32>
    %cst_348 = arith.constant dense<0.000000e+00> : vector<128x64xf32>
    %218 = tpu.matmul %216, %217, %cst_348 {dimension_numbers = #tpu.dot_dimension_numbers<[1], [0], [0], [1], [0, 0, 1, 1], [], []>} : vector<128x576xf32>, vector<576x64xf32>, vector<128x64xf32> -> vector<128x64xf32>
    %c0_349 = arith.constant 0 : index
    %c0_350 = arith.constant 0 : index
    %219 = vector.load %arg6[%c0_349, %c0_350] : memref<1x64xf32, #tpu.memory_space<vmem>>, vector<1x64xf32>
    %220 = vector.broadcast %219 : vector<1x64xf32> to vector<128x64xf32>
    %221 = arith.addf %218, %220 : vector<128x64xf32>
    %cst_351 = arith.constant 0.000000e+00 : f32
    %222 = vector.broadcast %cst_351 : f32 to vector<128x64xf32>
    %223 = arith.maximumf %221, %222 : vector<128x64xf32>
    %224 = vector.shape_cast %223 : vector<128x64xf32> to vector<2x8x8x64xf32>
    %225 = vector.extract_strided_slice %224 {offsets = [0, 0, 0, 0], sizes = [2, 1, 1, 64], strides = [1, 1, 1, 1]} : vector<2x8x8x64xf32> to vector<2x1x1x64xf32>
    %226 = vector.shape_cast %225 : vector<2x1x1x64xf32> to vector<2x64xf32>
    %227 = vector.extract_strided_slice %224 {offsets = [0, 0, 1, 0], sizes = [2, 1, 1, 64], strides = [1, 1, 1, 1]} : vector<2x8x8x64xf32> to vector<2x1x1x64xf32>
    %228 = vector.shape_cast %227 : vector<2x1x1x64xf32> to vector<2x64xf32>
    %229 = vector.extract_strided_slice %224 {offsets = [0, 0, 2, 0], sizes = [2, 1, 1, 64], strides = [1, 1, 1, 1]} : vector<2x8x8x64xf32> to vector<2x1x1x64xf32>
    %230 = vector.shape_cast %229 : vector<2x1x1x64xf32> to vector<2x64xf32>
    %231 = vector.extract_strided_slice %224 {offsets = [0, 0, 3, 0], sizes = [2, 1, 1, 64], strides = [1, 1, 1, 1]} : vector<2x8x8x64xf32> to vector<2x1x1x64xf32>
    %232 = vector.shape_cast %231 : vector<2x1x1x64xf32> to vector<2x64xf32>
    %233 = vector.extract_strided_slice %224 {offsets = [0, 0, 4, 0], sizes = [2, 1, 1, 64], strides = [1, 1, 1, 1]} : vector<2x8x8x64xf32> to vector<2x1x1x64xf32>
    %234 = vector.shape_cast %233 : vector<2x1x1x64xf32> to vector<2x64xf32>
    %235 = vector.extract_strided_slice %224 {offsets = [0, 0, 5, 0], sizes = [2, 1, 1, 64], strides = [1, 1, 1, 1]} : vector<2x8x8x64xf32> to vector<2x1x1x64xf32>
    %236 = vector.shape_cast %235 : vector<2x1x1x64xf32> to vector<2x64xf32>
    %237 = vector.extract_strided_slice %224 {offsets = [0, 0, 6, 0], sizes = [2, 1, 1, 64], strides = [1, 1, 1, 1]} : vector<2x8x8x64xf32> to vector<2x1x1x64xf32>
    %238 = vector.shape_cast %237 : vector<2x1x1x64xf32> to vector<2x64xf32>
    %239 = vector.extract_strided_slice %224 {offsets = [0, 0, 7, 0], sizes = [2, 1, 1, 64], strides = [1, 1, 1, 1]} : vector<2x8x8x64xf32> to vector<2x1x1x64xf32>
    %240 = vector.shape_cast %239 : vector<2x1x1x64xf32> to vector<2x64xf32>
    %241 = vector.extract_strided_slice %224 {offsets = [0, 1, 0, 0], sizes = [2, 1, 1, 64], strides = [1, 1, 1, 1]} : vector<2x8x8x64xf32> to vector<2x1x1x64xf32>
    %242 = vector.shape_cast %241 : vector<2x1x1x64xf32> to vector<2x64xf32>
    %243 = vector.extract_strided_slice %224 {offsets = [0, 1, 1, 0], sizes = [2, 1, 1, 64], strides = [1, 1, 1, 1]} : vector<2x8x8x64xf32> to vector<2x1x1x64xf32>
    %244 = vector.shape_cast %243 : vector<2x1x1x64xf32> to vector<2x64xf32>
    %245 = vector.extract_strided_slice %224 {offsets = [0, 1, 2, 0], sizes = [2, 1, 1, 64], strides = [1, 1, 1, 1]} : vector<2x8x8x64xf32> to vector<2x1x1x64xf32>
    %246 = vector.shape_cast %245 : vector<2x1x1x64xf32> to vector<2x64xf32>
    %247 = vector.extract_strided_slice %224 {offsets = [0, 1, 3, 0], sizes = [2, 1, 1, 64], strides = [1, 1, 1, 1]} : vector<2x8x8x64xf32> to vector<2x1x1x64xf32>
    %248 = vector.shape_cast %247 : vector<2x1x1x64xf32> to vector<2x64xf32>
    %249 = vector.extract_strided_slice %224 {offsets = [0, 1, 4, 0], sizes = [2, 1, 1, 64], strides = [1, 1, 1, 1]} : vector<2x8x8x64xf32> to vector<2x1x1x64xf32>
    %250 = vector.shape_cast %249 : vector<2x1x1x64xf32> to vector<2x64xf32>
    %251 = vector.extract_strided_slice %224 {offsets = [0, 1, 5, 0], sizes = [2, 1, 1, 64], strides = [1, 1, 1, 1]} : vector<2x8x8x64xf32> to vector<2x1x1x64xf32>
    %252 = vector.shape_cast %251 : vector<2x1x1x64xf32> to vector<2x64xf32>
    %253 = vector.extract_strided_slice %224 {offsets = [0, 1, 6, 0], sizes = [2, 1, 1, 64], strides = [1, 1, 1, 1]} : vector<2x8x8x64xf32> to vector<2x1x1x64xf32>
    %254 = vector.shape_cast %253 : vector<2x1x1x64xf32> to vector<2x64xf32>
    %255 = vector.extract_strided_slice %224 {offsets = [0, 1, 7, 0], sizes = [2, 1, 1, 64], strides = [1, 1, 1, 1]} : vector<2x8x8x64xf32> to vector<2x1x1x64xf32>
    %256 = vector.shape_cast %255 : vector<2x1x1x64xf32> to vector<2x64xf32>
    %257 = vector.extract_strided_slice %224 {offsets = [0, 2, 0, 0], sizes = [2, 1, 1, 64], strides = [1, 1, 1, 1]} : vector<2x8x8x64xf32> to vector<2x1x1x64xf32>
    %258 = vector.shape_cast %257 : vector<2x1x1x64xf32> to vector<2x64xf32>
    %259 = vector.extract_strided_slice %224 {offsets = [0, 2, 1, 0], sizes = [2, 1, 1, 64], strides = [1, 1, 1, 1]} : vector<2x8x8x64xf32> to vector<2x1x1x64xf32>
    %260 = vector.shape_cast %259 : vector<2x1x1x64xf32> to vector<2x64xf32>
    %261 = vector.extract_strided_slice %224 {offsets = [0, 2, 2, 0], sizes = [2, 1, 1, 64], strides = [1, 1, 1, 1]} : vector<2x8x8x64xf32> to vector<2x1x1x64xf32>
    %262 = vector.shape_cast %261 : vector<2x1x1x64xf32> to vector<2x64xf32>
    %263 = vector.extract_strided_slice %224 {offsets = [0, 2, 3, 0], sizes = [2, 1, 1, 64], strides = [1, 1, 1, 1]} : vector<2x8x8x64xf32> to vector<2x1x1x64xf32>
    %264 = vector.shape_cast %263 : vector<2x1x1x64xf32> to vector<2x64xf32>
    %265 = vector.extract_strided_slice %224 {offsets = [0, 2, 4, 0], sizes = [2, 1, 1, 64], strides = [1, 1, 1, 1]} : vector<2x8x8x64xf32> to vector<2x1x1x64xf32>
    %266 = vector.shape_cast %265 : vector<2x1x1x64xf32> to vector<2x64xf32>
    %267 = vector.extract_strided_slice %224 {offsets = [0, 2, 5, 0], sizes = [2, 1, 1, 64], strides = [1, 1, 1, 1]} : vector<2x8x8x64xf32> to vector<2x1x1x64xf32>
    %268 = vector.shape_cast %267 : vector<2x1x1x64xf32> to vector<2x64xf32>
    %269 = vector.extract_strided_slice %224 {offsets = [0, 2, 6, 0], sizes = [2, 1, 1, 64], strides = [1, 1, 1, 1]} : vector<2x8x8x64xf32> to vector<2x1x1x64xf32>
    %270 = vector.shape_cast %269 : vector<2x1x1x64xf32> to vector<2x64xf32>
    %271 = vector.extract_strided_slice %224 {offsets = [0, 2, 7, 0], sizes = [2, 1, 1, 64], strides = [1, 1, 1, 1]} : vector<2x8x8x64xf32> to vector<2x1x1x64xf32>
    %272 = vector.shape_cast %271 : vector<2x1x1x64xf32> to vector<2x64xf32>
    %273 = vector.extract_strided_slice %224 {offsets = [0, 3, 0, 0], sizes = [2, 1, 1, 64], strides = [1, 1, 1, 1]} : vector<2x8x8x64xf32> to vector<2x1x1x64xf32>
    %274 = vector.shape_cast %273 : vector<2x1x1x64xf32> to vector<2x64xf32>
    %275 = vector.extract_strided_slice %224 {offsets = [0, 3, 1, 0], sizes = [2, 1, 1, 64], strides = [1, 1, 1, 1]} : vector<2x8x8x64xf32> to vector<2x1x1x64xf32>
    %276 = vector.shape_cast %275 : vector<2x1x1x64xf32> to vector<2x64xf32>
    %277 = vector.extract_strided_slice %224 {offsets = [0, 3, 2, 0], sizes = [2, 1, 1, 64], strides = [1, 1, 1, 1]} : vector<2x8x8x64xf32> to vector<2x1x1x64xf32>
    %278 = vector.shape_cast %277 : vector<2x1x1x64xf32> to vector<2x64xf32>
    %279 = vector.extract_strided_slice %224 {offsets = [0, 3, 3, 0], sizes = [2, 1, 1, 64], strides = [1, 1, 1, 1]} : vector<2x8x8x64xf32> to vector<2x1x1x64xf32>
    %280 = vector.shape_cast %279 : vector<2x1x1x64xf32> to vector<2x64xf32>
    %281 = vector.extract_strided_slice %224 {offsets = [0, 3, 4, 0], sizes = [2, 1, 1, 64], strides = [1, 1, 1, 1]} : vector<2x8x8x64xf32> to vector<2x1x1x64xf32>
    %282 = vector.shape_cast %281 : vector<2x1x1x64xf32> to vector<2x64xf32>
    %283 = vector.extract_strided_slice %224 {offsets = [0, 3, 5, 0], sizes = [2, 1, 1, 64], strides = [1, 1, 1, 1]} : vector<2x8x8x64xf32> to vector<2x1x1x64xf32>
    %284 = vector.shape_cast %283 : vector<2x1x1x64xf32> to vector<2x64xf32>
    %285 = vector.extract_strided_slice %224 {offsets = [0, 3, 6, 0], sizes = [2, 1, 1, 64], strides = [1, 1, 1, 1]} : vector<2x8x8x64xf32> to vector<2x1x1x64xf32>
    %286 = vector.shape_cast %285 : vector<2x1x1x64xf32> to vector<2x64xf32>
    %287 = vector.extract_strided_slice %224 {offsets = [0, 3, 7, 0], sizes = [2, 1, 1, 64], strides = [1, 1, 1, 1]} : vector<2x8x8x64xf32> to vector<2x1x1x64xf32>
    %288 = vector.shape_cast %287 : vector<2x1x1x64xf32> to vector<2x64xf32>
    %289 = vector.extract_strided_slice %224 {offsets = [0, 4, 0, 0], sizes = [2, 1, 1, 64], strides = [1, 1, 1, 1]} : vector<2x8x8x64xf32> to vector<2x1x1x64xf32>
    %290 = vector.shape_cast %289 : vector<2x1x1x64xf32> to vector<2x64xf32>
    %291 = vector.extract_strided_slice %224 {offsets = [0, 4, 1, 0], sizes = [2, 1, 1, 64], strides = [1, 1, 1, 1]} : vector<2x8x8x64xf32> to vector<2x1x1x64xf32>
    %292 = vector.shape_cast %291 : vector<2x1x1x64xf32> to vector<2x64xf32>
    %293 = vector.extract_strided_slice %224 {offsets = [0, 4, 2, 0], sizes = [2, 1, 1, 64], strides = [1, 1, 1, 1]} : vector<2x8x8x64xf32> to vector<2x1x1x64xf32>
    %294 = vector.shape_cast %293 : vector<2x1x1x64xf32> to vector<2x64xf32>
    %295 = vector.extract_strided_slice %224 {offsets = [0, 4, 3, 0], sizes = [2, 1, 1, 64], strides = [1, 1, 1, 1]} : vector<2x8x8x64xf32> to vector<2x1x1x64xf32>
    %296 = vector.shape_cast %295 : vector<2x1x1x64xf32> to vector<2x64xf32>
    %297 = vector.extract_strided_slice %224 {offsets = [0, 4, 4, 0], sizes = [2, 1, 1, 64], strides = [1, 1, 1, 1]} : vector<2x8x8x64xf32> to vector<2x1x1x64xf32>
    %298 = vector.shape_cast %297 : vector<2x1x1x64xf32> to vector<2x64xf32>
    %299 = vector.extract_strided_slice %224 {offsets = [0, 4, 5, 0], sizes = [2, 1, 1, 64], strides = [1, 1, 1, 1]} : vector<2x8x8x64xf32> to vector<2x1x1x64xf32>
    %300 = vector.shape_cast %299 : vector<2x1x1x64xf32> to vector<2x64xf32>
    %301 = vector.extract_strided_slice %224 {offsets = [0, 4, 6, 0], sizes = [2, 1, 1, 64], strides = [1, 1, 1, 1]} : vector<2x8x8x64xf32> to vector<2x1x1x64xf32>
    %302 = vector.shape_cast %301 : vector<2x1x1x64xf32> to vector<2x64xf32>
    %303 = vector.extract_strided_slice %224 {offsets = [0, 4, 7, 0], sizes = [2, 1, 1, 64], strides = [1, 1, 1, 1]} : vector<2x8x8x64xf32> to vector<2x1x1x64xf32>
    %304 = vector.shape_cast %303 : vector<2x1x1x64xf32> to vector<2x64xf32>
    %305 = vector.extract_strided_slice %224 {offsets = [0, 5, 0, 0], sizes = [2, 1, 1, 64], strides = [1, 1, 1, 1]} : vector<2x8x8x64xf32> to vector<2x1x1x64xf32>
    %306 = vector.shape_cast %305 : vector<2x1x1x64xf32> to vector<2x64xf32>
    %307 = vector.extract_strided_slice %224 {offsets = [0, 5, 1, 0], sizes = [2, 1, 1, 64], strides = [1, 1, 1, 1]} : vector<2x8x8x64xf32> to vector<2x1x1x64xf32>
    %308 = vector.shape_cast %307 : vector<2x1x1x64xf32> to vector<2x64xf32>
    %309 = vector.extract_strided_slice %224 {offsets = [0, 5, 2, 0], sizes = [2, 1, 1, 64], strides = [1, 1, 1, 1]} : vector<2x8x8x64xf32> to vector<2x1x1x64xf32>
    %310 = vector.shape_cast %309 : vector<2x1x1x64xf32> to vector<2x64xf32>
    %311 = vector.extract_strided_slice %224 {offsets = [0, 5, 3, 0], sizes = [2, 1, 1, 64], strides = [1, 1, 1, 1]} : vector<2x8x8x64xf32> to vector<2x1x1x64xf32>
    %312 = vector.shape_cast %311 : vector<2x1x1x64xf32> to vector<2x64xf32>
    %313 = vector.extract_strided_slice %224 {offsets = [0, 5, 4, 0], sizes = [2, 1, 1, 64], strides = [1, 1, 1, 1]} : vector<2x8x8x64xf32> to vector<2x1x1x64xf32>
    %314 = vector.shape_cast %313 : vector<2x1x1x64xf32> to vector<2x64xf32>
    %315 = vector.extract_strided_slice %224 {offsets = [0, 5, 5, 0], sizes = [2, 1, 1, 64], strides = [1, 1, 1, 1]} : vector<2x8x8x64xf32> to vector<2x1x1x64xf32>
    %316 = vector.shape_cast %315 : vector<2x1x1x64xf32> to vector<2x64xf32>
    %317 = vector.extract_strided_slice %224 {offsets = [0, 5, 6, 0], sizes = [2, 1, 1, 64], strides = [1, 1, 1, 1]} : vector<2x8x8x64xf32> to vector<2x1x1x64xf32>
    %318 = vector.shape_cast %317 : vector<2x1x1x64xf32> to vector<2x64xf32>
    %319 = vector.extract_strided_slice %224 {offsets = [0, 5, 7, 0], sizes = [2, 1, 1, 64], strides = [1, 1, 1, 1]} : vector<2x8x8x64xf32> to vector<2x1x1x64xf32>
    %320 = vector.shape_cast %319 : vector<2x1x1x64xf32> to vector<2x64xf32>
    %321 = vector.extract_strided_slice %224 {offsets = [0, 6, 0, 0], sizes = [2, 1, 1, 64], strides = [1, 1, 1, 1]} : vector<2x8x8x64xf32> to vector<2x1x1x64xf32>
    %322 = vector.shape_cast %321 : vector<2x1x1x64xf32> to vector<2x64xf32>
    %323 = vector.extract_strided_slice %224 {offsets = [0, 6, 1, 0], sizes = [2, 1, 1, 64], strides = [1, 1, 1, 1]} : vector<2x8x8x64xf32> to vector<2x1x1x64xf32>
    %324 = vector.shape_cast %323 : vector<2x1x1x64xf32> to vector<2x64xf32>
    %325 = vector.extract_strided_slice %224 {offsets = [0, 6, 2, 0], sizes = [2, 1, 1, 64], strides = [1, 1, 1, 1]} : vector<2x8x8x64xf32> to vector<2x1x1x64xf32>
    %326 = vector.shape_cast %325 : vector<2x1x1x64xf32> to vector<2x64xf32>
    %327 = vector.extract_strided_slice %224 {offsets = [0, 6, 3, 0], sizes = [2, 1, 1, 64], strides = [1, 1, 1, 1]} : vector<2x8x8x64xf32> to vector<2x1x1x64xf32>
    %328 = vector.shape_cast %327 : vector<2x1x1x64xf32> to vector<2x64xf32>
    %329 = vector.extract_strided_slice %224 {offsets = [0, 6, 4, 0], sizes = [2, 1, 1, 64], strides = [1, 1, 1, 1]} : vector<2x8x8x64xf32> to vector<2x1x1x64xf32>
    %330 = vector.shape_cast %329 : vector<2x1x1x64xf32> to vector<2x64xf32>
    %331 = vector.extract_strided_slice %224 {offsets = [0, 6, 5, 0], sizes = [2, 1, 1, 64], strides = [1, 1, 1, 1]} : vector<2x8x8x64xf32> to vector<2x1x1x64xf32>
    %332 = vector.shape_cast %331 : vector<2x1x1x64xf32> to vector<2x64xf32>
    %333 = vector.extract_strided_slice %224 {offsets = [0, 6, 6, 0], sizes = [2, 1, 1, 64], strides = [1, 1, 1, 1]} : vector<2x8x8x64xf32> to vector<2x1x1x64xf32>
    %334 = vector.shape_cast %333 : vector<2x1x1x64xf32> to vector<2x64xf32>
    %335 = vector.extract_strided_slice %224 {offsets = [0, 6, 7, 0], sizes = [2, 1, 1, 64], strides = [1, 1, 1, 1]} : vector<2x8x8x64xf32> to vector<2x1x1x64xf32>
    %336 = vector.shape_cast %335 : vector<2x1x1x64xf32> to vector<2x64xf32>
    %337 = vector.extract_strided_slice %224 {offsets = [0, 7, 0, 0], sizes = [2, 1, 1, 64], strides = [1, 1, 1, 1]} : vector<2x8x8x64xf32> to vector<2x1x1x64xf32>
    %338 = vector.shape_cast %337 : vector<2x1x1x64xf32> to vector<2x64xf32>
    %339 = vector.extract_strided_slice %224 {offsets = [0, 7, 1, 0], sizes = [2, 1, 1, 64], strides = [1, 1, 1, 1]} : vector<2x8x8x64xf32> to vector<2x1x1x64xf32>
    %340 = vector.shape_cast %339 : vector<2x1x1x64xf32> to vector<2x64xf32>
    %341 = vector.extract_strided_slice %224 {offsets = [0, 7, 2, 0], sizes = [2, 1, 1, 64], strides = [1, 1, 1, 1]} : vector<2x8x8x64xf32> to vector<2x1x1x64xf32>
    %342 = vector.shape_cast %341 : vector<2x1x1x64xf32> to vector<2x64xf32>
    %343 = vector.extract_strided_slice %224 {offsets = [0, 7, 3, 0], sizes = [2, 1, 1, 64], strides = [1, 1, 1, 1]} : vector<2x8x8x64xf32> to vector<2x1x1x64xf32>
    %344 = vector.shape_cast %343 : vector<2x1x1x64xf32> to vector<2x64xf32>
    %345 = vector.extract_strided_slice %224 {offsets = [0, 7, 4, 0], sizes = [2, 1, 1, 64], strides = [1, 1, 1, 1]} : vector<2x8x8x64xf32> to vector<2x1x1x64xf32>
    %346 = vector.shape_cast %345 : vector<2x1x1x64xf32> to vector<2x64xf32>
    %347 = vector.extract_strided_slice %224 {offsets = [0, 7, 5, 0], sizes = [2, 1, 1, 64], strides = [1, 1, 1, 1]} : vector<2x8x8x64xf32> to vector<2x1x1x64xf32>
    %348 = vector.shape_cast %347 : vector<2x1x1x64xf32> to vector<2x64xf32>
    %349 = vector.extract_strided_slice %224 {offsets = [0, 7, 6, 0], sizes = [2, 1, 1, 64], strides = [1, 1, 1, 1]} : vector<2x8x8x64xf32> to vector<2x1x1x64xf32>
    %350 = vector.shape_cast %349 : vector<2x1x1x64xf32> to vector<2x64xf32>
    %351 = vector.extract_strided_slice %224 {offsets = [0, 7, 7, 0], sizes = [2, 1, 1, 64], strides = [1, 1, 1, 1]} : vector<2x8x8x64xf32> to vector<2x1x1x64xf32>
    %352 = vector.shape_cast %351 : vector<2x1x1x64xf32> to vector<2x64xf32>
    %353 = tpu.concatenate %226, %228, %230, %232, %234, %236, %238, %240, %242, %244, %246, %248, %250, %252, %254, %256 in 1 : vector<2x64xf32>, vector<2x64xf32>, vector<2x64xf32>, vector<2x64xf32>, vector<2x64xf32>, vector<2x64xf32>, vector<2x64xf32>, vector<2x64xf32>, vector<2x64xf32>, vector<2x64xf32>, vector<2x64xf32>, vector<2x64xf32>, vector<2x64xf32>, vector<2x64xf32>, vector<2x64xf32>, vector<2x64xf32> -> vector<2x1024xf32>
    %354 = tpu.concatenate %258, %260, %262, %264, %266, %268, %270, %272, %274, %276, %278, %280, %282, %284, %286, %288 in 1 : vector<2x64xf32>, vector<2x64xf32>, vector<2x64xf32>, vector<2x64xf32>, vector<2x64xf32>, vector<2x64xf32>, vector<2x64xf32>, vector<2x64xf32>, vector<2x64xf32>, vector<2x64xf32>, vector<2x64xf32>, vector<2x64xf32>, vector<2x64xf32>, vector<2x64xf32>, vector<2x64xf32>, vector<2x64xf32> -> vector<2x1024xf32>
    %355 = tpu.concatenate %290, %292, %294, %296, %298, %300, %302, %304, %306, %308, %310, %312, %314, %316, %318, %320 in 1 : vector<2x64xf32>, vector<2x64xf32>, vector<2x64xf32>, vector<2x64xf32>, vector<2x64xf32>, vector<2x64xf32>, vector<2x64xf32>, vector<2x64xf32>, vector<2x64xf32>, vector<2x64xf32>, vector<2x64xf32>, vector<2x64xf32>, vector<2x64xf32>, vector<2x64xf32>, vector<2x64xf32>, vector<2x64xf32> -> vector<2x1024xf32>
    %356 = tpu.concatenate %322, %324, %326, %328, %330, %332, %334, %336, %338, %340, %342, %344, %346, %348, %350, %352 in 1 : vector<2x64xf32>, vector<2x64xf32>, vector<2x64xf32>, vector<2x64xf32>, vector<2x64xf32>, vector<2x64xf32>, vector<2x64xf32>, vector<2x64xf32>, vector<2x64xf32>, vector<2x64xf32>, vector<2x64xf32>, vector<2x64xf32>, vector<2x64xf32>, vector<2x64xf32>, vector<2x64xf32>, vector<2x64xf32> -> vector<2x1024xf32>
    %357 = tpu.concatenate %353, %354, %355, %356 in 1 : vector<2x1024xf32>, vector<2x1024xf32>, vector<2x1024xf32>, vector<2x1024xf32> -> vector<2x4096xf32>
    %358 = arith.truncf %357 : vector<2x4096xf32> to vector<2x4096xbf16>
    %c0_352 = arith.constant 0 : index
    %c0_353 = arith.constant 0 : index
    %359 = vector.load %arg7[%c0_352, %c0_353] : memref<4096x512xbf16, #tpu.memory_space<vmem>>, vector<4096x512xbf16>
    %cst_354 = arith.constant dense<0.000000e+00> : vector<2x512xf32>
    %360 = tpu.matmul %358, %359, %cst_354 {dimension_numbers = #tpu.dot_dimension_numbers<[1], [0], [0], [1], [0, 0, 1, 1], [], []>} : vector<2x4096xbf16>, vector<4096x512xbf16>, vector<2x512xf32> -> vector<2x512xf32>
    %c0_355 = arith.constant 0 : index
    %c0_356 = arith.constant 0 : index
    %361 = vector.load %arg8[%c0_355, %c0_356] : memref<1x512xf32, #tpu.memory_space<vmem>>, vector<1x512xf32>
    %362 = vector.broadcast %361 : vector<1x512xf32> to vector<2x512xf32>
    %363 = arith.addf %360, %362 : vector<2x512xf32>
    %cst_357 = arith.constant 0.000000e+00 : f32
    %364 = vector.broadcast %cst_357 : f32 to vector<2x512xf32>
    %365 = arith.maximumf %363, %364 : vector<2x512xf32>
    %c0_358 = arith.constant 0 : index
    %c0_359 = arith.constant 0 : index
    %366 = vector.load %arg9[%c0_358, %c0_359] : memref<512x128xf32, #tpu.memory_space<vmem>>, vector<512x128xf32>
    %cst_360 = arith.constant dense<0.000000e+00> : vector<2x128xf32>
    %367 = tpu.matmul %365, %366, %cst_360 {dimension_numbers = #tpu.dot_dimension_numbers<[1], [0], [0], [1], [0, 0, 1, 1], [], []>} : vector<2x512xf32>, vector<512x128xf32>, vector<2x128xf32> -> vector<2x128xf32>
    %c0_361 = arith.constant 0 : index
    %c0_362 = arith.constant 0 : index
    %368 = vector.load %arg10[%c0_361, %c0_362] : memref<1x128xf32, #tpu.memory_space<vmem>>, vector<1x128xf32>
    %369 = vector.broadcast %368 : vector<1x128xf32> to vector<2x128xf32>
    %370 = arith.addf %367, %369 : vector<2x128xf32>
    %c0_363 = arith.constant 0 : index
    %c0_364 = arith.constant 0 : index
    %371 = vector.load %arg11[%c0_363, %c0_364] : memref<2x128xf32, #tpu.memory_space<vmem>>, vector<2x128xf32>
    tpu.vector_store %arg11[%c0_363, %c0_364], %370 {strides = array<i32>} : memref<2x128xf32, #tpu.memory_space<vmem>>, vector<2x128xf32>,
    return
  }
}

</mosaic_0001>

<bundles_post_ra>
// kernel: forward.1
= control target key start
LH: loop header
LB: loop body
LE: loop exit
PB: predicated region body
PF: predicated region fallthrough
CT: control target
= control target key end

     0   :  { %vm271_vm0 = vcmask 261120   ;;  %v15508_v7 = vmov 0.0   ;;  %vm273_vm1 = vcmask 253952   ;;  %s15509_s24 = smov 32   ;;  %s15510_s27 = smov 96   ;;  %vm1530_vm2 = vcmask 523264   ;;  %s21339_s0 = inlined_call_operand.vmem [shape: f32[128,256], index: 0, kind: input, shape index: {}]   ;;  %s21340_s1 = inlined_call_operand.vmem [shape: f32[256,32], index: 1, kind: input, shape index: {}]   ;;  %s21341_s2 = inlined_call_operand.vmem [shape: f32[1,32], index: 2, kind: input, shape index: {}]   ;;  %s21342_s3 = inlined_call_operand.vmem [shape: f32[512,64], index: 3, kind: input, shape index: {}]   ;;  %s21343_s4 = inlined_call_operand.vmem [shape: f32[1,64], index: 4, kind: input, shape index: {}]   ;;  %s21344_s5 = inlined_call_operand.vmem [shape: f32[576,64], index: 5, kind: input, shape index: {}]   ;;  %s21345_s6 = inlined_call_operand.vmem [shape: f32[1,64], index: 6, kind: input, shape index: {}]   ;;  %s21346_s7 = inlined_call_operand.vmem [shape: bf16[4096,512], index: 7, kind: input, shape index: {}]   ;;  %s21347_s8 = inlined_call_operand.vmem [shape: f32[1,512], index: 8, kind: input, shape index: {}]   ;;  %s21348_s9 = inlined_call_operand.vmem [shape: f32[512,128], index: 9, kind: input, shape index: {}]   ;;  %s21349_s10 = inlined_call_operand.vmem [shape: f32[1,128], index: 10, kind: input, shape index: {}]   ;;  %s21350_s11 = inlined_call_operand.hbm [shape: f32[2,128], index: 11, kind: output, shape index: {}]  }
   0x1   :  { %v15576_v0 = vld [vmem:[%s21340_s1 + $0x80] sm:$0xff]  ;;  %v15581_v1 = vld [vmem:[%s21340_s1 + $0x88] sm:$0xff]  ;;  %v15598_v5 = vld [vmem:[%s21340_s1 + $0x90] sm:$0xff]  ;;  %275 = vst.msk [vmem:[#allocation2 + $0x10] sm:$0xff] %vm271_vm0, %v15508_v7  ;;  %s15511_s28 = smov 64   ;;  %vm1547_vm3 = vcmask 785408  }
   0x2   :  { %v15586_v2 = vld [vmem:[%s21340_s1] sm:$0xff]  ;;  %v12857_v3 = vpack.c.bf16 %v15581_v1, %v15576_v0  ;;  %v15593_v4 = vld [vmem:[%s21340_s1 + $0x8] sm:$0xff]  ;;  %v15603_v6 = vld [vmem:[%s21340_s1 + $0x98] sm:$0xff]  ;;  %311 = vst.msk [vmem:[#allocation2 + $0x130] sm:$0xff] %vm271_vm0, %v15508_v7  ;;  %vm418_vm4 = vcmask 257024   ;;  %vm421_vm5 = vcmask 261124  }
   0x3   :  { %272 = vst.msk [vmem:[#allocation2] sm:$0xff] %vm271_vm0, %v15508_v7  ;;  %277 = vst.msk [vmem:[#allocation2 + $0x20] sm:$0xff] %vm271_vm0, %v15508_v7  ;;  %v12859_v8 = vpack.c.bf16 %v15593_v4, %v15586_v2  ;;  %v12861_v9 = vpack.c.bf16 %v15603_v6, %v15598_v5  ;;  %v15756_v10 = vld [vmem:[%s21340_s1 + $0x10] sm:$0xff]  ;;  %v15761_v11 = vld [vmem:[%s21340_s1 + $0x18] sm:$0xff]  ;;  %vm2086_vm6 = vcmask 517120  }
   0x4   :  { %279 = vst.msk [vmem:[#allocation2 + $0x30] sm:$0xff] %vm271_vm0, %v15508_v7  ;;  %281 = vst.msk [vmem:[#allocation2 + $0x40] sm:$0xff] %vm271_vm0, %v15508_v7  ;;  %v15766_v12 = vld [vmem:[%s21340_s1 + $0xa0] sm:$0xff]  ;;  %12858 = vmatprep.subr.bf16.mxu0 %v12857_v3  ;;  %v92_v13 = vld [vmem:[%s21340_s1 + $0xa8] sm:$0xff]  ;;  %v12863_v14 = vpack.c.bf16 %v15761_v11, %v15756_v10 }
   0x5   :  { %283 = vst.msk [vmem:[#allocation2 + $0x50] sm:$0xff] %vm271_vm0, %v15508_v7  ;;  %285 = vst.msk [vmem:[#allocation2 + $0x60] sm:$0xff] %vm271_vm0, %v15508_v7  ;;  %12860 = vmatpush3.bf16.msra.mxu0 %v12859_v8  ;;  %v12865_v15 = vpack.c.bf16 %v92_v13, %v15766_v12  ;;  %v75_v16 = vld [vmem:[%s21340_s1 + $0x20] sm:$0xff]  ;;  %v76_v17 = vld [vmem:[%s21340_s1 + $0x28] sm:$0xff] }
   0x6   :  { %287 = vst.msk [vmem:[#allocation2 + $0x70] sm:$0xff] %vm271_vm0, %v15508_v7  ;;  %289 = vst.msk [vmem:[#allocation2 + $0x80] sm:$0xff] %vm271_vm0, %v15508_v7  ;;  %12862 = vmatprep.subr.bf16.mxu0 %v12861_v9  ;;  %v93_v18 = vld [vmem:[%s21340_s1 + $0xb0] sm:$0xff]  ;;  %v94_v19 = vld [vmem:[%s21340_s1 + $0xb8] sm:$0xff]  ;;  %v12867_v20 = vpack.c.bf16 %v76_v17, %v75_v16 }
   0x7   :  { %291 = vst.msk [vmem:[#allocation2 + $0x90] sm:$0xff] %vm271_vm0, %v15508_v7  ;;  %293 = vst.msk [vmem:[#allocation2 + $0xa0] sm:$0xff] %vm271_vm0, %v15508_v7  ;;  %v12869_v21 = vpack.c.bf16 %v94_v19, %v93_v18  ;;  %v77_v22 = vld [vmem:[%s21340_s1 + $0x30] sm:$0xff]  ;;  %v78_v23 = vld [vmem:[%s21340_s1 + $0x38] sm:$0xff] }
   0x8   :  { %295 = vst.msk [vmem:[#allocation2 + $0xb0] sm:$0xff] %vm271_vm0, %v15508_v7  ;;  %297 = vst.msk [vmem:[#allocation2 + $0xc0] sm:$0xff] %vm271_vm0, %v15508_v7  ;;  %v95_v24 = vld [vmem:[%s21340_s1 + $0xc0] sm:$0xff]  ;;  %v96_v25 = vld [vmem:[%s21340_s1 + $0xc8] sm:$0xff]  ;;  %v12871_v27 = vpack.c.bf16 %v78_v23, %v77_v22 }
   0x9   :  { %299 = vst.msk [vmem:[#allocation2 + $0xd0] sm:$0xff] %vm271_vm0, %v15508_v7  ;;  %301 = vst.msk [vmem:[#allocation2 + $0xe0] sm:$0xff] %vm271_vm0, %v15508_v7  ;;  %12864 = vmatpush3.bf16.msra.mxu0 %v12863_v14  ;;  %v40_v26 = vld [vmem:[%s21339_s0 + $0x8] sm:$0xff]  ;;  %v12873_v28 = vpack.c.bf16 %v96_v25, %v95_v24  ;;  %v79_v29 = vld [vmem:[%s21340_s1 + $0x40] sm:$0xff] }
   0xa   :  { %303 = vst.msk [vmem:[#allocation2 + $0xf0] sm:$0xff] %vm271_vm0, %v15508_v7  ;;  %305 = vst.msk [vmem:[#allocation2 + $0x100] sm:$0xff] %vm271_vm0, %v15508_v7  ;;  %12866 = vmatprep.subr.bf16.mxu0 %v12865_v15  ;;  %174 = vmatprep.mubr.f32.mxu0 %v40_v26  ;;  %v80_v30 = vld [vmem:[%s21340_s1 + $0x48] sm:$0xff]  ;;  %v97_v31 = vld [vmem:[%s21340_s1 + $0xd0] sm:$0xff] }
   0xb   :  { %307 = vst.msk [vmem:[#allocation2 + $0x110] sm:$0xff] %vm271_vm0, %v15508_v7  ;;  %309 = vst.msk [vmem:[#allocation2 + $0x120] sm:$0xff] %vm271_vm0, %v15508_v7  ;;  %v98_v32 = vld [vmem:[%s21340_s1 + $0xd8] sm:$0xff]  ;;  %v12875_v33 = vpack.c.bf16 %v80_v30, %v79_v29  ;;  %v81_v35 = vld [vmem:[%s21340_s1 + $0x50] sm:$0xff] }
   0xc   :  { %313 = vst.msk [vmem:[#allocation2 + $0x140] sm:$0xff] %vm271_vm0, %v15508_v7  ;;  %315 = vst.msk [vmem:[#allocation2 + $0x150] sm:$0xff] %vm271_vm0, %v15508_v7  ;;  %v12877_v34 = vpack.c.bf16 %v98_v32, %v97_v31  ;;  %v82_v36 = vld [vmem:[%s21340_s1 + $0x58] sm:$0xff]  ;;  %v99_v37 = vld [vmem:[%s21340_s1 + $0xe0] sm:$0xff] }
   0xd   :  { %317 = vst.msk [vmem:[#allocation2 + $0x160] sm:$0xff] %vm271_vm0, %v15508_v7  ;;  %319 = vst.msk [vmem:[#allocation2 + $0x170] sm:$0xff] %vm271_vm0, %v15508_v7  ;;  %12868 = vmatpush3.bf16.msra.mxu0 %v12867_v20  ;;  %v100_v38 = vld [vmem:[%s21340_s1 + $0xe8] sm:$0xff]  ;;  %v12879_v39 = vpack.c.bf16 %v82_v36, %v81_v35  ;;  %v83_v40 = vld [vmem:[%s21340_s1 + $0x60] sm:$0xff] }
   0xe   :  { %321 = vst.msk [vmem:[#allocation2 + $0x180] sm:$0xff] %vm271_vm0, %v15508_v7  ;;  %323 = vst.msk [vmem:[#allocation2 + $0x190] sm:$0xff] %vm271_vm0, %v15508_v7  ;;  %12870 = vmatprep.subr.bf16.mxu0 %v12869_v21  ;;  %v84_v41 = vld [vmem:[%s21340_s1 + $0x68] sm:$0xff]  ;;  %v101_v42 = vld [vmem:[%s21340_s1 + $0xf0] sm:$0xff]  ;;  %v12881_v43 = vpack.c.bf16 %v100_v38, %v99_v37 }
   0xf   :  { %325 = vst.msk [vmem:[#allocation2 + $0x1a0] sm:$0xff] %vm271_vm0, %v15508_v7  ;;  %327 = vst.msk [vmem:[#allocation2 + $0x1b0] sm:$0xff] %vm271_vm0, %v15508_v7  ;;  %v102_v44 = vld [vmem:[%s21340_s1 + $0xf8] sm:$0xff]  ;;  %v500_v45 = vld [vmem:[#allocation2 + $0x10] sm:$0xff]  ;;  %v12883_v52 = vpack.c.bf16 %v84_v41, %v83_v40 }
  0x10   :  { %329 = vst.msk [vmem:[#allocation2 + $0x1c0] sm:$0xff] %vm271_vm0, %v15508_v7  ;;  %331 = vst.msk [vmem:[#allocation2 + $0x1d0] sm:$0xff] %vm271_vm0, %v15508_v7  ;;  %v566_v46 = vld [vmem:[#allocation2 + $0x130] sm:$0xff]  ;;  %v12885_v58 = vpack.c.bf16 %v102_v44, %v101_v42  ;;  %v86_v59 = vld [vmem:[%s21340_s1 + $0x78] sm:$0xff] }
  0x11   :  { %333 = vst.msk [vmem:[#allocation2 + $0x1e0] sm:$0xff] %vm271_vm0, %v15508_v7  ;;  %335 = vst.msk [vmem:[#allocation2 + $0x1f0] sm:$0xff] %vm271_vm0, %v15508_v7  ;;  %12872 = vmatpush3.bf16.msra.mxu0 %v12871_v27  ;;  %v13226_v47 = vpack.i.bf16 %v500_v45, %v566_v46  ;;  %v85_v53 = vld [vmem:[%s21340_s1 + $0x70] sm:$0xff]  ;;  %v39_v3 = vld [vmem:[%s21339_s0] sm:$0xff] }
  0x12   :  { %337 = vst.msk [vmem:[#allocation2 + $0x200] sm:$0xff] %vm271_vm0, %v15508_v7  ;;  %339 = vst.msk [vmem:[#allocation2 + $0x210] sm:$0xff] %vm271_vm0, %v15508_v7  ;;  %12874 = vmatprep.subr.bf16.mxu0 %v12873_v28  ;;  %v632_v56 = vld [vmem:[#allocation2 + $0x30] sm:$0xff]  ;;  %v12887_v63 = vpack.c.bf16 %v86_v59, %v85_v53  ;;  %v42_v4 = vld [vmem:[%s21339_s0 + $0x18] sm:$0xff] }
  0x13   :  { %341 = vst.msk [vmem:[#allocation2 + $0x220] sm:$0xff] %vm271_vm0, %v15508_v7  ;;  %343 = vst.msk [vmem:[#allocation2 + $0x230] sm:$0xff] %vm271_vm0, %v15508_v7  ;;  %13227 = vrot.lane.b32.xlu0 %v13226_v47, %s15509_s24  ;;  %v698_v57 = vld [vmem:[#allocation2 + $0x150] sm:$0xff]  ;;  %v44_v10 = vld [vmem:[%s21339_s0 + $0x28] sm:$0xff] }
  0x14   :  { %345 = vst.msk [vmem:[#allocation2 + $0x240] sm:$0xff] %vm271_vm0, %v15508_v7  ;;  %347 = vst.msk [vmem:[#allocation2 + $0x250] sm:$0xff] %vm271_vm0, %v15508_v7  ;;  %v13241_v62 = vpack.i.bf16 %v632_v56, %v698_v57  ;;  %v638_v6 = vld [vmem:[#allocation2 + $0xf0] sm:$0xff]  ;;  %v43_v13 = vld [vmem:[%s21339_s0 + $0x20] sm:$0xff] }
  0x15   :  { %349 = vst.msk [vmem:[#allocation2 + $0x260] sm:$0xff] %vm271_vm0, %v15508_v7  ;;  %351 = vst.msk [vmem:[#allocation2 + $0x270] sm:$0xff] %vm271_vm0, %v15508_v7  ;;  %12876 = vmatpush3.bf16.msra.mxu0 %v12875_v33  ;;  %v41_v9 = vld [vmem:[%s21339_s0 + $0x10] sm:$0xff]  ;;  %v46_v15 = vld [vmem:[%s21339_s0 + $0x38] sm:$0xff] }
  0x16   :  { %353 = vst.msk [vmem:[#allocation2 + $0x280] sm:$0xff] %vm271_vm0, %v15508_v7  ;;  %355 = vst.msk [vmem:[#allocation2 + $0x290] sm:$0xff] %vm271_vm0, %v15508_v7  ;;  %12878 = vmatprep.subr.bf16.mxu0 %v12877_v34  ;;  %v45_v19 = vld [vmem:[%s21339_s0 + $0x30] sm:$0xff]  ;;  %v48_v20 = vld [vmem:[%s21339_s0 + $0x48] sm:$0xff] }
  0x17   :  { %357 = vst.msk [vmem:[#allocation2 + $0x2a0] sm:$0xff] %vm271_vm0, %v15508_v7  ;;  %359 = vst.msk [vmem:[#allocation2 + $0x2b0] sm:$0xff] %vm271_vm0, %v15508_v7  ;;  %v639_v22 = vld [vmem:[#allocation2 + $0x110] sm:$0xff]  ;;  %v47_v24 = vld [vmem:[%s21339_s0 + $0x40] sm:$0xff] }
  0x18   :  { %361 = vst.msk [vmem:[#allocation2 + $0x2c0] sm:$0xff] %vm271_vm0, %v15508_v7  ;;  %363 = vst.msk [vmem:[#allocation2 + $0x2d0] sm:$0xff] %vm271_vm0, %v15508_v7  ;;  %v50_v25 = vld [vmem:[%s21339_s0 + $0x58] sm:$0xff]  ;;  %v49_v30 = vld [vmem:[%s21339_s0 + $0x50] sm:$0xff] }
  0x19   :  { %365 = vst.msk [vmem:[#allocation2 + $0x2e0] sm:$0xff] %vm271_vm0, %v15508_v7  ;;  %367 = vst.msk [vmem:[#allocation2 + $0x2f0] sm:$0xff] %vm271_vm0, %v15508_v7  ;;  %12880 = vmatpush3.bf16.msra.mxu0 %v12879_v39  ;;  %v704_v8 = vld [vmem:[#allocation2 + $0x210] sm:$0xff]  ;;  %v52_v32 = vld [vmem:[%s21339_s0 + $0x68] sm:$0xff] }
  0x1a   :  { %369 = vst.msk [vmem:[#allocation2 + $0x300] sm:$0xff] %vm271_vm0, %v15508_v7  ;;  %371 = vst.msk [vmem:[#allocation2 + $0x310] sm:$0xff] %vm271_vm0, %v15508_v7  ;;  %12882 = vmatprep.subr.bf16.mxu0 %v12881_v43  ;;  %v13271_v14 = vpack.i.bf16 %v638_v6, %v704_v8  ;;  %v705_v23 = vld [vmem:[#allocation2 + $0x230] sm:$0xff]  ;;  %v51_v38 = vld [vmem:[%s21339_s0 + $0x60] sm:$0xff] }
  0x1b   :  { %373 = vst.msk [vmem:[#allocation2 + $0x320] sm:$0xff] %vm271_vm0, %v15508_v7  ;;  %375 = vst.msk [vmem:[#allocation2 + $0x330] sm:$0xff] %vm271_vm0, %v15508_v7  ;;  %v508_v28 = vld [vmem:[#allocation2 + $0x250] sm:$0xff]  ;;  %v13301_v31 = vpack.i.bf16 %v639_v22, %v705_v23  ;;  %v54_v40 = vld [vmem:[%s21339_s0 + $0x78] sm:$0xff] }
  0x1c   :  { %377 = vst.msk [vmem:[#allocation2 + $0x340] sm:$0xff] %vm271_vm0, %v15508_v7  ;;  %379 = vst.msk [vmem:[#allocation2 + $0x350] sm:$0xff] %vm271_vm0, %v15508_v7  ;;  %v640_v44 = vld [vmem:[#allocation2 + $0x270] sm:$0xff]  ;;  %v60_v59 = vld [vmem:[%s21339_s0 + $0xa8] sm:$0xff] }
  0x1d   :  { %381 = vst.msk [vmem:[#allocation2 + $0x360] sm:$0xff] %vm271_vm0, %v15508_v7  ;;  %383 = vst.msk [vmem:[#allocation2 + $0x370] sm:$0xff] %vm271_vm0, %v15508_v7  ;;  %12884 = vmatpush3.bf16.msra.mxu0 %v12883_v52  ;;  %v53_v46 = vld [vmem:[%s21339_s0 + $0x70] sm:$0xff]  ;;  %v55_v52 = vld [vmem:[%s21339_s0 + $0x80] sm:$0xff] }
  0x1e   :  { %385 = vst.msk [vmem:[#allocation2 + $0x380] sm:$0xff] %vm271_vm0, %v15508_v7  ;;  %387 = vst.msk [vmem:[#allocation2 + $0x390] sm:$0xff] %vm271_vm0, %v15508_v7  ;;  %12886 = vmatprep.subr.bf16.mxu0 %v12885_v58  ;;  %v57_v58 = vld [vmem:[%s21339_s0 + $0x90] sm:$0xff]  ;;  %v70_v6 = vld [vmem:[%s21339_s0 + $0xf8] sm:$0xff] }
  0x1f   :  { %389 = vst.msk [vmem:[#allocation2 + $0x3a0] sm:$0xff] %vm271_vm0, %v15508_v7  ;;  %391 = vst.msk [vmem:[#allocation2 + $0x3b0] sm:$0xff] %vm271_vm0, %v15508_v7  ;;  %v69_v8 = vld [vmem:[%s21339_s0 + $0xf0] sm:$0xff]  ;;  %v1709_v22 = vld [vmem:[%s21342_s3 + $0x8] sm:$0xff] }
  0x20   :  { %393 = vst.msk [vmem:[#allocation2 + $0x3c0] sm:$0xff] %vm271_vm0, %v15508_v7  ;;  %395 = vst.msk [vmem:[#allocation2 + $0x3d0] sm:$0xff] %vm271_vm0, %v15508_v7 }
  0x21   :  { %397 = vst.msk [vmem:[#allocation2 + $0x3e0] sm:$0xff] %vm271_vm0, %v15508_v7  ;;  %399 = vst.msk [vmem:[#allocation2 + $0x3f0] sm:$0xff] %vm271_vm0, %v15508_v7  ;;  %12888 = vmatpush3.bf16.msra.mxu0 %v12887_v63  ;;  %v61_v63 = vld [vmem:[%s21339_s0 + $0xb0] sm:$0xff] }
  0x22   :  { %401 = vst.msk [vmem:[#allocation2 + $0x400] sm:$0xff] %vm271_vm0, %v15508_v7  ;;  %403 = vst.msk [vmem:[#allocation2 + $0x410] sm:$0xff] %vm271_vm0, %v15508_v7 }
  0x23   :  { %405 = vst.msk [vmem:[#allocation2 + $0x420] sm:$0xff] %vm271_vm0, %v15508_v7  ;;  %407 = vst.msk [vmem:[#allocation2 + $0x430] sm:$0xff] %vm271_vm0, %v15508_v7 }
  0x24   :  { %409 = vst.msk [vmem:[#allocation2 + $0x440] sm:$0xff] %vm271_vm0, %v15508_v7  ;;  %411 = vst.msk [vmem:[#allocation2 + $0x450] sm:$0xff] %vm271_vm0, %v15508_v7  ;;  %175 = vmatmul.mubr.f32.vlgmr.msra.gmra.mrb[0].mxu0 %v39_v3  ;;  %v574_v29 = vld [vmem:[#allocation2 + $0x370] sm:$0xff] }
  0x25   :  { %413 = vst.msk [vmem:[#allocation2 + $0x460] sm:$0xff] %vm271_vm0, %v15508_v7  ;;  %415 = vst.msk [vmem:[#allocation2 + $0x470] sm:$0xff] %vm271_vm0, %v15508_v7  ;;  %179 = vmatprep.mubr.f32.mxu0 %v42_v4  ;;  %v13311_v39 = vpack.i.bf16 %v508_v28, %v574_v29  ;;  %v706_v45 = vld [vmem:[#allocation2 + $0x390] sm:$0xff]  ;;  %v68_v4 = vld [vmem:[%s21339_s0 + $0xe8] sm:$0xff] }
  0x26   :  { %274 = vst.msk [vmem:[#allocation2 + $0x8] sm:$0x1] %vm273_vm1, %v15508_v7  ;;  %310 = vst.msk [vmem:[#allocation2 + $0x128] sm:$0x1] %vm273_vm1, %v15508_v7  ;;  %v13331_v53 = vpack.i.bf16 %v640_v44, %v706_v45  ;;  %v65_v3 = vld [vmem:[%s21339_s0 + $0xd0] sm:$0xff]  ;;  %v1741_v28 = vld [vmem:[%s21342_s3 + $0x108] sm:$0xff] }
  0x27   :  { %276 = vst.msk [vmem:[#allocation2 + $0x18] sm:$0x1] %vm273_vm1, %v15508_v7  ;;  %278 = vst.msk [vmem:[#allocation2 + $0x28] sm:$0x1] %vm273_vm1, %v15508_v7  ;;  %v1726_v29 = vld [vmem:[%s21342_s3 + $0x90] sm:$0xff]  ;;  %v1712_v45 = vld [vmem:[%s21342_s3 + $0x20] sm:$0xff] }
  0x28   :  { %280 = vst.msk [vmem:[#allocation2 + $0x38] sm:$0x1] %vm273_vm1, %v15508_v7  ;;  %282 = vst.msk [vmem:[#allocation2 + $0x48] sm:$0x1] %vm273_vm1, %v15508_v7  ;;  %180 = vmatmul.mubr.f32.gmra.mrb[2].mxu0 %v41_v9  ;;  %v646_v9 = vld [vmem:[#allocation2 + $0x330] sm:$0xff] }
  0x29   :  { %284 = vst.msk [vmem:[#allocation2 + $0x58] sm:$0x1] %vm273_vm1, %v15508_v7  ;;  %286 = vst.msk [vmem:[#allocation2 + $0x68] sm:$0x1] %vm273_vm1, %v15508_v7  ;;  %184 = vmatprep.mubr.f32.mxu0 %v44_v10 }
  0x2a   :  { %288 = vst.msk [vmem:[#allocation2 + $0x78] sm:$0x1] %vm273_vm1, %v15508_v7  ;;  %290 = vst.msk [vmem:[#allocation2 + $0x88] sm:$0x1] %vm273_vm1, %v15508_v7 }
  0x2b   :  { %292 = vst.msk [vmem:[#allocation2 + $0x98] sm:$0x1] %vm273_vm1, %v15508_v7  ;;  %294 = vst.msk [vmem:[#allocation2 + $0xa8] sm:$0x1] %vm273_vm1, %v15508_v7  ;;  %v712_v10 = vld [vmem:[#allocation2 + $0x450] sm:$0xff] }
  0x2c   :  { %296 = vst.msk [vmem:[#allocation2 + $0xb8] sm:$0x1] %vm273_vm1, %v15508_v7  ;;  %298 = vst.msk [vmem:[#allocation2 + $0xc8] sm:$0x1] %vm273_vm1, %v15508_v7  ;;  %185 = vmatmul.mubr.f32.gmra.mrb[4].mxu0 %v43_v13 }
  0x2d   :  { %300 = vst.msk [vmem:[#allocation2 + $0xd8] sm:$0x1] %vm273_vm1, %v15508_v7  ;;  %302 = vst.msk [vmem:[#allocation2 + $0xe8] sm:$0x1] %vm273_vm1, %v15508_v7  ;;  %v516_v48 = vld [vmem:[#allocation2 + $0x1] sm:$0xff]  ;;  %189 = vmatprep.mubr.f32.mxu0 %v46_v15 }
  0x2e   :  { %304 = vst.msk [vmem:[#allocation2 + $0xf8] sm:$0x1] %vm273_vm1, %v15508_v7  ;;  %306 = vst.msk [vmem:[#allocation2 + $0x108] sm:$0x1] %vm273_vm1, %v15508_v7  ;;  %v582_v49 = vld [vmem:[#allocation2 + $0x121] sm:$0xff]  ;;  %v532_v50 = vld [vmem:[#allocation2 + $0x11] sm:$0xff] }
  0x2f   :  { %308 = vst.msk [vmem:[#allocation2 + $0x118] sm:$0x1] %vm273_vm1, %v15508_v7  ;;  %312 = vst.msk [vmem:[#allocation2 + $0x138] sm:$0x1] %vm273_vm1, %v15508_v7  ;;  %v13231_v54 = vpack.i.bf16 %v516_v48, %v582_v49  ;;  %v648_v60 = vld [vmem:[#allocation2 + $0x21] sm:$0xff]  ;;  %v664_v1 = vld [vmem:[#allocation2 + $0x31] sm:$0xff] }
  0x30   :  { %314 = vst.msk [vmem:[#allocation2 + $0x148] sm:$0x1] %vm273_vm1, %v15508_v7  ;;  %316 = vst.msk [vmem:[#allocation2 + $0x158] sm:$0x1] %vm273_vm1, %v15508_v7  ;;  %190 = vmatmul.mubr.f32.gmra.mrb[6].mxu0 %v45_v19  ;;  %v56_v48 = vld [vmem:[%s21339_s0 + $0x88] sm:$0xff] }
  0x31   :  { %318 = vst.msk [vmem:[#allocation2 + $0x168] sm:$0x1] %vm273_vm1, %v15508_v7  ;;  %320 = vst.msk [vmem:[#allocation2 + $0x178] sm:$0x1] %vm273_vm1, %v15508_v7  ;;  %13232 = vrot.lane.b32.xlu0 %v13231_v54, %s15511_s28  ;;  %194 = vmatprep.mubr.f32.mxu0 %v48_v20  ;;  %v58_v54 = vld [vmem:[%s21339_s0 + $0x98] sm:$0xff]  ;;  %v1725_v19 = vld [vmem:[%s21342_s3 + $0x88] sm:$0xff] }
  0x32   :  { %322 = vst.msk [vmem:[#allocation2 + $0x188] sm:$0x1] %vm273_vm1, %v15508_v7  ;;  %324 = vst.msk [vmem:[#allocation2 + $0x198] sm:$0x1] %vm273_vm1, %v15508_v7 }
  0x33   :  { %326 = vst.msk [vmem:[#allocation2 + $0x1a8] sm:$0x1] %vm273_vm1, %v15508_v7  ;;  %328 = vst.msk [vmem:[#allocation2 + $0x1b8] sm:$0x1] %vm273_vm1, %v15508_v7 }
  0x34   :  { %330 = vst.msk [vmem:[#allocation2 + $0x1c8] sm:$0x1] %vm273_vm1, %v15508_v7  ;;  %332 = vst.msk [vmem:[#allocation2 + $0x1d8] sm:$0x1] %vm273_vm1, %v15508_v7  ;;  %v654_v11 = vld [vmem:[#allocation2 + $0xe1] sm:$0xff]  ;;  %195 = vmatmul.mubr.f32.gmra.mrb[8].mxu0 %v47_v24 }
  0x35   :  { %334 = vst.msk [vmem:[#allocation2 + $0x1e8] sm:$0x1] %vm273_vm1, %v15508_v7  ;;  %336 = vst.msk [vmem:[#allocation2 + $0x1f8] sm:$0x1] %vm273_vm1, %v15508_v7  ;;  %v670_v16 = vld [vmem:[#allocation2 + $0xf1] sm:$0xff]  ;;  %v655_v26 = vld [vmem:[#allocation2 + $0x101] sm:$0xff]  ;;  %199 = vmatprep.mubr.f32.mxu0 %v50_v25 }
  0x36   :  { %338 = vst.msk [vmem:[#allocation2 + $0x208] sm:$0x1] %vm273_vm1, %v15508_v7  ;;  %340 = vst.msk [vmem:[#allocation2 + $0x218] sm:$0x1] %vm273_vm1, %v15508_v7  ;;  %v598_v51 = vld [vmem:[#allocation2 + $0x131] sm:$0xff]  ;;  %v1756_v24 = vld [vmem:[%s21342_s3 + $0x180] sm:$0xff] }
  0x37   :  { %342 = vst.msk [vmem:[#allocation2 + $0x228] sm:$0x1] %vm273_vm1, %v15508_v7  ;;  %344 = vst.msk [vmem:[#allocation2 + $0x238] sm:$0x1] %vm273_vm1, %v15508_v7  ;;  %v13236_v55 = vpack.i.bf16 %v532_v50, %v598_v51  ;;  %v714_v61 = vld [vmem:[#allocation2 + $0x141] sm:$0xff]  ;;  %v730_v2 = vld [vmem:[#allocation2 + $0x151] sm:$0xff] }
  0x38   :  { %346 = vst.msk [vmem:[#allocation2 + $0x248] sm:$0x1] %vm273_vm1, %v15508_v7  ;;  %348 = vst.msk [vmem:[#allocation2 + $0x258] sm:$0x1] %vm273_vm1, %v15508_v7  ;;  %v13246_v0 = vpack.i.bf16 %v648_v60, %v714_v61  ;;  %v13256_v5 = vpack.i.bf16 %v664_v1, %v730_v2  ;;  %v671_v33 = vld [vmem:[#allocation2 + $0x111] sm:$0xff]  ;;  %200 = vmatmul.mubr.f32.gmra.mrb[10].mxu0 %v49_v30  ;;  %v59_v61 = vld [vmem:[%s21339_s0 + $0xa0] sm:$0xff] }
  0x39   :  { %350 = vst.msk [vmem:[#allocation2 + $0x268] sm:$0x1] %vm273_vm1, %v15508_v7  ;;  %352 = vst.msk [vmem:[#allocation2 + $0x278] sm:$0x1] %vm273_vm1, %v15508_v7  ;;  %13237 = vrot.lane.b32.xlu1 %v13236_v55, %s15510_s27  ;;  %204 = vmatprep.mubr.f32.mxu0 %v52_v32  ;;  %v63_v1 = vld [vmem:[%s21339_s0 + $0xc0] sm:$0xff]  ;;  %v66_v2 = vld [vmem:[%s21339_s0 + $0xd8] sm:$0xff] }
  0x3a   :  { %354 = vst.msk [vmem:[#allocation2 + $0x288] sm:$0x1] %vm273_vm1, %v15508_v7  ;;  %356 = vst.msk [vmem:[#allocation2 + $0x298] sm:$0x1] %vm273_vm1, %v15508_v7  ;;  %13247 = vrot.lane.b32.xlu0 %v13246_v0, %s15511_s28  ;;  %v1757_v25 = vld [vmem:[%s21342_s3 + $0x188] sm:$0xff] }
  0x3b   :  { %358 = vst.msk [vmem:[#allocation2 + $0x2a8] sm:$0x1] %vm273_vm1, %v15508_v7  ;;  %360 = vst.msk [vmem:[#allocation2 + $0x2b8] sm:$0x1] %vm273_vm1, %v15508_v7 }
  0x3c   :  { %362 = vst.msk [vmem:[#allocation2 + $0x2c8] sm:$0x1] %vm273_vm1, %v15508_v7  ;;  %364 = vst.msk [vmem:[#allocation2 + $0x2d8] sm:$0x1] %vm273_vm1, %v15508_v7  ;;  %205 = vmatmul.mubr.f32.gmra.mrb[12].mxu0 %v51_v38 }
  0x3d   :  { %366 = vst.msk [vmem:[#allocation2 + $0x2e8] sm:$0x1] %vm273_vm1, %v15508_v7  ;;  %368 = vst.msk [vmem:[#allocation2 + $0x2f8] sm:$0x1] %vm273_vm1, %v15508_v7  ;;  %13242 = vrot.lane.b32.xlu1 %v13241_v62, %s15509_s24  ;;  %v720_v12 = vld [vmem:[#allocation2 + $0x201] sm:$0xff]  ;;  %v736_v17 = vld [vmem:[#allocation2 + $0x211] sm:$0xff]  ;;  %209 = vmatprep.mubr.f32.mxu0 %v54_v40 }
  0x3e   :  { %370 = vst.msk [vmem:[#allocation2 + $0x308] sm:$0x1] %vm273_vm1, %v15508_v7  ;;  %372 = vst.msk [vmem:[#allocation2 + $0x318] sm:$0x1] %vm273_vm1, %v15508_v7  ;;  %13257 = vrot.lane.b32.xlu0 %v13256_v5, %s15510_s27  ;;  %v13276_v18 = vpack.i.bf16 %v654_v11, %v720_v12  ;;  %v13286_v21 = vpack.i.bf16 %v670_v16, %v736_v17  ;;  %v721_v27 = vld [vmem:[#allocation2 + $0x221] sm:$0xff]  ;;  %v737_v34 = vld [vmem:[#allocation2 + $0x231] sm:$0xff]  ;;  %v13361_v11 = vpack.i.bf16 %v646_v9, %v712_v10 }
  0x3f   :  { %374 = vst.msk [vmem:[#allocation2 + $0x328] sm:$0x1] %vm273_vm1, %v15508_v7  ;;  %376 = vst.msk [vmem:[#allocation2 + $0x338] sm:$0x1] %vm273_vm1, %v15508_v7  ;;  %v13306_v35 = vpack.i.bf16 %v655_v26, %v721_v27  ;;  %v524_v36 = vld [vmem:[#allocation2 + $0x241] sm:$0xff]  ;;  %v540_v41 = vld [vmem:[#allocation2 + $0x251] sm:$0xff]  ;;  %v13316_v43 = vpack.i.bf16 %v671_v33, %v737_v34  ;;  %v12921_v26 = vpack.c.bf16 %v1757_v25, %v1756_v24 }
  0x40   :  { %378 = vst.msk [vmem:[#allocation2 + $0x348] sm:$0x1] %vm273_vm1, %v15508_v7  ;;  %380 = vst.msk [vmem:[#allocation2 + $0x358] sm:$0x1] %vm273_vm1, %v15508_v7  ;;  %v656_v49 = vld [vmem:[#allocation2 + $0x261] sm:$0xff]  ;;  %210 = vmatmul.mubr.f32.gmra.mrb[14].mxu0 %v53_v46  ;;  %v672_v55 = vld [vmem:[#allocation2 + $0x271] sm:$0xff] }
  0x41   :  { %382 = vst.msk [vmem:[#allocation2 + $0x368] sm:$0x1] %vm273_vm1, %v15508_v7  ;;  %384 = vst.msk [vmem:[#allocation2 + $0x378] sm:$0x1] %vm273_vm1, %v15508_v7  ;;  %13252 = vrot.lane.b32.xlu1 %v13241_v62, %s15509_s24  ;;  %214 = vmatprep.mubr.f32.mxu0 %v56_v48  ;;  %v62_v62 = vld [vmem:[%s21339_s0 + $0xb8] sm:$0xff]  ;;  %v1740_v27 = vld [vmem:[%s21342_s3 + $0x100] sm:$0xff] }
  0x42   :  { %386 = vst.msk [vmem:[#allocation2 + $0x388] sm:$0x1] %vm273_vm1, %v15508_v7  ;;  %388 = vst.msk [vmem:[#allocation2 + $0x398] sm:$0x1] %vm273_vm1, %v15508_v7  ;;  %13267 = vrot.lane.b32.xlu0 %v13256_v5, %s15510_s27  ;;  %v67_v5 = vld [vmem:[%s21339_s0 + $0xe0] sm:$0xff]  ;;  %v12923_v30 = vpack.c.bf16 %v1741_v28, %v1740_v27  ;;  %12922 = vmatprep.subr.bf16.mxu0 %v12921_v26  ;;  %v1710_v33 = vld [vmem:[%s21342_s3 + $0x10] sm:$0xff] }
  0x43   :  { %390 = vst.msk [vmem:[#allocation2 + $0x3a8] sm:$0x1] %vm273_vm1, %v15508_v7  ;;  %392 = vst.msk [vmem:[#allocation2 + $0x3b8] sm:$0x1] %vm273_vm1, %v15508_v7  ;;  %v1711_v34 = vld [vmem:[%s21342_s3 + $0x18] sm:$0xff]  ;;  %v1713_v46 = vld [vmem:[%s21342_s3 + $0x28] sm:$0xff] }
  0x44   :  { %394 = vst.msk [vmem:[#allocation2 + $0x3c8] sm:$0x1] %vm273_vm1, %v15508_v7  ;;  %396 = vst.msk [vmem:[#allocation2 + $0x3d8] sm:$0x1] %vm273_vm1, %v15508_v7  ;;  %215 = vmatmul.mubr.f32.gmra.mrb[16].mxu0 %v55_v52  ;;  %v1743_v40 = vld [vmem:[%s21342_s3 + $0x118] sm:$0xff]  ;;  %v1760_v48 = vld [vmem:[%s21342_s3 + $0x1a0] sm:$0xff] }
  0x45   :  { %398 = vst.msk [vmem:[#allocation2 + $0x3e8] sm:$0x1] %vm273_vm1, %v15508_v7  ;;  %400 = vst.msk [vmem:[#allocation2 + $0x3f8] sm:$0x1] %vm273_vm1, %v15508_v7  ;;  %13262 = vrot.lane.b32.xlu1 %v13246_v0, %s15511_s28  ;;  %219 = vmatprep.mubr.f32.mxu0 %v58_v54  ;;  %v64_v0 = vld [vmem:[%s21339_s0 + $0xc8] sm:$0xff]  ;;  %v1764_v9 = vld [vmem:[%s21342_s3 + $0x1c0] sm:$0xff] }
  0x46   :  { %402 = vst.msk [vmem:[#allocation2 + $0x408] sm:$0x1] %vm273_vm1, %v15508_v7  ;;  %404 = vst.msk [vmem:[#allocation2 + $0x418] sm:$0x1] %vm273_vm1, %v15508_v7  ;;  %13277 = vrot.lane.b32.xlu0 %v13276_v18, %s15511_s28  ;;  %v662_v12 = vld [vmem:[#allocation2 + $0x321] sm:$0xff]  ;;  %v678_v15 = vld [vmem:[#allocation2 + $0x331] sm:$0xff]  ;;  %12924 = vmatpush3.bf16.msra.mxu0 %v12923_v30 }
  0x47   :  { %406 = vst.msk [vmem:[#allocation2 + $0x428] sm:$0x1] %vm273_vm1, %v15508_v7  ;;  %408 = vst.msk [vmem:[#allocation2 + $0x438] sm:$0x1] %vm273_vm1, %v15508_v7  ;;  %v1745_v52 = vld [vmem:[%s21342_s3 + $0x128] sm:$0xff]  ;;  %v1750_v27 = vld [vmem:[%s21342_s3 + $0x150] sm:$0xff] }
  0x48   :  { %410 = vst.msk [vmem:[#allocation2 + $0x448] sm:$0x1] %vm273_vm1, %v15508_v7  ;;  %412 = vst.msk [vmem:[#allocation2 + $0x458] sm:$0x1] %vm273_vm1, %v15508_v7  ;;  %v590_v37 = vld [vmem:[#allocation2 + $0x361] sm:$0xff]  ;;  %v606_v42 = vld [vmem:[#allocation2 + $0x371] sm:$0xff]  ;;  %220 = vmatmul.mubr.f32.gmra.mrb[18].mxu0 %v57_v58 }
  0x49   :  { %414 = vst.msk [vmem:[#allocation2 + $0x468] sm:$0x1] %vm273_vm1, %v15508_v7  ;;  %416 = vst.msk [vmem:[#allocation2 + $0x478] sm:$0x1] %vm273_vm1, %v15508_v7  ;;  %13272 = vrot.lane.b32.xlu1 %v13271_v14, %s15509_s24  ;;  %v13321_v47 = vpack.i.bf16 %v524_v36, %v590_v37  ;;  %v722_v50 = vld [vmem:[#allocation2 + $0x381] sm:$0xff]  ;;  %v13326_v51 = vpack.i.bf16 %v540_v41, %v606_v42  ;;  %v738_v56 = vld [vmem:[#allocation2 + $0x391] sm:$0xff]  ;;  %224 = vmatprep.mubr.f32.mxu0 %v60_v59 }
  0x4a   :  { %13287 = vrot.lane.b32.xlu0 %v13286_v21, %s15510_s27  ;;  %v13336_v57 = vpack.i.bf16 %v656_v49, %v722_v50  ;;  %v13346_v60 = vpack.i.bf16 %v672_v55, %v738_v56  ;;  %v1758_v36 = vld [vmem:[%s21342_s3 + $0x190] sm:$0xff]  ;;  %v1759_v37 = vld [vmem:[%s21342_s3 + $0x198] sm:$0xff]  ;;  %v1728_v41 = vld [vmem:[%s21342_s3 + $0xa0] sm:$0xff]  ;;  %2085 = vst.msk [vmem:[#allocation3] sm:$0xff] %vm1530_vm2, %v15508_v7 }
  0x4b   :  { %v12925_v38 = vpack.c.bf16 %v1759_v37, %v1758_v36  ;;  %v1761_v49 = vld [vmem:[%s21342_s3 + $0x1a8] sm:$0xff]  ;;  %v1731_v55 = vld [vmem:[%s21342_s3 + $0xb8] sm:$0xff]  ;;  %v1768_v36 = vld [vmem:[%s21342_s3 + $0x1e0] sm:$0xff]  ;;  %2088 = vst.msk [vmem:[#allocation3 + $0x10] sm:$0xff] %vm1530_vm2, %v15508_v7 }
  0x4c   :  { %225 = vmatmul.mubr.f32.gmra.mrb[20].mxu0 %v59_v61  ;;  %v12929_v50 = vpack.c.bf16 %v1761_v49, %v1760_v48  ;;  %v1715_v58 = vld [vmem:[%s21342_s3 + $0x38] sm:$0xff]  ;;  %v1765_v10 = vld [vmem:[%s21342_s3 + $0x1c8] sm:$0xff]  ;;  %2090 = vst.msk [vmem:[#allocation3 + $0x20] sm:$0xff] %vm1530_vm2, %v15508_v7  ;;  %2092 = vst.msk [vmem:[#allocation3 + $0x30] sm:$0xff] %vm1530_vm2, %v15508_v7 }
  0x4d   :  { %13282 = vrot.lane.b32.xlu1 %v13271_v14, %s15509_s24  ;;  %229 = vmatprep.mubr.f32.mxu0 %v62_v62  ;;  %v1763_v61 = vld [vmem:[%s21342_s3 + $0x1b8] sm:$0xff]  ;;  %v1737_v30 = vld [vmem:[%s21342_s3 + $0xe8] sm:$0xff]  ;;  %2094 = vst.msk [vmem:[#allocation3 + $0x40] sm:$0xff] %vm1530_vm2, %v15508_v7  ;;  %2096 = vst.msk [vmem:[#allocation3 + $0x50] sm:$0xff] %vm1530_vm2, %v15508_v7 }
  0x4e   :  { %13297 = vrot.lane.b32.xlu0 %v13286_v21, %s15510_s27  ;;  %v1708_v21 = vld [vmem:[%s21342_s3] sm:$0xff]  ;;  %12926 = vmatprep.subr.bf16.mxu0 %v12925_v38  ;;  %v1751_v28 = vld [vmem:[%s21342_s3 + $0x158] sm:$0xff]  ;;  %v1769_v37 = vld [vmem:[%s21342_s3 + $0x1e8] sm:$0xff]  ;;  %2098 = vst.msk [vmem:[#allocation3 + $0x60] sm:$0xff] %vm1530_vm2, %v15508_v7 }
  0x4f   :  { %v728_v13 = vld [vmem:[#allocation2 + $0x441] sm:$0xff]  ;;  %v744_v16 = vld [vmem:[#allocation2 + $0x451] sm:$0xff]  ;;  %v12891_v23 = vpack.c.bf16 %v1709_v22, %v1708_v21  ;;  %2100 = vst.msk [vmem:[#allocation3 + $0x70] sm:$0xff] %vm1530_vm2, %v15508_v7  ;;  %2102 = vst.msk [vmem:[#allocation3 + $0x80] sm:$0xff] %vm1530_vm2, %v15508_v7 }
  0x50   :  { %230 = vmatmul.mubr.f32.gmra.mrb[22].mxu0 %v61_v63  ;;  %v13366_v14 = vpack.i.bf16 %v662_v12, %v728_v13  ;;  %v13376_v17 = vpack.i.bf16 %v678_v15, %v744_v16  ;;  %v1746_v63 = vld [vmem:[%s21342_s3 + $0x130] sm:$0xff]  ;;  %v12937_v12 = vpack.c.bf16 %v1765_v10, %v1764_v9  ;;  %v1748_v13 = vld [vmem:[%s21342_s3 + $0x140] sm:$0xff]  ;;  %2104 = vst.msk [vmem:[#allocation3 + $0x90] sm:$0xff] %vm1530_vm2, %v15508_v7  ;;  %2106 = vst.msk [vmem:[#allocation3 + $0xa0] sm:$0xff] %vm1530_vm2, %v15508_v7 }
  0x51   :  { %13292 = vrot.lane.b32.xlu1 %v13276_v18, %s15511_s28  ;;  %234 = vmatprep.mubr.f32.mxu0 %v64_v0  ;;  %v1724_v18 = vld [vmem:[%s21342_s3 + $0x80] sm:$0xff]  ;;  %v1747_v0 = vld [vmem:[%s21342_s3 + $0x138] sm:$0xff]  ;;  %v1734_v15 = vld [vmem:[%s21342_s3 + $0xd0] sm:$0xff]  ;;  %2108 = vst.msk [vmem:[#allocation3 + $0xb0] sm:$0xff] %vm1530_vm2, %v15508_v7 }
  0x52   :  { %13307 = vrot.lane.b32.xlu0 %v13306_v35, %s15511_s28  ;;  %v12889_v20 = vpack.c.bf16 %v1725_v19, %v1724_v18  ;;  %v12895_v35 = vpack.c.bf16 %v1711_v34, %v1710_v33  ;;  %v1718_v19 = vld [vmem:[%s21342_s3 + $0x50] sm:$0xff]  ;;  %v1720_v33 = vld [vmem:[%s21342_s3 + $0x60] sm:$0xff]  ;;  %v1721_v34 = vld [vmem:[%s21342_s3 + $0x68] sm:$0xff]  ;;  %2110 = vst.msk [vmem:[#allocation3 + $0xc0] sm:$0xff] %vm1530_vm2, %v15508_v7 }
  0x53   :  { %v1766_v22 = vld [vmem:[%s21342_s3 + $0x1d0] sm:$0xff]  ;;  %2112 = vst.msk [vmem:[#allocation3 + $0xd0] sm:$0xff] %vm1530_vm2, %v15508_v7  ;;  %2114 = vst.msk [vmem:[#allocation3 + $0xe0] sm:$0xff] %vm1530_vm2, %v15508_v7 }
  0x54   :  { %235 = vmatmul.mubr.f32.gmra.mrb[24].mxu0 %v63_v1  ;;  %12890 = vmatprep.subr.bf16.mxu1 %v12889_v20  ;;  %v1732_v1 = vld [vmem:[%s21342_s3 + $0xc0] sm:$0xff]  ;;  %v1719_v20 = vld [vmem:[%s21342_s3 + $0x58] sm:$0xff]  ;;  %2116 = vst.msk [vmem:[#allocation3 + $0xf0] sm:$0xff] %vm1530_vm2, %v15508_v7  ;;  %2118 = vst.msk [vmem:[#allocation3 + $0x100] sm:$0xff] %vm1530_vm2, %v15508_v7 }
  0x55   :  { %13302 = vrot.lane.b32.xlu1 %v13301_v31, %s15509_s24  ;;  %239 = vmatprep.mubr.f32.mxu0 %v66_v2  ;;  %v1727_v31 = vld [vmem:[%s21342_s3 + $0x98] sm:$0xff]  ;;  %v12935_v2 = vpack.c.bf16 %v1747_v0, %v1746_v63  ;;  %v12911_v21 = vpack.c.bf16 %v1719_v20, %v1718_v19  ;;  %v549_v0 = vld [vmem:[#allocation2 + $0x120] sm:$0xff]  ;;  %2120 = vst.msk [vmem:[#allocation3 + $0x110] sm:$0xff] %vm1530_vm2, %v15508_v7  ;;  %2122 = vst.msk [vmem:[#allocation3 + $0x120] sm:$0xff] %vm1530_vm2, %v15508_v7 }
  0x56   :  { %13317 = vrot.lane.b32.xlu0 %v13316_v43, %s15510_s27  ;;  %12892 = vmatpush3.bf16.msra.mxu1 %v12891_v23  ;;  %v12893_v32 = vpack.c.bf16 %v1727_v31, %v1726_v29  ;;  %v1729_v43 = vld [vmem:[%s21342_s3 + $0xa8] sm:$0xff]  ;;  %v1767_v23 = vld [vmem:[%s21342_s3 + $0x1d8] sm:$0xff]  ;;  %v1736_v29 = vld [vmem:[%s21342_s3 + $0xe0] sm:$0xff]  ;;  %v12943_v31 = vpack.c.bf16 %v1751_v28, %v1750_v27  ;;  %2124 = vst.msk [vmem:[#allocation3 + $0x130] sm:$0xff] %vm1530_vm2, %v15508_v7 }
  0x57   :  { %v12897_v44 = vpack.c.bf16 %v1729_v43, %v1728_v41  ;;  %v12941_v25 = vpack.c.bf16 %v1767_v23, %v1766_v22  ;;  %v12945_v41 = vpack.c.bf16 %v1769_v37, %v1768_v36  ;;  %v1771_v63 = vld [vmem:[%s21342_s3 + $0x1f8] sm:$0xff]  ;;  %v16404_v37 = vld [vmem:[%s21341_s2] ss:$0 sm:$0xff]  ;;  %2089 = vst.msk [vmem:[#allocation3 + $0x18] sm:$0x3] %vm2086_vm6, %v15508_v7 }
  0x58   :  { %240 = vmatmul.mubr.f32.gmra.mrb[26].mxu0 %v65_v3  ;;  %12894 = vmatprep.subr.bf16.mxu1 %v12893_v32  ;;  %v1733_v3 = vld [vmem:[%s21342_s3 + $0xc8] sm:$0xff]  ;;  %v12913_v32 = vpack.c.bf16 %v1737_v30, %v1736_v29  ;;  %2087 = vst.msk [vmem:[#allocation3 + $0x8] sm:$0x3] %vm2086_vm6, %v15508_v7  ;;  %2091 = vst.msk [vmem:[#allocation3 + $0x28] sm:$0x3] %vm2086_vm6, %v15508_v7 }
  0x59   :  { %13312 = vrot.lane.b32.xlu1 %v13311_v39, %s15509_s24  ;;  %244 = vmatprep.mubr.f32.mxu0 %v68_v4  ;;  %v1742_v39 = vld [vmem:[%s21342_s3 + $0x110] sm:$0xff]  ;;  %v12905_v4 = vpack.c.bf16 %v1733_v3, %v1732_v1  ;;  %2093 = vst.msk [vmem:[#allocation3 + $0x38] sm:$0x3] %vm2086_vm6, %v15508_v7  ;;  %2095 = vst.msk [vmem:[#allocation3 + $0x48] sm:$0x3] %vm2086_vm6, %v15508_v7 }
  0x5a   :  { %13327 = vrot.lane.b32.xlu0 %v13326_v51, %s15510_s27  ;;  %12896 = vmatpush3.bf16.msra.mxu1 %v12895_v35  ;;  %v12927_v42 = vpack.c.bf16 %v1743_v40, %v1742_v39  ;;  %v1744_v51 = vld [vmem:[%s21342_s3 + $0x120] sm:$0xff]  ;;  %v12915_v35 = vpack.c.bf16 %v1721_v34, %v1720_v33  ;;  %2097 = vst.msk [vmem:[#allocation3 + $0x58] sm:$0x3] %vm2086_vm6, %v15508_v7  ;;  %2099 = vst.msk [vmem:[#allocation3 + $0x68] sm:$0x3] %vm2086_vm6, %v15508_v7 }
  0x5b   :  { %12898 = vmatprep.subr.bf16.mxu1 %v12897_v44  ;;  %v12931_v54 = vpack.c.bf16 %v1745_v52, %v1744_v51  ;;  %v1752_v44 = vld [vmem:[%s21342_s3 + $0x160] sm:$0xff]  ;;  %v1739_v51 = vld [vmem:[%s21342_s3 + $0xf8] sm:$0xff]  ;;  %2101 = vst.msk [vmem:[#allocation3 + $0x78] sm:$0x3] %vm2086_vm6, %v15508_v7  ;;  %2103 = vst.msk [vmem:[#allocation3 + $0x88] sm:$0x3] %vm2086_vm6, %v15508_v7 }
  0x5c   :  { %245 = vmatmul.mubr.f32.gmra.mrb[28].mxu0 %v67_v5  ;;  %v1716_v5 = vld [vmem:[%s21342_s3 + $0x40] sm:$0xff]  ;;  %2105 = vst.msk [vmem:[#allocation3 + $0x98] sm:$0x3] %vm2086_vm6, %v15508_v7  ;;  %2107 = vst.msk [vmem:[#allocation3 + $0xa8] sm:$0x3] %vm2086_vm6, %v15508_v7 }
  0x5d   :  { %13322 = vrot.lane.b32.xlu1 %v13321_v47, %s15511_s28  ;;  %249 = vmatprep.mubr.f32.mxu0 %v70_v6  ;;  %v12899_v47 = vpack.c.bf16 %v1713_v46, %v1712_v45  ;;  %v1717_v6 = vld [vmem:[%s21342_s3 + $0x48] sm:$0xff]  ;;  %2109 = vst.msk [vmem:[#allocation3 + $0xb8] sm:$0x3] %vm2086_vm6, %v15508_v7  ;;  %2111 = vst.msk [vmem:[#allocation3 + $0xc8] sm:$0x3] %vm2086_vm6, %v15508_v7 }
  0x5e   :  { %13337 = vrot.lane.b32.xlu0 %v13336_v57, %s15511_s28  ;;  %12928 = vmatpush3.bf16.msra.mxu0 %v12927_v42  ;;  %v16293_v42 = vld [vmem:[#allocation2 + $0x20] sm:$0xff]  ;;  %v1753_v45 = vld [vmem:[%s21342_s3 + $0x168] sm:$0xff]  ;;  %2113 = vst.msk [vmem:[#allocation3 + $0xd8] sm:$0x3] %vm2086_vm6, %v15508_v7  ;;  %2115 = vst.msk [vmem:[#allocation3 + $0xe8] sm:$0x3] %vm2086_vm6, %v15508_v7 }
  0x5f   :  { %12900 = vmatpush3.bf16.msra.mxu1 %v12899_v47  ;;  %12930 = vmatprep.subr.bf16.mxu0 %v12929_v50  ;;  %v1738_v50 = vld [vmem:[%s21342_s3 + $0xf0] sm:$0xff]  ;;  %2117 = vst.msk [vmem:[#allocation3 + $0xf8] sm:$0x3] %vm2086_vm6, %v15508_v7  ;;  %2119 = vst.msk [vmem:[#allocation3 + $0x108] sm:$0x3] %vm2086_vm6, %v15508_v7 }
  0x60   :  { %250 = vmatmul.mubr.f32.gmra.mrb[30].mxu0 %v69_v8  ;;  %v12907_v8 = vpack.c.bf16 %v1717_v6, %v1716_v5  ;;  %v1755_v5 = vld [vmem:[%s21342_s3 + $0x178] sm:$0xff]  ;;  %v483_v6 = vld [vmem:[#allocation2] sm:$0xff]  ;;  %2121 = vst.msk [vmem:[#allocation3 + $0x118] sm:$0x3] %vm2086_vm6, %v15508_v7  ;;  %2123 = vst.msk [vmem:[#allocation3 + $0x128] sm:$0x3] %vm2086_vm6, %v15508_v7 }
  0x61   :  { %13332 = vrot.lane.b32.xlu1 %v13331_v53, %s15509_s24  ;;  %2125 = vst.msk [vmem:[#allocation3 + $0x138] sm:$0x3] %vm2086_vm6, %v15508_v7 }
  0x62   :  { %13347 = vrot.lane.b32.xlu0 %v13346_v60, %s15510_s27  ;;  %12932 = vmatpush3.bf16.msra.mxu0 %v12931_v54  ;;  %v12947_v54 = vpack.c.bf16 %v1753_v45, %v1752_v44 }
  0x65   :  { %13342 = vrot.lane.b32.xlu1 %v13331_v53, %s15509_s24  ;;  %v1730_v53 = vld [vmem:[%s21342_s3 + $0xb0] sm:$0xff] }
  0x66   :  { %13357 = vrot.lane.b32.xlu0 %v13346_v60, %s15510_s27  ;;  %v12901_v56 = vpack.c.bf16 %v1731_v55, %v1730_v53  ;;  %v1762_v60 = vld [vmem:[%s21342_s3 + $0x1b0] sm:$0xff]  ;;  %v12917_v55 = vpack.c.bf16 %v1739_v51, %v1738_v50 }
  0x67   :  { %v12933_v62 = vpack.c.bf16 %v1763_v61, %v1762_v60 }
  0x68   :  { %12902 = vmatprep.subr.bf16.mxu1 %v12901_v56  ;;  %v1722_v56 = vld [vmem:[%s21342_s3 + $0x70] sm:$0xff] }
  0x69   :  { %13352 = vrot.lane.b32.xlu1 %v13336_v57, %s15511_s28  ;;  %v1714_v57 = vld [vmem:[%s21342_s3 + $0x30] sm:$0xff]  ;;  %12934 = vmatprep.subr.bf16.mxu0 %v12933_v62 }
  0x6a   :  { %13367 = vrot.lane.b32.xlu0 %v13366_v14, %s15511_s28  ;;  %v12903_v59 = vpack.c.bf16 %v1715_v58, %v1714_v57  ;;  %12936 = vmatpush3.bf16.msra.mxu0 %v12935_v2  ;;  %v1723_v57 = vld [vmem:[%s21342_s3 + $0x78] sm:$0xff]  ;;  %v1770_v62 = vld [vmem:[%s21342_s3 + $0x1f0] sm:$0xff] }
  0x6b   :  { %12938 = vmatprep.subr.bf16.mxu0 %v12937_v12  ;;  %v12919_v61 = vpack.c.bf16 %v1723_v57, %v1722_v56  ;;  %v12949_v2 = vpack.c.bf16 %v1771_v63, %v1770_v62 }
  0x6c   :  { %12904 = vmatpush3.bf16.msra.mxu1 %v12903_v59 }
  0x6d   :  { %13362 = vrot.lane.b32.xlu1 %v13361_v11, %s15509_s24  ;;  %12906 = vmatprep.subr.bf16.mxu1 %v12905_v4  ;;  %v1754_v4 = vld [vmem:[%s21342_s3 + $0x170] sm:$0xff] }
  0x6e   :  { %13377 = vrot.lane.b32.xlu0 %v13376_v17, %s15510_s27  ;;  %v1735_v17 = vld [vmem:[%s21342_s3 + $0xd8] sm:$0xff]  ;;  %v12951_v12 = vpack.c.bf16 %v1755_v5, %v1754_v4 }
  0x6f   :  { %v12909_v18 = vpack.c.bf16 %v1735_v17, %v1734_v15 }
  0x70   :  { %12908 = vmatpush3.bf16.msra.mxu1 %v12907_v8 }
  0x71   :  { %13372 = vrot.lane.b32.xlu1 %v13361_v11, %s15509_s24  ;;  %12910 = vmatprep.subr.bf16.mxu1 %v12909_v18 }
  0x74   :  { %12912 = vmatpush3.bf16.msra.mxu1 %v12911_v21 }
  0x75   :  { %13382 = vrot.lane.b32.xlu1 %v13366_v14, %s15511_s28  ;;  %v1749_v14 = vld [vmem:[%s21342_s3 + $0x148] sm:$0xff]  ;;  %12914 = vmatprep.subr.bf16.mxu1 %v12913_v32 }
  0x76   :  { %v12939_v16 = vpack.c.bf16 %v1749_v14, %v1748_v13  ;;  %v681_v13 = vld [vmem:[#allocation2 + $0x140] sm:$0xff] }
  0x78   :  { %12940 = vmatpush3.bf16.msra.mxu0 %v12939_v16  ;;  %12916 = vmatpush3.bf16.msra.mxu1 %v12915_v35 }
  0x79   :  { %12942 = vmatprep.subr.bf16.mxu0 %v12941_v25  ;;  %12918 = vmatprep.subr.bf16.mxu1 %v12917_v55  ;;  %v633_v55 = vld [vmem:[#allocation2 + $0x50] sm:$0xff] }
  0x7c   :  { %12944 = vmatpush3.bf16.msra.mxu0 %v12943_v31  ;;  %12920 = vmatpush3.bf16.msra.mxu1 %v12919_v61 }
  0x7d   :  { %12946 = vmatprep.subr.bf16.mxu0 %v12945_v41 }
  0x80   :  { %12948 = vmatpush3.bf16.msra.mxu0 %v12947_v54  ;;  %v649_v54 = vld [vmem:[#allocation2 + $0x41] sm:$0xff] }
  0x81   :  { %12950 = vmatprep.subr.bf16.mxu0 %v12949_v2 }
  0x84   :  { %12952 = vmatpush3.bf16.msra.mxu0 %v12951_v12 }
  0x85   :  { %v16235_v11 = vpop.permute.xlu0 %13227 }
  0x86   :  { %v13230_v38 = vunpack.i.h.bf16 %v16235_v11  ;;  %v13229_v39 = vunpack.i.l.bf16 %v16235_v11 }
  0x88   :  { %v1564_v3 = vsel %vm271_vm0, %v549_v0, %v13229_v39  ;;  %v1514_v15 = vsel %vm271_vm0, %v483_v6, %v13230_v38 }
  0xa3   :  { %v16261_v24 = vpop.permute.xlu0 %13232 }
  0xa4   :  { %v13235_v46 = vunpack.i.h.bf16 %v16261_v24  ;;  %v13234_v47 = vunpack.i.l.bf16 %v16261_v24 }
  0xa6   :  { %v1580_v10 = vsel %vm1530_vm2, %v1564_v3, %v13234_v47  ;;  %v1531_v17 = vsel %vm1530_vm2, %v1514_v15, %v13235_v46 }
  0xab   :  { %v16263_v26 = vpop.permute.xlu1 %13237 }
  0xac   :  { %v16291_v40 = vpop.permute.xlu0 %13247  ;;  %v13240_v48 = vunpack.i.h.bf16 %v16263_v26  ;;  %v13239_v52 = vunpack.i.l.bf16 %v16263_v26 }
  0xad   :  { %v13250_v58 = vunpack.i.h.bf16 %v16291_v40  ;;  %v13249_v59 = vunpack.i.l.bf16 %v16291_v40 }
  0xae   :  { %v1596_v14 = vsel %vm1547_vm3, %v1580_v10, %v13239_v52  ;;  %v1548_v19 = vsel %vm1547_vm3, %v1531_v17, %v13240_v48 }
  0xaf   :  { %v16295_v43 = vpop.permute.xlu1 %13242  ;;  %1843 = vmatprep.mubr.f32.mxu1 %v1596_v14 }
  0xb0   :  { %v13245_v49 = vunpack.i.h.bf16 %v16295_v43  ;;  %v13244_v53 = vunpack.i.l.bf16 %v16295_v43  ;;  %v13258_v1 = vpop.permute.xlu0 %13257  ;;  %1844 = vmatmul.mubr.f32.vlgmr.msra.gmra.mrb[0].mxu1 %v1548_v19 }
  0xb1   :  { %v13260_v8 = vunpack.i.h.bf16 %v13258_v1  ;;  %v13259_v9 = vunpack.i.l.bf16 %v13258_v1 }
  0xb2   :  { %v1612_v60 = vsel %vm271_vm0, %v16293_v42, %v13245_v49  ;;  %v1660_v16 = vsel %vm271_vm0, %v681_v13, %v13244_v53 }
  0xb3   :  { %v1676_v18 = vsel %vm1530_vm2, %v1660_v16, %v13249_v59  ;;  %v13253_v21 = vpop.permute.xlu1 %13252  ;;  %v1628_v11 = vsel %vm1530_vm2, %v1612_v60, %v13250_v58  ;;  %v665_v60 = vld [vmem:[#allocation2 + $0x51] sm:$0xff] }
  0xb4   :  { %v1692_v20 = vsel %vm1547_vm3, %v1676_v18, %v13259_v9  ;;  %v1644_v22 = vsel %vm1547_vm3, %v1628_v11, %v13260_v8  ;;  %v13255_v23 = vunpack.i.h.bf16 %v13253_v21  ;;  %v13254_v24 = vunpack.i.l.bf16 %v13253_v21  ;;  %v13268_v27 = vpop.permute.xlu0 %13267 }
  0xb5   :  { %1988 = vmatprep.mubr.f32.mxu0 %v1692_v20  ;;  %v13270_v30 = vunpack.i.h.bf16 %v13268_v27  ;;  %v13269_v26 = vunpack.i.l.bf16 %v13268_v27 }
  0xb6   :  { %1989 = vmatmul.mubr.f32.vlgmr.msra.gmra.mrb[32].mxu0 %v1644_v22  ;;  %v1565_v31 = vsel %vm271_vm0, %v681_v13, %v13254_v24  ;;  %v1515_v32 = vsel %vm271_vm0, %v16293_v42, %v13255_v23 }
  0xb7   :  { %v13263_v25 = vpop.permute.xlu1 %13262 }
  0xb8   :  { %v13265_v28 = vunpack.i.h.bf16 %v13263_v25  ;;  %v13264_v29 = vunpack.i.l.bf16 %v13263_v25 }
  0xba   :  { %v1581_v33 = vsel %vm1530_vm2, %v1565_v31, %v13264_v29  ;;  %v1532_v34 = vsel %vm1530_vm2, %v1515_v32, %v13265_v28 }
  0xbb   :  { %v1597_v35 = vsel %vm1547_vm3, %v1581_v33, %v13269_v26  ;;  %v1549_v36 = vsel %vm1547_vm3, %v1532_v34, %v13270_v30 }
  0xbc   :  { %1848 = vmatprep.mubr.f32.mxu1 %v1597_v35 }
  0xbd   :  { %1849 = vmatmul.mubr.f32.gmra.mrb[2].mxu1 %v1549_v36 }
  0xf7   :  { %v12355_v38 = vpop.f32.mrb[0].mxu0 }
  0xf8   :  { %v12356_v39 = vpop.f32.mrb[1].mxu0 }
  0xf9   :  { %v12357_v40 = vadd.f32 %v12356_v39, %v12355_v38 }
  0xfb   :  { %v177_v41 = vadd.f32 %v12357_v40, %v16404_v37  ;;  %v12358_v42 = vpop.f32.mrb[2].mxu0 }
  0xfc   :  { %v12359_v43 = vpop.f32.mrb[3].mxu0 }
  0xfd   :  { %v255_v44 = vmax.f32 %v177_v41, 0.0  ;;  %v12360_v45 = vadd.f32 %v12359_v43, %v12358_v42 }
  0xff   :  { %419 = vst.msk [vmem:[#allocation2 + $0x172] sm:$0xf] %vm418_vm4, %v255_v44  ;;  %v182_v46 = vadd.f32 %v12360_v45, %v16404_v37  ;;  %v12361_v47 = vpop.f32.mrb[4].mxu0 }
 0x100   :  { %422 = vst.msk [vmem:[#allocation2 + $0x15f] sm:$0xf0] %vm421_vm5, %v255_v44  ;;  %v12362_v48 = vpop.f32.mrb[5].mxu0 }
 0x101   :  { %v256_v49 = vmax.f32 %v182_v46, 0.0  ;;  %v12363_v50 = vadd.f32 %v12362_v48, %v12361_v47 }
 0x103   :  { %424 = vst.msk [vmem:[#allocation2 + $0x72] sm:$0xf] %vm418_vm4, %v256_v49  ;;  %v187_v51 = vadd.f32 %v12363_v50, %v16404_v37  ;;  %v12364_v52 = vpop.f32.mrb[6].mxu0 }
 0x104   :  { %426 = vst.msk [vmem:[#allocation2 + $0x5f] sm:$0xf0] %vm421_vm5, %v256_v49  ;;  %v12365_v53 = vpop.f32.mrb[7].mxu0 }
 0x105   :  { %v257_v56 = vmax.f32 %v187_v51, 0.0  ;;  %v12366_v57 = vadd.f32 %v12365_v53, %v12364_v52 }
 0x106   :  { %v699_v59 = vld [vmem:[#allocation2 + $0x170] sm:$0xff] }
 0x107   :  { %v715_v58 = vld [vmem:[#allocation2 + $0x161] sm:$0xff]  ;;  %428 = vst.msk [vmem:[#allocation2 + $0x192] sm:$0xf] %vm418_vm4, %v257_v56  ;;  %v192_v61 = vadd.f32 %v12366_v57, %v16404_v37  ;;  %v13386_v63 = vpack.i.bf16 %v633_v55, %v699_v59  ;;  %v12367_v0 = vpop.f32.mrb[8].mxu0  ;;  %v731_v1 = vld [vmem:[#allocation2 + $0x171] sm:$0xff] }
 0x108   :  { %430 = vst.msk [vmem:[#allocation2 + $0x17f] sm:$0xf0] %vm421_vm5, %v257_v56  ;;  %v13391_v62 = vpack.i.bf16 %v649_v54, %v715_v58  ;;  %v12368_v2 = vpop.f32.mrb[9].mxu0  ;;  %v13401_v6 = vpack.i.bf16 %v665_v60, %v731_v1 }
 0x109   :  { %v258_v3 = vmax.f32 %v192_v61, 0.0  ;;  %13387 = vrot.lane.b32.xlu1 %v13386_v63, %s15509_s24  ;;  %v12369_v4 = vadd.f32 %v12368_v2, %v12367_v0 }
 0x10a   :  { %13392 = vrot.lane.b32.xlu0 %v13391_v62, %s15511_s28  ;;  %v634_v15 = vld [vmem:[#allocation2 + $0x70] sm:$0xff] }
 0x10b   :  { %432 = vst.msk [vmem:[#allocation2 + $0x92] sm:$0xf] %vm418_vm4, %v258_v3  ;;  %v197_v5 = vadd.f32 %v12369_v4, %v16404_v37  ;;  %v12370_v8 = vpop.f32.mrb[10].mxu0  ;;  %v650_v13 = vld [vmem:[#allocation2 + $0x61] sm:$0xff]  ;;  %v666_v11 = vld [vmem:[#allocation2 + $0x71] sm:$0xff] }
 0x10c   :  { %434 = vst.msk [vmem:[#allocation2 + $0x7f] sm:$0xf0] %vm421_vm5, %v258_v3  ;;  %v12371_v9 = vpop.f32.mrb[11].mxu0 }
 0x10d   :  { %v259_v10 = vmax.f32 %v197_v5, 0.0  ;;  %13397 = vrot.lane.b32.xlu1 %v13386_v63, %s15509_s24  ;;  %v12372_v12 = vadd.f32 %v12371_v9, %v12370_v8 }
 0x10e   :  { %13402 = vrot.lane.b32.xlu0 %v13401_v6, %s15510_s27  ;;  %v700_v17 = vld [vmem:[#allocation2 + $0x190] sm:$0xff] }
 0x10f   :  { %v716_v14 = vld [vmem:[#allocation2 + $0x181] sm:$0xff]  ;;  %436 = vst.msk [vmem:[#allocation2 + $0x1b2] sm:$0xf] %vm418_vm4, %v259_v10  ;;  %v202_v16 = vadd.f32 %v12372_v12, %v16404_v37  ;;  %v12373_v18 = vpop.f32.mrb[12].mxu0  ;;  %v13416_v23 = vpack.i.bf16 %v634_v15, %v700_v17  ;;  %v732_v25 = vld [vmem:[#allocation2 + $0x191] sm:$0xff] }
 0x110   :  { %438 = vst.msk [vmem:[#allocation2 + $0x19f] sm:$0xf0] %vm421_vm5, %v259_v10  ;;  %v12374_v19 = vpop.f32.mrb[13].mxu0  ;;  %v13421_v22 = vpack.i.bf16 %v650_v13, %v716_v14  ;;  %v13431_v26 = vpack.i.bf16 %v666_v11, %v732_v25  ;;  %v703_v25 = vld [vmem:[#allocation2 + $0x1f0] sm:$0xff] }
 0x111   :  { %13407 = vrot.lane.b32.xlu1 %v13391_v62, %s15511_s28  ;;  %v260_v20 = vmax.f32 %v202_v16, 0.0  ;;  %v12375_v21 = vadd.f32 %v12374_v19, %v12373_v18 }
 0x112   :  { %13412 = vrot.lane.b32.xlu0 %v13401_v6, %s15510_s27  ;;  %v635_v39 = vld [vmem:[#allocation2 + $0x90] sm:$0xff] }
 0x113   :  { %440 = vst.msk [vmem:[#allocation2 + $0xb2] sm:$0xf] %vm418_vm4, %v260_v20  ;;  %v207_v24 = vadd.f32 %v12375_v21, %v16404_v37  ;;  %v12376_v27 = vpop.f32.mrb[14].mxu0  ;;  %v651_v36 = vld [vmem:[#allocation2 + $0x81] sm:$0xff]  ;;  %v667_v46 = vld [vmem:[#allocation2 + $0x91] sm:$0xff] }
 0x114   :  { %442 = vst.msk [vmem:[#allocation2 + $0x9f] sm:$0xf0] %vm421_vm5, %v260_v20  ;;  %v12377_v28 = vpop.f32.mrb[15].mxu0  ;;  %v719_v21 = vld [vmem:[#allocation2 + $0x1e1] sm:$0xff] }
 0x115   :  { %13417 = vrot.lane.b32.xlu1 %v13416_v23, %s15509_s24  ;;  %v261_v29 = vmax.f32 %v207_v24, 0.0  ;;  %v12378_v30 = vadd.f32 %v12377_v28, %v12376_v27 }
 0x116   :  { %13422 = vrot.lane.b32.xlu0 %v13421_v22, %s15511_s28  ;;  %v701_v40 = vld [vmem:[#allocation2 + $0x1b0] sm:$0xff] }
 0x117   :  { %444 = vst.msk [vmem:[#allocation2 + $0x1d2] sm:$0xf] %vm418_vm4, %v261_v29  ;;  %v212_v31 = vadd.f32 %v12378_v30, %v16404_v37  ;;  %v12379_v32 = vpop.f32.mrb[16].mxu0  ;;  %v717_v38 = vld [vmem:[#allocation2 + $0x1a1] sm:$0xff]  ;;  %v13446_v48 = vpack.i.bf16 %v635_v39, %v701_v40  ;;  %v733_v49 = vld [vmem:[#allocation2 + $0x1b1] sm:$0xff]  ;;  %v16480_v40 = vpop.permute.xlu0 %13277 }
 0x118   :  { %446 = vst.msk [vmem:[#allocation2 + $0x1bf] sm:$0xf0] %vm421_vm5, %v261_v29  ;;  %v12380_v33 = vpop.f32.mrb[17].mxu0  ;;  %v13451_v47 = vpack.i.bf16 %v651_v36, %v717_v38  ;;  %v13461_v55 = vpack.i.bf16 %v667_v46, %v733_v49  ;;  %v673_v49 = vld [vmem:[#allocation2 + $0x291] sm:$0xff] }
 0x119   :  { %13427 = vrot.lane.b32.xlu1 %v13416_v23, %s15509_s24  ;;  %v262_v34 = vmax.f32 %v212_v31, 0.0  ;;  %v12381_v35 = vadd.f32 %v12380_v33, %v12379_v32  ;;  %v16473_v31 = vpop.permute.xlu1 %13272 }
 0x11a   :  { %13432 = vrot.lane.b32.xlu0 %v13431_v26, %s15510_s27  ;;  %v636_v63 = vld [vmem:[#allocation2 + $0xb0] sm:$0xff] }
 0x11b   :  { %448 = vst.msk [vmem:[#allocation2 + $0xd2] sm:$0xf] %vm418_vm4, %v262_v34  ;;  %v217_v41 = vadd.f32 %v12381_v35, %v16404_v37  ;;  %v12382_v42 = vpop.f32.mrb[18].mxu0  ;;  %v652_v61 = vld [vmem:[#allocation2 + $0xa1] sm:$0xff]  ;;  %v668_v6 = vld [vmem:[#allocation2 + $0xb1] sm:$0xff] }
 0x11c   :  { %450 = vst.msk [vmem:[#allocation2 + $0xbf] sm:$0xf0] %vm421_vm5, %v262_v34  ;;  %v12383_v43 = vpop.f32.mrb[19].mxu0  ;;  %v735_v34 = vld [vmem:[#allocation2 + $0x1f1] sm:$0xff] }
 0x11d   :  { %13437 = vrot.lane.b32.xlu1 %v13421_v22, %s15511_s28  ;;  %v263_v44 = vmax.f32 %v217_v41, 0.0  ;;  %v12384_v45 = vadd.f32 %v12383_v43, %v12382_v42  ;;  %v16482_v41 = vpop.permute.xlu1 %13282  ;;  %v657_v42 = vld [vmem:[#allocation2 + $0x281] sm:$0xff]  ;;  %v641_v43 = vld [vmem:[#allocation2 + $0x290] sm:$0xff] }
 0x11e   :  { %13442 = vrot.lane.b32.xlu0 %v13431_v26, %s15510_s27  ;;  %v702_v0 = vld [vmem:[#allocation2 + $0x1d0] sm:$0xff] }
 0x11f   :  { %452 = vst.msk [vmem:[#allocation2 + $0x3b2] sm:$0xf] %vm418_vm4, %v263_v44  ;;  %v222_v50 = vadd.f32 %v12384_v45, %v16404_v37  ;;  %v12385_v51 = vpop.f32.mrb[20].mxu0  ;;  %v718_v62 = vld [vmem:[#allocation2 + $0x1c1] sm:$0xff]  ;;  %v13476_v9 = vpack.i.bf16 %v636_v63, %v702_v0  ;;  %v734_v10 = vld [vmem:[#allocation2 + $0x1d1] sm:$0xff] }
 0x120   :  { %454 = vst.msk [vmem:[#allocation2 + $0x39f] sm:$0xf0] %vm421_vm5, %v263_v44  ;;  %v12386_v52 = vpop.f32.mrb[21].mxu0  ;;  %v13481_v8 = vpack.i.bf16 %v652_v61, %v718_v62  ;;  %v13491_v17 = vpack.i.bf16 %v668_v6, %v734_v10 }
 0x121   :  { %13447 = vrot.lane.b32.xlu1 %v13446_v48, %s15509_s24  ;;  %v264_v53 = vmax.f32 %v222_v50, 0.0  ;;  %v12387_v54 = vadd.f32 %v12386_v52, %v12385_v51 }
 0x122   :  { %13452 = vrot.lane.b32.xlu0 %v13451_v47, %s15511_s28  ;;  %v637_v24 = vld [vmem:[#allocation2 + $0xd0] sm:$0xff] }
 0x123   :  { %456 = vst.msk [vmem:[#allocation2 + $0x2b2] sm:$0xf] %vm418_vm4, %v264_v53  ;;  %v227_v56 = vadd.f32 %v12387_v54, %v16404_v37  ;;  %v12388_v57 = vpop.f32.mrb[22].mxu0  ;;  %v653_v23 = vld [vmem:[#allocation2 + $0xc1] sm:$0xff]  ;;  %v13506_v26 = vpack.i.bf16 %v637_v24, %v703_v25  ;;  %v669_v35 = vld [vmem:[#allocation2 + $0xd1] sm:$0xff] }
 0x124   :  { %458 = vst.msk [vmem:[#allocation2 + $0x29f] sm:$0xf0] %vm421_vm5, %v264_v53  ;;  %v12389_v58 = vpop.f32.mrb[23].mxu0  ;;  %v13511_v30 = vpack.i.bf16 %v653_v23, %v719_v21  ;;  %v13521_v39 = vpack.i.bf16 %v669_v35, %v735_v34 }
 0x125   :  { %13457 = vrot.lane.b32.xlu1 %v13446_v48, %s15509_s24  ;;  %v265_v59 = vmax.f32 %v227_v56, 0.0  ;;  %v12390_v60 = vadd.f32 %v12389_v58, %v12388_v57  ;;  %v16492_v48 = vpop.permute.xlu1 %13292 }
 0x126   :  { %13462 = vrot.lane.b32.xlu0 %v13461_v55, %s15510_s27  ;;  %v707_v44 = vld [vmem:[#allocation2 + $0x3b0] sm:$0xff] }
 0x127   :  { %460 = vst.msk [vmem:[#allocation2 + $0x3d2] sm:$0xf] %vm418_vm4, %v265_v59  ;;  %v232_v1 = vadd.f32 %v12390_v60, %v16404_v37  ;;  %v12391_v2 = vpop.f32.mrb[24].mxu0  ;;  %v13536_v46 = vpack.i.bf16 %v641_v43, %v707_v44  ;;  %v739_v50 = vld [vmem:[#allocation2 + $0x3b1] sm:$0xff] }
 0x128   :  { %462 = vst.msk [vmem:[#allocation2 + $0x3bf] sm:$0xf0] %vm421_vm5, %v265_v59  ;;  %v12392_v3 = vpop.f32.mrb[25].mxu0  ;;  %v13551_v51 = vpack.i.bf16 %v673_v49, %v739_v50  ;;  %v613_v49 = vld [vmem:[#allocation2 + $0x451] sm:$0xff] }
 0x129   :  { %13467 = vrot.lane.b32.xlu1 %v13451_v47, %s15511_s28  ;;  %v266_v4 = vmax.f32 %v232_v1, 0.0  ;;  %v12393_v5 = vadd.f32 %v12392_v3, %v12391_v2  ;;  %v16490_v47 = vpop.permute.xlu0 %13287  ;;  %v16498_v53 = vpop.permute.xlu1 %13302  ;;  %v647_v50 = vld [vmem:[#allocation2 + $0x350] sm:$0xff] }
 0x12a   :  { %13472 = vrot.lane.b32.xlu0 %v13461_v55, %s15510_s27  ;;  %v642_v56 = vld [vmem:[#allocation2 + $0x2b0] sm:$0xff] }
 0x12b   :  { %464 = vst.msk [vmem:[#allocation2 + $0x2d2] sm:$0xf] %vm418_vm4, %v266_v4  ;;  %v237_v12 = vadd.f32 %v12393_v5, %v16404_v37  ;;  %v12394_v13 = vpop.f32.mrb[26].mxu0  ;;  %v658_v54 = vld [vmem:[#allocation2 + $0x2a1] sm:$0xff]  ;;  %v674_v60 = vld [vmem:[#allocation2 + $0x2b1] sm:$0xff] }
 0x12c   :  { %466 = vst.msk [vmem:[#allocation2 + $0x2bf] sm:$0xf0] %vm421_vm5, %v266_v4  ;;  %v12395_v14 = vpop.f32.mrb[27].mxu0 }
 0x12d   :  { %13477 = vrot.lane.b32.xlu1 %v13476_v9, %s15509_s24  ;;  %v267_v15 = vmax.f32 %v237_v12, 0.0  ;;  %v12396_v16 = vadd.f32 %v12395_v14, %v12394_v13  ;;  %v16496_v52 = vpop.permute.xlu0 %13297  ;;  %v16506_v59 = vpop.permute.xlu1 %13312 }
 0x12e   :  { %13482 = vrot.lane.b32.xlu0 %v13481_v8, %s15511_s28  ;;  %v708_v57 = vld [vmem:[#allocation2 + $0x3d0] sm:$0xff] }
 0x12f   :  { %468 = vst.msk [vmem:[#allocation2 + $0x3f2] sm:$0xf] %vm418_vm4, %v267_v15  ;;  %v242_v18 = vadd.f32 %v12396_v16, %v16404_v37  ;;  %v12397_v19 = vpop.f32.mrb[28].mxu0  ;;  %v724_v55 = vld [vmem:[#allocation2 + $0x3c1] sm:$0xff]  ;;  %v740_v61 = vld [vmem:[#allocation2 + $0x3d1] sm:$0xff]  ;;  %v13566_v63 = vpack.i.bf16 %v642_v56, %v708_v57 }
 0x130   :  { %470 = vst.msk [vmem:[#allocation2 + $0x3df] sm:$0xf0] %vm421_vm5, %v267_v15  ;;  %v12398_v20 = vpop.f32.mrb[29].mxu0  ;;  %v13571_v62 = vpack.i.bf16 %v658_v54, %v724_v55  ;;  %v13581_v0 = vpack.i.bf16 %v674_v60, %v740_v61  ;;  %v16558_v54 = vld [vmem:[#allocation2 + $0x40] sm:$0xff]  ;;  %v679_v61 = vld [vmem:[#allocation2 + $0x351] sm:$0xff] }
 0x131   :  { %13487 = vrot.lane.b32.xlu1 %v13476_v9, %s15509_s24  ;;  %v268_v11 = vmax.f32 %v242_v18, 0.0  ;;  %v12399_v22 = vadd.f32 %v12398_v20, %v12397_v19  ;;  %v16504_v58 = vpop.permute.xlu0 %13307  ;;  %v16512_v2 = vpop.permute.xlu1 %13322  ;;  %v663_v57 = vld [vmem:[#allocation2 + $0x341] sm:$0xff] }
 0x132   :  { %13492 = vrot.lane.b32.xlu0 %v13491_v17, %s15510_s27  ;;  %v643_v5 = vld [vmem:[#allocation2 + $0x2d0] sm:$0xff]  ;;  %v729_v60 = vld [vmem:[#allocation2 + $0x461] sm:$0xff] }
 0x133   :  { %472 = vst.msk [vmem:[#allocation2 + $0x2f2] sm:$0xf] %vm418_vm4, %v268_v11  ;;  %v247_v27 = vadd.f32 %v12399_v22, %v16404_v37  ;;  %v12400_v28 = vpop.f32.mrb[30].mxu0  ;;  %v659_v3 = vld [vmem:[#allocation2 + $0x2c1] sm:$0xff]  ;;  %v675_v10 = vld [vmem:[#allocation2 + $0x2d1] sm:$0xff] }
 0x134   :  { %474 = vst.msk [vmem:[#allocation2 + $0x2df] sm:$0xf0] %vm421_vm5, %v268_v11  ;;  %v12401_v29 = vpop.f32.mrb[31].mxu0 }
 0x135   :  { %13497 = vrot.lane.b32.xlu1 %v13481_v8, %s15511_s28  ;;  %v269_v32 = vmax.f32 %v247_v27, 0.0  ;;  %v12402_v33 = vadd.f32 %v12401_v29, %v12400_v28  ;;  %v16510_v1 = vpop.permute.xlu0 %13317  ;;  %v16520_v9 = vpop.permute.xlu1 %13332 }
 0x136   :  { %13502 = vrot.lane.b32.xlu0 %v13491_v17, %s15510_s27  ;;  %v709_v6 = vld [vmem:[#allocation2 + $0x3f0] sm:$0xff] }
 0x137   :  { %476 = vst.msk [vmem:[#allocation2 + $0x412] sm:$0xf] %vm418_vm4, %v269_v32  ;;  %v252_v36 = vadd.f32 %v12402_v33, %v16404_v37  ;;  %v723_v37 = vld [vmem:[#allocation2 + $0x3a1] sm:$0xff]  ;;  %v741_v12 = vld [vmem:[#allocation2 + $0x3f1] sm:$0xff]  ;;  %v13596_v14 = vpack.i.bf16 %v643_v5, %v709_v6 }
 0x138   :  { %478 = vst.msk [vmem:[#allocation2 + $0x3ff] sm:$0xf0] %vm421_vm5, %v269_v32  ;;  %v13541_v45 = vpack.i.bf16 %v657_v42, %v723_v37  ;;  %v725_v4 = vld [vmem:[#allocation2 + $0x3e1] sm:$0xff]  ;;  %v13611_v15 = vpack.i.bf16 %v675_v10, %v741_v12  ;;  %v711_v33 = vld [vmem:[#allocation2 + $0x430] sm:$0xff] }
 0x139   :  { %13507 = vrot.lane.b32.xlu1 %v13506_v26, %s15509_s24  ;;  %v270_v38 = vmax.f32 %v252_v36, 0.0  ;;  %v16518_v8 = vpop.permute.xlu0 %13327  ;;  %v13601_v13 = vpack.i.bf16 %v659_v3, %v725_v4  ;;  %v16526_v17 = vpop.permute.xlu1 %13342  ;;  %v727_v32 = vld [vmem:[#allocation2 + $0x421] sm:$0xff]  ;;  %v743_v37 = vld [vmem:[#allocation2 + $0x431] sm:$0xff] }
 0x13a   :  { %13512 = vrot.lane.b32.xlu0 %v13511_v30, %s15511_s28  ;;  %v644_v20 = vld [vmem:[#allocation2 + $0x2f0] sm:$0xff]  ;;  %v682_v6 = vld [vmem:[#allocation2 + $0x160] sm:$0xff] }
 0x13b   :  { %480 = vst.msk [vmem:[#allocation2 + $0x312] sm:$0xf] %vm418_vm4, %v270_v38  ;;  %v660_v18 = vld [vmem:[#allocation2 + $0x2e1] sm:$0xff]  ;;  %v676_v23 = vld [vmem:[#allocation2 + $0x2f1] sm:$0xff] }
 0x13c   :  { %482 = vst.msk [vmem:[#allocation2 + $0x2ff] sm:$0xf0] %vm421_vm5, %v270_v38  ;;  %v745_v10 = vld [vmem:[#allocation2 + $0x471] sm:$0xff] }
 0x13d   :  { %13517 = vrot.lane.b32.xlu1 %v13506_v26, %s15509_s24  ;;  %v16524_v16 = vpop.permute.xlu0 %13337  ;;  %v16534_v22 = vpop.permute.xlu1 %13352 }
 0x13e   :  { %13522 = vrot.lane.b32.xlu0 %v13521_v39, %s15510_s27  ;;  %v710_v21 = vld [vmem:[#allocation2 + $0x410] sm:$0xff] }
 0x13f   :  { %v726_v19 = vld [vmem:[#allocation2 + $0x401] sm:$0xff]  ;;  %v742_v24 = vld [vmem:[#allocation2 + $0x411] sm:$0xff]  ;;  %v13626_v27 = vpack.i.bf16 %v644_v20, %v710_v21  ;;  %v13696_v20 = vpack.i.bf16 %v663_v57, %v729_v60  ;;  %v13701_v21 = vpack.i.bf16 %v679_v61, %v745_v10 }
 0x140   :  { %v13631_v25 = vpack.i.bf16 %v660_v18, %v726_v19  ;;  %v617_v57 = vld [vmem:[#allocation2 + $0x60] sm:$0xff] }
 0x141   :  { %13527 = vrot.lane.b32.xlu1 %v13511_v30, %s15511_s28  ;;  %v16532_v11 = vpop.permute.xlu0 %13347  ;;  %v16540_v29 = vpop.permute.xlu1 %13362  ;;  %v13641_v30 = vpack.i.bf16 %v676_v23, %v742_v24 }
 0x142   :  { %13532 = vrot.lane.b32.xlu0 %v13521_v39, %s15510_s27  ;;  %v645_v34 = vld [vmem:[#allocation2 + $0x310] sm:$0xff] }
 0x143   :  { %v661_v26 = vld [vmem:[#allocation2 + $0x301] sm:$0xff]  ;;  %v13656_v39 = vpack.i.bf16 %v645_v34, %v711_v33  ;;  %v677_v42 = vld [vmem:[#allocation2 + $0x311] sm:$0xff] }
 0x144   :  { %v13661_v38 = vpack.i.bf16 %v661_v26, %v727_v32 }
 0x145   :  { %13537 = vrot.lane.b32.xlu1 %v13536_v46, %s15509_s24  ;;  %v16538_v28 = vpop.permute.xlu0 %13357  ;;  %v16546_v36 = vpop.permute.xlu1 %13372 }
 0x146   :  { %13542 = vrot.lane.b32.xlu0 %v13541_v45, %s15511_s28 }
 0x149   :  { %13547 = vrot.lane.b32.xlu1 %v13536_v46, %s15509_s24  ;;  %v16544_v35 = vpop.permute.xlu0 %13367  ;;  %v16554_v44 = vpop.permute.xlu1 %13382  ;;  %v547_v46 = vld [vmem:[#allocation2 + $0x331] sm:$0xff] }
 0x14a   :  { %13552 = vrot.lane.b32.xlu0 %v13551_v51, %s15510_s27 }
 0x14d   :  { %13557 = vrot.lane.b32.xlu1 %v13541_v45, %s15511_s28  ;;  %v16552_v43 = vpop.permute.xlu0 %13377  ;;  %v13671_v45 = vpack.i.bf16 %v677_v42, %v743_v37 }
 0x14e   :  { %13562 = vrot.lane.b32.xlu0 %v13551_v51, %s15510_s27  ;;  %v713_v51 = vld [vmem:[#allocation2 + $0x470] sm:$0xff] }
 0x14f   :  { %v13691_v5 = vpack.i.bf16 %v647_v50, %v713_v51 }
 0x151   :  { %13567 = vrot.lane.b32.xlu1 %v13566_v63, %s15509_s24 }
 0x152   :  { %13572 = vrot.lane.b32.xlu0 %v13571_v62, %s15511_s28 }
 0x155   :  { %13577 = vrot.lane.b32.xlu1 %v13566_v63, %s15509_s24 }
 0x156   :  { %13582 = vrot.lane.b32.xlu0 %v13581_v0, %s15510_s27 }
 0x159   :  { %13587 = vrot.lane.b32.xlu1 %v13571_v62, %s15511_s28 }
 0x15a   :  { %13592 = vrot.lane.b32.xlu0 %v13581_v0, %s15510_s27  ;;  %v13686_v0 = vpack.i.bf16 %v547_v46, %v613_v49 }
 0x15d   :  { %13597 = vrot.lane.b32.xlu1 %v13596_v14, %s15509_s24 }
 0x15e   :  { %13602 = vrot.lane.b32.xlu0 %v13601_v13, %s15511_s28 }
 0x161   :  { %13607 = vrot.lane.b32.xlu1 %v13596_v14, %s15509_s24 }
 0x162   :  { %13612 = vrot.lane.b32.xlu0 %v13611_v15, %s15510_s27 }
 0x165   :  { %13617 = vrot.lane.b32.xlu1 %v13601_v13, %s15511_s28 }
 0x166   :  { %13622 = vrot.lane.b32.xlu0 %v13611_v15, %s15510_s27 }
 0x169   :  { %13627 = vrot.lane.b32.xlu1 %v13626_v27, %s15509_s24 }
 0x16a   :  { %13632 = vrot.lane.b32.xlu0 %v13631_v25, %s15511_s28 }
 0x16d   :  { %13637 = vrot.lane.b32.xlu1 %v13626_v27, %s15509_s24 }
 0x16e   :  { %13642 = vrot.lane.b32.xlu0 %v13641_v30, %s15510_s27 }
 0x171   :  { %13647 = vrot.lane.b32.xlu1 %v13631_v25, %s15511_s28 }
 0x172   :  { %13652 = vrot.lane.b32.xlu0 %v13641_v30, %s15510_s27 }
 0x175   :  { %13657 = vrot.lane.b32.xlu1 %v13656_v39, %s15509_s24 }
 0x176   :  { %13662 = vrot.lane.b32.xlu0 %v13661_v38, %s15511_s28 }
 0x179   :  { %13667 = vrot.lane.b32.xlu1 %v13656_v39, %s15509_s24 }
 0x17a   :  { %13672 = vrot.lane.b32.xlu0 %v13671_v45, %s15510_s27 }
 0x17b   :  { %v13388_v56 = vpop.permute.xlu1 %13387 }
 0x17c   :  { %v13393_v55 = vpop.permute.xlu0 %13392  ;;  %v13390_v62 = vunpack.i.h.bf16 %v13388_v56  ;;  %v13389_v63 = vunpack.i.l.bf16 %v13388_v56  ;;  %v683_v56 = vld [vmem:[#allocation2 + $0x180] sm:$0xff] }
 0x17d   :  { %v13395_v3 = vunpack.i.h.bf16 %v13393_v55  ;;  %v13394_v4 = vunpack.i.l.bf16 %v13393_v55  ;;  %13677 = vrot.lane.b32.xlu1 %v13661_v38, %s15511_s28 }
 0x17e   :  { %13682 = vrot.lane.b32.xlu0 %v13671_v45, %s15510_s27  ;;  %v1661_v12 = vsel %vm271_vm0, %v682_v6, %v13389_v63  ;;  %v1613_v13 = vsel %vm271_vm0, %v16558_v54, %v13390_v62 }
 0x17f   :  { %v13398_v15 = vpop.permute.xlu1 %13397  ;;  %v1677_v25 = vsel %vm1530_vm2, %v1661_v12, %v13394_v4  ;;  %v1629_v27 = vsel %vm1530_vm2, %v1613_v13, %v13395_v3 }
 0x180   :  { %v13403_v14 = vpop.permute.xlu0 %13402  ;;  %v13400_v23 = vunpack.i.h.bf16 %v13398_v15  ;;  %v13399_v24 = vunpack.i.l.bf16 %v13398_v15 }
 0x181   :  { %v13405_v18 = vunpack.i.h.bf16 %v13403_v14  ;;  %v13404_v19 = vunpack.i.l.bf16 %v13403_v14  ;;  %13692 = vrot.lane.b32.xlu1 %v13691_v5, %s15509_s24 }
 0x182   :  { %13687 = vrot.lane.b32.xlu0 %v13686_v0, %s15510_s27  ;;  %v1566_v42 = vsel %vm271_vm0, %v682_v6, %v13399_v24  ;;  %v1516_v37 = vsel %vm271_vm0, %v16558_v54, %v13400_v23 }
 0x183   :  { %v1693_v30 = vsel %vm1547_vm3, %v1677_v25, %v13404_v19  ;;  %v1645_v7 = vsel %vm1547_vm3, %v1629_v27, %v13405_v18  ;;  %v13408_v32 = vpop.permute.xlu1 %13407  ;;  %v11280_v27 = vld [vmem:[%s21343_s4] ss:$0 sm:$0xff] }
 0x184   :  { %1993 = vmatprep.mubr.f32.mxu0 %v1693_v30  ;;  %v13413_v26 = vpop.permute.xlu0 %13412  ;;  %v13410_v38 = vunpack.i.h.bf16 %v13408_v32  ;;  %v13409_v39 = vunpack.i.l.bf16 %v13408_v32 }
 0x185   :  { %v13415_v33 = vunpack.i.h.bf16 %v13413_v26  ;;  %v13414_v34 = vunpack.i.l.bf16 %v13413_v26  ;;  %1994 = vmatmul.mubr.f32.gmra.mrb[34].mxu0 %v1645_v7  ;;  %13702 = vrot.lane.b32.xlu1 %v13701_v21, %s15510_s27  ;;  %v12435_v26 = vpop.f32.mrb[0].mxu1 }
 0x186   :  { %13697 = vrot.lane.b32.xlu0 %v13696_v20, %s15511_s28  ;;  %v1582_v45 = vsel %vm1530_vm2, %v1566_v42, %v13409_v39  ;;  %v1533_v46 = vsel %vm1530_vm2, %v1516_v37, %v13410_v38 }
 0x187   :  { %v13418_v50 = vpop.permute.xlu1 %13417  ;;  %v1598_v51 = vsel %vm1547_vm3, %v1582_v45, %v13414_v34  ;;  %v1550_v55 = vsel %vm1547_vm3, %v1533_v46, %v13415_v33  ;;  %v12436_v34 = vpop.f32.mrb[1].mxu1  ;;  %v684_v45 = vld [vmem:[#allocation2 + $0x1a0] sm:$0xff] }
 0x188   :  { %v13423_v49 = vpop.permute.xlu0 %13422  ;;  %v13420_v60 = vunpack.i.h.bf16 %v13418_v50  ;;  %v13419_v61 = vunpack.i.l.bf16 %v13418_v50  ;;  %1853 = vmatprep.mubr.f32.mxu1 %v1598_v51  ;;  %v618_v46 = vld [vmem:[#allocation2 + $0x80] sm:$0xff] }
 0x189   :  { %v13425_v62 = vunpack.i.h.bf16 %v13423_v49  ;;  %v13424_v63 = vunpack.i.l.bf16 %v13423_v49  ;;  %1854 = vmatmul.mubr.f32.gmra.mrb[4].mxu1 %v1550_v55  ;;  %v12437_v49 = vadd.f32 %v12436_v34, %v12435_v26 }
 0x18a   :  { %v1662_v54 = vsel %vm271_vm0, %v683_v56, %v13419_v61  ;;  %v1614_v0 = vsel %vm271_vm0, %v617_v57, %v13420_v60 }
 0x18b   :  { %v13428_v4 = vpop.permute.xlu1 %13427  ;;  %v1678_v13 = vsel %vm1530_vm2, %v1662_v54, %v13424_v63  ;;  %v1630_v14 = vsel %vm1530_vm2, %v1614_v0, %v13425_v62  ;;  %v1846_v60 = vadd.f32 %v12437_v49, %v11280_v27 }
 0x18c   :  { %v13433_v3 = vpop.permute.xlu0 %13432  ;;  %v13430_v10 = vunpack.i.h.bf16 %v13428_v4  ;;  %v13429_v12 = vunpack.i.l.bf16 %v13428_v4 }
 0x18d   :  { %v13435_v5 = vunpack.i.h.bf16 %v13433_v3  ;;  %v13434_v6 = vunpack.i.l.bf16 %v13433_v3 }
 0x18e   :  { %v1567_v30 = vsel %vm271_vm0, %v683_v56, %v13429_v12  ;;  %v1517_v7 = vsel %vm271_vm0, %v617_v57, %v13430_v10  ;;  %v12515_v56 = vpop.f32.mrb[32].mxu0 }
 0x18f   :  { %v1694_v15 = vsel %vm1547_vm3, %v1678_v13, %v13434_v6  ;;  %v1646_v18 = vsel %vm1547_vm3, %v1630_v14, %v13435_v5  ;;  %v13438_v20 = vpop.permute.xlu1 %13437  ;;  %v12516_v61 = vpop.f32.mrb[33].mxu0 }
 0x190   :  { %v13443_v19 = vpop.permute.xlu0 %13442  ;;  %1998 = vmatprep.mubr.f32.mxu0 %v1694_v15  ;;  %v13440_v24 = vunpack.i.h.bf16 %v13438_v20  ;;  %v13439_v25 = vunpack.i.l.bf16 %v13438_v20  ;;  %v12517_v54 = vadd.f32 %v12516_v61, %v12515_v56  ;;  %v13275_v56 = vunpack.i.h.bf16 %v16473_v31 }
 0x191   :  { %v13445_v21 = vunpack.i.h.bf16 %v13443_v19  ;;  %v13444_v23 = vunpack.i.l.bf16 %v13443_v19  ;;  %1999 = vmatmul.mubr.f32.gmra.mrb[36].mxu0 %v1646_v18 }
 0x192   :  { %v1583_v32 = vsel %vm1530_vm2, %v1567_v30, %v13439_v25  ;;  %v1534_v33 = vsel %vm1530_vm2, %v1517_v7, %v13440_v24  ;;  %v1991_v14 = vadd.f32 %v12517_v54, %v1846_v60  ;;  %v12438_v30 = vpop.f32.mrb[2].mxu1  ;;  %v13279_v54 = vunpack.i.l.bf16 %v16480_v40 }
 0x193   :  { %v13448_v39 = vpop.permute.xlu1 %13447  ;;  %v1599_v42 = vsel %vm1547_vm3, %v1583_v32, %v13444_v23  ;;  %v1551_v37 = vsel %vm1547_vm3, %v1534_v33, %v13445_v21  ;;  %v12439_v32 = vpop.f32.mrb[3].mxu1 }
 0x194   :  { %v13453_v38 = vpop.permute.xlu0 %13452  ;;  %v13450_v51 = vunpack.i.h.bf16 %v13448_v39  ;;  %v13449_v55 = vunpack.i.l.bf16 %v13448_v39  ;;  %1858 = vmatprep.mubr.f32.mxu1 %v1599_v42  ;;  %v2069_v21 = vmax.f32 %v1991_v14, 0.0  ;;  %v16646_v39 = vadd.f32 %v12439_v32, %v12438_v30 }
 0x195   :  { %v13454_v50 = vunpack.i.l.bf16 %v13453_v38  ;;  %v13455_v57 = vunpack.i.h.bf16 %v13453_v38  ;;  %1859 = vmatmul.mubr.f32.gmra.mrb[6].mxu1 %v1551_v37  ;;  %v687_v38 = vld [vmem:[#allocation2 + $0x200] sm:$0xff]  ;;  %v13274_v42 = vunpack.i.l.bf16 %v16473_v31  ;;  %v13290_v31 = vunpack.i.h.bf16 %v16490_v47 }
 0x196   :  { %v1663_v62 = vsel %vm271_vm0, %v684_v45, %v13449_v55  ;;  %v1615_v63 = vsel %vm271_vm0, %v618_v46, %v13450_v51  ;;  %2127 = vst.msk [vmem:[#allocation3 + $0x11] sm:$0xff] %vm1530_vm2, %v2069_v21  ;;  %v685_v51 = vld [vmem:[#allocation2 + $0x1c0] sm:$0xff]  ;;  %v13299_v32 = vunpack.i.l.bf16 %v16496_v52 }
 0x197   :  { %v13458_v3 = vpop.permute.xlu1 %13457  ;;  %v1679_v6 = vsel %vm1530_vm2, %v1663_v62, %v13454_v50  ;;  %v1631_v13 = vsel %vm1530_vm2, %v1615_v63, %v13455_v57  ;;  %v621_v55 = vld [vmem:[#allocation2 + $0xe0] sm:$0xff]  ;;  %v13280_v63 = vunpack.i.h.bf16 %v16480_v40  ;;  %v1666_v40 = vsel %vm271_vm0, %v687_v38, %v13274_v42 }
 0x198   :  { %v13463_v0 = vpop.permute.xlu0 %13462  ;;  %v13460_v10 = vunpack.i.h.bf16 %v13458_v3  ;;  %v13459_v12 = vunpack.i.l.bf16 %v13458_v3  ;;  %v2159_v62 = vld [vmem:[#allocation3 + $0x1] sm:$0xff]  ;;  %v13285_v3 = vunpack.i.h.bf16 %v16482_v41 }
 0x199   :  { %v13465_v4 = vunpack.i.h.bf16 %v13463_v0  ;;  %v13464_v5 = vunpack.i.l.bf16 %v13463_v0 }
 0x19a   :  { %v1568_v7 = vsel %vm271_vm0, %v684_v45, %v13459_v12  ;;  %v1518_v26 = vsel %vm271_vm0, %v618_v46, %v13460_v10  ;;  %v619_v46 = vld [vmem:[#allocation2 + $0xa0] sm:$0xff]  ;;  %v13289_v10 = vunpack.i.l.bf16 %v16490_v47  ;;  %v13295_v12 = vunpack.i.h.bf16 %v16492_v48 }
 0x19b   :  { %v1695_v15 = vsel %vm1547_vm3, %v1679_v6, %v13464_v5  ;;  %v1647_v18 = vsel %vm1547_vm3, %v1631_v13, %v13465_v4  ;;  %v13468_v20 = vpop.permute.xlu1 %13467  ;;  %v13284_v4 = vunpack.i.l.bf16 %v16482_v41  ;;  %v1618_v41 = vsel %vm271_vm0, %v621_v55, %v13275_v56 }
 0x19c   :  { %v13473_v19 = vpop.permute.xlu0 %13472  ;;  %2003 = vmatprep.mubr.f32.mxu0 %v1695_v15  ;;  %v13470_v25 = vunpack.i.h.bf16 %v13468_v20  ;;  %v13469_v27 = vunpack.i.l.bf16 %v13468_v20  ;;  %v13294_v47 = vunpack.i.l.bf16 %v16492_v48  ;;  %v1634_v42 = vsel %vm1530_vm2, %v1618_v41, %v13280_v63 }
 0x19d   :  { %v13475_v23 = vunpack.i.h.bf16 %v13473_v19  ;;  %v13474_v24 = vunpack.i.l.bf16 %v13473_v19  ;;  %2004 = vmatmul.mubr.f32.gmra.mrb[38].mxu0 %v1647_v18  ;;  %v2191_v20 = vld [vmem:[#allocation3 + $0x10] sm:$0xff]  ;;  %v13305_v56 = vunpack.i.h.bf16 %v16498_v53 }
 0x19e   :  { %v1584_v33 = vsel %vm1530_vm2, %v1568_v7, %v13469_v27  ;;  %v1535_v34 = vsel %vm1530_vm2, %v1518_v26, %v13470_v25  ;;  %v13706_v25 = vpack.i.bf16 %v2159_v62, %v2191_v20  ;;  %v1682_v7 = vsel %vm1530_vm2, %v1666_v40, %v13279_v54 }
 0x19f   :  { %v13478_v49 = vpop.permute.xlu1 %13477  ;;  %v1600_v50 = vsel %vm1547_vm3, %v1584_v33, %v13474_v24  ;;  %v1552_v45 = vsel %vm1547_vm3, %v1535_v34, %v13475_v23  ;;  %v13300_v26 = vunpack.i.h.bf16 %v16496_v52  ;;  %v13304_v62 = vunpack.i.l.bf16 %v16498_v53  ;;  %v622_v53 = vld [vmem:[#allocation2 + $0x100] sm:$0xff] }
 0x1a0   :  { %v13483_v37 = vpop.permute.xlu0 %13482  ;;  %v13480_v60 = vunpack.i.h.bf16 %v13478_v49  ;;  %v13479_v61 = vunpack.i.l.bf16 %v13478_v49  ;;  %1863 = vmatprep.mubr.f32.mxu1 %v1600_v50  ;;  %13707 = vrot.lane.b32.xlu0 %v13706_v25, %s15511_s28  ;;  %v1698_v54 = vsel %vm1547_vm3, %v1682_v7, %v13289_v10 }
 0x1a1   :  { %v13484_v57 = vunpack.i.l.bf16 %v13483_v37  ;;  %v13485_v0 = vunpack.i.h.bf16 %v13483_v37  ;;  %1864 = vmatmul.mubr.f32.gmra.mrb[8].mxu1 %v1552_v45  ;;  %v1571_v37 = vsel %vm271_vm0, %v687_v38, %v13284_v4 }
 0x1a2   :  { %v1664_v5 = vsel %vm271_vm0, %v685_v51, %v13479_v61  ;;  %v1616_v6 = vsel %vm271_vm0, %v619_v46, %v13480_v60  ;;  %v16677_v60 = vld [vmem:[#allocation2 + $0x1e0] sm:$0xff]  ;;  %v1521_v61 = vsel %vm271_vm0, %v621_v55, %v13285_v3  ;;  %v1587_v55 = vsel %vm1530_vm2, %v1571_v37, %v13294_v47 }
 0x1a3   :  { %v13488_v14 = vpop.permute.xlu1 %13487  ;;  %v1680_v19 = vsel %vm1530_vm2, %v1664_v5, %v13484_v57  ;;  %v1632_v24 = vsel %vm1530_vm2, %v1616_v6, %v13485_v0  ;;  %v620_v6 = vld [vmem:[#allocation2 + $0xc0] sm:$0xff]  ;;  %v13310_v3 = vunpack.i.h.bf16 %v16504_v58  ;;  %v1538_v10 = vsel %vm1530_vm2, %v1521_v61, %v13295_v12 }
 0x1a4   :  { %v13493_v13 = vpop.permute.xlu0 %13492  ;;  %v13490_v21 = vunpack.i.h.bf16 %v13488_v14  ;;  %v13489_v23 = vunpack.i.l.bf16 %v13488_v14  ;;  %v13319_v12 = vunpack.i.l.bf16 %v16510_v1 }
 0x1a5   :  { %v13495_v15 = vunpack.i.h.bf16 %v13493_v13  ;;  %v13494_v18 = vunpack.i.l.bf16 %v13493_v13  ;;  %v688_v13 = vld [vmem:[#allocation2 + $0x220] sm:$0xff] }
 0x1a6   :  { %v1569_v57 = vsel %vm271_vm0, %v685_v51, %v13489_v23  ;;  %v1519_v52 = vsel %vm271_vm0, %v619_v46, %v13490_v21  ;;  %v16687_v46 = vsel %vm1547_vm3, %v1634_v42, %v13290_v31  ;;  %v13314_v31 = vunpack.i.l.bf16 %v16506_v59 }
 0x1a7   :  { %v1696_v27 = vsel %vm1547_vm3, %v1680_v19, %v13494_v18  ;;  %v1648_v30 = vsel %vm1547_vm3, %v1632_v24, %v13495_v15  ;;  %v13498_v34 = vpop.permute.xlu1 %13497  ;;  %v13309_v15 = vunpack.i.l.bf16 %v16504_v58  ;;  %v13315_v18 = vunpack.i.h.bf16 %v16506_v59 }
 0x1a8   :  { %v13503_v33 = vpop.permute.xlu0 %13502  ;;  %2008 = vmatprep.mubr.f32.mxu0 %v1696_v27  ;;  %v13500_v50 = vunpack.i.h.bf16 %v13498_v34  ;;  %v13499_v45 = vunpack.i.l.bf16 %v13498_v34  ;;  %v16699_v23 = vsel %vm1547_vm3, %v1587_v55, %v13299_v32  ;;  %v13320_v24 = vunpack.i.h.bf16 %v16510_v1  ;;  %v689_v1 = vld [vmem:[#allocation2 + $0x380] sm:$0xff] }
 0x1a9   :  { %v13505_v48 = vunpack.i.h.bf16 %v13503_v33  ;;  %v13504_v49 = vunpack.i.l.bf16 %v13503_v33  ;;  %2009 = vmatmul.mubr.f32.gmra.mrb[40].mxu0 %v1648_v30  ;;  %v13325_v58 = vunpack.i.h.bf16 %v16512_v2  ;;  %v16705_v27 = vsel %vm1547_vm3, %v1538_v10, %v13300_v26 }
 0x1aa   :  { %v1585_v38 = vsel %vm1530_vm2, %v1569_v57, %v13499_v45  ;;  %v1536_v63 = vsel %vm1530_vm2, %v1519_v52, %v13500_v50  ;;  %v1667_v7 = vsel %vm271_vm0, %v688_v13, %v13304_v62  ;;  %v1619_v33 = vsel %vm271_vm0, %v622_v53, %v13305_v56  ;;  %v491_v57 = vld [vmem:[#allocation2 + $0x240] sm:$0xff] }
 0x1ab   :  { %v13508_v4 = vpop.permute.xlu1 %13507  ;;  %v1601_v5 = vsel %vm1547_vm3, %v1585_v38, %v13504_v49  ;;  %v1553_v51 = vsel %vm1547_vm3, %v1536_v63, %v13505_v48  ;;  %v557_v48 = vld [vmem:[#allocation2 + $0x360] sm:$0xff]  ;;  %v13324_v49 = vunpack.i.l.bf16 %v16512_v2  ;;  %v13334_v50 = vunpack.i.l.bf16 %v16520_v9 }
 0x1ac   :  { %v13513_v0 = vpop.permute.xlu0 %13512  ;;  %v13510_v14 = vunpack.i.h.bf16 %v13508_v4  ;;  %v13509_v40 = vunpack.i.l.bf16 %v13508_v4  ;;  %1868 = vmatprep.mubr.f32.mxu1 %v1601_v5  ;;  %v13330_v52 = vunpack.i.h.bf16 %v16518_v8  ;;  %v13329_v56 = vunpack.i.l.bf16 %v16518_v8  ;;  %v623_v13 = vld [vmem:[#allocation2 + $0x260] sm:$0xff] }
 0x1ad   :  { %v13515_v19 = vunpack.i.h.bf16 %v13513_v0  ;;  %v13514_v41 = vunpack.i.l.bf16 %v13513_v0  ;;  %1869 = vmatmul.mubr.f32.gmra.mrb[10].mxu1 %v1553_v51  ;;  %v1683_v38 = vsel %vm1530_vm2, %v1667_v7, %v13309_v15  ;;  %v1635_v63 = vsel %vm1530_vm2, %v1619_v33, %v13310_v3  ;;  %v690_v33 = vld [vmem:[#allocation2 + $0x3a0] sm:$0xff] }
 0x1ae   :  { %v1665_v20 = vsel %vm271_vm0, %v16677_v60, %v13509_v40  ;;  %v1617_v21 = vsel %vm271_vm0, %v620_v6, %v13510_v14  ;;  %v13335_v55 = vunpack.i.h.bf16 %v16520_v9  ;;  %v13339_v53 = vunpack.i.l.bf16 %v16524_v16 }
 0x1af   :  { %v13518_v47 = vpop.permute.xlu1 %13517  ;;  %v1681_v42 = vsel %vm1530_vm2, %v1665_v20, %v13514_v41  ;;  %v1633_v37 = vsel %vm1530_vm2, %v1617_v21, %v13515_v19  ;;  %v1668_v15 = vsel %vm271_vm0, %v689_v1, %v13334_v50  ;;  %v1572_v19 = vsel %vm271_vm0, %v557_v48, %v13314_v31 }
 0x1b0   :  { %v13523_v25 = vpop.permute.xlu0 %13522  ;;  %v13520_v34 = vunpack.i.h.bf16 %v13518_v47  ;;  %v13519_v32 = vunpack.i.l.bf16 %v13518_v47  ;;  %v13344_v41 = vunpack.i.l.bf16 %v16526_v17  ;;  %v1699_v31 = vsel %vm1547_vm3, %v1683_v38, %v13319_v12  ;;  %v624_v12 = vld [vmem:[#allocation2 + $0x280] sm:$0xff] }
 0x1b1   :  { %v13525_v59 = vunpack.i.h.bf16 %v13523_v25  ;;  %v13524_v30 = vunpack.i.l.bf16 %v13523_v25  ;;  %v13349_v25 = vunpack.i.l.bf16 %v16532_v11  ;;  %v1684_v7 = vsel %vm1530_vm2, %v1668_v15, %v13339_v53 }
 0x1b2   :  { %v1570_v14 = vsel %vm271_vm0, %v16677_v60, %v13519_v32  ;;  %v1520_v40 = vsel %vm271_vm0, %v620_v6, %v13520_v34  ;;  %v1522_v60 = vsel %vm271_vm0, %v491_v57, %v13315_v18  ;;  %v13340_v6 = vunpack.i.h.bf16 %v16524_v16 }
 0x1b3   :  { %v1697_v26 = vsel %vm1547_vm3, %v1681_v42, %v13524_v30  ;;  %v1649_v45 = vsel %vm1547_vm3, %v1633_v37, %v13525_v59  ;;  %v13528_v62 = vpop.permute.xlu1 %13527  ;;  %v13345_v59 = vunpack.i.h.bf16 %v16526_v17  ;;  %v1651_v30 = vsel %vm1547_vm3, %v1635_v63, %v13320_v24 }
 0x1b4   :  { %v13533_v61 = vpop.permute.xlu0 %13532  ;;  %2013 = vmatprep.mubr.f32.mxu0 %v1697_v26  ;;  %v13530_v5 = vunpack.i.h.bf16 %v13528_v62  ;;  %v13529_v51 = vunpack.i.l.bf16 %v13528_v62  ;;  %v1620_v18 = vsel %vm271_vm0, %v623_v13, %v13335_v55  ;;  %v13350_v16 = vunpack.i.h.bf16 %v16532_v11 }
 0x1b5   :  { %v13535_v0 = vunpack.i.h.bf16 %v13533_v61  ;;  %v13534_v4 = vunpack.i.l.bf16 %v13533_v61  ;;  %2014 = vmatmul.mubr.f32.gmra.mrb[42].mxu0 %v1649_v45  ;;  %v13354_v34 = vunpack.i.l.bf16 %v16534_v22  ;;  %v1539_v17 = vsel %vm1530_vm2, %v1522_v60, %v13325_v58 }
 0x1b6   :  { %2018 = vmatprep.mubr.f32.mxu0 %v1698_v54  ;;  %v1586_v10 = vsel %vm1530_vm2, %v1570_v14, %v13529_v51  ;;  %v1537_v3 = vsel %vm1530_vm2, %v1520_v40, %v13530_v5  ;;  %v13355_v24 = vunpack.i.h.bf16 %v16534_v22  ;;  %v1573_v11 = vsel %vm271_vm0, %v689_v1, %v13344_v41 }
 0x1b7   :  { %v13538_v9 = vpop.permute.xlu1 %13537  ;;  %v1602_v54 = vsel %vm1547_vm3, %v1586_v10, %v13534_v4  ;;  %v1554_v21 = vsel %vm1547_vm3, %v1537_v3, %v13535_v0  ;;  %v13359_v58 = vunpack.i.l.bf16 %v16538_v28  ;;  %v1523_v45 = vsel %vm271_vm0, %v623_v13, %v13345_v59 }
 0x1b8   :  { %v16729_v20 = vpop.permute.xlu0 %13542  ;;  %v13539_v47 = vunpack.i.l.bf16 %v13538_v9  ;;  %1873 = vmatprep.mubr.f32.mxu1 %v1602_v54  ;;  %v13540_v42 = vunpack.i.h.bf16 %v13538_v9  ;;  %v13360_v1 = vunpack.i.h.bf16 %v16538_v28  ;;  %v1556_v61 = vsel %vm1547_vm3, %v1539_v17, %v13330_v52 }
 0x1b9   :  { %2019 = vmatmul.mubr.f32.gmra.mrb[44].mxu0 %v16687_v46  ;;  %1874 = vmatmul.mubr.f32.gmra.mrb[12].mxu1 %v1554_v21  ;;  %v1588_v46 = vsel %vm1530_vm2, %v1572_v19, %v13324_v49  ;;  %v13544_v32 = vunpack.i.l.bf16 %v16729_v20  ;;  %v1636_v49 = vsel %vm1530_vm2, %v1620_v18, %v13340_v6  ;;  %v13545_v57 = vunpack.i.h.bf16 %v16729_v20 }
 0x1ba   :  { %2023 = vmatprep.mubr.f32.mxu0 %v1699_v31  ;;  %1878 = vmatprep.mubr.f32.mxu1 %v16699_v23  ;;  %v1700_v23 = vsel %vm1547_vm3, %v1684_v7, %v13349_v25  ;;  %v1669_v2 = vsel %vm271_vm0, %v690_v33, %v13539_v47  ;;  %v1604_v22 = vsel %vm1547_vm3, %v1588_v46, %v13329_v56 }
 0x1bb   :  { %v13548_v48 = vpop.permute.xlu1 %13547  ;;  %v1589_v62 = vsel %vm1530_vm2, %v1573_v11, %v13354_v34 }
 0x1bc   :  { %v13553_v37 = vpop.permute.xlu0 %13552  ;;  %v13549_v26 = vunpack.i.l.bf16 %v13548_v48 }
 0x1bd   :  { %v13554_v50 = vunpack.i.l.bf16 %v13553_v37  ;;  %2024 = vmatmul.mubr.f32.gmra.mrb[46].mxu0 %v1651_v30  ;;  %1879 = vmatmul.mubr.f32.gmra.mrb[14].mxu1 %v16705_v27 }
 0x1be   :  { %2028 = vmatprep.mubr.f32.mxu0 %v1700_v23  ;;  %1883 = vmatprep.mubr.f32.mxu1 %v1604_v22 }
 0x1bf   :  { %16 = vsyncpa [#allocation5], 0  ;;  %v13555_v38 = vunpack.i.h.bf16 %v13553_v37  ;;  %v13558_v27 = vpop.permute.xlu1 %13557  ;;  %v1652_v0 = vsel %vm1547_vm3, %v1636_v49, %v13350_v16  ;;  %v1685_v56 = vsel %vm1530_vm2, %v1669_v2, %v13544_v32  ;;  %v1621_v4 = vsel %vm271_vm0, %v624_v12, %v13540_v42  ;;  %v691_v47 = vld [vmem:[#allocation2 + $0x3c0] sm:$0xff]  ;;  %s15512_s13 = smov [#allocation4]  }
 0x1c0   :  { %v13563_v63 = vpop.permute.xlu0 %13562  ;;  %v13550_v28 = vunpack.i.h.bf16 %v13548_v48  ;;  %v13559_v5 = vunpack.i.l.bf16 %v13558_v27  ;;  %v1701_v51 = vsel %vm1547_vm3, %v1685_v56, %v13554_v50  ;;  %v1540_v8 = vsel %vm1530_vm2, %v1523_v45, %v13355_v24  ;;  %v625_v31 = vld [vmem:[#allocation2 + $0x2a0] sm:$0xff] }
 0x1c1   :  { %2029 = vmatmul.mubr.f32.gmra.mrb[48].mxu0 %v1652_v0  ;;  %v13564_v52 = vunpack.i.l.bf16 %v13563_v63  ;;  %v13560_v13 = vunpack.i.h.bf16 %v13558_v27  ;;  %1884 = vmatmul.mubr.f32.gmra.mrb[16].mxu1 %v1556_v61  ;;  %v1605_v55 = vsel %vm1547_vm3, %v1589_v62, %v13359_v58  ;;  %v1574_v53 = vsel %vm271_vm0, %v690_v33, %v13549_v26  ;;  %v692_v0 = vld [vmem:[#allocation2 + $0x3e0] sm:$0xff] }
 0x1c2   :  { %2033 = vmatprep.mubr.f32.mxu0 %v1701_v51  ;;  %1888 = vmatprep.mubr.f32.mxu1 %v1605_v55  ;;  %v1637_v14 = vsel %vm1530_vm2, %v1621_v4, %v13545_v57  ;;  %v1590_v40 = vsel %vm1530_vm2, %v1574_v53, %v13559_v5  ;;  %v1557_v19 = vsel %vm1547_vm3, %v1540_v8, %v13360_v1  ;;  %v13565_v41 = vunpack.i.h.bf16 %v13563_v63  ;;  %v626_v56 = vld [vmem:[#allocation2 + $0x2c0] sm:$0xff] }
 0x1c3   :  { %v13568_v3 = vpop.permute.xlu1 %13567  ;;  %v1653_v15 = vsel %vm1547_vm3, %v1637_v14, %v13555_v38  ;;  %v1524_v54 = vsel %vm271_vm0, %v624_v12, %v13550_v28  ;;  %v1606_v6 = vsel %vm1547_vm3, %v1590_v40, %v13564_v52  ;;  %vm3189_vm7 = vcmask 1041409  }
 0x1c4   :  { %v13573_v10 = vpop.permute.xlu0 %13572  ;;  %v13570_v20 = vunpack.i.h.bf16 %v13568_v3  ;;  %v13569_v9 = vunpack.i.l.bf16 %v13568_v3  ;;  %v1541_v25 = vsel %vm1530_vm2, %v1524_v54, %v13560_v13 }
 0x1c5   :  { %2034 = vmatmul.mubr.f32.gmra.mrb[50].mxu0 %v1653_v15  ;;  %v13575_v21 = vunpack.i.h.bf16 %v13573_v10  ;;  %v13574_v60 = vunpack.i.l.bf16 %v13573_v10  ;;  %1889 = vmatmul.mubr.f32.gmra.mrb[18].mxu1 %v1557_v19  ;;  %v1558_v34 = vsel %vm1547_vm3, %v1541_v25, %v13565_v41 }
 0x1c6   :  { %1893 = vmatprep.mubr.f32.mxu1 %v1606_v6  ;;  %v1670_v59 = vsel %vm271_vm0, %v691_v47, %v13569_v9  ;;  %v1622_v30 = vsel %vm271_vm0, %v625_v31, %v13570_v20 }
 0x1c7   :  { %v13578_v18 = vpop.permute.xlu1 %13577  ;;  %v1686_v12 = vsel %vm1530_vm2, %v1670_v59, %v13574_v60  ;;  %v1638_v24 = vsel %vm1530_vm2, %v1622_v30, %v13575_v21 }
 0x1c8   :  { %v13583_v7 = vpop.permute.xlu0 %13582  ;;  %v13580_v46 = vunpack.i.h.bf16 %v13578_v18  ;;  %v13579_v17 = vunpack.i.l.bf16 %v13578_v18 }
 0x1c9   :  { %v13585_v33 = vunpack.i.h.bf16 %v13583_v7  ;;  %v13584_v16 = vunpack.i.l.bf16 %v13583_v7  ;;  %1894 = vmatmul.mubr.f32.gmra.mrb[20].mxu1 %v1558_v34  ;;  %v627_v34 = vld [vmem:[#allocation2 + $0x2e0] sm:$0xff] }
 0x1ca   :  { %v1575_v2 = vsel %vm271_vm0, %v691_v47, %v13579_v17  ;;  %v1525_v58 = vsel %vm271_vm0, %v625_v31, %v13580_v46 }
 0x1cb   :  { %v1702_v32 = vsel %vm1547_vm3, %v1686_v12, %v13584_v16  ;;  %v1654_v42 = vsel %vm1547_vm3, %v1638_v24, %v13585_v33  ;;  %v13588_v48 = vpop.permute.xlu1 %13587  ;;  %v693_v16 = vld [vmem:[#allocation2 + $0x400] sm:$0xff] }
 0x1cc   :  { %v13593_v37 = vpop.permute.xlu0 %13592  ;;  %2038 = vmatprep.mubr.f32.mxu0 %v1702_v32  ;;  %v13590_v23 = vunpack.i.h.bf16 %v13588_v48  ;;  %v13589_v49 = vunpack.i.l.bf16 %v13588_v48 }
 0x1cd   :  { %v13595_v11 = vunpack.i.h.bf16 %v13593_v37  ;;  %v13594_v50 = vunpack.i.l.bf16 %v13593_v37  ;;  %2039 = vmatmul.mubr.f32.gmra.mrb[52].mxu0 %v1654_v42 }
 0x1ce   :  { %v1591_v26 = vsel %vm1530_vm2, %v1575_v2, %v13589_v49  ;;  %v1542_v22 = vsel %vm1530_vm2, %v1525_v58, %v13590_v23 }
 0x1cf   :  { %v13598_v1 = vpop.permute.xlu1 %13597  ;;  %v1607_v57 = vsel %vm1547_vm3, %v1591_v26, %v13594_v50  ;;  %v1559_v61 = vsel %vm1547_vm3, %v1542_v22, %v13595_v11 }
 0x1d0   :  { %v13603_v45 = vpop.permute.xlu0 %13602  ;;  %v13600_v62 = vunpack.i.h.bf16 %v13598_v1  ;;  %v13599_v38 = vunpack.i.l.bf16 %v13598_v1  ;;  %1898 = vmatprep.mubr.f32.mxu1 %v1607_v57  ;;  %v13364_v57 = vunpack.i.l.bf16 %v16540_v29 }
 0x1d1   :  { %v13605_v63 = vunpack.i.h.bf16 %v13603_v45  ;;  %v13604_v27 = vunpack.i.l.bf16 %v13603_v45  ;;  %1899 = vmatmul.mubr.f32.gmra.mrb[22].mxu1 %v1559_v61 }
 0x1d2   :  { %v1671_v4 = vsel %vm271_vm0, %v692_v0, %v13599_v38  ;;  %v1623_v28 = vsel %vm271_vm0, %v626_v56, %v13600_v62 }
 0x1d3   :  { %v13608_v51 = vpop.permute.xlu1 %13607  ;;  %v1687_v53 = vsel %vm1530_vm2, %v1671_v4, %v13604_v27  ;;  %v1639_v14 = vsel %vm1530_vm2, %v1623_v28, %v13605_v63  ;;  %v695_v27 = vld [vmem:[#allocation2 + $0x440] sm:$0xff] }
 0x1d4   :  { %v13613_v5 = vpop.permute.xlu0 %13612  ;;  %v13610_v13 = vunpack.i.h.bf16 %v13608_v51  ;;  %v13609_v55 = vunpack.i.l.bf16 %v13608_v51  ;;  %v13365_v51 = vunpack.i.h.bf16 %v16540_v29  ;;  %v13379_v29 = vunpack.i.l.bf16 %v16552_v43 }
 0x1d5   :  { %v13615_v8 = vunpack.i.h.bf16 %v13613_v5  ;;  %v13614_v52 = vunpack.i.l.bf16 %v13613_v5  ;;  %v694_v5 = vld [vmem:[#allocation2 + $0x420] sm:$0xff] }
 0x1d6   :  { %v1576_v54 = vsel %vm271_vm0, %v692_v0, %v13609_v55  ;;  %v1526_v21 = vsel %vm271_vm0, %v626_v56, %v13610_v13 }
 0x1d7   :  { %v1703_v40 = vsel %vm1547_vm3, %v1687_v53, %v13614_v52  ;;  %v1655_v10 = vsel %vm1547_vm3, %v1639_v14, %v13615_v8  ;;  %v13618_v15 = vpop.permute.xlu1 %13617  ;;  %v13369_v8 = vunpack.i.l.bf16 %v16544_v35  ;;  %v628_v14 = vld [vmem:[#allocation2 + $0x300] sm:$0xff] }
 0x1d8   :  { %v13623_v3 = vpop.permute.xlu0 %13622  ;;  %2043 = vmatprep.mubr.f32.mxu0 %v1703_v40  ;;  %v13620_v20 = vunpack.i.h.bf16 %v13618_v15  ;;  %v13619_v9 = vunpack.i.l.bf16 %v13618_v15  ;;  %v1674_v40 = vsel %vm271_vm0, %v695_v27, %v13364_v57 }
 0x1d9   :  { %v13625_v19 = vunpack.i.h.bf16 %v13623_v3  ;;  %v13624_v41 = vunpack.i.l.bf16 %v13623_v3  ;;  %2044 = vmatmul.mubr.f32.gmra.mrb[54].mxu0 %v1655_v10  ;;  %v629_v10 = vld [vmem:[#allocation2 + $0x320] sm:$0xff] }
 0x1da   :  { %v1592_v60 = vsel %vm1530_vm2, %v1576_v54, %v13619_v9  ;;  %v1543_v6 = vsel %vm1530_vm2, %v1526_v21, %v13620_v20  ;;  %v1690_v21 = vsel %vm1530_vm2, %v1674_v40, %v13369_v8 }
 0x1db   :  { %v13628_v47 = vpop.permute.xlu1 %13627  ;;  %v1608_v31 = vsel %vm1547_vm3, %v1592_v60, %v13624_v41  ;;  %v1560_v59 = vsel %vm1547_vm3, %v1543_v6, %v13625_v19  ;;  %v13370_v19 = vunpack.i.h.bf16 %v16544_v35  ;;  %v1626_v60 = vsel %vm271_vm0, %v629_v10, %v13365_v51 }
 0x1dc   :  { %v13633_v25 = vpop.permute.xlu0 %13632  ;;  %v13630_v30 = vunpack.i.h.bf16 %v13628_v47  ;;  %v13629_v7 = vunpack.i.l.bf16 %v13628_v47  ;;  %1903 = vmatprep.mubr.f32.mxu1 %v1608_v31 }
 0x1dd   :  { %v13635_v18 = vunpack.i.h.bf16 %v13633_v25  ;;  %v13634_v33 = vunpack.i.l.bf16 %v13633_v25  ;;  %1904 = vmatmul.mubr.f32.gmra.mrb[24].mxu1 %v1560_v59  ;;  %v13374_v59 = vunpack.i.l.bf16 %v16546_v36 }
 0x1de   :  { %v1672_v46 = vsel %vm271_vm0, %v693_v16, %v13629_v7  ;;  %v1624_v17 = vsel %vm271_vm0, %v627_v34, %v13630_v30  ;;  %v13375_v7 = vunpack.i.h.bf16 %v16546_v36 }
 0x1df   :  { %v13638_v24 = vpop.permute.xlu1 %13637  ;;  %v1688_v11 = vsel %vm1530_vm2, %v1672_v46, %v13634_v33  ;;  %v1640_v50 = vsel %vm1530_vm2, %v1624_v17, %v13635_v18  ;;  %v13380_v18 = vunpack.i.h.bf16 %v16552_v43  ;;  %v1642_v46 = vsel %vm1530_vm2, %v1626_v60, %v13370_v19  ;;  %v2611_v60 = vld [vmem:[%s21344_s5 + $0x18] sm:$0xff] }
 0x1e0   :  { %v13643_v12 = vpop.permute.xlu0 %13642  ;;  %v13640_v37 = vunpack.i.h.bf16 %v13638_v24  ;;  %v13639_v48 = vunpack.i.l.bf16 %v13638_v24  ;;  %v13385_v43 = vunpack.i.h.bf16 %v16554_v44 }
 0x1e1   :  { %v13645_v32 = vunpack.i.h.bf16 %v13643_v12  ;;  %v13644_v42 = vunpack.i.l.bf16 %v13643_v12 }
 0x1e2   :  { %v1577_v61 = vsel %vm271_vm0, %v693_v16, %v13639_v48  ;;  %v1527_v62 = vsel %vm271_vm0, %v627_v34, %v13640_v37  ;;  %v1706_v34 = vsel %vm1547_vm3, %v1690_v21, %v13379_v29  ;;  %v2610_v21 = vld [vmem:[%s21344_s5 + $0x10] sm:$0xff] }
 0x1e3   :  { %v1704_v23 = vsel %vm1547_vm3, %v1688_v11, %v13644_v42  ;;  %v1656_v49 = vsel %vm1547_vm3, %v1640_v50, %v13645_v32  ;;  %v13648_v58 = vpop.permute.xlu1 %13647  ;;  %v13384_v42 = vunpack.i.l.bf16 %v16554_v44  ;;  %v1579_v50 = vsel %vm271_vm0, %v695_v27, %v13374_v59  ;;  %v630_v27 = vld [vmem:[#allocation2 + $0x340] sm:$0xff] }
 0x1e4   :  { %v13653_v2 = vpop.permute.xlu0 %13652  ;;  %2048 = vmatprep.mubr.f32.mxu0 %v1704_v23  ;;  %v13650_v45 = vunpack.i.h.bf16 %v13648_v58  ;;  %v13649_v1 = vunpack.i.l.bf16 %v13648_v58  ;;  %v1658_v58 = vsel %vm1547_vm3, %v1642_v46, %v13380_v18  ;;  %v2612_v59 = vld [vmem:[%s21344_s5 + $0x20] sm:$0xff]  ;;  %v2631_v18 = vld [vmem:[%s21344_s5 + $0xb8] sm:$0xff] }
 0x1e5   :  { %v13655_v26 = vunpack.i.h.bf16 %v13653_v2  ;;  %v13654_v22 = vunpack.i.l.bf16 %v13653_v2  ;;  %2049 = vmatmul.mubr.f32.gmra.mrb[56].mxu0 %v1656_v49 }
 0x1e6   :  { %v1593_v38 = vsel %vm1530_vm2, %v1577_v61, %v13649_v1  ;;  %v1544_v63 = vsel %vm1530_vm2, %v1527_v62, %v13650_v45  ;;  %v1595_v61 = vsel %vm1530_vm2, %v1579_v50, %v13384_v42  ;;  %v2617_v42 = vld [vmem:[%s21344_s5 + $0x48] sm:$0xff]  ;;  %v2619_v50 = vld [vmem:[%s21344_s5 + $0x58] sm:$0xff] }
 0x1e7   :  { %v13658_v56 = vpop.permute.xlu1 %13657  ;;  %v1609_v4 = vsel %vm1547_vm3, %v1593_v38, %v13654_v22  ;;  %v1561_v28 = vsel %vm1547_vm3, %v1544_v63, %v13655_v26  ;;  %v1529_v22 = vsel %vm271_vm0, %v629_v10, %v13375_v7  ;;  %v696_v63 = vld [vmem:[#allocation2 + $0x460] sm:$0xff]  ;;  %v2630_v7 = vld [vmem:[%s21344_s5 + $0xb0] sm:$0xff] }
 0x1e8   :  { %v13663_v0 = vpop.permute.xlu0 %13662  ;;  %v13660_v52 = vunpack.i.h.bf16 %v13658_v56  ;;  %v13659_v13 = vunpack.i.l.bf16 %v13658_v56  ;;  %1908 = vmatprep.mubr.f32.mxu1 %v1609_v4  ;;  %v1546_v38 = vsel %vm1530_vm2, %v1529_v22, %v13385_v43  ;;  %v2635_v43 = vld [vmem:[%s21344_s5 + $0xd8] sm:$0xff]  ;;  %v2621_v22 = vld [vmem:[%s21344_s5 + $0x68] sm:$0xff] }
 0x1e9   :  { %v13665_v55 = vunpack.i.h.bf16 %v13663_v0  ;;  %v13664_v53 = vunpack.i.l.bf16 %v13663_v0  ;;  %1909 = vmatmul.mubr.f32.gmra.mrb[26].mxu1 %v1561_v28 }
 0x1ea   :  { %v1673_v3 = vsel %vm271_vm0, %v694_v5, %v13659_v13  ;;  %v1625_v15 = vsel %vm271_vm0, %v628_v14, %v13660_v52 }
 0x1eb   :  { %v13668_v20 = vpop.permute.xlu1 %13667  ;;  %v1689_v47 = vsel %vm1530_vm2, %v1673_v3, %v13664_v53  ;;  %v1641_v31 = vsel %vm1530_vm2, %v1625_v15, %v13665_v55  ;;  %v2624_v55 = vld [vmem:[%s21344_s5 + $0x80] sm:$0xff]  ;;  %v2625_v53 = vld [vmem:[%s21344_s5 + $0x88] sm:$0xff] }
 0x1ec   :  { %v13673_v41 = vpop.permute.xlu0 %13672  ;;  %v13670_v6 = vunpack.i.h.bf16 %v13668_v20  ;;  %v13669_v25 = vunpack.i.l.bf16 %v13668_v20  ;;  %v12953_v10 = vpack.c.bf16 %v2625_v53, %v2624_v55  ;;  %v2608_v3 = vld [vmem:[%s21344_s5] sm:$0xff]  ;;  %v2609_v15 = vld [vmem:[%s21344_s5 + $0x8] sm:$0xff]  ;;  %v2626_v20 = vld [vmem:[%s21344_s5 + $0x90] sm:$0xff] }
 0x1ed   :  { %v13675_v9 = vunpack.i.h.bf16 %v13673_v41  ;;  %v13674_v54 = vunpack.i.l.bf16 %v13673_v41  ;;  %v12955_v41 = vpack.c.bf16 %v2609_v15, %v2608_v3 }
 0x1ee   :  { %v1578_v37 = vsel %vm271_vm0, %v694_v5, %v13669_v25  ;;  %v1528_v36 = vsel %vm271_vm0, %v628_v14, %v13670_v6  ;;  %12954 = vmatprep.subr.bf16.mxu1 %v12953_v10  ;;  %v12959_v6 = vpack.c.bf16 %v2611_v60, %v2610_v21  ;;  %v2628_v25 = vld [vmem:[%s21344_s5 + $0xa0] sm:$0xff] }
 0x1ef   :  { %v1705_v35 = vsel %vm1547_vm3, %v1689_v47, %v13674_v54  ;;  %v1657_v30 = vsel %vm1547_vm3, %v1641_v31, %v13675_v9  ;;  %v13678_v16 = vpop.permute.xlu1 %13677  ;;  %12956 = vmatpush3.bf16.msra.mxu1 %v12955_v41  ;;  %v2627_v9 = vld [vmem:[%s21344_s5 + $0x98] sm:$0xff]  ;;  %v2629_v47 = vld [vmem:[%s21344_s5 + $0xa8] sm:$0xff] }
 0x1f0   :  { %v13683_v33 = vpop.permute.xlu0 %13682  ;;  %2053 = vmatprep.mubr.f32.mxu0 %v1705_v35  ;;  %v13680_v24 = vunpack.i.h.bf16 %v13678_v16  ;;  %v13679_v32 = vunpack.i.l.bf16 %v13678_v16  ;;  %v12957_v54 = vpack.c.bf16 %v2627_v9, %v2626_v20  ;;  %v12961_v31 = vpack.c.bf16 %v2629_v47, %v2628_v25  ;;  %v2613_v35 = vld [vmem:[%s21344_s5 + $0x28] sm:$0xff]  ;;  %v2614_v16 = vld [vmem:[%s21344_s5 + $0x30] sm:$0xff] }
 0x1f1   :  { %v13685_v17 = vunpack.i.h.bf16 %v13683_v33  ;;  %v13684_v12 = vunpack.i.l.bf16 %v13683_v33  ;;  %2054 = vmatmul.mubr.f32.gmra.mrb[58].mxu0 %v1657_v30  ;;  %v12963_v30 = vpack.c.bf16 %v2613_v35, %v2612_v59  ;;  %v12965_v33 = vpack.c.bf16 %v2631_v18, %v2630_v7  ;;  %v16963_v20 = vld [vmem:[#allocation3 + $0x11] sm:$0xff] }
 0x1f2   :  { %2058 = vmatprep.mubr.f32.mxu0 %v1706_v34  ;;  %v1594_v48 = vsel %vm1530_vm2, %v1578_v37, %v13679_v32  ;;  %v1545_v11 = vsel %vm1530_vm2, %v1528_v36, %v13680_v24  ;;  %12958 = vmatprep.subr.bf16.mxu1 %v12957_v54  ;;  %v2615_v34 = vld [vmem:[%s21344_s5 + $0x38] sm:$0xff]  ;;  %v2616_v32 = vld [vmem:[%s21344_s5 + $0x40] sm:$0xff]  ;;  %v2634_v36 = vld [vmem:[%s21344_s5 + $0xd0] sm:$0xff] }
 0x1f3   :  { %v13693_v49 = vpop.permute.xlu1 %13692  ;;  %v1610_v2 = vsel %vm1547_vm3, %v1594_v48, %v13684_v12  ;;  %v1562_v26 = vsel %vm1547_vm3, %v1545_v11, %v13685_v17  ;;  %12960 = vmatpush3.bf16.msra.mxu1 %v12959_v6  ;;  %v12967_v46 = vpack.c.bf16 %v2615_v34, %v2614_v16  ;;  %v2632_v17 = vld [vmem:[%s21344_s5 + $0xc0] sm:$0xff]  ;;  %v2633_v12 = vld [vmem:[%s21344_s5 + $0xc8] sm:$0xff]  ;;  %v12971_v37 = vpack.c.bf16 %v2617_v42, %v2616_v32  ;;  %v2618_v11 = vld [vmem:[%s21344_s5 + $0x50] sm:$0xff] }
 0x1f4   :  { %v13688_v23 = vpop.permute.xlu0 %13687  ;;  %1913 = vmatprep.mubr.f32.mxu1 %v1610_v2  ;;  %v13695_v44 = vunpack.i.h.bf16 %v13693_v49  ;;  %v13694_v57 = vunpack.i.l.bf16 %v13693_v49  ;;  %12962 = vmatprep.subr.bf16.mxu1 %v12961_v31  ;;  %v12969_v24 = vpack.c.bf16 %v2633_v12, %v2632_v17  ;;  %v12973_v48 = vpack.c.bf16 %v2635_v43, %v2634_v36  ;;  %v2636_v49 = vld [vmem:[%s21344_s5 + $0xe0] sm:$0xff]  ;;  %v2637_v2 = vld [vmem:[%s21344_s5 + $0xe8] sm:$0xff] }
 0x1f5   :  { %v13690_v45 = vunpack.i.h.bf16 %v13688_v23  ;;  %v13689_v1 = vunpack.i.l.bf16 %v13688_v23  ;;  %2059 = vmatmul.mubr.f32.gmra.mrb[60].mxu0 %v1658_v58  ;;  %1914 = vmatmul.mubr.f32.gmra.mrb[28].mxu1 %v1562_v26  ;;  %v12975_v23 = vpack.c.bf16 %v2619_v50, %v2618_v11  ;;  %v12977_v58 = vpack.c.bf16 %v2637_v2, %v2636_v49  ;;  %v2620_v26 = vld [vmem:[%s21344_s5 + $0x60] sm:$0xff] }
 0x1f6   :  { %v1675_v52 = vsel %vm271_vm0, %v696_v63, %v13694_v57  ;;  %v1627_v13 = vsel %vm271_vm0, %v630_v27, %v13695_v44  ;;  %v2639_v44 = vld [vmem:[%s21344_s5 + $0xf8] sm:$0xff]  ;;  %v2175_v27 = vld [vmem:[#allocation3 + $0x2] sm:$0xff] }
 0x1f7   :  { %v1611_v62 = vsel %vm1547_vm3, %v1595_v61, %v13689_v1  ;;  %v13703_v56 = vpop.permute.xlu1 %13702  ;;  %v1563_v4 = vsel %vm1547_vm3, %v1546_v38, %v13690_v45  ;;  %12964 = vmatpush3.bf16.msra.mxu1 %v12963_v30  ;;  %v12979_v45 = vpack.c.bf16 %v2621_v22, %v2620_v26  ;;  %v2638_v1 = vld [vmem:[%s21344_s5 + $0xf0] sm:$0xff]  ;;  %v2656_v2 = vld [vmem:[%s21344_s5 + $0x180] sm:$0xff] }
 0x1f8   :  { %v13698_v0 = vpop.permute.xlu0 %13697  ;;  %1918 = vmatprep.mubr.f32.mxu1 %v1611_v62  ;;  %v13705_v51 = vunpack.i.h.bf16 %v13703_v56  ;;  %v13704_v8 = vunpack.i.l.bf16 %v13703_v56  ;;  %12966 = vmatprep.subr.bf16.mxu1 %v12965_v33  ;;  %v12981_v57 = vpack.c.bf16 %v2639_v44, %v2638_v1  ;;  %v2622_v61 = vld [vmem:[%s21344_s5 + $0x70] sm:$0xff]  ;;  %v2623_v62 = vld [vmem:[%s21344_s5 + $0x78] sm:$0xff]  ;;  %v2640_v26 = vld [vmem:[%s21344_s5 + $0x100] sm:$0xff] }
 0x1f9   :  { %v13700_v28 = vunpack.i.h.bf16 %v13698_v0  ;;  %v13699_v5 = vunpack.i.l.bf16 %v13698_v0  ;;  %1919 = vmatmul.mubr.f32.gmra.mrb[30].mxu1 %v1563_v4  ;;  %v12983_v38 = vpack.c.bf16 %v2623_v62, %v2622_v61  ;;  %v2143_v4 = vld [vmem:[#allocation3] sm:$0xff] }
 0x1fb   :  { %v1691_v14 = vsel %vm1530_vm2, %v1675_v52, %v13699_v5  ;;  %v1643_v40 = vsel %vm1530_vm2, %v1627_v13, %v13700_v28  ;;  %12968 = vmatpush3.bf16.msra.mxu1 %v12967_v46  ;;  %v16957_v52 = vld [vmem:[%s21343_s4] ss:$0 sm:$0xff] }
 0x1fc   :  { %v1707_v19 = vsel %vm1547_vm3, %v1691_v14, %v13704_v8  ;;  %v1659_v29 = vsel %vm1547_vm3, %v1643_v40, %v13705_v51  ;;  %12970 = vmatprep.subr.bf16.mxu1 %v12969_v24  ;;  %v1851_v13 = vadd.f32 %v16957_v52, %v16646_v39 }
 0x1fd   :  { %2063 = vmatprep.mubr.f32.mxu0 %v1707_v19 }
 0x1fe   :  { %2064 = vmatmul.mubr.f32.gmra.mrb[62].mxu0 %v1659_v29 }
 0x1ff   :  { %12972 = vmatpush3.bf16.msra.mxu1 %v12971_v37 }
 0x200   :  { %12974 = vmatprep.subr.bf16.mxu1 %v12973_v48 }
 0x203   :  { %12976 = vmatpush3.bf16.msra.mxu1 %v12975_v23 }
 0x204   :  { %12978 = vmatprep.subr.bf16.mxu1 %v12977_v58  ;;  %v2657_v58 = vld [vmem:[%s21344_s5 + $0x188] sm:$0xff] }
 0x205   :  { %v12985_v22 = vpack.c.bf16 %v2657_v58, %v2656_v2 }
 0x207   :  { %12980 = vmatpush3.bf16.msra.mxu1 %v12979_v45  ;;  %v2641_v45 = vld [vmem:[%s21344_s5 + $0x108] sm:$0xff]  ;;  %12986 = vmatprep.subr.bf16.mxu0 %v12985_v22 }
 0x208   :  { %12982 = vmatprep.subr.bf16.mxu1 %v12981_v57  ;;  %v12987_v1 = vpack.c.bf16 %v2641_v45, %v2640_v26 }
 0x20a   :  { %12988 = vmatpush3.bf16.msra.mxu0 %v12987_v1  ;;  %v2672_v1 = vld [vmem:[%s21344_s5 + $0x200] sm:$0xff] }
 0x20b   :  { %12984 = vmatpush3.bf16.msra.mxu1 %v12983_v38 }
 0x212   :  { %v13708_v63 = vpop.permute.xlu0 %13707 }
 0x213   :  { %v13710_v0 = vunpack.i.h.bf16 %v13708_v63  ;;  %v13709_v56 = vunpack.i.l.bf16 %v13708_v63 }
 0x215   :  { %v2560_v28 = vsel %vm1530_vm2, %v2175_v27, %v13709_v56  ;;  %v2544_v5 = vsel %vm1530_vm2, %v2143_v4, %v13710_v0 }
 0x216   :  { %2799 = vmatprep.mubr.f32.mxu1 %v2560_v28 }
 0x217   :  { %2800 = vmatmul.mubr.f32.vlgmr.msra.gmra.mrb[32].mxu1 %v2544_v5 }
 0x258   :  { %v12518_v51 = vpop.f32.mrb[34].mxu0 }
 0x259   :  { %v12519_v8 = vpop.f32.mrb[35].mxu0 }
 0x25a   :  { %v12520_v55 = vadd.f32 %v12519_v8, %v12518_v51 }
 0x25c   :  { %v1996_v53 = vadd.f32 %v12520_v55, %v1851_v13  ;;  %v12441_v14 = vpop.f32.mrb[4].mxu1 }
 0x25d   :  { %v12442_v10 = vpop.f32.mrb[5].mxu1 }
 0x25e   :  { %v2070_v40 = vmax.f32 %v1996_v53, 0.0  ;;  %v12443_v3 = vadd.f32 %v12442_v10, %v12441_v14  ;;  %v2658_v10 = vld [vmem:[%s21344_s5 + $0x190] sm:$0xff] }
 0x260   :  { %2128 = vst.msk [vmem:[#allocation3 + $0x21] sm:$0xff] %vm1530_vm2, %v2070_v40  ;;  %v1856_v29 = vadd.f32 %v16957_v52, %v12443_v3  ;;  %v2659_v3 = vld [vmem:[%s21344_s5 + $0x198] sm:$0xff] }
 0x264   :  { %v12521_v15 = vpop.f32.mrb[36].mxu0 }
 0x265   :  { %v12522_v19 = vpop.f32.mrb[37].mxu0 }
 0x266   :  { %v12523_v41 = vadd.f32 %v12522_v19, %v12521_v15  ;;  %v2642_v15 = vld [vmem:[%s21344_s5 + $0x110] sm:$0xff] }
 0x267   :  { %v16965_v9 = vld [vmem:[#allocation3 + $0x20] sm:$0xff] }
 0x268   :  { %v2001_v54 = vadd.f32 %v12523_v41, %v1856_v29  ;;  %v13711_v39 = vpack.i.bf16 %v16963_v20, %v16965_v9  ;;  %v12444_v21 = vpop.f32.mrb[6].mxu1  ;;  %v16972_v30 = vld [vmem:[#allocation3 + $0x21] sm:$0xff]  ;;  %v12989_v41 = vpack.c.bf16 %v2659_v3, %v2658_v10 }
 0x269   :  { %v12445_v6 = vpop.f32.mrb[7].mxu1 }
 0x26a   :  { %v2071_v60 = vmax.f32 %v2001_v54, 0.0  ;;  %13712 = vrot.lane.b32.xlu1 %v13711_v39, %s15511_s28  ;;  %v12446_v25 = vadd.f32 %v12445_v6, %v12444_v21  ;;  %v2643_v54 = vld [vmem:[%s21344_s5 + $0x118] sm:$0xff]  ;;  %12990 = vmatprep.subr.bf16.mxu0 %v12989_v41 }
 0x26c   :  { %2129 = vst.msk [vmem:[#allocation3 + $0x31] sm:$0xff] %vm1530_vm2, %v2071_v60  ;;  %v1861_v59 = vadd.f32 %v16957_v52, %v12446_v25  ;;  %v12991_v60 = vpack.c.bf16 %v2643_v54, %v2642_v15 }
 0x26e   :  { %12992 = vmatpush3.bf16.msra.mxu0 %v12991_v60  ;;  %v2665_v60 = vld [vmem:[%s21344_s5 + $0x1c8] sm:$0xff] }
 0x270   :  { %v12524_v47 = vpop.f32.mrb[38].mxu0 }
 0x271   :  { %v12525_v31 = vpop.f32.mrb[39].mxu0 }
 0x272   :  { %v12526_v35 = vadd.f32 %v12525_v31, %v12524_v47 }
 0x273   :  { %v16974_v7 = vld [vmem:[#allocation3 + $0x30] sm:$0xff] }
 0x274   :  { %v2006_v18 = vadd.f32 %v12526_v35, %v1861_v59  ;;  %v13716_v33 = vpack.i.bf16 %v16972_v30, %v16974_v7  ;;  %v12447_v16 = vpop.f32.mrb[8].mxu1  ;;  %v16981_v37 = vld [vmem:[#allocation3 + $0x31] sm:$0xff] }
 0x275   :  { %v12448_v46 = vpop.f32.mrb[9].mxu1 }
 0x276   :  { %v2072_v34 = vmax.f32 %v2006_v18, 0.0  ;;  %13717 = vrot.lane.b32.xlu0 %v13716_v33, %s15511_s28  ;;  %v12449_v17 = vadd.f32 %v12448_v46, %v12447_v16 }
 0x278   :  { %2130 = vst.msk [vmem:[#allocation3 + $0x41] sm:$0xff] %vm1530_vm2, %v2072_v34  ;;  %v1866_v32 = vadd.f32 %v16957_v52, %v12449_v17 }
 0x27c   :  { %v12527_v12 = vpop.f32.mrb[40].mxu0 }
 0x27d   :  { %v12528_v24 = vpop.f32.mrb[41].mxu0 }
 0x27e   :  { %v12529_v42 = vadd.f32 %v12528_v24, %v12527_v12  ;;  %v2660_v24 = vld [vmem:[%s21344_s5 + $0x1a0] sm:$0xff] }
 0x27f   :  { %v16983_v36 = vld [vmem:[#allocation3 + $0x40] sm:$0xff] }
 0x280   :  { %v2011_v43 = vadd.f32 %v12529_v42, %v1866_v32  ;;  %v13721_v48 = vpack.i.bf16 %v16981_v37, %v16983_v36  ;;  %v12450_v11 = vpop.f32.mrb[10].mxu1  ;;  %v17002_v38 = vld [vmem:[#allocation3 + $0x41] sm:$0xff] }
 0x281   :  { %v12451_v23 = vpop.f32.mrb[11].mxu1  ;;  %v2661_v32 = vld [vmem:[%s21344_s5 + $0x1a8] sm:$0xff]  ;;  %v2644_v42 = vld [vmem:[%s21344_s5 + $0x120] sm:$0xff] }
 0x282   :  { %v2073_v50 = vmax.f32 %v2011_v43, 0.0  ;;  %13722 = vrot.lane.b32.xlu1 %v13721_v48, %s15511_s28  ;;  %v12452_v49 = vadd.f32 %v12451_v23, %v12450_v11  ;;  %v12993_v23 = vpack.c.bf16 %v2661_v32, %v2660_v24  ;;  %v2666_v32 = vld [vmem:[%s21344_s5 + $0x1d0] sm:$0xff] }
 0x284   :  { %2131 = vst.msk [vmem:[#allocation3 + $0x51] sm:$0xff] %vm1530_vm2, %v2073_v50  ;;  %v1871_v61 = vadd.f32 %v16957_v52, %v12452_v49  ;;  %v2645_v49 = vld [vmem:[%s21344_s5 + $0x128] sm:$0xff]  ;;  %12994 = vmatprep.subr.bf16.mxu0 %v12993_v23  ;;  %v2668_v23 = vld [vmem:[%s21344_s5 + $0x1e0] sm:$0xff] }
 0x285   :  { %v12995_v26 = vpack.c.bf16 %v2645_v49, %v2644_v42  ;;  %v2667_v42 = vld [vmem:[%s21344_s5 + $0x1d8] sm:$0xff]  ;;  %v2669_v49 = vld [vmem:[%s21344_s5 + $0x1e8] sm:$0xff] }
 0x287   :  { %12996 = vmatpush3.bf16.msra.mxu0 %v12995_v26 }
 0x288   :  { %v12530_v44 = vpop.f32.mrb[42].mxu0 }
 0x289   :  { %v12531_v57 = vpop.f32.mrb[43].mxu0 }
 0x28a   :  { %v12532_v62 = vadd.f32 %v12531_v57, %v12530_v44  ;;  %v2673_v44 = vld [vmem:[%s21344_s5 + $0x208] sm:$0xff] }
 0x28b   :  { %v17004_v63 = vld [vmem:[#allocation3 + $0x50] sm:$0xff] }
 0x28c   :  { %v2016_v27 = vadd.f32 %v12532_v62, %v1871_v61  ;;  %v12533_v0 = vpop.f32.mrb[44].mxu0  ;;  %v13726_v56 = vpack.i.bf16 %v17002_v38, %v17004_v63  ;;  %v12453_v4 = vpop.f32.mrb[12].mxu1  ;;  %v17025_v34 = vld [vmem:[#allocation3 + $0x51] sm:$0xff] }
 0x28d   :  { %v12534_v28 = vpop.f32.mrb[45].mxu0  ;;  %v12454_v8 = vpop.f32.mrb[13].mxu1 }
 0x28e   :  { %v2074_v5 = vmax.f32 %v2016_v27, 0.0  ;;  %v12535_v51 = vadd.f32 %v12534_v28, %v12533_v0  ;;  %13727 = vrot.lane.b32.xlu0 %v13726_v56, %s15511_s28  ;;  %v12455_v13 = vadd.f32 %v12454_v8, %v12453_v4  ;;  %v13017_v27 = vpack.c.bf16 %v2673_v44, %v2672_v1  ;;  %v2662_v8 = vld [vmem:[%s21344_s5 + $0x1b0] sm:$0xff]  ;;  %v2675_v1 = vld [vmem:[%s21344_s5 + $0x218] sm:$0xff]  ;;  %v2652_v44 = vld [vmem:[%s21344_s5 + $0x160] sm:$0xff] }
 0x290   :  { %2132 = vst.msk [vmem:[#allocation3 + $0x61] sm:$0xff] %vm1530_vm2, %v2074_v5  ;;  %v12536_v55 = vpop.f32.mrb[46].mxu0  ;;  %v1876_v53 = vadd.f32 %v16957_v52, %v12455_v13  ;;  %v12456_v14 = vpop.f32.mrb[14].mxu1  ;;  %13018 = vmatprep.subr.bf16.mxu1 %v13017_v27 }
 0x291   :  { %v12537_v40 = vpop.f32.mrb[47].mxu0  ;;  %v12457_v29 = vpop.f32.mrb[15].mxu1  ;;  %13020 = vmatpush3.bf16.msra.mxu1 %v13017_v27 }
 0x292   :  { %v12538_v19 = vadd.f32 %v12537_v40, %v12536_v55  ;;  %v2021_v39 = vadd.f32 %v12535_v51, %v1876_v53  ;;  %v12458_v21 = vadd.f32 %v12457_v29, %v12456_v14  ;;  %v2663_v55 = vld [vmem:[%s21344_s5 + $0x1b8] sm:$0xff]  ;;  %v2646_v53 = vld [vmem:[%s21344_s5 + $0x130] sm:$0xff] }
 0x293   :  { %v2647_v14 = vld [vmem:[%s21344_s5 + $0x138] sm:$0xff]  ;;  %v12997_v15 = vpack.c.bf16 %v2663_v55, %v2662_v8 }
 0x294   :  { %v12539_v6 = vpop.f32.mrb[48].mxu0  ;;  %v2075_v25 = vmax.f32 %v2021_v39, 0.0  ;;  %v1881_v47 = vadd.f32 %v16957_v52, %v12458_v21  ;;  %v12459_v31 = vpop.f32.mrb[16].mxu1  ;;  %v2664_v21 = vld [vmem:[%s21344_s5 + $0x1c0] sm:$0xff] }
 0x295   :  { %v12540_v59 = vpop.f32.mrb[49].mxu0  ;;  %v12460_v18 = vpop.f32.mrb[17].mxu1  ;;  %12998 = vmatprep.subr.bf16.mxu0 %v12997_v15 }
 0x296   :  { %v12541_v35 = vadd.f32 %v12540_v59, %v12539_v6  ;;  %2133 = vst.msk [vmem:[#allocation3 + $0x71] sm:$0xff] %vm1530_vm2, %v2075_v25  ;;  %v2026_v33 = vadd.f32 %v12538_v19, %v1881_v47  ;;  %v12461_v16 = vadd.f32 %v12460_v18, %v12459_v31  ;;  %v12999_v19 = vpack.c.bf16 %v2647_v14, %v2646_v53  ;;  %v2167_v25 = vld [vmem:[#allocation3 + $0xa1] sm:$0xff]  ;;  %v2670_v53 = vld [vmem:[%s21344_s5 + $0x1f0] sm:$0xff]  ;;  %v2671_v14 = vld [vmem:[%s21344_s5 + $0x1f8] sm:$0xff] }
 0x297   :  { %v17027_v46 = vld [vmem:[#allocation3 + $0x60] sm:$0xff]  ;;  %v13001_v47 = vpack.c.bf16 %v2665_v60, %v2664_v21  ;;  %v2649_v59 = vld [vmem:[%s21344_s5 + $0x148] sm:$0xff]  ;;  %v13013_v15 = vpack.c.bf16 %v2671_v14, %v2670_v53 }
 0x298   :  { %v12542_v17 = vpop.f32.mrb[50].mxu0  ;;  %v13731_v12 = vpack.i.bf16 %v17025_v34, %v17027_v46  ;;  %v2076_v43 = vmax.f32 %v2026_v33, 0.0  ;;  %v1886_v48 = vadd.f32 %v16957_v52, %v12461_v16  ;;  %v12462_v11 = vpop.f32.mrb[18].mxu1  ;;  %v17053_v56 = vld [vmem:[#allocation3 + $0x61] sm:$0xff]  ;;  %13000 = vmatpush3.bf16.msra.mxu0 %v12999_v19  ;;  %v2655_v19 = vld [vmem:[%s21344_s5 + $0x178] sm:$0xff] }
 0x299   :  { %v12543_v50 = vpop.f32.mrb[51].mxu0  ;;  %v12463_v58 = vpop.f32.mrb[19].mxu1  ;;  %v2648_v31 = vld [vmem:[%s21344_s5 + $0x140] sm:$0xff]  ;;  %13002 = vmatprep.subr.bf16.mxu0 %v13001_v47 }
 0x29a   :  { %v12544_v2 = vadd.f32 %v12543_v50, %v12542_v17  ;;  %13732 = vrot.lane.b32.xlu1 %v13731_v12, %s15511_s28  ;;  %2134 = vst.msk [vmem:[#allocation3 + $0x81] sm:$0xff] %vm1530_vm2, %v2076_v43  ;;  %v2031_v22 = vadd.f32 %v12541_v35, %v1886_v48  ;;  %v12464_v45 = vadd.f32 %v12463_v58, %v12462_v11  ;;  %v2650_v48 = vld [vmem:[%s21344_s5 + $0x150] sm:$0xff]  ;;  %v2651_v11 = vld [vmem:[%s21344_s5 + $0x158] sm:$0xff] }
 0x29b   :  { %v13003_v18 = vpack.c.bf16 %v2649_v59, %v2648_v31  ;;  %v13005_v43 = vpack.c.bf16 %v2667_v42, %v2666_v32  ;;  %v13007_v50 = vpack.c.bf16 %v2651_v11, %v2650_v48  ;;  %v2677_v48 = vld [vmem:[%s21344_s5 + $0x228] sm:$0xff] }
 0x29c   :  { %v2077_v57 = vmax.f32 %v2031_v22, 0.0  ;;  %v1891_v61 = vadd.f32 %v16957_v52, %v12464_v45  ;;  %v12465_v62 = vpop.f32.mrb[20].mxu1  ;;  %v13009_v22 = vpack.c.bf16 %v2669_v49, %v2668_v23 }
 0x29d   :  { %v12466_v0 = vpop.f32.mrb[21].mxu1  ;;  %v17055_v4 = vld [vmem:[#allocation3 + $0x70] sm:$0xff]  ;;  %13004 = vmatpush3.bf16.msra.mxu0 %v13003_v18 }
 0x29e   :  { %2135 = vst.msk [vmem:[#allocation3 + $0xb1] sm:$0xff] %vm1530_vm2, %v2077_v57  ;;  %v2036_v28 = vadd.f32 %v12544_v2, %v1891_v61  ;;  %v12467_v5 = vadd.f32 %v12466_v0, %v12465_v62  ;;  %v13736_v51 = vpack.i.bf16 %v17053_v56, %v17055_v4  ;;  %v17074_v41 = vld [vmem:[#allocation3 + $0x71] sm:$0xff]  ;;  %13006 = vmatprep.subr.bf16.mxu0 %v13005_v43  ;;  %v2653_v57 = vld [vmem:[%s21344_s5 + $0x168] sm:$0xff]  ;;  %v2676_v43 = vld [vmem:[%s21344_s5 + $0x220] sm:$0xff] }
 0x29f   :  { %v2674_v2 = vld [vmem:[%s21344_s5 + $0x210] sm:$0xff]  ;;  %v13011_v27 = vpack.c.bf16 %v2653_v57, %v2652_v44  ;;  %v13025_v23 = vpack.c.bf16 %v2677_v48, %v2676_v43 }
 0x2a0   :  { %v12545_v13 = vpop.f32.mrb[52].mxu0  ;;  %v2078_v40 = vmax.f32 %v2036_v28, 0.0  ;;  %v1896_v10 = vadd.f32 %v16957_v52, %v12467_v5  ;;  %13737 = vrot.lane.b32.xlu0 %v13736_v51, %s15511_s28  ;;  %v13021_v62 = vpack.c.bf16 %v2675_v1, %v2674_v2  ;;  %v17187_v44 = vld [vmem:[#allocation3 + $0x32] sm:$0xff] }
 0x2a1   :  { %v12546_v3 = vpop.f32.mrb[53].mxu0  ;;  %v17076_v54 = vld [vmem:[#allocation3 + $0x80] sm:$0xff]  ;;  %13008 = vmatpush3.bf16.msra.mxu0 %v13007_v50 }
 0x2a2   :  { %v12547_v29 = vadd.f32 %v12546_v3, %v12545_v13  ;;  %2136 = vst.msk [vmem:[#allocation3 + $0xc1] sm:$0xff] %vm1530_vm2, %v2078_v40  ;;  %v13741_v39 = vpack.i.bf16 %v17074_v41, %v17076_v54  ;;  %13010 = vmatprep.subr.bf16.mxu0 %v13009_v22  ;;  %13022 = vmatprep.subr.bf16.mxu1 %v13021_v62  ;;  %v2654_v40 = vld [vmem:[%s21344_s5 + $0x170] sm:$0xff] }
 0x2a3   :  { %13024 = vmatpush3.bf16.msra.mxu1 %v13021_v62  ;;  %v13015_v21 = vpack.c.bf16 %v2655_v19, %v2654_v40  ;;  %v2679_v19 = vld [vmem:[%s21344_s5 + $0x238] sm:$0xff] }
 0x2a4   :  { %v2041_v6 = vadd.f32 %v12547_v29, %v1896_v10  ;;  %v12468_v35 = vpop.f32.mrb[22].mxu1  ;;  %13742 = vrot.lane.b32.xlu1 %v13741_v39, %s15511_s28  ;;  %13026 = vmatprep.subr.bf16.mxu1 %v13025_v23 }
 0x2a5   :  { %v12469_v16 = vpop.f32.mrb[23].mxu1  ;;  %v17094_v17 = vld [vmem:[#allocation3 + $0xb0] sm:$0xff]  ;;  %13012 = vmatpush3.bf16.msra.mxu0 %v13011_v27 }
 0x2a6   :  { %v2079_v33 = vmax.f32 %v2041_v6, 0.0  ;;  %v12470_v12 = vadd.f32 %v12469_v16, %v12468_v35  ;;  %v13746_v24 = vpack.i.bf16 %v2167_v25, %v17094_v17  ;;  %v17120_v58 = vld [vmem:[#allocation3 + $0xb1] sm:$0xff]  ;;  %13014 = vmatprep.subr.bf16.mxu0 %v13013_v15 }
 0x2a7   :  { %v17158_v6 = vld [vmem:[#allocation3 + $0x12] sm:$0xff]  ;;  %13028 = vmatpush3.bf16.msra.mxu1 %v13025_v23 }
 0x2a8   :  { %2137 = vst.msk [vmem:[#allocation3 + $0xd1] sm:$0xff] %vm1530_vm2, %v2079_v33  ;;  %13747 = vrot.lane.b32.xlu0 %v13746_v24, %s15511_s28  ;;  %v1901_v28 = vadd.f32 %v16957_v52, %v12470_v12  ;;  %v17167_v33 = vld [vmem:[#allocation3 + $0x22] sm:$0xff]  ;;  %v2678_v15 = vld [vmem:[%s21344_s5 + $0x230] sm:$0xff]  ;;  %s11271_s5 = sshll.u32 %s15512_s13, 4  ;;  %s11272_s5 = int_to_ptr.vmem [resolvable:$true] %s11271_s5 }
 0x2a9   :  { %v17122_v26 = vld [vmem:[#allocation3 + $0xc0] sm:$0xff]  ;;  %13016 = vmatpush3.bf16.msra.mxu0 %v13015_v21  ;;  %s15484_s14 = scalar_lea.vmem %s11272_s5, 32  ;;  %p15489_p1 = scmp.lt.s32.totalorder %s11272_s5, %s11272_s5 }
 0x2aa   :  { %v13751_v45 = vpack.i.bf16 %v17120_v58, %v17122_v26  ;;  %v17137_v51 = vld [vmem:[#allocation3 + $0xc1] sm:$0xff]  ;;  %p15485_p0 = scmp.ne.s32.totalorder %s11272_s5, %s15484_s14  ;;  %p15490_p2 = scmp.lt.s32.totalorder %s15484_s14, %s15484_s14 }
 0x2ac   :  { %v12548_v61 = vpop.f32.mrb[54].mxu0  ;;  %13752 = vrot.lane.b32.xlu1 %v13751_v45, %s15511_s28  ;;  %p15491_p3 = por %p15490_p2, %p15489_p1 }
 0x2ad   :  { %v12549_v0 = vpop.f32.mrb[55].mxu0 }
 0x2ae   :  { %v12550_v5 = vadd.f32 %v12549_v0, %v12548_v61  ;;  %p15492_p4 = pnand %p15491_p3, %p15485_p0 }
 0x2af   :  { %v17139_v8 = vld [vmem:[#allocation3 + $0xd0] sm:$0xff] }
 0x2b0   :  { %v2046_v13 = vadd.f32 %v12550_v5, %v1901_v28  ;;  %v13756_v55 = vpack.i.bf16 %v17137_v51, %v17139_v8  ;;  %v12471_v10 = vpop.f32.mrb[24].mxu1  ;;  %v17152_v3 = vld [vmem:[#allocation3 + $0xd1] sm:$0xff] }
 0x2b1   :  { %v12472_v39 = vpop.f32.mrb[25].mxu1  ;;  %v13761_v25 = vpack.i.bf16 %v17158_v6, %v17152_v3 }
 0x2b2   :  { %v2080_v29 = vmax.f32 %v2046_v13, 0.0  ;;  %13757 = vrot.lane.b32.xlu0 %v13756_v55, %s15511_s28  ;;  %v12473_v60 = vadd.f32 %v12472_v39, %v12471_v10  ;;  %v13029_v39 = vpack.c.bf16 %v2679_v19, %v2678_v15  ;;  %v17258_v15 = vld [vmem:[#allocation3 + $0x82] sm:$0xff]  ;;  %v2263_v19 = vld [vmem:[#allocation3 + $0x91] sm:$0xff] }
 0x2b4   :  { %2138 = vst.msk [vmem:[#allocation3 + $0xe1] sm:$0xff] %vm1530_vm2, %v2080_v29  ;;  %v1906_v59 = vadd.f32 %v16957_v52, %v12473_v60  ;;  %13030 = vmatprep.subr.bf16.mxu1 %v13029_v39 }
 0x2b5   :  { %13032 = vmatpush3.bf16.msra.mxu1 %v13029_v39 }
 0x2b6   :  { %13762 = vrot.lane.b32.xlu0 %v13761_v25, %s15511_s28 }
 0x2b8   :  { %v12551_v47 = vpop.f32.mrb[56].mxu0 }
 0x2b9   :  { %v12552_v31 = vpop.f32.mrb[57].mxu0 }
 0x2ba   :  { %v12553_v35 = vadd.f32 %v12552_v31, %v12551_v47 }
 0x2bb   :  { %v17165_v18 = vld [vmem:[#allocation3 + $0xe1] sm:$0xff] }
 0x2bc   :  { %v17169_v16 = vld [vmem:[#allocation3 + $0xe0] sm:$0xff]  ;;  %v2051_v12 = vadd.f32 %v12553_v35, %v1906_v59  ;;  %v13771_v24 = vpack.i.bf16 %v17167_v33, %v17165_v18  ;;  %v12474_v42 = vpop.f32.mrb[26].mxu1 }
 0x2bd   :  { %v13766_v32 = vpack.i.bf16 %v16972_v30, %v17169_v16  ;;  %v12475_v50 = vpop.f32.mrb[27].mxu1 }
 0x2be   :  { %v2081_v11 = vmax.f32 %v2051_v12, 0.0  ;;  %13772 = vrot.lane.b32.xlu0 %v13771_v24, %s15511_s28  ;;  %v12476_v49 = vadd.f32 %v12475_v50, %v12474_v42  ;;  %v17209_v24 = vld [vmem:[#allocation3 + $0x42] sm:$0xff]  ;;  %v17222_v50 = vld [vmem:[#allocation3 + $0x52] sm:$0xff] }
 0x2bf   :  { %13767 = vrot.lane.b32.xlu1 %v13766_v32, %s15511_s28 }
 0x2c0   :  { %2139 = vst.msk [vmem:[#allocation3 + $0xf1] sm:$0xff] %vm1530_vm2, %v2081_v11  ;;  %v1911_v22 = vadd.f32 %v16957_v52, %v12476_v49 }
 0x2c4   :  { %v12554_v30 = vpop.f32.mrb[58].mxu0 }
 0x2c5   :  { %v12555_v2 = vpop.f32.mrb[59].mxu0 }
 0x2c6   :  { %v12556_v45 = vadd.f32 %v12555_v2, %v12554_v30 }
 0x2c7   :  { %v17185_v1 = vld [vmem:[#allocation3 + $0xf1] sm:$0xff] }
 0x2c8   :  { %v17189_v57 = vld [vmem:[#allocation3 + $0xf0] sm:$0xff]  ;;  %v2056_v61 = vadd.f32 %v12556_v45, %v1911_v22  ;;  %v12557_v62 = vpop.f32.mrb[60].mxu0  ;;  %v13781_v27 = vpack.i.bf16 %v17187_v44, %v17185_v1  ;;  %v12477_v28 = vpop.f32.mrb[28].mxu1  ;;  %v17230_v22 = vld [vmem:[#allocation3 + $0x81] sm:$0xff] }
 0x2c9   :  { %v13776_v0 = vpack.i.bf16 %v16981_v37, %v17189_v57  ;;  %v12558_v5 = vpop.f32.mrb[61].mxu0  ;;  %v12478_v53 = vpop.f32.mrb[29].mxu1 }
 0x2ca   :  { %v2082_v13 = vmax.f32 %v2056_v61, 0.0  ;;  %v12559_v55 = vadd.f32 %v12558_v5, %v12557_v62  ;;  %13782 = vrot.lane.b32.xlu0 %v13781_v27, %s15511_s28  ;;  %v12479_v14 = vadd.f32 %v12478_v53, %v12477_v28  ;;  %v17234_v62 = vld [vmem:[#allocation3 + $0x72] sm:$0xff] }
 0x2cb   :  { %13777 = vrot.lane.b32.xlu1 %v13776_v0, %s15511_s28  ;;  %v15483_v0 = vld [vmem:[#allocation3 + $0x10] sm:$0xff]  ;;  %v13816_v5 = vpack.i.bf16 %v17234_v62, %v17230_v22 }
 0x2cc   :  { %2140 = vst.msk [vmem:[#allocation3 + $0x101] sm:$0xff] %vm1530_vm2, %v2082_v13  ;;  %v1916_v40 = vadd.f32 %v16957_v52, %v12479_v14  ;;  %v12480_v10 = vpop.f32.mrb[30].mxu1  ;;  %v17246_v53 = vld [vmem:[#allocation3 + $0xb2] sm:$0xff]  ;;  %v17251_v14 = vld [vmem:[#allocation3 + $0x62] sm:$0xff] }
 0x2cd   :  { %v12481_v29 = vpop.f32.mrb[31].mxu1 }
 0x2ce   :  { %v2061_v21 = vadd.f32 %v12559_v55, %v1916_v40  ;;  %v12482_v60 = vadd.f32 %v12481_v29, %v12480_v10  ;;  %v13811_v40 = vpack.i.bf16 %v17251_v14, %v17074_v41  ;;  %v17256_v10 = vld [vmem:[#allocation3 + $0xd2] sm:$0xff] }
 0x2cf   :  { %v13836_v29 = vpack.i.bf16 %v17256_v10, %v17165_v18 }
 0x2d0   :  { %v2083_v25 = vmax.f32 %v2061_v21, 0.0  ;;  %v1921_v59 = vadd.f32 %v16957_v52, %v12482_v60 }
 0x2d1   :  { %v12560_v47 = vpop.f32.mrb[62].mxu0 }
 0x2d2   :  { %v12561_v31 = vpop.f32.mrb[63].mxu0  ;;  %2141 = vst.msk [vmem:[#allocation3 + $0x111] sm:$0xff] %vm1530_vm2, %v2083_v25  ;;  %v13821_v25 = vpack.i.bf16 %v17258_v15, %v2263_v19  ;;  %v2271_v19 = vld [vmem:[#allocation3 + $0x131] sm:$0xff] }
 0x2d3   :  { %v12562_v35 = vadd.f32 %v12561_v31, %v12560_v47  ;;  %v17207_v12 = vld [vmem:[#allocation3 + $0x101] sm:$0xff]  ;;  %v17265_v47 = vld [vmem:[#allocation3 + $0xf2] sm:$0xff] }
 0x2d4   :  { %v17211_v32 = vld [vmem:[#allocation3 + $0x100] sm:$0xff]  ;;  %v13791_v42 = vpack.i.bf16 %v17209_v24, %v17207_v12 }
 0x2d5   :  { %v13786_v43 = vpack.i.bf16 %v17002_v38, %v17211_v32  ;;  %v2066_v48 = vadd.f32 %v12562_v35, %v1921_v59  ;;  %v13846_v59 = vpack.i.bf16 %v17265_v47, %v17207_v12 }
 0x2d6   :  { %13792 = vrot.lane.b32.xlu0 %v13791_v42, %s15511_s28  ;;  %v17274_v42 = vld [vmem:[#allocation3 + $0xc2] sm:$0xff] }
 0x2d7   :  { %13787 = vrot.lane.b32.xlu1 %v13786_v43, %s15511_s28  ;;  %v2084_v11 = vmax.f32 %v2066_v48, 0.0  ;;  %v13831_v48 = vpack.i.bf16 %v17274_v42, %v17152_v3 }
 0x2d9   :  { %2142 = vst.msk [vmem:[#allocation3 + $0x121] sm:$0xff] %vm1530_vm2, %v2084_v11  ;;  %v17220_v52 = vld [vmem:[#allocation3 + $0x111] sm:$0xff] }
 0x2da   :  { %v17224_v23 = vld [vmem:[#allocation3 + $0x110] sm:$0xff]  ;;  %v13801_v49 = vpack.i.bf16 %v17222_v50, %v17220_v52 }
 0x2db   :  { %v13796_v30 = vpack.i.bf16 %v17025_v34, %v17224_v23  ;;  %v17281_v11 = vld [vmem:[#allocation3 + $0x112] sm:$0xff] }
 0x2dc   :  { %v13713_v2 = vpop.permute.xlu1 %13712  ;;  %13802 = vrot.lane.b32.xlu0 %v13801_v49, %s15511_s28 }
 0x2dd   :  { %v13715_v45 = vunpack.i.h.bf16 %v13713_v2  ;;  %v13714_v61 = vunpack.i.l.bf16 %v13713_v2  ;;  %13797 = vrot.lane.b32.xlu1 %v13796_v30, %s15511_s28  ;;  %v17286_v30 = vld [vmem:[#allocation3 + $0xe2] sm:$0xff] }
 0x2de   :  { %v13841_v2 = vpack.i.bf16 %v17286_v30, %v17185_v1 }
 0x2df   :  { %v2561_v27 = vsel %vm1530_vm2, %v17158_v6, %v13714_v61  ;;  %v2545_v28 = vsel %vm1530_vm2, %v15483_v0, %v13715_v45  ;;  %v13826_v6 = vpack.i.bf16 %v17246_v53, %v17137_v51  ;;  %v17292_v0 = vld [vmem:[#allocation3 + $0x102] sm:$0xff] }
 0x2e0   :  { %2804 = vmatprep.mubr.f32.mxu1 %v2561_v27  ;;  %v17241_v13 = vld [vmem:[#allocation3 + $0x120] sm:$0xff]  ;;  %13817 = vrot.lane.b32.xlu0 %v13816_v5, %s15511_s28 }
 0x2e1   :  { %2805 = vmatmul.mubr.f32.gmra.mrb[34].mxu1 %v2545_v28  ;;  %v13806_v55 = vpack.i.bf16 %v17053_v56, %v17241_v13  ;;  %v17276_v43 = vld [vmem:[#allocation3 + $0x121] sm:$0xff] }
 0x2e2   :  { %v13856_v49 = vpack.i.bf16 %v17281_v11, %v17276_v43 }
 0x2e3   :  { %13807 = vrot.lane.b32.xlu1 %v13806_v55, %s15511_s28 }
 0x2e4   :  { %13827 = vrot.lane.b32.xlu0 %v13826_v6, %s15511_s28  ;;  %v13851_v6 = vpack.i.bf16 %v17292_v0, %v17220_v52 }
 0x2e7   :  { %13812 = vrot.lane.b32.xlu1 %v13811_v40, %s15511_s28  ;;  %v17298_v40 = vld [vmem:[#allocation3 + $0x122] sm:$0xff] }
 0x2e8   :  { %v13718_v39 = vpop.permute.xlu0 %13717  ;;  %13837 = vrot.lane.b32.xlu0 %v13836_v29, %s15511_s28 }
 0x2e9   :  { %v13720_v21 = vunpack.i.h.bf16 %v13718_v39  ;;  %v13719_v60 = vunpack.i.l.bf16 %v13718_v39 }
 0x2ea   :  { %v12595_v45 = vpop.f32.mrb[32].mxu1 }
 0x2eb   :  { %13822 = vrot.lane.b32.xlu1 %v13821_v25, %s15511_s28  ;;  %v2562_v31 = vsel %vm1530_vm2, %v17167_v33, %v13719_v60  ;;  %v2546_v35 = vsel %vm1530_vm2, %v16965_v9, %v13720_v21  ;;  %v12596_v61 = vpop.f32.mrb[33].mxu1  ;;  %v13861_v21 = vpack.i.bf16 %v17298_v40, %v2271_v19 }
 0x2ec   :  { %2809 = vmatprep.mubr.f32.mxu1 %v2562_v31  ;;  %13847 = vrot.lane.b32.xlu0 %v13846_v59, %s15511_s28  ;;  %v17294_v28 = vadd.f32 %v12596_v61, %v12595_v45 }
 0x2ed   :  { %2810 = vmatmul.mubr.f32.gmra.mrb[36].mxu1 %v2546_v35 }
 0x2ef   :  { %13832 = vrot.lane.b32.xlu1 %v13831_v48, %s15511_s28 }
 0x2f0   :  { %13857 = vrot.lane.b32.xlu0 %v13856_v49, %s15511_s28 }
 0x2f3   :  { %13842 = vrot.lane.b32.xlu1 %v13841_v2, %s15511_s28 }
 0x2f4   :  { %v13723_v27 = vpop.permute.xlu1 %13722 }
 0x2f5   :  { %v13725_v5 = vunpack.i.h.bf16 %v13723_v27  ;;  %v13724_v55 = vunpack.i.l.bf16 %v13723_v27 }
 0x2f7   :  { %13852 = vrot.lane.b32.xlu1 %v13851_v6, %s15511_s28  ;;  %v2563_v29 = vsel %vm1530_vm2, %v17187_v44, %v13724_v55  ;;  %v2547_v39 = vsel %vm1530_vm2, %v16974_v7, %v13725_v5 }
 0x2f8   :  { %2814 = vmatprep.mubr.f32.mxu1 %v2563_v29 }
 0x2f9   :  { %2815 = vmatmul.mubr.f32.gmra.mrb[38].mxu1 %v2547_v39 }
 0x2fb   :  { %13862 = vrot.lane.b32.xlu1 %v13861_v21, %s15511_s28 }
 0x300   :  { %v13728_v60 = vpop.permute.xlu0 %13727 }
 0x301   :  { %v13730_v25 = vunpack.i.h.bf16 %v13728_v60  ;;  %v13729_v31 = vunpack.i.l.bf16 %v13728_v60 }
 0x303   :  { %v2564_v59 = vsel %vm1530_vm2, %v17209_v24, %v13729_v31  ;;  %v2548_v35 = vsel %vm1530_vm2, %v16983_v36, %v13730_v25 }
 0x304   :  { %2819 = vmatprep.mubr.f32.mxu1 %v2564_v59  ;;  %v2183_v59 = vld [vmem:[#allocation3 + $0xa2] sm:$0xff] }
 0x305   :  { %2820 = vmatmul.mubr.f32.gmra.mrb[40].mxu1 %v2548_v35  ;;  %v2151_v35 = vld [vmem:[#allocation3 + $0xa0] sm:$0xff] }
 0x30c   :  { %v13733_v48 = vpop.permute.xlu1 %13732 }
 0x30d   :  { %v13735_v49 = vunpack.i.h.bf16 %v13733_v48  ;;  %v13734_v2 = vunpack.i.l.bf16 %v13733_v48 }
 0x30f   :  { %v2565_v45 = vsel %vm1530_vm2, %v17222_v50, %v13734_v2  ;;  %v2549_v61 = vsel %vm1530_vm2, %v17004_v63, %v13735_v49 }
 0x310   :  { %2824 = vmatprep.mubr.f32.mxu1 %v2565_v45 }
 0x311   :  { %2825 = vmatmul.mubr.f32.gmra.mrb[42].mxu1 %v2549_v61 }
 0x312   :  { %v13738_v27 = vpop.permute.xlu0 %13737 }
 0x313   :  { %v13740_v5 = vunpack.i.h.bf16 %v13738_v27  ;;  %v13739_v55 = vunpack.i.l.bf16 %v13738_v27 }
 0x315   :  { %v2566_v6 = vsel %vm1530_vm2, %v17251_v14, %v13739_v55  ;;  %v2550_v19 = vsel %vm1530_vm2, %v17027_v46, %v13740_v5 }
 0x316   :  { %v13743_v29 = vpop.permute.xlu1 %13742  ;;  %2829 = vmatprep.mubr.f32.mxu1 %v2566_v6 }
 0x317   :  { %v13745_v39 = vunpack.i.h.bf16 %v13743_v29  ;;  %v13744_v21 = vunpack.i.l.bf16 %v13743_v29  ;;  %2830 = vmatmul.mubr.f32.gmra.mrb[44].mxu1 %v2550_v19 }
 0x319   :  { %v2567_v60 = vsel %vm1530_vm2, %v17234_v62, %v13744_v21  ;;  %v2551_v25 = vsel %vm1530_vm2, %v17055_v4, %v13745_v39 }
 0x31a   :  { %v13748_v31 = vpop.permute.xlu0 %13747  ;;  %2834 = vmatprep.mubr.f32.mxu1 %v2567_v60 }
 0x31b   :  { %v13750_v48 = vunpack.i.h.bf16 %v13748_v31  ;;  %v13749_v49 = vunpack.i.l.bf16 %v13748_v31  ;;  %2835 = vmatmul.mubr.f32.gmra.mrb[46].mxu1 %v2551_v25 }
 0x31d   :  { %v2568_v2 = vsel %vm1530_vm2, %v2183_v59, %v13749_v49  ;;  %v2552_v45 = vsel %vm1530_vm2, %v2151_v35, %v13750_v48 }
 0x31e   :  { %v13753_v61 = vpop.permute.xlu1 %13752  ;;  %2839 = vmatprep.mubr.f32.mxu1 %v2568_v2 }
 0x31f   :  { %v13755_v27 = vunpack.i.h.bf16 %v13753_v61  ;;  %v13754_v5 = vunpack.i.l.bf16 %v13753_v61  ;;  %2840 = vmatmul.mubr.f32.gmra.mrb[48].mxu1 %v2552_v45 }
 0x321   :  { %v2569_v55 = vsel %vm1530_vm2, %v17246_v53, %v13754_v5  ;;  %v2553_v6 = vsel %vm1530_vm2, %v17094_v17, %v13755_v27 }
 0x322   :  { %2844 = vmatprep.mubr.f32.mxu1 %v2569_v55 }
 0x323   :  { %2845 = vmatmul.mubr.f32.gmra.mrb[50].mxu1 %v2553_v6 }
 0x324   :  { %v13758_v19 = vpop.permute.xlu0 %13757 }
 0x325   :  { %v13760_v29 = vunpack.i.h.bf16 %v13758_v19  ;;  %v13759_v39 = vunpack.i.l.bf16 %v13758_v19 }
 0x327   :  { %v2570_v21 = vsel %vm1530_vm2, %v17274_v42, %v13759_v39  ;;  %v2554_v60 = vsel %vm1530_vm2, %v17122_v26, %v13760_v29  ;;  %v2208_v39 = vld [vmem:[#allocation3 + $0x21] sm:$0xff] }
 0x328   :  { %2849 = vmatprep.mubr.f32.mxu1 %v2570_v21  ;;  %v13763_v25 = vpop.permute.xlu0 %13762 }
 0x329   :  { %2850 = vmatmul.mubr.f32.gmra.mrb[52].mxu1 %v2554_v60  ;;  %v13765_v31 = vunpack.i.h.bf16 %v13763_v25  ;;  %v13764_v59 = vunpack.i.l.bf16 %v13763_v25 }
 0x32b   :  { %v2555_v2 = vsel %vm1530_vm2, %v17139_v8, %v13764_v59  ;;  %v2576_v45 = vsel %vm1530_vm2, %v16963_v20, %v13765_v31 }
 0x330   :  { %v13773_v61 = vpop.permute.xlu0 %13772 }
 0x331   :  { %v13768_v53 = vpop.permute.xlu1 %13767  ;;  %v13775_v27 = vunpack.i.h.bf16 %v13773_v61  ;;  %v13774_v5 = vunpack.i.l.bf16 %v13773_v61 }
 0x332   :  { %v13770_v35 = vunpack.i.h.bf16 %v13768_v53  ;;  %v13769_v48 = vunpack.i.l.bf16 %v13768_v53 }
 0x333   :  { %v2556_v20 = vsel %vm1530_vm2, %v17169_v16, %v13774_v5  ;;  %v2577_v21 = vsel %vm1530_vm2, %v2208_v39, %v13775_v27 }
 0x334   :  { %v2571_v17 = vsel %vm1530_vm2, %v17256_v10, %v13769_v48  ;;  %v2592_v49 = vsel %vm1530_vm2, %v16965_v9, %v13770_v35 }
 0x335   :  { %2854 = vmatprep.mubr.f32.mxu1 %v2571_v17  ;;  %2944 = vmatprep.mubr.f32.mxu0 %v2592_v49 }
 0x336   :  { %2855 = vmatmul.mubr.f32.gmra.mrb[54].mxu1 %v2555_v2  ;;  %2945 = vmatmul.mubr.f32.vlgmr.msra.gmra.mrb[64].mxu0 %v2576_v45 }
 0x33c   :  { %v13783_v60 = vpop.permute.xlu0 %13782 }
 0x33d   :  { %v13778_v55 = vpop.permute.xlu1 %13777  ;;  %v13785_v25 = vunpack.i.h.bf16 %v13783_v60  ;;  %v13784_v31 = vunpack.i.l.bf16 %v13783_v60 }
 0x33e   :  { %v13780_v6 = vunpack.i.h.bf16 %v13778_v55  ;;  %v13779_v19 = vunpack.i.l.bf16 %v13778_v55 }
 0x33f   :  { %v2557_v49 = vsel %vm1530_vm2, %v17189_v57, %v13784_v31  ;;  %v2578_v2 = vsel %vm1530_vm2, %v16981_v37, %v13785_v25 }
 0x340   :  { %v2572_v29 = vsel %vm1530_vm2, %v17286_v30, %v13779_v19  ;;  %v2593_v9 = vsel %vm1530_vm2, %v16974_v7, %v13780_v6 }
 0x341   :  { %2859 = vmatprep.mubr.f32.mxu1 %v2572_v29  ;;  %2949 = vmatprep.mubr.f32.mxu0 %v2593_v9 }
 0x342   :  { %2860 = vmatmul.mubr.f32.gmra.mrb[56].mxu1 %v2556_v20  ;;  %2950 = vmatmul.mubr.f32.gmra.mrb[66].mxu0 %v2577_v21 }
 0x348   :  { %v13793_v17 = vpop.permute.xlu0 %13792 }
 0x349   :  { %v13788_v59 = vpop.permute.xlu1 %13787  ;;  %v13795_v45 = vunpack.i.h.bf16 %v13793_v17  ;;  %v13794_v61 = vunpack.i.l.bf16 %v13793_v17 }
 0x34a   :  { %v13790_v53 = vunpack.i.h.bf16 %v13788_v59  ;;  %v13789_v35 = vunpack.i.l.bf16 %v13788_v59 }
 0x34b   :  { %v2558_v29 = vsel %vm1530_vm2, %v17211_v32, %v13794_v61  ;;  %v2579_v37 = vsel %vm1530_vm2, %v17002_v38, %v13795_v45 }
 0x34c   :  { %v2573_v48 = vsel %vm1530_vm2, %v17265_v47, %v13789_v35  ;;  %v2594_v7 = vsel %vm1530_vm2, %v16983_v36, %v13790_v53 }
 0x34d   :  { %2864 = vmatprep.mubr.f32.mxu1 %v2573_v48  ;;  %2954 = vmatprep.mubr.f32.mxu0 %v2594_v7 }
 0x34e   :  { %2865 = vmatmul.mubr.f32.gmra.mrb[58].mxu1 %v2557_v49  ;;  %2955 = vmatmul.mubr.f32.gmra.mrb[68].mxu0 %v2578_v2  ;;  %v13803_v6 = vpop.permute.xlu0 %13802 }
 0x34f   :  { %v13798_v27 = vpop.permute.xlu1 %13797  ;;  %v13805_v9 = vunpack.i.h.bf16 %v13803_v6  ;;  %v13804_v39 = vunpack.i.l.bf16 %v13803_v6  ;;  %v2279_v6 = vld [vmem:[#allocation3 + $0x92] sm:$0xff] }
 0x350   :  { %v13800_v5 = vunpack.i.h.bf16 %v13798_v27  ;;  %v13799_v55 = vunpack.i.l.bf16 %v13798_v27 }
 0x351   :  { %v2559_v38 = vsel %vm1530_vm2, %v17224_v23, %v13804_v39  ;;  %v2580_v53 = vsel %vm1530_vm2, %v17025_v34, %v13805_v9 }
 0x352   :  { %v2574_v36 = vsel %vm1530_vm2, %v17292_v0, %v13799_v55  ;;  %v2595_v19 = vsel %vm1530_vm2, %v17004_v63, %v13800_v5  ;;  %v13818_v25 = vpop.permute.xlu0 %13817 }
 0x353   :  { %2869 = vmatprep.mubr.f32.mxu1 %v2574_v36  ;;  %2959 = vmatprep.mubr.f32.mxu0 %v2595_v19  ;;  %v13819_v35 = vunpack.i.l.bf16 %v13818_v25  ;;  %v13820_v49 = vunpack.i.h.bf16 %v13818_v25 }
 0x354   :  { %2870 = vmatmul.mubr.f32.gmra.mrb[60].mxu1 %v2558_v29  ;;  %2960 = vmatmul.mubr.f32.gmra.mrb[70].mxu0 %v2579_v37 }
 0x355   :  { %v13808_v20 = vpop.permute.xlu1 %13807  ;;  %v2598_v34 = vsel %vm1530_vm2, %v17076_v54, %v13819_v35 }
 0x356   :  { %v13810_v21 = vunpack.i.h.bf16 %v13808_v20  ;;  %v13809_v60 = vunpack.i.l.bf16 %v13808_v20  ;;  %v13828_v61 = vpop.permute.xlu0 %13827 }
 0x357   :  { %v13829_v27 = vunpack.i.l.bf16 %v13828_v61  ;;  %v13830_v54 = vunpack.i.h.bf16 %v13828_v61  ;;  %v13946_v61 = vld [vmem:[%s21346_s7] ss:$16 sps:$4 sm:$0xff]  }
 0x358   :  { %v2575_v31 = vsel %vm1530_vm2, %v17281_v11, %v13809_v60  ;;  %v2596_v63 = vsel %vm1530_vm2, %v17027_v46, %v13810_v21 }
 0x359   :  { %v13813_v59 = vpop.permute.xlu1 %13812  ;;  %2874 = vmatprep.mubr.f32.mxu1 %v2575_v31  ;;  %2964 = vmatprep.mubr.f32.mxu0 %v2596_v63 }
 0x35a   :  { %v13815_v48 = vunpack.i.h.bf16 %v13813_v59  ;;  %v13814_v7 = vunpack.i.l.bf16 %v13813_v59  ;;  %2875 = vmatmul.mubr.f32.gmra.mrb[62].mxu1 %v2559_v38  ;;  %2965 = vmatmul.mubr.f32.gmra.mrb[72].mxu0 %v2580_v53 }
 0x35b   :  { %12833 = vmatprep.mubr.msk.f32.mxu1 %vm1530_vm2, %v17167_v33 }
 0x35c   :  { %v2597_v46 = vsel %vm1530_vm2, %v17055_v4, %v13814_v7  ;;  %v2581_v17 = vsel %vm1530_vm2, %v17053_v56, %v13815_v48  ;;  %v2247_v4 = vld [vmem:[#allocation3 + $0x90] sm:$0xff]  ;;  %v2582_v56 = vsel %vm1530_vm2, %v17074_v41, %v13820_v49  ;;  %v2600_v41 = vsel %vm1530_vm2, %v17122_v26, %v13829_v27 }
 0x35d   :  { %v13823_v2 = vpop.permute.xlu1 %13822  ;;  %2969 = vmatprep.mubr.f32.mxu0 %v2597_v46  ;;  %v13954_v27 = vld [vmem:[%s21346_s7 + $0x24] ss:$16 sps:$4 sm:$0xff]  }
 0x35e   :  { %v13824_v45 = vunpack.i.l.bf16 %v13823_v2  ;;  %2970 = vmatmul.mubr.f32.gmra.mrb[74].mxu0 %v2581_v17  ;;  %12834 = vmatmul.mubr.msk.f32.vlgmr.msra.gmra.mrb[64].mxu1 %vm1530_vm2, %v17187_v44  ;;  %v13825_v33 = vunpack.i.h.bf16 %v13823_v2 }
 0x35f   :  { %2974 = vmatprep.mubr.f32.mxu0 %v2598_v34  ;;  %12836 = vmatprep.mubr.msk.f32.mxu1 %vm1530_vm2, %v17209_v24 }
 0x360   :  { %v2599_v44 = vsel %vm1530_vm2, %v2247_v4, %v13824_v45  ;;  %v2583_v24 = vsel %vm1530_vm2, %v17230_v22, %v13825_v33  ;;  %v13948_v4 = vld [vmem:[%s21346_s7 + $0x4] ss:$16 sps:$4 sm:$0xff]   ;;  %v13949_v33 = vld [vmem:[%s21346_s7 + $0x8] ss:$16 sps:$4 sm:$0xff]  }
 0x361   :  { %v13833_v5 = vpop.permute.xlu1 %13832  ;;  %9737 = vmatprep.subr.bf16.mxu0 %v13948_v4 }
 0x362   :  { %2975 = vmatmul.mubr.f32.gmra.mrb[76].mxu0 %v2582_v56  ;;  %12837 = vmatmul.mubr.msk.f32.gmra.mrb[66].mxu1 %vm1530_vm2, %v17222_v50  ;;  %v13834_v55 = vunpack.i.l.bf16 %v13833_v5  ;;  %v13838_v50 = vpop.permute.xlu0 %13837  ;;  %v13835_v36 = vunpack.i.h.bf16 %v13833_v5  ;;  %v13951_v56 = vld [vmem:[%s21346_s7 + $0xc] ss:$16 sps:$4 sm:$0xff]  }
 0x363   :  { %2979 = vmatprep.mubr.f32.mxu0 %v2599_v44  ;;  %12839 = vmatprep.mubr.msk.f32.mxu1 %vm1530_vm2, %v17251_v14  ;;  %v2584_v14 = vsel %vm1530_vm2, %v17120_v58, %v13830_v54  ;;  %v13839_v19 = vunpack.i.l.bf16 %v13838_v50  ;;  %v13840_v26 = vunpack.i.h.bf16 %v13838_v50  ;;  %v13957_v5 = vld [vmem:[%s21346_s7 + $0x2c] ss:$16 sps:$4 sm:$0xff]   ;;  %v13960_v50 = vld [vmem:[%s21346_s7 + $0x44] ss:$16 sps:$4 sm:$0xff]  }
 0x364   :  { %v2601_v22 = vsel %vm1530_vm2, %v17139_v8, %v13834_v55  ;;  %10393 = vmatprep.subr.bf16.mxu1 %v13951_v56  ;;  %9738 = vmatpush1.bf16.msra.mxu0 %v13946_v61 }
 0x365   :  { %v2602_v58 = vsel %vm1530_vm2, %v17169_v16, %v13839_v19  ;;  %10394 = vmatpush1.bf16.msra.mxu1 %v13949_v33  ;;  %9739 = vmatprep.subr.bf16.mxu0 %v13954_v27  ;;  %v13958_v19 = vld [vmem:[%s21346_s7 + $0x40] ss:$16 sps:$4 sm:$0xff]   ;;  %v14005_v33 = vld [vmem:[%s21346_s7 + $0x12c] ss:$16 sps:$4 sm:$0xff]  }
 0x366   :  { %2980 = vmatmul.mubr.f32.gmra.mrb[78].mxu0 %v2583_v24  ;;  %12840 = vmatmul.mubr.msk.f32.gmra.mrb[68].mxu1 %vm1530_vm2, %v17234_v62  ;;  %v13843_v62 = vpop.permute.xlu1 %13842  ;;  %v13848_v37 = vpop.permute.xlu0 %13847  ;;  %v13952_v24 = vld [vmem:[%s21346_s7 + $0x20] ss:$16 sps:$4 sm:$0xff]  }
 0x367   :  { %2984 = vmatprep.mubr.f32.mxu0 %v2600_v41  ;;  %12842 = vmatprep.mubr.msk.f32.mxu1 %vm1530_vm2, %v17258_v15  ;;  %v2585_v15 = vsel %vm1530_vm2, %v17137_v51, %v13835_v36  ;;  %v13844_v29 = vunpack.i.l.bf16 %v13843_v62  ;;  %v13845_v8 = vunpack.i.h.bf16 %v13843_v62  ;;  %v13849_v9 = vunpack.i.l.bf16 %v13848_v37  ;;  %v13955_v41 = vld [vmem:[%s21346_s7 + $0x28] ss:$16 sps:$4 sm:$0xff]   ;;  %v14000_v27 = vld [vmem:[%s21346_s7 + $0x120] ss:$16 sps:$4 sm:$0xff]  }
 0x368   :  { %v13850_v16 = vunpack.i.h.bf16 %v13848_v37  ;;  %10395 = vmatprep.subr.bf16.mxu1 %v13957_v5  ;;  %9740 = vmatpush1.bf16.msra.mxu0 %v13952_v24  ;;  %v13961_v62 = vld [vmem:[%s21346_s7 + $0x48] ss:$16 sps:$4 sm:$0xff]   ;;  %v13964_v37 = vld [vmem:[%s21346_s7 + $0x60] ss:$16 sps:$4 sm:$0xff]   ;;  %v14011_v5 = vld [vmem:[%s21346_s7 + $0x14c] ss:$16 sps:$4 sm:$0xff]  }
 0x369   :  { %v2603_v51 = vsel %vm1530_vm2, %v17189_v57, %v13844_v29  ;;  %v2287_v57 = vld [vmem:[#allocation3 + $0x132] sm:$0xff]  ;;  %10396 = vmatpush1.bf16.msra.mxu1 %v13955_v41  ;;  %9741 = vmatprep.subr.bf16.mxu0 %v13960_v50  ;;  %v14017_v50 = vld [vmem:[%s21346_s7 + $0x16c] ss:$16 sps:$4 sm:$0xff]  }
 0x36a   :  { %2985 = vmatmul.mubr.f32.gmra.mrb[80].mxu0 %v2584_v14  ;;  %12843 = vmatmul.mubr.msk.f32.gmra.mrb[70].mxu1 %vm1530_vm2, %v2279_v6  ;;  %v13963_v6 = vld [vmem:[%s21346_s7 + $0x4c] ss:$16 sps:$4 sm:$0xff]   ;;  %v14009_v24 = vld [vmem:[%s21346_s7 + $0x148] ss:$16 sps:$4 sm:$0xff]   ;;  %v14014_v41 = vld [vmem:[%s21346_s7 + $0x164] ss:$16 sps:$4 sm:$0xff]  }
 0x36b   :  { %2989 = vmatprep.mubr.f32.mxu0 %v2601_v22  ;;  %12845 = vmatprep.mubr.msk.f32.mxu1 %vm1530_vm2, %v17274_v42  ;;  %v2586_v42 = vsel %vm1530_vm2, %v17152_v3, %v13840_v26  ;;  %v2604_v3 = vsel %vm1530_vm2, %v17211_v32, %v13849_v9  ;;  %v13966_v26 = vld [vmem:[%s21346_s7 + $0x64] ss:$16 sps:$4 sm:$0xff]  }
 0x36c   :  { %10397 = vmatprep.subr.bf16.mxu1 %v13963_v6  ;;  %9742 = vmatpush1.bf16.msra.mxu0 %v13958_v19  ;;  %v13972_v9 = vld [vmem:[%s21346_s7 + $0x84] ss:$16 sps:$4 sm:$0xff]  }
 0x36d   :  { %10398 = vmatpush1.bf16.msra.mxu1 %v13961_v62  ;;  %9743 = vmatprep.subr.bf16.mxu0 %v13966_v26  ;;  %v14015_v26 = vld [vmem:[%s21346_s7 + $0x168] ss:$16 sps:$4 sm:$0xff]  }
 0x36e   :  { %2990 = vmatmul.mubr.f32.gmra.mrb[82].mxu0 %v2585_v15  ;;  %12846 = vmatmul.mubr.msk.f32.gmra.mrb[72].mxu1 %vm1530_vm2, %v17256_v10  ;;  %v13853_v10 = vpop.permute.xlu1 %13852  ;;  %v13969_v15 = vld [vmem:[%s21346_s7 + $0x6c] ss:$16 sps:$4 sm:$0xff]  }
 0x36f   :  { %2994 = vmatprep.mubr.f32.mxu0 %v2602_v58  ;;  %12848 = vmatprep.mubr.msk.f32.mxu1 %vm1530_vm2, %v17286_v30  ;;  %v2587_v30 = vsel %vm1530_vm2, %v17165_v18, %v13845_v8  ;;  %v13854_v39 = vunpack.i.l.bf16 %v13853_v10  ;;  %v13855_v20 = vunpack.i.h.bf16 %v13853_v10 }
 0x370   :  { %10399 = vmatprep.subr.bf16.mxu1 %v13969_v15  ;;  %9744 = vmatpush1.bf16.msra.mxu0 %v13964_v37  ;;  %v14020_v15 = vld [vmem:[%s21346_s7 + $0x184] ss:$16 sps:$4 sm:$0xff]  }
 0x371   :  { %v2605_v18 = vsel %vm1530_vm2, %v17224_v23, %v13854_v39  ;;  %v2589_v60 = vsel %vm1530_vm2, %v17207_v12, %v13855_v20  ;;  %9745 = vmatprep.subr.bf16.mxu0 %v13972_v9 }
 0x372   :  { %2995 = vmatmul.mubr.f32.gmra.mrb[84].mxu0 %v2586_v42  ;;  %12849 = vmatmul.mubr.msk.f32.gmra.mrb[74].mxu1 %vm1530_vm2, %v17265_v47  ;;  %v13858_v47 = vpop.permute.xlu0 %13857  ;;  %v13967_v42 = vld [vmem:[%s21346_s7 + $0x68] ss:$16 sps:$4 sm:$0xff]  }
 0x373   :  { %2999 = vmatprep.mubr.f32.mxu0 %v2603_v51  ;;  %12851 = vmatprep.mubr.msk.f32.mxu1 %vm1530_vm2, %v17292_v0  ;;  %v2588_v0 = vsel %vm1530_vm2, %v17185_v1, %v13850_v16  ;;  %v13859_v21 = vunpack.i.l.bf16 %v13858_v47  ;;  %v13860_v32 = vunpack.i.h.bf16 %v13858_v47  ;;  %v2255_v1 = vld [vmem:[#allocation3 + $0x130] sm:$0xff]  ;;  %v13975_v51 = vld [vmem:[%s21346_s7 + $0x8c] ss:$16 sps:$4 sm:$0xff]  }
 0x374   :  { %10400 = vmatpush1.bf16.msra.mxu1 %v13967_v42  ;;  %v13978_v47 = vld [vmem:[%s21346_s7 + $0xa4] ss:$16 sps:$4 sm:$0xff]   ;;  %v14023_v42 = vld [vmem:[%s21346_s7 + $0x18c] ss:$16 sps:$4 sm:$0xff]  }
 0x375   :  { %v2590_v63 = vsel %vm1530_vm2, %v17220_v52, %v13860_v32  ;;  %10401 = vmatprep.subr.bf16.mxu1 %v13975_v51  ;;  %v14018_v51 = vld [vmem:[%s21346_s7 + $0x180] ss:$16 sps:$4 sm:$0xff]  }
 0x376   :  { %3000 = vmatmul.mubr.f32.gmra.mrb[86].mxu0 %v2587_v30  ;;  %12852 = vmatmul.mubr.msk.f32.gmra.mrb[76].mxu1 %vm1530_vm2, %v17281_v11  ;;  %v13863_v11 = vpop.permute.xlu1 %13862  ;;  %v13970_v30 = vld [vmem:[%s21346_s7 + $0x80] ss:$16 sps:$4 sm:$0xff]  }
 0x377   :  { %3004 = vmatprep.mubr.f32.mxu0 %v2604_v3  ;;  %12854 = vmatprep.mubr.msk.f32.mxu1 %vm1530_vm2, %v17298_v40  ;;  %v13864_v25 = vunpack.i.l.bf16 %v13863_v11  ;;  %v2606_v40 = vsel %vm1530_vm2, %v17241_v13, %v13859_v21  ;;  %v13865_v31 = vunpack.i.h.bf16 %v13863_v11  ;;  %v13973_v3 = vld [vmem:[%s21346_s7 + $0x88] ss:$16 sps:$4 sm:$0xff]   ;;  %v13984_v11 = vld [vmem:[%s21346_s7 + $0xc4] ss:$16 sps:$4 sm:$0xff]  }
 0x378   :  { %9746 = vmatpush1.bf16.msra.mxu0 %v13970_v30  ;;  %10402 = vmatpush1.bf16.msra.mxu1 %v13973_v3  ;;  %v14024_v30 = vld [vmem:[%s21346_s7 + $0x1a0] ss:$16 sps:$4 sm:$0xff]   ;;  %v14027_v3 = vld [vmem:[%s21346_s7 + $0x1a8] ss:$16 sps:$4 sm:$0xff]  }
 0x379   :  { %v2607_v23 = vsel %vm1530_vm2, %v2255_v1, %v13864_v25  ;;  %v2591_v59 = vsel %vm1530_vm2, %v17276_v43, %v13865_v31  ;;  %9747 = vmatprep.subr.bf16.mxu0 %v13978_v47  ;;  %v13982_v25 = vld [vmem:[%s21346_s7 + $0xc0] ss:$16 sps:$4 sm:$0xff]   ;;  %v13990_v1 = vld [vmem:[%s21346_s7 + $0xe4] ss:$16 sps:$4 sm:$0xff]   ;;  %v13993_v31 = vld [vmem:[%s21346_s7 + $0xec] ss:$16 sps:$4 sm:$0xff]  }
 0x37a   :  { %3005 = vmatmul.mubr.f32.gmra.mrb[88].mxu0 %v2588_v0  ;;  %12855 = vmatmul.mubr.msk.f32.gmra.mrb[78].mxu1 %vm1530_vm2, %v2287_v57  ;;  %v13981_v57 = vld [vmem:[%s21346_s7 + $0xac] ss:$16 sps:$4 sm:$0xff]   ;;  %v13976_v0 = vld [vmem:[%s21346_s7 + $0xa0] ss:$16 sps:$4 sm:$0xff]   ;;  %v14032_v47 = vld [vmem:[%s21346_s7 + $0x1c4] ss:$16 sps:$4 sm:$0xff]  }
 0x37b   :  { %3009 = vmatprep.mubr.f32.mxu0 %v2605_v18  ;;  %v13979_v18 = vld [vmem:[%s21346_s7 + $0xa8] ss:$16 sps:$4 sm:$0xff]   ;;  %10403 = vmatprep.subr.bf16.mxu1 %v13981_v57  ;;  %v14035_v57 = vld [vmem:[%s21346_s7 + $0x1cc] ss:$16 sps:$4 sm:$0xff]  }
 0x37c   :  { %9748 = vmatpush1.bf16.msra.mxu0 %v13976_v0  ;;  %10404 = vmatpush1.bf16.msra.mxu1 %v13979_v18 }
 0x37d   :  { %9749 = vmatprep.subr.bf16.mxu0 %v13984_v11 }
 0x37e   :  { %3010 = vmatmul.mubr.f32.gmra.mrb[90].mxu0 %v2589_v60  ;;  %v13987_v60 = vld [vmem:[%s21346_s7 + $0xcc] ss:$16 sps:$4 sm:$0xff]  }
 0x37f   :  { %3014 = vmatprep.mubr.f32.mxu0 %v2606_v40  ;;  %v13985_v40 = vld [vmem:[%s21346_s7 + $0xc8] ss:$16 sps:$4 sm:$0xff]   ;;  %10405 = vmatprep.subr.bf16.mxu1 %v13987_v60 }
 0x380   :  { %9750 = vmatpush1.bf16.msra.mxu0 %v13982_v25  ;;  %10406 = vmatpush1.bf16.msra.mxu1 %v13985_v40  ;;  %v14033_v60 = vld [vmem:[%s21346_s7 + $0x1c8] ss:$16 sps:$4 sm:$0xff]  }
 0x381   :  { %9751 = vmatprep.subr.bf16.mxu0 %v13990_v1  ;;  %10407 = vmatprep.subr.bf16.mxu1 %v13993_v31 }
 0x382   :  { %3015 = vmatmul.mubr.f32.gmra.mrb[92].mxu0 %v2590_v63  ;;  %v13988_v63 = vld [vmem:[%s21346_s7 + $0xe0] ss:$16 sps:$4 sm:$0xff]  }
 0x383   :  { %3019 = vmatprep.mubr.f32.mxu0 %v2607_v23  ;;  %v13991_v23 = vld [vmem:[%s21346_s7 + $0xe8] ss:$16 sps:$4 sm:$0xff]  }
 0x384   :  { %9752 = vmatpush1.bf16.msra.mxu0 %v13988_v63  ;;  %10408 = vmatpush1.bf16.msra.mxu1 %v13991_v23 }
 0x386   :  { %3020 = vmatmul.mubr.f32.gmra.mrb[94].mxu0 %v2591_v59  ;;  %v13996_v59 = vld [vmem:[%s21346_s7 + $0x104] ss:$16 sps:$4 sm:$0xff]  }
 0x387   :  { %9753 = vmatprep.subr.bf16.mxu0 %v13996_v59 }
 0x3b4   :  { %v12598_v12 = vpop.f32.mrb[34].mxu1 }
 0x3b5   :  { %v12599_v38 = vpop.f32.mrb[35].mxu1 }
 0x3b6   :  { %v17444_v53 = vadd.f32 %v12599_v38, %v12598_v12  ;;  %v13999_v12 = vld [vmem:[%s21346_s7 + $0x10c] ss:$16 sps:$4 sm:$0xff]   ;;  %v17569_v38 = vld [vmem:[%s21345_s6] ss:$0 sm:$0xff] }
 0x3b7   :  { %10409 = vmatprep.subr.bf16.mxu1 %v13999_v12 }
 0x3c0   :  { %v12601_v35 = vpop.f32.mrb[36].mxu1 }
 0x3c1   :  { %v12602_v13 = vpop.f32.mrb[37].mxu1 }
 0x3c2   :  { %v17446_v48 = vadd.f32 %v12602_v13, %v12601_v35 }
 0x3c4   :  { %v2812_v25 = vadd.f32 %v17446_v48, %v17569_v38 }
 0x3cc   :  { %v12604_v7 = vpop.f32.mrb[38].mxu1 }
 0x3cd   :  { %v12605_v46 = vpop.f32.mrb[39].mxu1 }
 0x3ce   :  { %v17448_v17 = vadd.f32 %v12605_v46, %v12604_v7  ;;  %v13994_v7 = vld [vmem:[%s21346_s7 + $0x100] ss:$16 sps:$4 sm:$0xff]  }
 0x3cf   :  { %9754 = vmatpush1.bf16.msra.mxu0 %v13994_v7 }
 0x3d8   :  { %v12607_v52 = vpop.f32.mrb[40].mxu1 }
 0x3d9   :  { %v12608_v49 = vpop.f32.mrb[41].mxu1 }
 0x3da   :  { %v17450_v2 = vadd.f32 %v12608_v49, %v12607_v52  ;;  %v13997_v49 = vld [vmem:[%s21346_s7 + $0x108] ss:$16 sps:$4 sm:$0xff]  }
 0x3db   :  { %10410 = vmatpush1.bf16.msra.mxu1 %v13997_v49 }
 0x3dc   :  { %10411 = vmatprep.subr.bf16.mxu1 %v14005_v33 }
 0x3e4   :  { %v12610_v45 = vpop.f32.mrb[42].mxu1 }
 0x3e5   :  { %v12611_v34 = vpop.f32.mrb[43].mxu1 }
 0x3e6   :  { %v17452_v43 = vadd.f32 %v12611_v34, %v12610_v45  ;;  %v14002_v45 = vld [vmem:[%s21346_s7 + $0x124] ss:$16 sps:$4 sm:$0xff]   ;;  %v2802_v34 = vadd.f32 %v17294_v28, %v17569_v38  ;;  %v14003_v28 = vld [vmem:[%s21346_s7 + $0x128] ss:$16 sps:$4 sm:$0xff]  }
 0x3e7   :  { %9755 = vmatprep.subr.bf16.mxu0 %v14002_v45  ;;  %10412 = vmatpush1.bf16.msra.mxu1 %v14003_v28 }
 0x3e8   :  { %9756 = vmatpush1.bf16.msra.mxu0 %v14000_v27  ;;  %10413 = vmatprep.subr.bf16.mxu1 %v14011_v5 }
 0x3ea   :  { %v12613_v44 = vpop.f32.mrb[44].mxu1 }
 0x3eb   :  { %v12614_v54 = vpop.f32.mrb[45].mxu1  ;;  %10414 = vmatpush1.bf16.msra.mxu1 %v14009_v24  ;;  %v2827_v24 = vadd.f32 %v17452_v43, %v17569_v38 }
 0x3ec   :  { %v17475_v55 = vadd.f32 %v12614_v54, %v12613_v44  ;;  %v14008_v44 = vld [vmem:[%s21346_s7 + $0x144] ss:$16 sps:$4 sm:$0xff]   ;;  %v14006_v54 = vld [vmem:[%s21346_s7 + $0x140] ss:$16 sps:$4 sm:$0xff]   ;;  %10415 = vmatprep.subr.bf16.mxu1 %v14017_v50 }
 0x3ed   :  { %9757 = vmatprep.subr.bf16.mxu0 %v14008_v44 }
 0x3ee   :  { %v12616_v36 = vpop.f32.mrb[46].mxu1  ;;  %9758 = vmatpush1.bf16.msra.mxu0 %v14006_v54 }
 0x3ef   :  { %v12617_v14 = vpop.f32.mrb[47].mxu1  ;;  %9759 = vmatprep.subr.bf16.mxu0 %v14014_v41  ;;  %10416 = vmatpush1.bf16.msra.mxu1 %v14015_v26 }
 0x3f0   :  { %v17489_v22 = vadd.f32 %v12617_v14, %v12616_v36  ;;  %v14012_v14 = vld [vmem:[%s21346_s7 + $0x160] ss:$16 sps:$4 sm:$0xff]   ;;  %10417 = vmatprep.subr.bf16.mxu1 %v14023_v42 }
 0x3f2   :  { %v12619_v29 = vpop.f32.mrb[48].mxu1  ;;  %9760 = vmatpush1.bf16.msra.mxu0 %v14012_v14 }
 0x3f3   :  { %v12620_v58 = vpop.f32.mrb[49].mxu1  ;;  %9761 = vmatprep.subr.bf16.mxu0 %v14020_v15 }
 0x3f4   :  { %v17503_v8 = vadd.f32 %v12620_v58, %v12619_v29  ;;  %v2807_v29 = vadd.f32 %v17444_v53, %v17569_v38  ;;  %v14021_v53 = vld [vmem:[%s21346_s7 + $0x188] ss:$16 sps:$4 sm:$0xff]  }
 0x3f5   :  { %10418 = vmatpush1.bf16.msra.mxu1 %v14021_v53 }
 0x3f6   :  { %v12622_v10 = vpop.f32.mrb[50].mxu1  ;;  %9762 = vmatpush1.bf16.msra.mxu0 %v14018_v51 }
 0x3f7   :  { %v12623_v16 = vpop.f32.mrb[51].mxu1 }
 0x3f8   :  { %v17517_v39 = vadd.f32 %v12623_v16, %v12622_v10  ;;  %v14026_v10 = vld [vmem:[%s21346_s7 + $0x1a4] ss:$16 sps:$4 sm:$0xff]   ;;  %v14029_v16 = vld [vmem:[%s21346_s7 + $0x1ac] ss:$16 sps:$4 sm:$0xff]  }
 0x3f9   :  { %9763 = vmatprep.subr.bf16.mxu0 %v14026_v10  ;;  %10419 = vmatprep.subr.bf16.mxu1 %v14029_v16 }
 0x3fa   :  { %9764 = vmatpush1.bf16.msra.mxu0 %v14024_v30  ;;  %10420 = vmatpush1.bf16.msra.mxu1 %v14027_v3 }
 0x3fb   :  { %9765 = vmatprep.subr.bf16.mxu0 %v14032_v47  ;;  %10421 = vmatprep.subr.bf16.mxu1 %v14035_v57 }
 0x3fc   :  { %v12625_v20 = vpop.f32.mrb[52].mxu1 }
 0x3fd   :  { %v12626_v21 = vpop.f32.mrb[53].mxu1 }
 0x3fe   :  { %v17537_v32 = vadd.f32 %v12626_v21, %v12625_v20  ;;  %v14030_v21 = vld [vmem:[%s21346_s7 + $0x1c0] ss:$16 sps:$4 sm:$0xff]   ;;  %10422 = vmatpush1.bf16.msra.mxu1 %v14033_v60 }
 0x3ff   :  { %9766 = vmatpush1.bf16.msra.mxu0 %v14030_v21 }
 0x400   :  { %v17690_v43 = vadd.f32 %v17537_v32, %v17569_v38 }
 0x409   :  { %v12628_v35 = vpop.f32.mrb[54].mxu1  ;;  %v12675_v13 = vpop.f32.mrb[64].mxu0 }
 0x40a   :  { %v12629_v46 = vpop.f32.mrb[55].mxu1  ;;  %v12676_v52 = vpop.f32.mrb[65].mxu0 }
 0x40b   :  { %v17582_v61 = vadd.f32 %v12629_v46, %v12628_v35  ;;  %v12677_v4 = vadd.f32 %v12676_v52, %v12675_v13  ;;  %v2817_v35 = vadd.f32 %v17448_v17, %v17569_v38 }
 0x40d   :  { %v17587_v56 = vadd.f32 %v12677_v4, %v2802_v34  ;;  %v2822_v34 = vadd.f32 %v17450_v2, %v17569_v38  ;;  %v2837_v2 = vadd.f32 %v17489_v22, %v17569_v38 }
 0x415   :  { %v12631_v6 = vpop.f32.mrb[56].mxu1  ;;  %v12678_v36 = vpop.f32.mrb[66].mxu0 }
 0x416   :  { %v12632_v19 = vpop.f32.mrb[57].mxu1  ;;  %v12679_v62 = vpop.f32.mrb[67].mxu0 }
 0x417   :  { %v17624_v58 = vadd.f32 %v12632_v19, %v12631_v6  ;;  %v12680_v37 = vadd.f32 %v12679_v62, %v12678_v36  ;;  %v2832_v6 = vadd.f32 %v17475_v55, %v17569_v38  ;;  %v17680_v36 = vadd.f32 %v17503_v8, %v17569_v38 }
 0x418   :  { %v17686_v19 = vadd.f32 %v17517_v39, %v17569_v38 }
 0x419   :  { %v2952_v9 = vadd.f32 %v12680_v37, %v2807_v29 }
 0x421   :  { %v12634_v20 = vpop.f32.mrb[58].mxu1  ;;  %v12681_v0 = vpop.f32.mrb[68].mxu0 }
 0x422   :  { %v12635_v18 = vpop.f32.mrb[59].mxu1  ;;  %v12682_v11 = vpop.f32.mrb[69].mxu0 }
 0x423   :  { %v17661_v40 = vadd.f32 %v12635_v18, %v12634_v20  ;;  %v12683_v1 = vadd.f32 %v12682_v11, %v12681_v0 }
 0x425   :  { %v2957_v31 = vadd.f32 %v12683_v1, %v2812_v25 }
 0x427   :  { %v12637_v63 = vpop.f32.mrb[60].mxu1  ;;  %v12684_v23 = vpop.f32.mrb[70].mxu0 }
 0x428   :  { %v12638_v59 = vpop.f32.mrb[61].mxu1  ;;  %v12685_v12 = vpop.f32.mrb[71].mxu0 }
 0x429   :  { %v17665_v13 = vadd.f32 %v12638_v59, %v12637_v63  ;;  %v12686_v7 = vadd.f32 %v12685_v12, %v12684_v23 }
 0x42b   :  { %v2962_v46 = vadd.f32 %v12686_v7, %v2817_v35 }
 0x42d   :  { %v12640_v52 = vpop.f32.mrb[62].mxu1  ;;  %v12687_v48 = vpop.f32.mrb[72].mxu0 }
 0x42e   :  { %v12641_v49 = vpop.f32.mrb[63].mxu1  ;;  %v12688_v45 = vpop.f32.mrb[73].mxu0 }
 0x42f   :  { %v17669_v4 = vadd.f32 %v12641_v49, %v12640_v52  ;;  %v12689_v33 = vadd.f32 %v12688_v45, %v12687_v48 }
 0x431   :  { %v12690_v27 = vpop.f32.mrb[74].mxu0  ;;  %v12835_v28 = vpop.f32.mrb[64].mxu1  ;;  %v2967_v44 = vadd.f32 %v12689_v33, %v2822_v34 }
 0x432   :  { %v3097_v5 = vadd.f32 %v12835_v28, %v2952_v9  ;;  %v12691_v54 = vpop.f32.mrb[75].mxu0  ;;  %v3091_v17 = vpop.f32.mrb[65].mxu1 }
 0x433   :  { %v12692_v41 = vadd.f32 %v12691_v54, %v12690_v27  ;;  %v3092_v50 = vadd.f32 %v3091_v17, %v17587_v56 }
 0x434   :  { %v17682_v14 = vmax.f32 %v3097_v5, 0.0 }
 0x435   :  { %v17692_v56 = vmax.f32 %v3092_v50, 0.0  ;;  %v12693_v55 = vpop.f32.mrb[76].mxu0  ;;  %v12838_v62 = vpop.f32.mrb[66].mxu1  ;;  %v2972_v26 = vadd.f32 %v12692_v41, %v2827_v24 }
 0x436   :  { %v3107_v22 = vadd.f32 %v12838_v62, %v2962_v46  ;;  %v12694_v15 = vpop.f32.mrb[77].mxu0  ;;  %v3101_v29 = vpop.f32.mrb[67].mxu1  ;;  %v3251_v8 = vrot.slane %v17682_v14, 5  ;;  %v3261_v37 = vrot.slane %v17682_v14, 7  ;;  %v3232_v42 = vrot.slane %v17682_v14, 1 }
 0x437   :  { %v12695_v39 = vadd.f32 %v12694_v15, %v12693_v55  ;;  %v3102_v9 = vadd.f32 %v3101_v29, %v2957_v31  ;;  %v3211_v51 = vrot.slane %v17692_v56, 5  ;;  %v3221_v32 = vrot.slane %v17692_v56, 7 }
 0x438   :  { %v17699_v53 = vmax.f32 %v3107_v22, 0.0  ;;  %v3192_v10 = vrot.slane %v17692_v56, 1  ;;  %v3201_v16 = vrot.slane %v17692_v56, 3  ;;  %v3241_v30 = vrot.slane %v17682_v14, 3  ;;  %v14038_v22 = vld [vmem:[%s21346_s7 + $0x1e4] ss:$16 sps:$4 sm:$0xff]  }
 0x439   :  { %v17704_v3 = vmax.f32 %v3102_v9, 0.0  ;;  %v12696_v47 = vpop.f32.mrb[78].mxu0  ;;  %v12841_v57 = vpop.f32.mrb[68].mxu1  ;;  %v2977_v20 = vadd.f32 %v12695_v39, %v2832_v6  ;;  %v3207_v0 = vrot.slane %v17692_v56, 4  ;;  %v3247_v21 = vrot.slane %v17682_v14, 4  ;;  %9767 = vmatprep.subr.bf16.mxu0 %v14038_v22 }
 0x43a   :  { %v3117_v18 = vadd.f32 %v12841_v57, %v2972_v26  ;;  %v12697_v11 = vpop.f32.mrb[79].mxu0  ;;  %v3111_v60 = vpop.f32.mrb[69].mxu1  ;;  %v3339_v25 = vrot.slane %v17699_v53, 5  ;;  %v3349_v1 = vrot.slane %v17699_v53, 7  ;;  %v3320_v31 = vrot.slane %v17699_v53, 1 }
 0x43b   :  { %v12698_v63 = vadd.f32 %v12697_v11, %v12696_v47  ;;  %v3112_v23 = vadd.f32 %v3111_v60, %v2967_v44  ;;  %v3299_v59 = vrot.slane %v17704_v3, 5  ;;  %v3309_v12 = vrot.slane %v17704_v3, 7 }
 0x43c   :  { %v17713_v35 = vmax.f32 %v3117_v18, 0.0  ;;  %v3280_v7 = vrot.slane %v17704_v3, 1  ;;  %v3289_v46 = vrot.slane %v17704_v3, 3  ;;  %v3329_v52 = vrot.slane %v17699_v53, 3  ;;  %v14036_v18 = vld [vmem:[%s21346_s7 + $0x1e0] ss:$16 sps:$4 sm:$0xff]  }
 0x43d   :  { %v17718_v48 = vmax.f32 %v3112_v23, 0.0  ;;  %v12699_v49 = vpop.f32.mrb[80].mxu0  ;;  %v2982_v45 = vadd.f32 %v12698_v63, %v2837_v2  ;;  %v12844_v34 = vpop.f32.mrb[70].mxu1  ;;  %v3197_v33 = vrot.slane %v17692_v56, 2  ;;  %v3295_v27 = vrot.slane %v17704_v3, 4  ;;  %9768 = vmatpush1.bf16.msra.mxu0 %v14036_v18 }
 0x43e   :  { %v12700_v28 = vpop.f32.mrb[81].mxu0  ;;  %v3121_v44 = vpop.f32.mrb[71].mxu1  ;;  %v3427_v5 = vrot.slane %v17713_v35, 5  ;;  %v3437_v54 = vrot.slane %v17713_v35, 7  ;;  %v3408_v17 = vrot.slane %v17713_v35, 1  ;;  %v3417_v24 = vrot.slane %v17713_v35, 3 }
 0x43f   :  { %v3127_v41 = vadd.f32 %v12844_v34, %v2982_v45  ;;  %v12701_v50 = vadd.f32 %v12700_v28, %v12699_v49  ;;  %v3122_v6 = vadd.f32 %v3121_v44, %v2977_v20  ;;  %v3387_v2 = vrot.slane %v17718_v48, 5  ;;  %v14047_v28 = vld [vmem:[%s21346_s7 + $0x20c] ss:$16 sps:$4 sm:$0xff]  }
 0x440   :  { %v3397_v55 = vrot.slane %v17718_v48, 7  ;;  %v3368_v62 = vrot.slane %v17718_v48, 1  ;;  %v3377_v26 = vrot.slane %v17718_v48, 3  ;;  %v3217_v15 = vrot.slane %v17692_v56, 6 }
 0x441   :  { %v17736_v29 = vadd.f32 %v17582_v61, %v17569_v38  ;;  %v17738_v39 = vmax.f32 %v3127_v41, 0.0  ;;  %v17740_v9 = vmax.f32 %v3122_v6, 0.0  ;;  %v12702_v47 = vpop.f32.mrb[82].mxu0  ;;  %v12847_v57 = vpop.f32.mrb[72].mxu1  ;;  %v2987_v20 = vadd.f32 %v12701_v50, %v17680_v36 }
 0x442   :  { %v17748_v11 = vadd.f32 %v17624_v58, %v17569_v38  ;;  %v17752_v61 = vadd.f32 %v17661_v40, %v17569_v38  ;;  %v17756_v60 = vadd.f32 %v17665_v13, %v17569_v38  ;;  %v17760_v63 = vadd.f32 %v17669_v4, %v17569_v38  ;;  %v12703_v36 = vpop.f32.mrb[83].mxu0  ;;  %v3131_v23 = vpop.f32.mrb[73].mxu1  ;;  %v14039_v58 = vld [vmem:[%s21346_s7 + $0x1e8] ss:$16 sps:$4 sm:$0xff]   ;;  %v14041_v40 = vld [vmem:[%s21346_s7 + $0x1ec] ss:$16 sps:$4 sm:$0xff]  }
 0x443   :  { %v12704_v49 = vadd.f32 %v12703_v36, %v12702_v47  ;;  %v3132_v45 = vadd.f32 %v3131_v23, %v2987_v20  ;;  %10423 = vmatprep.subr.bf16.mxu1 %v14041_v40  ;;  %v3335_v23 = vrot.slane %v17699_v53, 4 }
 0x444   :  { %10424 = vmatpush1.bf16.msra.mxu1 %v14039_v58  ;;  %v14044_v58 = vld [vmem:[%s21346_s7 + $0x204] ss:$16 sps:$4 sm:$0xff]  }
 0x445   :  { %v2992_v41 = vadd.f32 %v12704_v49, %v17686_v19  ;;  %v17775_v50 = vmax.f32 %v3132_v45, 0.0  ;;  %v12705_v6 = vpop.f32.mrb[84].mxu0  ;;  %v12850_v22 = vpop.f32.mrb[74].mxu1  ;;  %9778 = vmatprep.subr.bf16.mxu0 %v14044_v58  ;;  %10434 = vmatprep.subr.bf16.mxu1 %v14047_v28 }
 0x446   :  { %v12706_v18 = vpop.f32.mrb[85].mxu0  ;;  %v3141_v36 = vpop.f32.mrb[75].mxu1 }
 0x447   :  { %v3137_v19 = vadd.f32 %v12847_v57, %v2992_v41  ;;  %v12707_v49 = vadd.f32 %v12706_v18, %v12705_v6  ;;  %v3212_v45 = vrot.slane %v17775_v50, 4  ;;  %v3222_v4 = vrot.slane %v17775_v50, 6 }
 0x448   :  { %v3193_v20 = vsel %vm3189_vm7, %v17775_v50, %v3192_v10  ;;  %v3202_v47 = vrot.slane %v17775_v50, 2  ;;  %v3208_v44 = vrot.slane %v17775_v50, 3  ;;  %v3188_v57 = vrot.slane %v17775_v50, 7 }
 0x449   :  { %v17795_v41 = vmax.f32 %v3137_v19, 0.0  ;;  %v2997_v6 = vadd.f32 %v12707_v49, %v17690_v43  ;;  %v12708_v18 = vpop.f32.mrb[86].mxu0  ;;  %v17798_v40 = vpop.f32.mrb[76].mxu1  ;;  %v3213_v34 = vsel %vm3189_vm7, %v3212_v45, %v3211_v51  ;;  %v3223_v10 = vsel %vm3189_vm7, %v3222_v4, %v3221_v32 }
 0x44a   :  { %v12709_v19 = vpop.f32.mrb[87].mxu0  ;;  %v3151_v13 = vpop.f32.mrb[77].mxu1  ;;  %v13871_v38 = vpack.i.bf16 %v3213_v34, %v3223_v10  ;;  %v3203_v43 = vsel %vm3189_vm7, %v3202_v47, %v3201_v16  ;;  %v17815_v51 = vsel %vm3189_vm7, %v3208_v44, %v3207_v0  ;;  %v17819_v32 = vsel %vm3189_vm7, %v3188_v57, %v17692_v56 }
 0x44b   :  { %v3142_v4 = vadd.f32 %v3141_v36, %v2997_v6  ;;  %v12710_v49 = vadd.f32 %v12709_v19, %v12708_v18  ;;  %v13866_v45 = vpack.i.bf16 %v3193_v20, %v3203_v43  ;;  %v3252_v58 = vrot.slane %v17795_v41, 4 }
 0x44c   :  { %13872 = vrot.lane.b32.xlu1 %v13871_v38, %s15511_s28  ;;  %v3262_v34 = vrot.slane %v17795_v41, 6  ;;  %v3233_v16 = vsel %vm3189_vm7, %v17795_v41, %v3232_v42  ;;  %v3242_v0 = vrot.slane %v17795_v41, 2  ;;  %v3248_v44 = vrot.slane %v17795_v41, 3 }
 0x44d   :  { %v17830_v47 = vmax.f32 %v3142_v4, 0.0  ;;  %v3002_v20 = vadd.f32 %v12710_v49, %v17736_v29  ;;  %13867 = vrot.lane.b32.xlu0 %v13866_v45, %s15511_s28  ;;  %v12711_v28 = vpop.f32.mrb[88].mxu0  ;;  %v3253_v38 = vsel %vm3189_vm7, %v3252_v58, %v3251_v8  ;;  %v17837_v36 = vpop.f32.mrb[78].mxu1  ;;  %v3229_v57 = vrot.slane %v17795_v41, 7 }
 0x44e   :  { %v12712_v42 = vpop.f32.mrb[89].mxu0  ;;  %v3263_v6 = vsel %vm3189_vm7, %v3262_v34, %v3261_v37  ;;  %v3243_v29 = vsel %vm3189_vm7, %v3242_v0, %v3241_v30  ;;  %v17846_v18 = vpop.f32.mrb[79].mxu1  ;;  %v17851_v10 = vsel %vm3189_vm7, %v3248_v44, %v3247_v21  ;;  %v3198_v8 = vrot.slane %v17775_v50, 1 }
 0x44f   :  { %v3147_v19 = vadd.f32 %v12850_v22, %v3002_v20  ;;  %v12713_v43 = vadd.f32 %v12712_v42, %v12711_v28  ;;  %v13881_v4 = vpack.i.bf16 %v3253_v38, %v3263_v6  ;;  %v13876_v49 = vpack.i.bf16 %v3233_v16, %v3243_v29 }
 0x450   :  { %v3300_v45 = vrot.slane %v17830_v47, 4  ;;  %v3310_v37 = vrot.slane %v17830_v47, 6  ;;  %v3281_v30 = vsel %vm3189_vm7, %v17830_v47, %v3280_v7  ;;  %v3290_v58 = vrot.slane %v17830_v47, 2 }
 0x451   :  { %v17861_v34 = vmax.f32 %v3147_v19, 0.0  ;;  %v3007_v21 = vadd.f32 %v12713_v43, %v17748_v11  ;;  %13882 = vrot.lane.b32.xlu1 %v13881_v4, %s15511_s28  ;;  %13877 = vrot.lane.b32.xlu0 %v13876_v49, %s15511_s28  ;;  %v12714_v22 = vpop.f32.mrb[90].mxu0  ;;  %v17868_v16 = vsel %vm3189_vm7, %v3229_v57, %v17682_v14  ;;  %v17873_v0 = vsel %vm3189_vm7, %v3198_v8, %v3197_v33 }
 0x452   :  { %v12715_v7 = vpop.f32.mrb[91].mxu0  ;;  %v3301_v44 = vsel %vm3189_vm7, %v3300_v45, %v3299_v59  ;;  %v3311_v11 = vsel %vm3189_vm7, %v3310_v37, %v3309_v12  ;;  %v3291_v20 = vsel %vm3189_vm7, %v3290_v58, %v3289_v46  ;;  %v3296_v28 = vrot.slane %v17830_v47, 3 }
 0x453   :  { %v3152_v38 = vadd.f32 %v3151_v13, %v3007_v21  ;;  %v12716_v57 = vadd.f32 %v12715_v7, %v12714_v22  ;;  %v13891_v42 = vpack.i.bf16 %v3301_v44, %v3311_v11  ;;  %v13886_v33 = vpack.i.bf16 %v3281_v30, %v3291_v20 }
 0x454   :  { %v3340_v6 = vrot.slane %v17861_v34, 4  ;;  %v3350_v29 = vrot.slane %v17861_v34, 6  ;;  %v3321_v59 = vsel %vm3189_vm7, %v17861_v34, %v3320_v31  ;;  %v3330_v12 = vrot.slane %v17861_v34, 2 }
 0x455   :  { %v17892_v8 = vmax.f32 %v3152_v38, 0.0  ;;  %v3012_v46 = vadd.f32 %v12716_v57, %v17752_v61  ;;  %13892 = vrot.lane.b32.xlu1 %v13891_v42, %s15511_s28  ;;  %13887 = vrot.lane.b32.xlu0 %v13886_v33, %s15511_s28  ;;  %v12717_v13 = vpop.f32.mrb[92].mxu0  ;;  %v17900_v19 = vsel %vm3189_vm7, %v3296_v28, %v3295_v27  ;;  %v3277_v43 = vrot.slane %v17830_v47, 7 }
 0x456   :  { %v12718_v4 = vpop.f32.mrb[93].mxu0  ;;  %v3341_v31 = vsel %vm3189_vm7, %v3340_v6, %v3339_v25  ;;  %v3351_v61 = vsel %vm3189_vm7, %v3350_v29, %v3349_v1  ;;  %v3331_v49 = vsel %vm3189_vm7, %v3330_v12, %v3329_v52  ;;  %v3218_v45 = vrot.slane %v17775_v50, 5 }
 0x457   :  { %v3157_v27 = vadd.f32 %v17798_v40, %v3012_v46  ;;  %v12719_v37 = vadd.f32 %v12718_v4, %v12717_v13  ;;  %v13901_v30 = vpack.i.bf16 %v3341_v31, %v3351_v61  ;;  %v13896_v58 = vpack.i.bf16 %v3321_v59, %v3331_v49 }
 0x458   :  { %v3388_v21 = vrot.slane %v17892_v8, 4  ;;  %v3398_v22 = vrot.slane %v17892_v8, 6  ;;  %v3369_v25 = vsel %vm3189_vm7, %v17892_v8, %v3368_v62  ;;  %v3378_v1 = vrot.slane %v17892_v8, 2 }
 0x459   :  { %v17921_v7 = vmax.f32 %v3157_v27, 0.0  ;;  %13902 = vrot.lane.b32.xlu1 %v13901_v30, %s15511_s28  ;;  %13897 = vrot.lane.b32.xlu0 %v13896_v58, %s15511_s28  ;;  %v12720_v52 = vpop.f32.mrb[94].mxu0  ;;  %v3017_v50 = vadd.f32 %v12719_v37, %v17756_v60  ;;  %v17928_v40 = vsel %vm3189_vm7, %v3277_v43, %v17704_v3  ;;  %v17933_v44 = vsel %vm3189_vm7, %v3218_v45, %v3217_v15 }
 0x45a   :  { %v12721_v62 = vpop.f32.mrb[95].mxu0  ;;  %v3389_v11 = vsel %vm3189_vm7, %v3388_v21, %v3387_v2  ;;  %v3399_v20 = vsel %vm3189_vm7, %v3398_v22, %v3397_v55  ;;  %v3379_v60 = vsel %vm3189_vm7, %v3378_v1, %v3377_v26  ;;  %v3336_v28 = vrot.slane %v17861_v34, 3 }
 0x45b   :  { %v12722_v38 = vadd.f32 %v12721_v62, %v12720_v52  ;;  %v3162_v56 = vadd.f32 %v17846_v18, %v3017_v50  ;;  %v13911_v15 = vpack.i.bf16 %v3389_v11, %v3399_v20  ;;  %v13906_v57 = vpack.i.bf16 %v3369_v25, %v3379_v60 }
 0x45c   :  { %v3428_v42 = vrot.slane %v17921_v7, 4  ;;  %v3438_v33 = vrot.slane %v17921_v7, 6  ;;  %v3409_v2 = vsel %vm3189_vm7, %v17921_v7, %v3408_v17  ;;  %v3418_v55 = vrot.slane %v17921_v7, 2 }
 0x45d   :  { %v3022_v26 = vadd.f32 %v12722_v38, %v17760_v63  ;;  %v17954_v6 = vmax.f32 %v3162_v56, 0.0  ;;  %13912 = vrot.lane.b32.xlu1 %v13911_v15, %s15511_s28  ;;  %13907 = vrot.lane.b32.xlu0 %v13906_v57, %s15511_s28  ;;  %v17961_v18 = vsel %vm3189_vm7, %v3336_v28, %v3335_v23  ;;  %v3317_v29 = vrot.slane %v17861_v34, 7 }
 0x45e   :  { %v3429_v17 = vsel %vm3189_vm7, %v3428_v42, %v3427_v5  ;;  %v3439_v63 = vsel %vm3189_vm7, %v3438_v33, %v3437_v54  ;;  %v3419_v59 = vsel %vm3189_vm7, %v3418_v55, %v3417_v24  ;;  %v3384_v12 = vrot.slane %v17892_v8, 3 }
 0x45f   :  { %v3167_v46 = vadd.f32 %v17837_v36, %v3022_v26  ;;  %v13921_v23 = vpack.i.bf16 %v3429_v17, %v3439_v63  ;;  %v13916_v13 = vpack.i.bf16 %v3409_v2, %v3419_v59  ;;  %v3476_v43 = vrot.slane %v17954_v6, 4 }
 0x460   :  { %v3486_v4 = vrot.slane %v17954_v6, 6  ;;  %v21351_v5 = vrot.slane %v17740_v9, 1  ;;  %v3466_v54 = vrot.slane %v17954_v6, 2  ;;  %v17984_v24 = vsel %vm3189_vm7, %v3317_v29, %v17699_v53 }
 0x461   :  { %v17986_v61 = vmax.f32 %v3167_v46, 0.0  ;;  %13922 = vrot.lane.b32.xlu1 %v13921_v23, %s15511_s28  ;;  %13917 = vrot.lane.b32.xlu0 %v13916_v13, %s15511_s28  ;;  %v21352_v36 = vrot.slane %v17740_v9, 5  ;;  %v21353_v45 = vrot.slane %v17718_v48, 4  ;;  %v3365_v37 = vrot.slane %v17892_v8, 7 }
 0x462   :  { %v3457_v31 = vsel %vm3189_vm7, %v17954_v6, %v21351_v5  ;;  %v21354_v30 = vrot.slane %v17740_v9, 7  ;;  %v21355_v21 = vrot.slane %v17740_v9, 3  ;;  %v3424_v25 = vrot.slane %v17921_v7, 3 }
 0x463   :  { %v3477_v49 = vsel %vm3189_vm7, %v3476_v43, %v21352_v36  ;;  %v17996_v27 = vsel %vm3189_vm7, %v3384_v12, %v21353_v45  ;;  %v3405_v1 = vrot.slane %v17921_v7, 7  ;;  %v3516_v62 = vrot.slane %v17986_v61, 4 }
 0x464   :  { %v3487_v58 = vsel %vm3189_vm7, %v3486_v4, %v21354_v30  ;;  %v3467_v22 = vsel %vm3189_vm7, %v3466_v54, %v21355_v21  ;;  %v3526_v11 = vrot.slane %v17986_v61, 6  ;;  %v21356_v20 = vrot.slane %v17738_v39, 1 }
 0x465   :  { %v13931_v52 = vpack.i.bf16 %v3477_v49, %v3487_v58  ;;  %v13926_v50 = vpack.i.bf16 %v3457_v31, %v3467_v22  ;;  %v3506_v28 = vrot.slane %v17986_v61, 2  ;;  %v18016_v38 = vsel %vm3189_vm7, %v3365_v37, %v17718_v48 }
 0x466   :  { %v3497_v60 = vsel %vm3189_vm7, %v17986_v61, %v21356_v20  ;;  %v21357_v56 = vrot.slane %v17713_v35, 4  ;;  %v21358_v57 = vrot.slane %v17738_v39, 5  ;;  %v21359_v33 = vrot.slane %v17738_v39, 7 }
 0x467   :  { %13932 = vrot.lane.b32.xlu1 %v13931_v52, %s15511_s28  ;;  %13927 = vrot.lane.b32.xlu0 %v13926_v50, %s15511_s28  ;;  %v18033_v55 = vsel %vm3189_vm7, %v3405_v1, %v17713_v35  ;;  %v3472_v26 = vrot.slane %v17954_v6, 3  ;;  %v21360_v17 = vrot.slane %v17738_v39, 3  ;;  %v3453_v59 = vrot.slane %v17954_v6, 7 }
 0x468   :  { %v18021_v15 = vsel %vm3189_vm7, %v3424_v25, %v21357_v56  ;;  %v3517_v42 = vsel %vm3189_vm7, %v3516_v62, %v21358_v57  ;;  %v3527_v2 = vsel %vm3189_vm7, %v3526_v11, %v21359_v33  ;;  %v3511_v12 = vrot.slane %v17738_v39, 4 }
 0x469   :  { %v13941_v29 = vpack.i.bf16 %v3517_v42, %v3527_v2  ;;  %v3507_v63 = vsel %vm3189_vm7, %v3506_v28, %v21360_v17  ;;  %v21361_v23 = vrot.slane %v17740_v9, 4  ;;  %v3512_v43 = vrot.slane %v17986_v61, 3 }
 0x46a   :  { %v13936_v46 = vpack.i.bf16 %v3497_v60, %v3507_v63  ;;  %v3493_v4 = vrot.slane %v17986_v61, 7  ;;  %v18050_v5 = vsel %vm3189_vm7, %v3453_v59, %v17740_v9  ;;  %v3237_v31 = vrot.slane %v17682_v14, 2 }
 0x46b   :  { %v18044_v13 = vsel %vm3189_vm7, %v3472_v26, %v21361_v23  ;;  %v3238_v54 = vrot.slane %v17795_v41, 1  ;;  %13942 = vrot.lane.b32.xlu1 %v13941_v29, %s15511_s28  ;;  %v18057_v36 = vsel %vm3189_vm7, %v3512_v43, %v3511_v12  ;;  %v3257_v45 = vrot.slane %v17682_v14, 6 }
 0x46c   :  { %13937 = vrot.lane.b32.xlu0 %v13936_v46, %s15511_s28  ;;  %v18061_v49 = vsel %vm3189_vm7, %v3493_v4, %v17738_v39  ;;  %v3258_v37 = vrot.slane %v17795_v41, 5  ;;  %v3285_v58 = vrot.slane %v17704_v3, 2  ;;  %v3286_v21 = vrot.slane %v17830_v47, 1 }
 0x46d   :  { %v18066_v30 = vsel %vm3189_vm7, %v3238_v54, %v3237_v31  ;;  %v3305_v25 = vrot.slane %v17704_v3, 6  ;;  %v3306_v1 = vrot.slane %v17830_v47, 5  ;;  %v3325_v14 = vrot.slane %v17699_v53, 2 }
 0x46e   :  { %v18071_v22 = vsel %vm3189_vm7, %v3258_v37, %v3257_v45  ;;  %v18076_v52 = vsel %vm3189_vm7, %v3286_v21, %v3285_v58  ;;  %v3326_v41 = vrot.slane %v17861_v34, 1  ;;  %v3345_v50 = vrot.slane %v17699_v53, 6  ;;  %v14042_v21 = vld [vmem:[%s21346_s7 + $0x200] ss:$16 sps:$4 sm:$0xff]  }
 0x46f   :  { %v18082_v62 = vsel %vm3189_vm7, %v3306_v1, %v3305_v25  ;;  %v3346_v11 = vrot.slane %v17861_v34, 5  ;;  %v3373_v20 = vrot.slane %v17718_v48, 2  ;;  %v3374_v3 = vrot.slane %v17892_v8, 1  ;;  %v14045_v25 = vld [vmem:[%s21346_s7 + $0x208] ss:$16 sps:$4 sm:$0xff]  }
 0x470   :  { %v18088_v47 = vsel %vm3189_vm7, %v3326_v41, %v3325_v14  ;;  %v3393_v60 = vrot.slane %v17718_v48, 6  ;;  %v3394_v28 = vrot.slane %v17892_v8, 5  ;;  %v3413_v57 = vrot.slane %v17713_v35, 2  ;;  %v14048_v41 = vld [vmem:[%s21346_s7 + $0x220] ss:$16 sps:$4 sm:$0xff]  }
 0x471   :  { %v18093_v56 = vsel %vm3189_vm7, %v3346_v11, %v3345_v50  ;;  %v18096_v53 = vsel %vm3189_vm7, %v3374_v3, %v3373_v20  ;;  %v3414_v34 = vrot.slane %v17921_v7, 1  ;;  %v3433_v33 = vrot.slane %v17713_v35, 6  ;;  %v14056_v50 = vld [vmem:[%s21346_s7 + $0x244] ss:$16 sps:$4 sm:$0xff]   ;;  %v14059_v11 = vld [vmem:[%s21346_s7 + $0x24c] ss:$16 sps:$4 sm:$0xff]  }
 0x472   :  { %v18101_v42 = vsel %vm3189_vm7, %v3394_v28, %v3393_v60  ;;  %v3434_v2 = vrot.slane %v17921_v7, 5  ;;  %v3461_v48 = vrot.slane %v17740_v9, 2  ;;  %v3462_v26 = vrot.slane %v17954_v6, 1  ;;  %v14054_v20 = vld [vmem:[%s21346_s7 + $0x240] ss:$16 sps:$4 sm:$0xff]  }
 0x473   :  { %v18107_v8 = vsel %vm3189_vm7, %v3414_v34, %v3413_v57  ;;  %v3481_v29 = vrot.slane %v17740_v9, 6  ;;  %v3482_v17 = vrot.slane %v17954_v6, 5  ;;  %v3501_v59 = vrot.slane %v17738_v39, 2  ;;  %v14057_v3 = vld [vmem:[%s21346_s7 + $0x248] ss:$16 sps:$4 sm:$0xff]  }
 0x474   :  { %v18113_v63 = vsel %vm3189_vm7, %v3434_v2, %v3433_v33  ;;  %v3502_v35 = vrot.slane %v17986_v61, 1  ;;  %v18118_v7 = vsel %vm3189_vm7, %v3462_v26, %v3461_v48  ;;  %v3521_v46 = vrot.slane %v17738_v39, 6  ;;  %v14062_v60 = vld [vmem:[%s21346_s7 + $0x264] ss:$16 sps:$4 sm:$0xff]   ;;  %v14065_v28 = vld [vmem:[%s21346_s7 + $0x26c] ss:$16 sps:$4 sm:$0xff]  }
 0x475   :  { %v18121_v12 = vsel %vm3189_vm7, %v3482_v17, %v3481_v29  ;;  %v3522_v23 = vrot.slane %v17986_v61, 5  ;;  %v14060_v57 = vld [vmem:[%s21346_s7 + $0x260] ss:$16 sps:$4 sm:$0xff]   ;;  %v14063_v34 = vld [vmem:[%s21346_s7 + $0x268] ss:$16 sps:$4 sm:$0xff]  }
 0x476   :  { %v18126_v9 = vsel %vm3189_vm7, %v3502_v35, %v3501_v59  ;;  %v14068_v33 = vld [vmem:[%s21346_s7 + $0x284] ss:$16 sps:$4 sm:$0xff]   ;;  %v14071_v2 = vld [vmem:[%s21346_s7 + $0x28c] ss:$16 sps:$4 sm:$0xff]   ;;  %v14066_v48 = vld [vmem:[%s21346_s7 + $0x280] ss:$16 sps:$4 sm:$0xff]  }
 0x477   :  { %v18129_v6 = vsel %vm3189_vm7, %v3522_v23, %v3521_v46  ;;  %v14069_v26 = vld [vmem:[%s21346_s7 + $0x288] ss:$16 sps:$4 sm:$0xff]   ;;  %v14074_v29 = vld [vmem:[%s21346_s7 + $0x2a4] ss:$16 sps:$4 sm:$0xff]   ;;  %v14077_v17 = vld [vmem:[%s21346_s7 + $0x2ac] ss:$16 sps:$4 sm:$0xff]  }
 0x478   :  { %v14072_v59 = vld [vmem:[%s21346_s7 + $0x2a0] ss:$16 sps:$4 sm:$0xff]   ;;  %v14075_v35 = vld [vmem:[%s21346_s7 + $0x2a8] ss:$16 sps:$4 sm:$0xff]   ;;  %v14080_v46 = vld [vmem:[%s21346_s7 + $0x2c4] ss:$16 sps:$4 sm:$0xff]  }
 0x479   :  { %v14083_v23 = vld [vmem:[%s21346_s7 + $0x2cc] ss:$16 sps:$4 sm:$0xff]  }
 0x4be   :  { %v18131_v43 = vpop.permute.xlu1 %13872 }
 0x4bf   :  { %v13874_v4 = vunpack.i.l.bf16 %v18131_v43  ;;  %v13868_v31 = vpop.permute.xlu0 %13867 }
 0x4c0   :  { %v13870_v54 = vunpack.i.h.bf16 %v13868_v31  ;;  %v13869_v45 = vunpack.i.l.bf16 %v13868_v31  ;;  %v14081_v31 = vld [vmem:[%s21346_s7 + $0x2c8] ss:$16 sps:$4 sm:$0xff]  }
 0x4c1   :  { %v3270_v1 = vsel %vm1530_vm2, %v17933_v44, %v13874_v4  ;;  %v14051_v44 = vld [vmem:[%s21346_s7 + $0x228] ss:$16 sps:$4 sm:$0xff]   ;;  %v14078_v4 = vld [vmem:[%s21346_s7 + $0x2c0] ss:$16 sps:$4 sm:$0xff]  }
 0x4c2   :  { %v3267_v37 = vsel %vm1530_vm2, %v17819_v32, %v13870_v54  ;;  %v3268_v39 = vsel %vm1530_vm2, %v17873_v0, %v13869_v45  ;;  %v14050_v32 = vld [vmem:[%s21346_s7 + $0x224] ss:$16 sps:$4 sm:$0xff]   ;;  %v14053_v0 = vld [vmem:[%s21346_s7 + $0x22c] ss:$16 sps:$4 sm:$0xff]   ;;  %v3542_v14 = vpack.c.bf16 %v3270_v1, %v3270_v1 }
 0x4c3   :  { %v3539_v61 = vpack.c.bf16 %v3267_v37, %v3267_v37  ;;  %v3540_v58 = vpack.c.bf16 %v3268_v39, %v3268_v39  ;;  %v14086_v54 = vld [vmem:[%s21346_s7 + $0x2e4] ss:$16 sps:$4 sm:$0xff]   ;;  %v14089_v45 = vld [vmem:[%s21346_s7 + $0x2ec] ss:$16 sps:$4 sm:$0xff]   ;;  %v14084_v37 = vld [vmem:[%s21346_s7 + $0x2e0] ss:$16 sps:$4 sm:$0xff]  }
 0x4c4   :  { %v14087_v39 = vld [vmem:[%s21346_s7 + $0x2e8] ss:$16 sps:$4 sm:$0xff]   ;;  %v14098_v1 = vld [vmem:[%s21346_s7 + $0x324] ss:$16 sps:$4 sm:$0xff]  }
 0x4c5   :  { %9769 = vmatprep.mubr.bf16.mxu0 %v3540_v58  ;;  %10425 = vmatprep.mubr.bf16.mxu1 %v3540_v58  ;;  %v14095_v58 = vld [vmem:[%s21346_s7 + $0x30c] ss:$16 sps:$4 sm:$0xff]  }
 0x4c6   :  { %9770 = vmatmul.mubr.bf16.vlgmr.msra.gmra.mrb[96].mxu0 %v3539_v61  ;;  %10426 = vmatmul.mubr.bf16.vlgmr.msra.gmra.mrb[80].mxu1 %v3539_v61  ;;  %v14092_v61 = vld [vmem:[%s21346_s7 + $0x304] ss:$16 sps:$4 sm:$0xff]  }
 0x4c7   :  { %9779 = vmatpush1.bf16.msra.mxu0 %v14042_v21  ;;  %10435 = vmatpush1.bf16.msra.mxu1 %v14045_v25  ;;  %v14090_v21 = vld [vmem:[%s21346_s7 + $0x300] ss:$16 sps:$4 sm:$0xff]   ;;  %v14093_v25 = vld [vmem:[%s21346_s7 + $0x308] ss:$16 sps:$4 sm:$0xff]  }
 0x4c8   :  { %9810 = vmatprep.mubr.bf16.mxu0 %v3542_v14  ;;  %10466 = vmatprep.mubr.bf16.mxu1 %v3542_v14  ;;  %v14099_v14 = vld [vmem:[%s21346_s7 + $0x328] ss:$16 sps:$4 sm:$0xff]  }
 0x4c9   :  { %9780 = vmatprep.subr.bf16.mxu0 %v14050_v32  ;;  %10436 = vmatprep.subr.bf16.mxu1 %v14053_v0  ;;  %v14101_v32 = vld [vmem:[%s21346_s7 + $0x32c] ss:$16 sps:$4 sm:$0xff]   ;;  %v14096_v0 = vld [vmem:[%s21346_s7 + $0x320] ss:$16 sps:$4 sm:$0xff]  }
 0x4cb   :  { %9781 = vmatpush1.bf16.msra.mxu0 %v14048_v41  ;;  %10437 = vmatpush1.bf16.msra.mxu1 %v14051_v44  ;;  %v14104_v41 = vld [vmem:[%s21346_s7 + $0x344] ss:$16 sps:$4 sm:$0xff]   ;;  %v14107_v44 = vld [vmem:[%s21346_s7 + $0x34c] ss:$16 sps:$4 sm:$0xff]  }
 0x4cc   :  { %9782 = vmatprep.subr.bf16.mxu0 %v14056_v50  ;;  %10438 = vmatprep.subr.bf16.mxu1 %v14059_v11  ;;  %v14102_v50 = vld [vmem:[%s21346_s7 + $0x340] ss:$16 sps:$4 sm:$0xff]   ;;  %v14105_v11 = vld [vmem:[%s21346_s7 + $0x348] ss:$16 sps:$4 sm:$0xff]  }
 0x4cf   :  { %9783 = vmatpush1.bf16.msra.mxu0 %v14054_v20  ;;  %10439 = vmatpush1.bf16.msra.mxu1 %v14057_v3  ;;  %v14110_v20 = vld [vmem:[%s21346_s7 + $0x364] ss:$16 sps:$4 sm:$0xff]   ;;  %v14113_v3 = vld [vmem:[%s21346_s7 + $0x36c] ss:$16 sps:$4 sm:$0xff]  }
 0x4d0   :  { %9784 = vmatprep.subr.bf16.mxu0 %v14062_v60  ;;  %10440 = vmatprep.subr.bf16.mxu1 %v14065_v28  ;;  %v14108_v60 = vld [vmem:[%s21346_s7 + $0x360] ss:$16 sps:$4 sm:$0xff]   ;;  %v14111_v28 = vld [vmem:[%s21346_s7 + $0x368] ss:$16 sps:$4 sm:$0xff]  }
 0x4d3   :  { %9785 = vmatpush1.bf16.msra.mxu0 %v14060_v57  ;;  %10441 = vmatpush1.bf16.msra.mxu1 %v14063_v34  ;;  %v14116_v57 = vld [vmem:[%s21346_s7 + $0x384] ss:$16 sps:$4 sm:$0xff]   ;;  %v14119_v34 = vld [vmem:[%s21346_s7 + $0x38c] ss:$16 sps:$4 sm:$0xff]  }
 0x4d4   :  { %9786 = vmatprep.subr.bf16.mxu0 %v14068_v33  ;;  %10442 = vmatprep.subr.bf16.mxu1 %v14071_v2  ;;  %v14114_v33 = vld [vmem:[%s21346_s7 + $0x380] ss:$16 sps:$4 sm:$0xff]   ;;  %v14117_v2 = vld [vmem:[%s21346_s7 + $0x388] ss:$16 sps:$4 sm:$0xff]  }
 0x4d7   :  { %9787 = vmatpush1.bf16.msra.mxu0 %v14066_v48  ;;  %10443 = vmatpush1.bf16.msra.mxu1 %v14069_v26  ;;  %v14122_v48 = vld [vmem:[%s21346_s7 + $0x3a4] ss:$16 sps:$4 sm:$0xff]   ;;  %v14125_v26 = vld [vmem:[%s21346_s7 + $0x3ac] ss:$16 sps:$4 sm:$0xff]  }
 0x4d8   :  { %9788 = vmatprep.subr.bf16.mxu0 %v14074_v29  ;;  %10444 = vmatprep.subr.bf16.mxu1 %v14077_v17  ;;  %v14120_v29 = vld [vmem:[%s21346_s7 + $0x3a0] ss:$16 sps:$4 sm:$0xff]   ;;  %v14123_v17 = vld [vmem:[%s21346_s7 + $0x3a8] ss:$16 sps:$4 sm:$0xff]  }
 0x4db   :  { %9789 = vmatpush1.bf16.msra.mxu0 %v14072_v59  ;;  %10445 = vmatpush1.bf16.msra.mxu1 %v14075_v35  ;;  %v14128_v59 = vld [vmem:[%s21346_s7 + $0x3c4] ss:$16 sps:$4 sm:$0xff]   ;;  %v14131_v35 = vld [vmem:[%s21346_s7 + $0x3cc] ss:$16 sps:$4 sm:$0xff]  }
 0x4dc   :  { %9790 = vmatprep.subr.bf16.mxu0 %v14080_v46  ;;  %10446 = vmatprep.subr.bf16.mxu1 %v14083_v23  ;;  %v18308_v46 = vpop.permute.xlu0 %13877  ;;  %v14126_v23 = vld [vmem:[%s21346_s7 + $0x3c0] ss:$16 sps:$4 sm:$0xff]  }
 0x4df   :  { %9791 = vmatpush1.bf16.msra.mxu0 %v14078_v4  ;;  %10447 = vmatpush1.bf16.msra.mxu1 %v14081_v31  ;;  %v14129_v4 = vld [vmem:[%s21346_s7 + $0x3c8] ss:$16 sps:$4 sm:$0xff]   ;;  %v14134_v31 = vld [vmem:[%s21346_s7 + $0x3e4] ss:$16 sps:$4 sm:$0xff]  }
 0x4e0   :  { %9792 = vmatprep.subr.bf16.mxu0 %v14086_v54  ;;  %10448 = vmatprep.subr.bf16.mxu1 %v14089_v45  ;;  %v14137_v54 = vld [vmem:[%s21346_s7 + $0x3ec] ss:$16 sps:$4 sm:$0xff]   ;;  %v13875_v45 = vunpack.i.h.bf16 %v18131_v43 }
 0x4e1   :  { %v14143_v43 = vld [vmem:[%s21346_s7 + $0x40c] ss:$16 sps:$4 sm:$0xff]  }
 0x4e3   :  { %9793 = vmatpush1.bf16.msra.mxu0 %v14084_v37  ;;  %10449 = vmatpush1.bf16.msra.mxu1 %v14087_v39  ;;  %v13879_v37 = vunpack.i.l.bf16 %v18308_v46  ;;  %v14132_v39 = vld [vmem:[%s21346_s7 + $0x3e0] ss:$16 sps:$4 sm:$0xff]  }
 0x4e4   :  { %9794 = vmatprep.subr.bf16.mxu0 %v14092_v61  ;;  %10450 = vmatprep.subr.bf16.mxu1 %v14095_v58  ;;  %v14135_v61 = vld [vmem:[%s21346_s7 + $0x3e8] ss:$16 sps:$4 sm:$0xff]   ;;  %v14140_v58 = vld [vmem:[%s21346_s7 + $0x404] ss:$16 sps:$4 sm:$0xff]  }
 0x4e7   :  { %9795 = vmatpush1.bf16.msra.mxu0 %v14090_v21  ;;  %10451 = vmatpush1.bf16.msra.mxu1 %v14093_v25  ;;  %v3269_v21 = vsel %vm1530_vm2, %v17815_v51, %v13875_v45  ;;  %v3272_v25 = vsel %vm1530_vm2, %v18066_v30, %v13879_v37  ;;  %v14146_v51 = vld [vmem:[%s21346_s7 + $0x424] ss:$16 sps:$4 sm:$0xff]   ;;  %v14149_v30 = vld [vmem:[%s21346_s7 + $0x42c] ss:$16 sps:$4 sm:$0xff]  }
 0x4e8   :  { %9796 = vmatprep.subr.bf16.mxu0 %v14098_v1  ;;  %10452 = vmatprep.subr.bf16.mxu1 %v14101_v32  ;;  %v14138_v1 = vld [vmem:[%s21346_s7 + $0x400] ss:$16 sps:$4 sm:$0xff]   ;;  %v3541_v32 = vpack.c.bf16 %v3269_v21, %v3269_v21  ;;  %v14182_v45 = vld [vmem:[%s21346_s7 + $0x4e4] ss:$16 sps:$4 sm:$0xff]   ;;  %v14185_v37 = vld [vmem:[%s21346_s7 + $0x4ec] ss:$16 sps:$4 sm:$0xff]  }
 0x4e9   :  { %v14186_v21 = vld [vmem:[%s21346_s7 + $0x500] ss:$16 sps:$4 sm:$0xff]  }
 0x4eb   :  { %9797 = vmatpush1.bf16.msra.mxu0 %v14096_v0  ;;  %10453 = vmatpush1.bf16.msra.mxu1 %v14099_v14  ;;  %v14141_v0 = vld [vmem:[%s21346_s7 + $0x408] ss:$16 sps:$4 sm:$0xff]   ;;  %v3544_v14 = vpack.c.bf16 %v3272_v25, %v3272_v25 }
 0x4ec   :  { %9798 = vmatprep.subr.bf16.mxu0 %v14104_v41  ;;  %10454 = vmatprep.subr.bf16.mxu1 %v14107_v44  ;;  %v14144_v41 = vld [vmem:[%s21346_s7 + $0x420] ss:$16 sps:$4 sm:$0xff]   ;;  %v14147_v44 = vld [vmem:[%s21346_s7 + $0x428] ss:$16 sps:$4 sm:$0xff]  }
 0x4ed   :  { %v14189_v25 = vld [vmem:[%s21346_s7 + $0x508] ss:$16 sps:$4 sm:$0xff]  }
 0x4ef   :  { %9799 = vmatpush1.bf16.msra.mxu0 %v14102_v50  ;;  %10455 = vmatpush1.bf16.msra.mxu1 %v14105_v11  ;;  %v14152_v50 = vld [vmem:[%s21346_s7 + $0x444] ss:$16 sps:$4 sm:$0xff]   ;;  %v14155_v11 = vld [vmem:[%s21346_s7 + $0x44c] ss:$16 sps:$4 sm:$0xff]  }
 0x4f0   :  { %9800 = vmatprep.subr.bf16.mxu0 %v14110_v20  ;;  %10456 = vmatprep.subr.bf16.mxu1 %v14113_v3  ;;  %v14150_v20 = vld [vmem:[%s21346_s7 + $0x440] ss:$16 sps:$4 sm:$0xff]   ;;  %v14153_v3 = vld [vmem:[%s21346_s7 + $0x448] ss:$16 sps:$4 sm:$0xff]  }
 0x4f3   :  { %9801 = vmatpush1.bf16.msra.mxu0 %v14108_v60  ;;  %10457 = vmatpush1.bf16.msra.mxu1 %v14111_v28  ;;  %v14158_v60 = vld [vmem:[%s21346_s7 + $0x464] ss:$16 sps:$4 sm:$0xff]   ;;  %v14161_v28 = vld [vmem:[%s21346_s7 + $0x46c] ss:$16 sps:$4 sm:$0xff]  }
 0x4f4   :  { %9802 = vmatprep.subr.bf16.mxu0 %v14116_v57  ;;  %10458 = vmatprep.subr.bf16.mxu1 %v14119_v34  ;;  %v14156_v57 = vld [vmem:[%s21346_s7 + $0x460] ss:$16 sps:$4 sm:$0xff]   ;;  %v14159_v34 = vld [vmem:[%s21346_s7 + $0x468] ss:$16 sps:$4 sm:$0xff]  }
 0x4f7   :  { %9803 = vmatpush1.bf16.msra.mxu0 %v14114_v33  ;;  %10459 = vmatpush1.bf16.msra.mxu1 %v14117_v2  ;;  %v14164_v33 = vld [vmem:[%s21346_s7 + $0x484] ss:$16 sps:$4 sm:$0xff]   ;;  %v14167_v2 = vld [vmem:[%s21346_s7 + $0x48c] ss:$16 sps:$4 sm:$0xff]  }
 0x4f8   :  { %9804 = vmatprep.subr.bf16.mxu0 %v14122_v48  ;;  %10460 = vmatprep.subr.bf16.mxu1 %v14125_v26  ;;  %v14162_v48 = vld [vmem:[%s21346_s7 + $0x480] ss:$16 sps:$4 sm:$0xff]   ;;  %v14165_v26 = vld [vmem:[%s21346_s7 + $0x488] ss:$16 sps:$4 sm:$0xff]  }
 0x4fb   :  { %9805 = vmatpush1.bf16.msra.mxu0 %v14120_v29  ;;  %10461 = vmatpush1.bf16.msra.mxu1 %v14123_v17  ;;  %v14170_v29 = vld [vmem:[%s21346_s7 + $0x4a4] ss:$16 sps:$4 sm:$0xff]   ;;  %v14173_v17 = vld [vmem:[%s21346_s7 + $0x4ac] ss:$16 sps:$4 sm:$0xff]  }
 0x4fc   :  { %9806 = vmatprep.subr.bf16.mxu0 %v14128_v59  ;;  %10462 = vmatprep.subr.bf16.mxu1 %v14131_v35  ;;  %v14168_v59 = vld [vmem:[%s21346_s7 + $0x4a0] ss:$16 sps:$4 sm:$0xff]   ;;  %v14171_v35 = vld [vmem:[%s21346_s7 + $0x4a8] ss:$16 sps:$4 sm:$0xff]  }
 0x4ff   :  { %9807 = vmatpush1.bf16.msra.mxu0 %v14126_v23  ;;  %10463 = vmatpush1.bf16.msra.mxu1 %v14129_v4  ;;  %v14176_v23 = vld [vmem:[%s21346_s7 + $0x4c4] ss:$16 sps:$4 sm:$0xff]   ;;  %v14179_v4 = vld [vmem:[%s21346_s7 + $0x4cc] ss:$16 sps:$4 sm:$0xff]  }
 0x500   :  { %9808 = vmatprep.subr.bf16.mxu0 %v14134_v31  ;;  %10464 = vmatprep.subr.bf16.mxu1 %v14137_v54  ;;  %v14174_v31 = vld [vmem:[%s21346_s7 + $0x4c0] ss:$16 sps:$4 sm:$0xff]   ;;  %v14177_v54 = vld [vmem:[%s21346_s7 + $0x4c8] ss:$16 sps:$4 sm:$0xff]  }
 0x503   :  { %9809 = vmatpush1.bf16.msra.mxu0 %v14132_v39  ;;  %10465 = vmatpush1.bf16.msra.mxu1 %v14135_v61  ;;  %v14180_v39 = vld [vmem:[%s21346_s7 + $0x4e0] ss:$16 sps:$4 sm:$0xff]   ;;  %v14183_v61 = vld [vmem:[%s21346_s7 + $0x4e8] ss:$16 sps:$4 sm:$0xff]  }
 0x504   :  { %9819 = vmatprep.subr.bf16.mxu0 %v14140_v58  ;;  %10475 = vmatprep.subr.bf16.mxu1 %v14143_v43  ;;  %v14188_v58 = vld [vmem:[%s21346_s7 + $0x504] ss:$16 sps:$4 sm:$0xff]   ;;  %v14191_v43 = vld [vmem:[%s21346_s7 + $0x50c] ss:$16 sps:$4 sm:$0xff]  }
 0x506   :  { %9811 = vmatmul.mubr.bf16.vlgmr.msra.gmra.mrb[96].mxu0 %v3541_v32  ;;  %10467 = vmatmul.mubr.bf16.vlgmr.msra.gmra.mrb[80].mxu1 %v3541_v32  ;;  %v14197_v32 = vld [vmem:[%s21346_s7 + $0x52c] ss:$16 sps:$4 sm:$0xff]  }
 0x507   :  { %9820 = vmatpush1.bf16.msra.mxu0 %v14138_v1  ;;  %9851 = vmatprep.mubr.bf16.mxu0 %v3544_v14  ;;  %v14194_v1 = vld [vmem:[%s21346_s7 + $0x524] ss:$16 sps:$4 sm:$0xff]  }
 0x508   :  { %10476 = vmatpush1.bf16.msra.mxu1 %v14141_v0  ;;  %10507 = vmatprep.mubr.bf16.mxu1 %v3544_v14  ;;  %v14192_v0 = vld [vmem:[%s21346_s7 + $0x520] ss:$16 sps:$4 sm:$0xff]   ;;  %v14195_v14 = vld [vmem:[%s21346_s7 + $0x528] ss:$16 sps:$4 sm:$0xff]  }
 0x509   :  { %9821 = vmatprep.subr.bf16.mxu0 %v14146_v51  ;;  %10477 = vmatprep.subr.bf16.mxu1 %v14149_v30  ;;  %v14200_v51 = vld [vmem:[%s21346_s7 + $0x544] ss:$16 sps:$4 sm:$0xff]   ;;  %v14203_v30 = vld [vmem:[%s21346_s7 + $0x54c] ss:$16 sps:$4 sm:$0xff]  }
 0x50b   :  { %9822 = vmatpush1.bf16.msra.mxu0 %v14144_v41  ;;  %v14198_v41 = vld [vmem:[%s21346_s7 + $0x540] ss:$16 sps:$4 sm:$0xff]  }
 0x50c   :  { %10478 = vmatpush1.bf16.msra.mxu1 %v14147_v44  ;;  %9823 = vmatprep.subr.bf16.mxu0 %v14152_v50  ;;  %v14201_v44 = vld [vmem:[%s21346_s7 + $0x548] ss:$16 sps:$4 sm:$0xff]   ;;  %v14206_v50 = vld [vmem:[%s21346_s7 + $0x564] ss:$16 sps:$4 sm:$0xff]  }
 0x50d   :  { %10479 = vmatprep.subr.bf16.mxu1 %v14155_v11  ;;  %v14209_v11 = vld [vmem:[%s21346_s7 + $0x56c] ss:$16 sps:$4 sm:$0xff]  }
 0x50f   :  { %9824 = vmatpush1.bf16.msra.mxu0 %v14150_v20  ;;  %v14204_v20 = vld [vmem:[%s21346_s7 + $0x560] ss:$16 sps:$4 sm:$0xff]  }
 0x510   :  { %10480 = vmatpush1.bf16.msra.mxu1 %v14153_v3  ;;  %9825 = vmatprep.subr.bf16.mxu0 %v14158_v60  ;;  %v14207_v3 = vld [vmem:[%s21346_s7 + $0x568] ss:$16 sps:$4 sm:$0xff]   ;;  %v14212_v60 = vld [vmem:[%s21346_s7 + $0x584] ss:$16 sps:$4 sm:$0xff]  }
 0x511   :  { %10481 = vmatprep.subr.bf16.mxu1 %v14161_v28  ;;  %v14215_v28 = vld [vmem:[%s21346_s7 + $0x58c] ss:$16 sps:$4 sm:$0xff]  }
 0x513   :  { %9826 = vmatpush1.bf16.msra.mxu0 %v14156_v57  ;;  %v14210_v57 = vld [vmem:[%s21346_s7 + $0x580] ss:$16 sps:$4 sm:$0xff]  }
 0x514   :  { %10482 = vmatpush1.bf16.msra.mxu1 %v14159_v34  ;;  %9827 = vmatprep.subr.bf16.mxu0 %v14164_v33  ;;  %v14213_v34 = vld [vmem:[%s21346_s7 + $0x588] ss:$16 sps:$4 sm:$0xff]   ;;  %v14218_v33 = vld [vmem:[%s21346_s7 + $0x5a4] ss:$16 sps:$4 sm:$0xff]  }
 0x515   :  { %10483 = vmatprep.subr.bf16.mxu1 %v14167_v2  ;;  %v14221_v2 = vld [vmem:[%s21346_s7 + $0x5ac] ss:$16 sps:$4 sm:$0xff]  }
 0x517   :  { %9828 = vmatpush1.bf16.msra.mxu0 %v14162_v48  ;;  %v14216_v48 = vld [vmem:[%s21346_s7 + $0x5a0] ss:$16 sps:$4 sm:$0xff]  }
 0x518   :  { %10484 = vmatpush1.bf16.msra.mxu1 %v14165_v26  ;;  %9829 = vmatprep.subr.bf16.mxu0 %v14170_v29  ;;  %v14219_v26 = vld [vmem:[%s21346_s7 + $0x5a8] ss:$16 sps:$4 sm:$0xff]   ;;  %v14224_v29 = vld [vmem:[%s21346_s7 + $0x5c4] ss:$16 sps:$4 sm:$0xff]  }
 0x519   :  { %10485 = vmatprep.subr.bf16.mxu1 %v14173_v17  ;;  %v14227_v17 = vld [vmem:[%s21346_s7 + $0x5cc] ss:$16 sps:$4 sm:$0xff]  }
 0x51b   :  { %9830 = vmatpush1.bf16.msra.mxu0 %v14168_v59  ;;  %v14222_v59 = vld [vmem:[%s21346_s7 + $0x5c0] ss:$16 sps:$4 sm:$0xff]  }
 0x51c   :  { %10486 = vmatpush1.bf16.msra.mxu1 %v14171_v35  ;;  %9831 = vmatprep.subr.bf16.mxu0 %v14176_v23  ;;  %v18511_v35 = vpop.permute.xlu1 %13882  ;;  %v14225_v23 = vld [vmem:[%s21346_s7 + $0x5c8] ss:$16 sps:$4 sm:$0xff]  }
 0x51d   :  { %10487 = vmatprep.subr.bf16.mxu1 %v14179_v4  ;;  %v14230_v4 = vld [vmem:[%s21346_s7 + $0x5e4] ss:$16 sps:$4 sm:$0xff]  }
 0x51f   :  { %9832 = vmatpush1.bf16.msra.mxu0 %v14174_v31  ;;  %v13880_v31 = vunpack.i.h.bf16 %v18308_v46  ;;  %v14236_v46 = vld [vmem:[%s21346_s7 + $0x604] ss:$16 sps:$4 sm:$0xff]  }
 0x520   :  { %10488 = vmatpush1.bf16.msra.mxu1 %v14177_v54  ;;  %9833 = vmatprep.subr.bf16.mxu0 %v14182_v45  ;;  %v14233_v54 = vld [vmem:[%s21346_s7 + $0x5ec] ss:$16 sps:$4 sm:$0xff]   ;;  %v13884_v45 = vunpack.i.l.bf16 %v18511_v35 }
 0x521   :  { %10489 = vmatprep.subr.bf16.mxu1 %v14185_v37  ;;  %v14228_v37 = vld [vmem:[%s21346_s7 + $0x5e0] ss:$16 sps:$4 sm:$0xff]  }
 0x523   :  { %9834 = vmatpush1.bf16.msra.mxu0 %v14180_v39  ;;  %v14231_v39 = vld [vmem:[%s21346_s7 + $0x5e8] ss:$16 sps:$4 sm:$0xff]  }
 0x524   :  { %10490 = vmatpush1.bf16.msra.mxu1 %v14183_v61  ;;  %9835 = vmatprep.subr.bf16.mxu0 %v14188_v58  ;;  %v3271_v61 = vsel %vm1530_vm2, %v17868_v16, %v13880_v31  ;;  %v14239_v58 = vld [vmem:[%s21346_s7 + $0x60c] ss:$16 sps:$4 sm:$0xff]   ;;  %v14237_v16 = vld [vmem:[%s21346_s7 + $0x608] ss:$16 sps:$4 sm:$0xff]  }
 0x525   :  { %10491 = vmatprep.subr.bf16.mxu1 %v14191_v43  ;;  %v14234_v43 = vld [vmem:[%s21346_s7 + $0x600] ss:$16 sps:$4 sm:$0xff]   ;;  %v14281_v31 = vld [vmem:[%s21346_s7 + $0x6ec] ss:$16 sps:$4 sm:$0xff]  }
 0x527   :  { %9836 = vmatpush1.bf16.msra.mxu0 %v14186_v21  ;;  %v3274_v21 = vsel %vm1530_vm2, %v18071_v22, %v13884_v45  ;;  %v14240_v22 = vld [vmem:[%s21346_s7 + $0x620] ss:$16 sps:$4 sm:$0xff]   ;;  %v14279_v45 = vld [vmem:[%s21346_s7 + $0x6e8] ss:$16 sps:$4 sm:$0xff]  }
 0x528   :  { %10492 = vmatpush1.bf16.msra.mxu1 %v14189_v25  ;;  %9837 = vmatprep.subr.bf16.mxu0 %v14194_v1  ;;  %v3543_v25 = vpack.c.bf16 %v3271_v61, %v3271_v61  ;;  %v14242_v1 = vld [vmem:[%s21346_s7 + $0x624] ss:$16 sps:$4 sm:$0xff]   ;;  %v14285_v61 = vld [vmem:[%s21346_s7 + $0x708] ss:$16 sps:$4 sm:$0xff]  }
 0x529   :  { %10493 = vmatprep.subr.bf16.mxu1 %v14197_v32  ;;  %v3546_v32 = vpack.c.bf16 %v3274_v21, %v3274_v21  ;;  %v14288_v21 = vld [vmem:[%s21346_s7 + $0x720] ss:$16 sps:$4 sm:$0xff]  }
 0x52b   :  { %9838 = vmatpush1.bf16.msra.mxu0 %v14192_v0  ;;  %v14245_v0 = vld [vmem:[%s21346_s7 + $0x62c] ss:$16 sps:$4 sm:$0xff]  }
 0x52c   :  { %10494 = vmatpush1.bf16.msra.mxu1 %v14195_v14  ;;  %9839 = vmatprep.subr.bf16.mxu0 %v14200_v51  ;;  %v14243_v14 = vld [vmem:[%s21346_s7 + $0x628] ss:$16 sps:$4 sm:$0xff]   ;;  %v14248_v51 = vld [vmem:[%s21346_s7 + $0x644] ss:$16 sps:$4 sm:$0xff]  }
 0x52d   :  { %10495 = vmatprep.subr.bf16.mxu1 %v14203_v30  ;;  %v14251_v30 = vld [vmem:[%s21346_s7 + $0x64c] ss:$16 sps:$4 sm:$0xff]  }
 0x52f   :  { %9840 = vmatpush1.bf16.msra.mxu0 %v14198_v41  ;;  %v14246_v41 = vld [vmem:[%s21346_s7 + $0x640] ss:$16 sps:$4 sm:$0xff]  }
 0x530   :  { %10496 = vmatpush1.bf16.msra.mxu1 %v14201_v44  ;;  %9841 = vmatprep.subr.bf16.mxu0 %v14206_v50  ;;  %v14249_v44 = vld [vmem:[%s21346_s7 + $0x648] ss:$16 sps:$4 sm:$0xff]   ;;  %v14254_v50 = vld [vmem:[%s21346_s7 + $0x664] ss:$16 sps:$4 sm:$0xff]  }
 0x531   :  { %10497 = vmatprep.subr.bf16.mxu1 %v14209_v11  ;;  %v14257_v11 = vld [vmem:[%s21346_s7 + $0x66c] ss:$16 sps:$4 sm:$0xff]  }
 0x533   :  { %9842 = vmatpush1.bf16.msra.mxu0 %v14204_v20  ;;  %v14252_v20 = vld [vmem:[%s21346_s7 + $0x660] ss:$16 sps:$4 sm:$0xff]  }
 0x534   :  { %10498 = vmatpush1.bf16.msra.mxu1 %v14207_v3  ;;  %9843 = vmatprep.subr.bf16.mxu0 %v14212_v60  ;;  %v14255_v3 = vld [vmem:[%s21346_s7 + $0x668] ss:$16 sps:$4 sm:$0xff]   ;;  %v14260_v60 = vld [vmem:[%s21346_s7 + $0x684] ss:$16 sps:$4 sm:$0xff]  }
 0x535   :  { %10499 = vmatprep.subr.bf16.mxu1 %v14215_v28  ;;  %v14263_v28 = vld [vmem:[%s21346_s7 + $0x68c] ss:$16 sps:$4 sm:$0xff]  }
 0x537   :  { %9844 = vmatpush1.bf16.msra.mxu0 %v14210_v57  ;;  %v14258_v57 = vld [vmem:[%s21346_s7 + $0x680] ss:$16 sps:$4 sm:$0xff]  }
 0x538   :  { %10500 = vmatpush1.bf16.msra.mxu1 %v14213_v34  ;;  %9845 = vmatprep.subr.bf16.mxu0 %v14218_v33  ;;  %v14261_v34 = vld [vmem:[%s21346_s7 + $0x688] ss:$16 sps:$4 sm:$0xff]   ;;  %v14266_v33 = vld [vmem:[%s21346_s7 + $0x6a4] ss:$16 sps:$4 sm:$0xff]  }
 0x539   :  { %10501 = vmatprep.subr.bf16.mxu1 %v14221_v2  ;;  %v14269_v2 = vld [vmem:[%s21346_s7 + $0x6ac] ss:$16 sps:$4 sm:$0xff]  }
 0x53b   :  { %9846 = vmatpush1.bf16.msra.mxu0 %v14216_v48  ;;  %v14264_v48 = vld [vmem:[%s21346_s7 + $0x6a0] ss:$16 sps:$4 sm:$0xff]  }
 0x53c   :  { %10502 = vmatpush1.bf16.msra.mxu1 %v14219_v26  ;;  %9847 = vmatprep.subr.bf16.mxu0 %v14224_v29  ;;  %v14267_v26 = vld [vmem:[%s21346_s7 + $0x6a8] ss:$16 sps:$4 sm:$0xff]   ;;  %v14272_v29 = vld [vmem:[%s21346_s7 + $0x6c4] ss:$16 sps:$4 sm:$0xff]  }
 0x53d   :  { %10503 = vmatprep.subr.bf16.mxu1 %v14227_v17  ;;  %v14275_v17 = vld [vmem:[%s21346_s7 + $0x6cc] ss:$16 sps:$4 sm:$0xff]  }
 0x53f   :  { %9848 = vmatpush1.bf16.msra.mxu0 %v14222_v59  ;;  %v14270_v59 = vld [vmem:[%s21346_s7 + $0x6c0] ss:$16 sps:$4 sm:$0xff]  }
 0x540   :  { %10504 = vmatpush1.bf16.msra.mxu1 %v14225_v23  ;;  %9849 = vmatprep.subr.bf16.mxu0 %v14230_v4  ;;  %v14273_v23 = vld [vmem:[%s21346_s7 + $0x6c8] ss:$16 sps:$4 sm:$0xff]   ;;  %v14278_v4 = vld [vmem:[%s21346_s7 + $0x6e4] ss:$16 sps:$4 sm:$0xff]  }
 0x541   :  { %10505 = vmatprep.subr.bf16.mxu1 %v14233_v54  ;;  %v14276_v54 = vld [vmem:[%s21346_s7 + $0x6e0] ss:$16 sps:$4 sm:$0xff]  }
 0x543   :  { %9850 = vmatpush1.bf16.msra.mxu0 %v14228_v37  ;;  %v14284_v37 = vld [vmem:[%s21346_s7 + $0x704] ss:$16 sps:$4 sm:$0xff]  }
 0x544   :  { %10506 = vmatpush1.bf16.msra.mxu1 %v14231_v39  ;;  %9860 = vmatprep.subr.bf16.mxu0 %v14236_v46  ;;  %v14287_v39 = vld [vmem:[%s21346_s7 + $0x70c] ss:$16 sps:$4 sm:$0xff]   ;;  %v14282_v46 = vld [vmem:[%s21346_s7 + $0x700] ss:$16 sps:$4 sm:$0xff]  }
 0x545   :  { %10516 = vmatprep.subr.bf16.mxu1 %v14239_v58  ;;  %v14290_v58 = vld [vmem:[%s21346_s7 + $0x724] ss:$16 sps:$4 sm:$0xff]  }
 0x546   :  { %9852 = vmatmul.mubr.bf16.vlgmr.msra.gmra.mrb[96].mxu0 %v3543_v25 }
 0x547   :  { %10508 = vmatmul.mubr.bf16.vlgmr.msra.gmra.mrb[80].mxu1 %v3543_v25  ;;  %9861 = vmatpush1.bf16.msra.mxu0 %v14234_v43  ;;  %v14293_v43 = vld [vmem:[%s21346_s7 + $0x72c] ss:$16 sps:$4 sm:$0xff]   ;;  %v14291_v25 = vld [vmem:[%s21346_s7 + $0x728] ss:$16 sps:$4 sm:$0xff]  }
 0x548   :  { %9892 = vmatprep.mubr.bf16.mxu0 %v3546_v32  ;;  %10517 = vmatpush1.bf16.msra.mxu1 %v14237_v16  ;;  %v14296_v16 = vld [vmem:[%s21346_s7 + $0x744] ss:$16 sps:$4 sm:$0xff]  }
 0x549   :  { %10548 = vmatprep.mubr.bf16.mxu1 %v3546_v32  ;;  %9862 = vmatprep.subr.bf16.mxu0 %v14242_v1  ;;  %v14299_v1 = vld [vmem:[%s21346_s7 + $0x74c] ss:$16 sps:$4 sm:$0xff]   ;;  %v14294_v32 = vld [vmem:[%s21346_s7 + $0x740] ss:$16 sps:$4 sm:$0xff]  }
 0x54a   :  { %10518 = vmatprep.subr.bf16.mxu1 %v14245_v0  ;;  %v14297_v0 = vld [vmem:[%s21346_s7 + $0x748] ss:$16 sps:$4 sm:$0xff]  }
 0x54b   :  { %9863 = vmatpush1.bf16.msra.mxu0 %v14240_v22  ;;  %v14302_v22 = vld [vmem:[%s21346_s7 + $0x764] ss:$16 sps:$4 sm:$0xff]  }
 0x54c   :  { %10519 = vmatpush1.bf16.msra.mxu1 %v14243_v14  ;;  %9864 = vmatprep.subr.bf16.mxu0 %v14248_v51  ;;  %v14305_v14 = vld [vmem:[%s21346_s7 + $0x76c] ss:$16 sps:$4 sm:$0xff]   ;;  %v14300_v51 = vld [vmem:[%s21346_s7 + $0x760] ss:$16 sps:$4 sm:$0xff]  }
 0x54d   :  { %10520 = vmatprep.subr.bf16.mxu1 %v14251_v30  ;;  %v14303_v30 = vld [vmem:[%s21346_s7 + $0x768] ss:$16 sps:$4 sm:$0xff]  }
 0x54f   :  { %9865 = vmatpush1.bf16.msra.mxu0 %v14246_v41  ;;  %v14308_v41 = vld [vmem:[%s21346_s7 + $0x784] ss:$16 sps:$4 sm:$0xff]  }
 0x550   :  { %10521 = vmatpush1.bf16.msra.mxu1 %v14249_v44  ;;  %9866 = vmatprep.subr.bf16.mxu0 %v14254_v50  ;;  %v14311_v44 = vld [vmem:[%s21346_s7 + $0x78c] ss:$16 sps:$4 sm:$0xff]   ;;  %v14306_v50 = vld [vmem:[%s21346_s7 + $0x780] ss:$16 sps:$4 sm:$0xff]  }
 0x551   :  { %10522 = vmatprep.subr.bf16.mxu1 %v14257_v11  ;;  %v14309_v11 = vld [vmem:[%s21346_s7 + $0x788] ss:$16 sps:$4 sm:$0xff]  }
 0x553   :  { %9867 = vmatpush1.bf16.msra.mxu0 %v14252_v20  ;;  %v14314_v20 = vld [vmem:[%s21346_s7 + $0x7a4] ss:$16 sps:$4 sm:$0xff]  }
 0x554   :  { %10523 = vmatpush1.bf16.msra.mxu1 %v14255_v3  ;;  %9868 = vmatprep.subr.bf16.mxu0 %v14260_v60  ;;  %v14317_v3 = vld [vmem:[%s21346_s7 + $0x7ac] ss:$16 sps:$4 sm:$0xff]   ;;  %v14312_v60 = vld [vmem:[%s21346_s7 + $0x7a0] ss:$16 sps:$4 sm:$0xff]  }
 0x555   :  { %10524 = vmatprep.subr.bf16.mxu1 %v14263_v28  ;;  %v14315_v28 = vld [vmem:[%s21346_s7 + $0x7a8] ss:$16 sps:$4 sm:$0xff]  }
 0x557   :  { %9869 = vmatpush1.bf16.msra.mxu0 %v14258_v57  ;;  %v14320_v57 = vld [vmem:[%s21346_s7 + $0x7c4] ss:$16 sps:$4 sm:$0xff]  }
 0x558   :  { %10525 = vmatpush1.bf16.msra.mxu1 %v14261_v34  ;;  %9870 = vmatprep.subr.bf16.mxu0 %v14266_v33  ;;  %v14323_v34 = vld [vmem:[%s21346_s7 + $0x7cc] ss:$16 sps:$4 sm:$0xff]   ;;  %v14318_v33 = vld [vmem:[%s21346_s7 + $0x7c0] ss:$16 sps:$4 sm:$0xff]  }
 0x559   :  { %10526 = vmatprep.subr.bf16.mxu1 %v14269_v2  ;;  %v18711_v2 = vpop.permute.xlu0 %13887 }
 0x55b   :  { %9871 = vmatpush1.bf16.msra.mxu0 %v14264_v48  ;;  %v14321_v48 = vld [vmem:[%s21346_s7 + $0x7c8] ss:$16 sps:$4 sm:$0xff]  }
 0x55c   :  { %10527 = vmatpush1.bf16.msra.mxu1 %v14267_v26  ;;  %9872 = vmatprep.subr.bf16.mxu0 %v14272_v29  ;;  %v14326_v26 = vld [vmem:[%s21346_s7 + $0x7e4] ss:$16 sps:$4 sm:$0xff]   ;;  %v13885_v29 = vunpack.i.h.bf16 %v18511_v35 }
 0x55d   :  { %10528 = vmatprep.subr.bf16.mxu1 %v14275_v17  ;;  %v14329_v17 = vld [vmem:[%s21346_s7 + $0x7ec] ss:$16 sps:$4 sm:$0xff]   ;;  %v14332_v35 = vld [vmem:[%s21346_s7 + $0x804] ss:$16 sps:$4 sm:$0xff]  }
 0x55f   :  { %9873 = vmatpush1.bf16.msra.mxu0 %v14270_v59  ;;  %v13889_v59 = vunpack.i.l.bf16 %v18711_v2 }
 0x560   :  { %10529 = vmatpush1.bf16.msra.mxu1 %v14273_v23  ;;  %9874 = vmatprep.subr.bf16.mxu0 %v14278_v4  ;;  %v14324_v23 = vld [vmem:[%s21346_s7 + $0x7e0] ss:$16 sps:$4 sm:$0xff]   ;;  %v14327_v4 = vld [vmem:[%s21346_s7 + $0x7e8] ss:$16 sps:$4 sm:$0xff]  }
 0x561   :  { %10530 = vmatprep.subr.bf16.mxu1 %v14281_v31  ;;  %v3273_v31 = vsel %vm1530_vm2, %v17851_v10, %v13885_v29  ;;  %v14333_v10 = vld [vmem:[%s21346_s7 + $0x808] ss:$16 sps:$4 sm:$0xff]  }
 0x562   :  { %v14375_v29 = vld [vmem:[%s21346_s7 + $0x8e8] ss:$16 sps:$4 sm:$0xff]  }
 0x563   :  { %9875 = vmatpush1.bf16.msra.mxu0 %v14276_v54  ;;  %v14335_v54 = vld [vmem:[%s21346_s7 + $0x80c] ss:$16 sps:$4 sm:$0xff]  }
 0x564   :  { %10531 = vmatpush1.bf16.msra.mxu1 %v14279_v45  ;;  %9876 = vmatprep.subr.bf16.mxu0 %v14284_v37  ;;  %v14330_v45 = vld [vmem:[%s21346_s7 + $0x800] ss:$16 sps:$4 sm:$0xff]   ;;  %v3356_v37 = vsel %vm1530_vm2, %v18076_v52, %v13889_v59  ;;  %v14383_v59 = vld [vmem:[%s21346_s7 + $0x90c] ss:$16 sps:$4 sm:$0xff]  }
 0x565   :  { %10532 = vmatprep.subr.bf16.mxu1 %v14287_v39  ;;  %v3545_v39 = vpack.c.bf16 %v3273_v31, %v3273_v31  ;;  %v14336_v52 = vld [vmem:[%s21346_s7 + $0x820] ss:$16 sps:$4 sm:$0xff]   ;;  %v14389_v31 = vld [vmem:[%s21346_s7 + $0x92c] ss:$16 sps:$4 sm:$0xff]  }
 0x567   :  { %9877 = vmatpush1.bf16.msra.mxu0 %v14282_v46  ;;  %v14338_v46 = vld [vmem:[%s21346_s7 + $0x824] ss:$16 sps:$4 sm:$0xff]  }
 0x568   :  { %10533 = vmatpush1.bf16.msra.mxu1 %v14285_v61  ;;  %9878 = vmatprep.subr.bf16.mxu0 %v14290_v58  ;;  %v3548_v61 = vpack.c.bf16 %v3356_v37, %v3356_v37  ;;  %v14341_v58 = vld [vmem:[%s21346_s7 + $0x82c] ss:$16 sps:$4 sm:$0xff]   ;;  %v14392_v37 = vld [vmem:[%s21346_s7 + $0x944] ss:$16 sps:$4 sm:$0xff]  }
 0x569   :  { %10534 = vmatprep.subr.bf16.mxu1 %v14293_v43  ;;  %v14339_v43 = vld [vmem:[%s21346_s7 + $0x828] ss:$16 sps:$4 sm:$0xff]  }
 0x56b   :  { %9879 = vmatpush1.bf16.msra.mxu0 %v14288_v21  ;;  %v14344_v21 = vld [vmem:[%s21346_s7 + $0x844] ss:$16 sps:$4 sm:$0xff]  }
 0x56c   :  { %10535 = vmatpush1.bf16.msra.mxu1 %v14291_v25  ;;  %9880 = vmatprep.subr.bf16.mxu0 %v14296_v16  ;;  %v14347_v25 = vld [vmem:[%s21346_s7 + $0x84c] ss:$16 sps:$4 sm:$0xff]   ;;  %v14342_v16 = vld [vmem:[%s21346_s7 + $0x840] ss:$16 sps:$4 sm:$0xff]  }
 0x56d   :  { %10536 = vmatprep.subr.bf16.mxu1 %v14299_v1  ;;  %v14345_v1 = vld [vmem:[%s21346_s7 + $0x848] ss:$16 sps:$4 sm:$0xff]  }
 0x56f   :  { %9881 = vmatpush1.bf16.msra.mxu0 %v14294_v32  ;;  %v14350_v32 = vld [vmem:[%s21346_s7 + $0x864] ss:$16 sps:$4 sm:$0xff]  }
 0x570   :  { %10537 = vmatpush1.bf16.msra.mxu1 %v14297_v0  ;;  %9882 = vmatprep.subr.bf16.mxu0 %v14302_v22  ;;  %v14353_v0 = vld [vmem:[%s21346_s7 + $0x86c] ss:$16 sps:$4 sm:$0xff]   ;;  %v14348_v22 = vld [vmem:[%s21346_s7 + $0x860] ss:$16 sps:$4 sm:$0xff]  }
 0x571   :  { %10538 = vmatprep.subr.bf16.mxu1 %v14305_v14  ;;  %v14351_v14 = vld [vmem:[%s21346_s7 + $0x868] ss:$16 sps:$4 sm:$0xff]  }
 0x573   :  { %9883 = vmatpush1.bf16.msra.mxu0 %v14300_v51  ;;  %v14356_v51 = vld [vmem:[%s21346_s7 + $0x884] ss:$16 sps:$4 sm:$0xff]  }
 0x574   :  { %10539 = vmatpush1.bf16.msra.mxu1 %v14303_v30  ;;  %9884 = vmatprep.subr.bf16.mxu0 %v14308_v41  ;;  %v14359_v30 = vld [vmem:[%s21346_s7 + $0x88c] ss:$16 sps:$4 sm:$0xff]   ;;  %v14354_v41 = vld [vmem:[%s21346_s7 + $0x880] ss:$16 sps:$4 sm:$0xff]  }
 0x575   :  { %10540 = vmatprep.subr.bf16.mxu1 %v14311_v44  ;;  %v14357_v44 = vld [vmem:[%s21346_s7 + $0x888] ss:$16 sps:$4 sm:$0xff]  }
 0x577   :  { %9885 = vmatpush1.bf16.msra.mxu0 %v14306_v50  ;;  %v14362_v50 = vld [vmem:[%s21346_s7 + $0x8a4] ss:$16 sps:$4 sm:$0xff]  }
 0x578   :  { %10541 = vmatpush1.bf16.msra.mxu1 %v14309_v11  ;;  %9886 = vmatprep.subr.bf16.mxu0 %v14314_v20  ;;  %v14365_v11 = vld [vmem:[%s21346_s7 + $0x8ac] ss:$16 sps:$4 sm:$0xff]   ;;  %v14360_v20 = vld [vmem:[%s21346_s7 + $0x8a0] ss:$16 sps:$4 sm:$0xff]  }
 0x579   :  { %10542 = vmatprep.subr.bf16.mxu1 %v14317_v3  ;;  %v14363_v3 = vld [vmem:[%s21346_s7 + $0x8a8] ss:$16 sps:$4 sm:$0xff]  }
 0x57b   :  { %9887 = vmatpush1.bf16.msra.mxu0 %v14312_v60  ;;  %v14368_v60 = vld [vmem:[%s21346_s7 + $0x8c4] ss:$16 sps:$4 sm:$0xff]  }
 0x57c   :  { %10543 = vmatpush1.bf16.msra.mxu1 %v14315_v28  ;;  %9888 = vmatprep.subr.bf16.mxu0 %v14320_v57  ;;  %v14371_v28 = vld [vmem:[%s21346_s7 + $0x8cc] ss:$16 sps:$4 sm:$0xff]   ;;  %v14366_v57 = vld [vmem:[%s21346_s7 + $0x8c0] ss:$16 sps:$4 sm:$0xff]  }
 0x57d   :  { %10544 = vmatprep.subr.bf16.mxu1 %v14323_v34  ;;  %v14369_v34 = vld [vmem:[%s21346_s7 + $0x8c8] ss:$16 sps:$4 sm:$0xff]  }
 0x57f   :  { %9889 = vmatpush1.bf16.msra.mxu0 %v14318_v33  ;;  %v14374_v33 = vld [vmem:[%s21346_s7 + $0x8e4] ss:$16 sps:$4 sm:$0xff]  }
 0x580   :  { %10545 = vmatpush1.bf16.msra.mxu1 %v14321_v48  ;;  %9890 = vmatprep.subr.bf16.mxu0 %v14326_v26  ;;  %v14377_v48 = vld [vmem:[%s21346_s7 + $0x8ec] ss:$16 sps:$4 sm:$0xff]   ;;  %v14372_v26 = vld [vmem:[%s21346_s7 + $0x8e0] ss:$16 sps:$4 sm:$0xff]  }
 0x581   :  { %10546 = vmatprep.subr.bf16.mxu1 %v14329_v17  ;;  %v14380_v17 = vld [vmem:[%s21346_s7 + $0x904] ss:$16 sps:$4 sm:$0xff]  }
 0x583   :  { %9891 = vmatpush1.bf16.msra.mxu0 %v14324_v23  ;;  %v14378_v23 = vld [vmem:[%s21346_s7 + $0x900] ss:$16 sps:$4 sm:$0xff]  }
 0x584   :  { %10547 = vmatpush1.bf16.msra.mxu1 %v14327_v4  ;;  %9901 = vmatprep.subr.bf16.mxu0 %v14332_v35  ;;  %v14381_v4 = vld [vmem:[%s21346_s7 + $0x908] ss:$16 sps:$4 sm:$0xff]   ;;  %v14386_v35 = vld [vmem:[%s21346_s7 + $0x924] ss:$16 sps:$4 sm:$0xff]  }
 0x585   :  { %10557 = vmatprep.subr.bf16.mxu1 %v14335_v54  ;;  %v14384_v54 = vld [vmem:[%s21346_s7 + $0x920] ss:$16 sps:$4 sm:$0xff]  }
 0x586   :  { %9893 = vmatmul.mubr.bf16.vlgmr.msra.gmra.mrb[96].mxu0 %v3545_v39 }
 0x587   :  { %10549 = vmatmul.mubr.bf16.vlgmr.msra.gmra.mrb[80].mxu1 %v3545_v39  ;;  %9902 = vmatpush1.bf16.msra.mxu0 %v14330_v45  ;;  %v14387_v45 = vld [vmem:[%s21346_s7 + $0x928] ss:$16 sps:$4 sm:$0xff]   ;;  %v14395_v39 = vld [vmem:[%s21346_s7 + $0x94c] ss:$16 sps:$4 sm:$0xff]  }
 0x588   :  { %9933 = vmatprep.mubr.bf16.mxu0 %v3548_v61  ;;  %10558 = vmatpush1.bf16.msra.mxu1 %v14333_v10  ;;  %v14390_v10 = vld [vmem:[%s21346_s7 + $0x940] ss:$16 sps:$4 sm:$0xff]  }
 0x589   :  { %10589 = vmatprep.mubr.bf16.mxu1 %v3548_v61  ;;  %9903 = vmatprep.subr.bf16.mxu0 %v14338_v46  ;;  %v14393_v46 = vld [vmem:[%s21346_s7 + $0x948] ss:$16 sps:$4 sm:$0xff]   ;;  %v14398_v61 = vld [vmem:[%s21346_s7 + $0x964] ss:$16 sps:$4 sm:$0xff]  }
 0x58a   :  { %10559 = vmatprep.subr.bf16.mxu1 %v14341_v58  ;;  %v14401_v58 = vld [vmem:[%s21346_s7 + $0x96c] ss:$16 sps:$4 sm:$0xff]  }
 0x58b   :  { %9904 = vmatpush1.bf16.msra.mxu0 %v14336_v52  ;;  %v14396_v52 = vld [vmem:[%s21346_s7 + $0x960] ss:$16 sps:$4 sm:$0xff]  }
 0x58c   :  { %10560 = vmatpush1.bf16.msra.mxu1 %v14339_v43  ;;  %9905 = vmatprep.subr.bf16.mxu0 %v14344_v21  ;;  %v14399_v43 = vld [vmem:[%s21346_s7 + $0x968] ss:$16 sps:$4 sm:$0xff]   ;;  %v14404_v21 = vld [vmem:[%s21346_s7 + $0x984] ss:$16 sps:$4 sm:$0xff]  }
 0x58d   :  { %10561 = vmatprep.subr.bf16.mxu1 %v14347_v25  ;;  %v14407_v25 = vld [vmem:[%s21346_s7 + $0x98c] ss:$16 sps:$4 sm:$0xff]  }
 0x58f   :  { %9906 = vmatpush1.bf16.msra.mxu0 %v14342_v16  ;;  %v14402_v16 = vld [vmem:[%s21346_s7 + $0x980] ss:$16 sps:$4 sm:$0xff]  }
 0x590   :  { %10562 = vmatpush1.bf16.msra.mxu1 %v14345_v1  ;;  %9907 = vmatprep.subr.bf16.mxu0 %v14350_v32  ;;  %v14405_v1 = vld [vmem:[%s21346_s7 + $0x988] ss:$16 sps:$4 sm:$0xff]   ;;  %v14410_v32 = vld [vmem:[%s21346_s7 + $0x9a4] ss:$16 sps:$4 sm:$0xff]  }
 0x591   :  { %10563 = vmatprep.subr.bf16.mxu1 %v14353_v0  ;;  %v14413_v0 = vld [vmem:[%s21346_s7 + $0x9ac] ss:$16 sps:$4 sm:$0xff]  }
 0x593   :  { %9908 = vmatpush1.bf16.msra.mxu0 %v14348_v22  ;;  %v14408_v22 = vld [vmem:[%s21346_s7 + $0x9a0] ss:$16 sps:$4 sm:$0xff]  }
 0x594   :  { %10564 = vmatpush1.bf16.msra.mxu1 %v14351_v14  ;;  %9909 = vmatprep.subr.bf16.mxu0 %v14356_v51  ;;  %v14411_v14 = vld [vmem:[%s21346_s7 + $0x9a8] ss:$16 sps:$4 sm:$0xff]   ;;  %v14416_v51 = vld [vmem:[%s21346_s7 + $0x9c4] ss:$16 sps:$4 sm:$0xff]  }
 0x595   :  { %10565 = vmatprep.subr.bf16.mxu1 %v14359_v30  ;;  %v14419_v30 = vld [vmem:[%s21346_s7 + $0x9cc] ss:$16 sps:$4 sm:$0xff]  }
 0x597   :  { %9910 = vmatpush1.bf16.msra.mxu0 %v14354_v41  ;;  %v14414_v41 = vld [vmem:[%s21346_s7 + $0x9c0] ss:$16 sps:$4 sm:$0xff]  }
 0x598   :  { %10566 = vmatpush1.bf16.msra.mxu1 %v14357_v44  ;;  %9911 = vmatprep.subr.bf16.mxu0 %v14362_v50  ;;  %v18911_v44 = vpop.permute.xlu1 %13892  ;;  %v14417_v50 = vld [vmem:[%s21346_s7 + $0x9c8] ss:$16 sps:$4 sm:$0xff]  }
 0x599   :  { %10567 = vmatprep.subr.bf16.mxu1 %v14365_v11  ;;  %v14422_v11 = vld [vmem:[%s21346_s7 + $0x9e4] ss:$16 sps:$4 sm:$0xff]  }
 0x59b   :  { %9912 = vmatpush1.bf16.msra.mxu0 %v14360_v20  ;;  %v13890_v20 = vunpack.i.h.bf16 %v18711_v2  ;;  %v14428_v2 = vld [vmem:[%s21346_s7 + $0xa04] ss:$16 sps:$4 sm:$0xff]  }
 0x59c   :  { %10568 = vmatpush1.bf16.msra.mxu1 %v14363_v3  ;;  %9913 = vmatprep.subr.bf16.mxu0 %v14368_v60  ;;  %v14425_v3 = vld [vmem:[%s21346_s7 + $0x9ec] ss:$16 sps:$4 sm:$0xff]   ;;  %v13894_v60 = vunpack.i.l.bf16 %v18911_v44 }
 0x59d   :  { %10569 = vmatprep.subr.bf16.mxu1 %v14371_v28  ;;  %v14420_v28 = vld [vmem:[%s21346_s7 + $0x9e0] ss:$16 sps:$4 sm:$0xff]  }
 0x59f   :  { %9914 = vmatpush1.bf16.msra.mxu0 %v14366_v57  ;;  %v14423_v57 = vld [vmem:[%s21346_s7 + $0x9e8] ss:$16 sps:$4 sm:$0xff]  }
 0x5a0   :  { %10570 = vmatpush1.bf16.msra.mxu1 %v14369_v34  ;;  %9915 = vmatprep.subr.bf16.mxu0 %v14374_v33  ;;  %v3355_v34 = vsel %vm1530_vm2, %v17928_v40, %v13890_v20  ;;  %v14431_v33 = vld [vmem:[%s21346_s7 + $0xa0c] ss:$16 sps:$4 sm:$0xff]   ;;  %v14429_v40 = vld [vmem:[%s21346_s7 + $0xa08] ss:$16 sps:$4 sm:$0xff]  }
 0x5a1   :  { %10571 = vmatprep.subr.bf16.mxu1 %v14377_v48  ;;  %v14426_v48 = vld [vmem:[%s21346_s7 + $0xa00] ss:$16 sps:$4 sm:$0xff]   ;;  %v14479_v20 = vld [vmem:[%s21346_s7 + $0xb0c] ss:$16 sps:$4 sm:$0xff]  }
 0x5a3   :  { %9916 = vmatpush1.bf16.msra.mxu0 %v14372_v26  ;;  %v3358_v26 = vsel %vm1530_vm2, %v18082_v62, %v13894_v60  ;;  %v14432_v62 = vld [vmem:[%s21346_s7 + $0xa20] ss:$16 sps:$4 sm:$0xff]   ;;  %v14477_v60 = vld [vmem:[%s21346_s7 + $0xb08] ss:$16 sps:$4 sm:$0xff]  }
 0x5a4   :  { %10572 = vmatpush1.bf16.msra.mxu1 %v14375_v29  ;;  %9917 = vmatprep.subr.bf16.mxu0 %v14380_v17  ;;  %v3547_v29 = vpack.c.bf16 %v3355_v34, %v3355_v34  ;;  %v14434_v17 = vld [vmem:[%s21346_s7 + $0xa24] ss:$16 sps:$4 sm:$0xff]   ;;  %v14483_v34 = vld [vmem:[%s21346_s7 + $0xb28] ss:$16 sps:$4 sm:$0xff]  }
 0x5a5   :  { %10573 = vmatprep.subr.bf16.mxu1 %v14383_v59  ;;  %v3550_v59 = vpack.c.bf16 %v3358_v26, %v3358_v26  ;;  %v14486_v26 = vld [vmem:[%s21346_s7 + $0xb40] ss:$16 sps:$4 sm:$0xff]  }
 0x5a7   :  { %9918 = vmatpush1.bf16.msra.mxu0 %v14378_v23  ;;  %v14437_v23 = vld [vmem:[%s21346_s7 + $0xa2c] ss:$16 sps:$4 sm:$0xff]  }
 0x5a8   :  { %10574 = vmatpush1.bf16.msra.mxu1 %v14381_v4  ;;  %9919 = vmatprep.subr.bf16.mxu0 %v14386_v35  ;;  %v14435_v4 = vld [vmem:[%s21346_s7 + $0xa28] ss:$16 sps:$4 sm:$0xff]   ;;  %v14440_v35 = vld [vmem:[%s21346_s7 + $0xa44] ss:$16 sps:$4 sm:$0xff]  }
 0x5a9   :  { %10575 = vmatprep.subr.bf16.mxu1 %v14389_v31  ;;  %v14443_v31 = vld [vmem:[%s21346_s7 + $0xa4c] ss:$16 sps:$4 sm:$0xff]  }
 0x5ab   :  { %9920 = vmatpush1.bf16.msra.mxu0 %v14384_v54  ;;  %v14438_v54 = vld [vmem:[%s21346_s7 + $0xa40] ss:$16 sps:$4 sm:$0xff]  }
 0x5ac   :  { %10576 = vmatpush1.bf16.msra.mxu1 %v14387_v45  ;;  %9921 = vmatprep.subr.bf16.mxu0 %v14392_v37  ;;  %v14441_v45 = vld [vmem:[%s21346_s7 + $0xa48] ss:$16 sps:$4 sm:$0xff]   ;;  %v14446_v37 = vld [vmem:[%s21346_s7 + $0xa64] ss:$16 sps:$4 sm:$0xff]  }
 0x5ad   :  { %10577 = vmatprep.subr.bf16.mxu1 %v14395_v39  ;;  %v14449_v39 = vld [vmem:[%s21346_s7 + $0xa6c] ss:$16 sps:$4 sm:$0xff]  }
 0x5af   :  { %9922 = vmatpush1.bf16.msra.mxu0 %v14390_v10  ;;  %v14444_v10 = vld [vmem:[%s21346_s7 + $0xa60] ss:$16 sps:$4 sm:$0xff]  }
 0x5b0   :  { %10578 = vmatpush1.bf16.msra.mxu1 %v14393_v46  ;;  %9923 = vmatprep.subr.bf16.mxu0 %v14398_v61  ;;  %v14447_v46 = vld [vmem:[%s21346_s7 + $0xa68] ss:$16 sps:$4 sm:$0xff]   ;;  %v14452_v61 = vld [vmem:[%s21346_s7 + $0xa84] ss:$16 sps:$4 sm:$0xff]  }
 0x5b1   :  { %10579 = vmatprep.subr.bf16.mxu1 %v14401_v58  ;;  %v14455_v58 = vld [vmem:[%s21346_s7 + $0xa8c] ss:$16 sps:$4 sm:$0xff]  }
 0x5b3   :  { %9924 = vmatpush1.bf16.msra.mxu0 %v14396_v52  ;;  %v14450_v52 = vld [vmem:[%s21346_s7 + $0xa80] ss:$16 sps:$4 sm:$0xff]  }
 0x5b4   :  { %10580 = vmatpush1.bf16.msra.mxu1 %v14399_v43  ;;  %9925 = vmatprep.subr.bf16.mxu0 %v14404_v21  ;;  %v14453_v43 = vld [vmem:[%s21346_s7 + $0xa88] ss:$16 sps:$4 sm:$0xff]   ;;  %v14458_v21 = vld [vmem:[%s21346_s7 + $0xaa4] ss:$16 sps:$4 sm:$0xff]  }
 0x5b5   :  { %10581 = vmatprep.subr.bf16.mxu1 %v14407_v25  ;;  %v14461_v25 = vld [vmem:[%s21346_s7 + $0xaac] ss:$16 sps:$4 sm:$0xff]  }
 0x5b7   :  { %9926 = vmatpush1.bf16.msra.mxu0 %v14402_v16  ;;  %v14456_v16 = vld [vmem:[%s21346_s7 + $0xaa0] ss:$16 sps:$4 sm:$0xff]  }
 0x5b8   :  { %10582 = vmatpush1.bf16.msra.mxu1 %v14405_v1  ;;  %9927 = vmatprep.subr.bf16.mxu0 %v14410_v32  ;;  %v14459_v1 = vld [vmem:[%s21346_s7 + $0xaa8] ss:$16 sps:$4 sm:$0xff]   ;;  %v14464_v32 = vld [vmem:[%s21346_s7 + $0xac4] ss:$16 sps:$4 sm:$0xff]  }
 0x5b9   :  { %10583 = vmatprep.subr.bf16.mxu1 %v14413_v0  ;;  %v14467_v0 = vld [vmem:[%s21346_s7 + $0xacc] ss:$16 sps:$4 sm:$0xff]  }
 0x5bb   :  { %9928 = vmatpush1.bf16.msra.mxu0 %v14408_v22  ;;  %v14462_v22 = vld [vmem:[%s21346_s7 + $0xac0] ss:$16 sps:$4 sm:$0xff]  }
 0x5bc   :  { %10584 = vmatpush1.bf16.msra.mxu1 %v14411_v14  ;;  %9929 = vmatprep.subr.bf16.mxu0 %v14416_v51  ;;  %v14465_v14 = vld [vmem:[%s21346_s7 + $0xac8] ss:$16 sps:$4 sm:$0xff]   ;;  %v14470_v51 = vld [vmem:[%s21346_s7 + $0xae4] ss:$16 sps:$4 sm:$0xff]  }
 0x5bd   :  { %10585 = vmatprep.subr.bf16.mxu1 %v14419_v30  ;;  %v14473_v30 = vld [vmem:[%s21346_s7 + $0xaec] ss:$16 sps:$4 sm:$0xff]  }
 0x5bf   :  { %9930 = vmatpush1.bf16.msra.mxu0 %v14414_v41  ;;  %v14468_v41 = vld [vmem:[%s21346_s7 + $0xae0] ss:$16 sps:$4 sm:$0xff]  }
 0x5c0   :  { %10586 = vmatpush1.bf16.msra.mxu1 %v14417_v50  ;;  %9931 = vmatprep.subr.bf16.mxu0 %v14422_v11  ;;  %v14471_v50 = vld [vmem:[%s21346_s7 + $0xae8] ss:$16 sps:$4 sm:$0xff]   ;;  %v14476_v11 = vld [vmem:[%s21346_s7 + $0xb04] ss:$16 sps:$4 sm:$0xff]  }
 0x5c1   :  { %10587 = vmatprep.subr.bf16.mxu1 %v14425_v3  ;;  %v14474_v3 = vld [vmem:[%s21346_s7 + $0xb00] ss:$16 sps:$4 sm:$0xff]  }
 0x5c3   :  { %9932 = vmatpush1.bf16.msra.mxu0 %v14420_v28  ;;  %v14482_v28 = vld [vmem:[%s21346_s7 + $0xb24] ss:$16 sps:$4 sm:$0xff]  }
 0x5c4   :  { %10588 = vmatpush1.bf16.msra.mxu1 %v14423_v57  ;;  %9942 = vmatprep.subr.bf16.mxu0 %v14428_v2  ;;  %v14485_v57 = vld [vmem:[%s21346_s7 + $0xb2c] ss:$16 sps:$4 sm:$0xff]   ;;  %v14480_v2 = vld [vmem:[%s21346_s7 + $0xb20] ss:$16 sps:$4 sm:$0xff]  }
 0x5c5   :  { %10598 = vmatprep.subr.bf16.mxu1 %v14431_v33  ;;  %v14488_v33 = vld [vmem:[%s21346_s7 + $0xb44] ss:$16 sps:$4 sm:$0xff]  }
 0x5c6   :  { %9934 = vmatmul.mubr.bf16.vlgmr.msra.gmra.mrb[96].mxu0 %v3547_v29 }
 0x5c7   :  { %10590 = vmatmul.mubr.bf16.vlgmr.msra.gmra.mrb[80].mxu1 %v3547_v29  ;;  %9943 = vmatpush1.bf16.msra.mxu0 %v14426_v48  ;;  %v14491_v48 = vld [vmem:[%s21346_s7 + $0xb4c] ss:$16 sps:$4 sm:$0xff]   ;;  %v14489_v29 = vld [vmem:[%s21346_s7 + $0xb48] ss:$16 sps:$4 sm:$0xff]  }
 0x5c8   :  { %9974 = vmatprep.mubr.bf16.mxu0 %v3550_v59  ;;  %10599 = vmatpush1.bf16.msra.mxu1 %v14429_v40  ;;  %v14494_v40 = vld [vmem:[%s21346_s7 + $0xb64] ss:$16 sps:$4 sm:$0xff]  }
 0x5c9   :  { %10630 = vmatprep.mubr.bf16.mxu1 %v3550_v59  ;;  %9944 = vmatprep.subr.bf16.mxu0 %v14434_v17  ;;  %v14497_v17 = vld [vmem:[%s21346_s7 + $0xb6c] ss:$16 sps:$4 sm:$0xff]   ;;  %v14492_v59 = vld [vmem:[%s21346_s7 + $0xb60] ss:$16 sps:$4 sm:$0xff]  }
 0x5ca   :  { %10600 = vmatprep.subr.bf16.mxu1 %v14437_v23  ;;  %v14495_v23 = vld [vmem:[%s21346_s7 + $0xb68] ss:$16 sps:$4 sm:$0xff]  }
 0x5cb   :  { %9945 = vmatpush1.bf16.msra.mxu0 %v14432_v62  ;;  %v14500_v62 = vld [vmem:[%s21346_s7 + $0xb84] ss:$16 sps:$4 sm:$0xff]  }
 0x5cc   :  { %10601 = vmatpush1.bf16.msra.mxu1 %v14435_v4  ;;  %9946 = vmatprep.subr.bf16.mxu0 %v14440_v35  ;;  %v14503_v4 = vld [vmem:[%s21346_s7 + $0xb8c] ss:$16 sps:$4 sm:$0xff]   ;;  %v14498_v35 = vld [vmem:[%s21346_s7 + $0xb80] ss:$16 sps:$4 sm:$0xff]  }
 0x5cd   :  { %10602 = vmatprep.subr.bf16.mxu1 %v14443_v31  ;;  %v14501_v31 = vld [vmem:[%s21346_s7 + $0xb88] ss:$16 sps:$4 sm:$0xff]  }
 0x5cf   :  { %9947 = vmatpush1.bf16.msra.mxu0 %v14438_v54  ;;  %v14506_v54 = vld [vmem:[%s21346_s7 + $0xba4] ss:$16 sps:$4 sm:$0xff]  }
 0x5d0   :  { %10603 = vmatpush1.bf16.msra.mxu1 %v14441_v45  ;;  %9948 = vmatprep.subr.bf16.mxu0 %v14446_v37  ;;  %v14509_v45 = vld [vmem:[%s21346_s7 + $0xbac] ss:$16 sps:$4 sm:$0xff]   ;;  %v14504_v37 = vld [vmem:[%s21346_s7 + $0xba0] ss:$16 sps:$4 sm:$0xff]  }
 0x5d1   :  { %10604 = vmatprep.subr.bf16.mxu1 %v14449_v39  ;;  %v14507_v39 = vld [vmem:[%s21346_s7 + $0xba8] ss:$16 sps:$4 sm:$0xff]  }
 0x5d3   :  { %9949 = vmatpush1.bf16.msra.mxu0 %v14444_v10  ;;  %v14512_v10 = vld [vmem:[%s21346_s7 + $0xbc4] ss:$16 sps:$4 sm:$0xff]  }
 0x5d4   :  { %10605 = vmatpush1.bf16.msra.mxu1 %v14447_v46  ;;  %9950 = vmatprep.subr.bf16.mxu0 %v14452_v61  ;;  %v14515_v46 = vld [vmem:[%s21346_s7 + $0xbcc] ss:$16 sps:$4 sm:$0xff]   ;;  %v14510_v61 = vld [vmem:[%s21346_s7 + $0xbc0] ss:$16 sps:$4 sm:$0xff]  }
 0x5d5   :  { %10606 = vmatprep.subr.bf16.mxu1 %v14455_v58  ;;  %v19111_v58 = vpop.permute.xlu0 %13897 }
 0x5d7   :  { %9951 = vmatpush1.bf16.msra.mxu0 %v14450_v52  ;;  %v14513_v52 = vld [vmem:[%s21346_s7 + $0xbc8] ss:$16 sps:$4 sm:$0xff]  }
 0x5d8   :  { %10607 = vmatpush1.bf16.msra.mxu1 %v14453_v43  ;;  %9952 = vmatprep.subr.bf16.mxu0 %v14458_v21  ;;  %v14518_v43 = vld [vmem:[%s21346_s7 + $0xbe4] ss:$16 sps:$4 sm:$0xff]   ;;  %v13895_v21 = vunpack.i.h.bf16 %v18911_v44 }
 0x5d9   :  { %10608 = vmatprep.subr.bf16.mxu1 %v14461_v25  ;;  %v14521_v25 = vld [vmem:[%s21346_s7 + $0xbec] ss:$16 sps:$4 sm:$0xff]   ;;  %v14524_v44 = vld [vmem:[%s21346_s7 + $0xc04] ss:$16 sps:$4 sm:$0xff]  }
 0x5db   :  { %9953 = vmatpush1.bf16.msra.mxu0 %v14456_v16  ;;  %v13899_v16 = vunpack.i.l.bf16 %v19111_v58 }
 0x5dc   :  { %10609 = vmatpush1.bf16.msra.mxu1 %v14459_v1  ;;  %9954 = vmatprep.subr.bf16.mxu0 %v14464_v32  ;;  %v14516_v1 = vld [vmem:[%s21346_s7 + $0xbe0] ss:$16 sps:$4 sm:$0xff]   ;;  %v14519_v32 = vld [vmem:[%s21346_s7 + $0xbe8] ss:$16 sps:$4 sm:$0xff]  }
 0x5dd   :  { %10610 = vmatprep.subr.bf16.mxu1 %v14467_v0  ;;  %v3357_v0 = vsel %vm1530_vm2, %v17900_v19, %v13895_v21  ;;  %v14525_v19 = vld [vmem:[%s21346_s7 + $0xc08] ss:$16 sps:$4 sm:$0xff]  }
 0x5de   :  { %v14573_v21 = vld [vmem:[%s21346_s7 + $0xd08] ss:$16 sps:$4 sm:$0xff]  }
 0x5df   :  { %9955 = vmatpush1.bf16.msra.mxu0 %v14462_v22  ;;  %v14527_v22 = vld [vmem:[%s21346_s7 + $0xc0c] ss:$16 sps:$4 sm:$0xff]  }
 0x5e0   :  { %10611 = vmatpush1.bf16.msra.mxu1 %v14465_v14  ;;  %9956 = vmatprep.subr.bf16.mxu0 %v14470_v51  ;;  %v14522_v14 = vld [vmem:[%s21346_s7 + $0xc00] ss:$16 sps:$4 sm:$0xff]   ;;  %v3360_v51 = vsel %vm1530_vm2, %v18088_v47, %v13899_v16  ;;  %v14581_v16 = vld [vmem:[%s21346_s7 + $0xd2c] ss:$16 sps:$4 sm:$0xff]  }
 0x5e1   :  { %10612 = vmatprep.subr.bf16.mxu1 %v14473_v30  ;;  %v3549_v30 = vpack.c.bf16 %v3357_v0, %v3357_v0  ;;  %v14528_v47 = vld [vmem:[%s21346_s7 + $0xc20] ss:$16 sps:$4 sm:$0xff]   ;;  %v14587_v0 = vld [vmem:[%s21346_s7 + $0xd4c] ss:$16 sps:$4 sm:$0xff]  }
 0x5e3   :  { %9957 = vmatpush1.bf16.msra.mxu0 %v14468_v41  ;;  %v14530_v41 = vld [vmem:[%s21346_s7 + $0xc24] ss:$16 sps:$4 sm:$0xff]  }
 0x5e4   :  { %10613 = vmatpush1.bf16.msra.mxu1 %v14471_v50  ;;  %9958 = vmatprep.subr.bf16.mxu0 %v14476_v11  ;;  %v3552_v50 = vpack.c.bf16 %v3360_v51, %v3360_v51  ;;  %v14533_v11 = vld [vmem:[%s21346_s7 + $0xc2c] ss:$16 sps:$4 sm:$0xff]   ;;  %v14590_v51 = vld [vmem:[%s21346_s7 + $0xd64] ss:$16 sps:$4 sm:$0xff]  }
 0x5e5   :  { %10614 = vmatprep.subr.bf16.mxu1 %v14479_v20  ;;  %v14531_v20 = vld [vmem:[%s21346_s7 + $0xc28] ss:$16 sps:$4 sm:$0xff]  }
 0x5e7   :  { %9959 = vmatpush1.bf16.msra.mxu0 %v14474_v3  ;;  %v14536_v3 = vld [vmem:[%s21346_s7 + $0xc44] ss:$16 sps:$4 sm:$0xff]  }
 0x5e8   :  { %10615 = vmatpush1.bf16.msra.mxu1 %v14477_v60  ;;  %9960 = vmatprep.subr.bf16.mxu0 %v14482_v28  ;;  %v14539_v60 = vld [vmem:[%s21346_s7 + $0xc4c] ss:$16 sps:$4 sm:$0xff]   ;;  %v14534_v28 = vld [vmem:[%s21346_s7 + $0xc40] ss:$16 sps:$4 sm:$0xff]  }
 0x5e9   :  { %10616 = vmatprep.subr.bf16.mxu1 %v14485_v57  ;;  %v14537_v57 = vld [vmem:[%s21346_s7 + $0xc48] ss:$16 sps:$4 sm:$0xff]  }
 0x5eb   :  { %9961 = vmatpush1.bf16.msra.mxu0 %v14480_v2  ;;  %v14542_v2 = vld [vmem:[%s21346_s7 + $0xc64] ss:$16 sps:$4 sm:$0xff]  }
 0x5ec   :  { %10617 = vmatpush1.bf16.msra.mxu1 %v14483_v34  ;;  %9962 = vmatprep.subr.bf16.mxu0 %v14488_v33  ;;  %v14545_v34 = vld [vmem:[%s21346_s7 + $0xc6c] ss:$16 sps:$4 sm:$0xff]   ;;  %v14540_v33 = vld [vmem:[%s21346_s7 + $0xc60] ss:$16 sps:$4 sm:$0xff]  }
 0x5ed   :  { %10618 = vmatprep.subr.bf16.mxu1 %v14491_v48  ;;  %v14543_v48 = vld [vmem:[%s21346_s7 + $0xc68] ss:$16 sps:$4 sm:$0xff]  }
 0x5ef   :  { %9963 = vmatpush1.bf16.msra.mxu0 %v14486_v26  ;;  %v14548_v26 = vld [vmem:[%s21346_s7 + $0xc84] ss:$16 sps:$4 sm:$0xff]  }
 0x5f0   :  { %10619 = vmatpush1.bf16.msra.mxu1 %v14489_v29  ;;  %9964 = vmatprep.subr.bf16.mxu0 %v14494_v40  ;;  %v14551_v29 = vld [vmem:[%s21346_s7 + $0xc8c] ss:$16 sps:$4 sm:$0xff]   ;;  %v14546_v40 = vld [vmem:[%s21346_s7 + $0xc80] ss:$16 sps:$4 sm:$0xff]  }
 0x5f1   :  { %10620 = vmatprep.subr.bf16.mxu1 %v14497_v17  ;;  %v14549_v17 = vld [vmem:[%s21346_s7 + $0xc88] ss:$16 sps:$4 sm:$0xff]  }
 0x5f3   :  { %9965 = vmatpush1.bf16.msra.mxu0 %v14492_v59  ;;  %v14554_v59 = vld [vmem:[%s21346_s7 + $0xca4] ss:$16 sps:$4 sm:$0xff]  }
 0x5f4   :  { %10621 = vmatpush1.bf16.msra.mxu1 %v14495_v23  ;;  %9966 = vmatprep.subr.bf16.mxu0 %v14500_v62  ;;  %v14557_v23 = vld [vmem:[%s21346_s7 + $0xcac] ss:$16 sps:$4 sm:$0xff]   ;;  %v14552_v62 = vld [vmem:[%s21346_s7 + $0xca0] ss:$16 sps:$4 sm:$0xff]  }
 0x5f5   :  { %10622 = vmatprep.subr.bf16.mxu1 %v14503_v4  ;;  %v14555_v4 = vld [vmem:[%s21346_s7 + $0xca8] ss:$16 sps:$4 sm:$0xff]  }
 0x5f7   :  { %9967 = vmatpush1.bf16.msra.mxu0 %v14498_v35  ;;  %v14560_v35 = vld [vmem:[%s21346_s7 + $0xcc4] ss:$16 sps:$4 sm:$0xff]  }
 0x5f8   :  { %10623 = vmatpush1.bf16.msra.mxu1 %v14501_v31  ;;  %9968 = vmatprep.subr.bf16.mxu0 %v14506_v54  ;;  %v14563_v31 = vld [vmem:[%s21346_s7 + $0xccc] ss:$16 sps:$4 sm:$0xff]   ;;  %v14558_v54 = vld [vmem:[%s21346_s7 + $0xcc0] ss:$16 sps:$4 sm:$0xff]  }
 0x5f9   :  { %10624 = vmatprep.subr.bf16.mxu1 %v14509_v45  ;;  %v14561_v45 = vld [vmem:[%s21346_s7 + $0xcc8] ss:$16 sps:$4 sm:$0xff]  }
 0x5fb   :  { %9969 = vmatpush1.bf16.msra.mxu0 %v14504_v37  ;;  %v14566_v37 = vld [vmem:[%s21346_s7 + $0xce4] ss:$16 sps:$4 sm:$0xff]  }
 0x5fc   :  { %10625 = vmatpush1.bf16.msra.mxu1 %v14507_v39  ;;  %9970 = vmatprep.subr.bf16.mxu0 %v14512_v10  ;;  %v14569_v39 = vld [vmem:[%s21346_s7 + $0xcec] ss:$16 sps:$4 sm:$0xff]   ;;  %v14564_v10 = vld [vmem:[%s21346_s7 + $0xce0] ss:$16 sps:$4 sm:$0xff]  }
 0x5fd   :  { %10626 = vmatprep.subr.bf16.mxu1 %v14515_v46  ;;  %v14567_v46 = vld [vmem:[%s21346_s7 + $0xce8] ss:$16 sps:$4 sm:$0xff]  }
 0x5ff   :  { %9971 = vmatpush1.bf16.msra.mxu0 %v14510_v61  ;;  %v14572_v61 = vld [vmem:[%s21346_s7 + $0xd04] ss:$16 sps:$4 sm:$0xff]  }
 0x600   :  { %10627 = vmatpush1.bf16.msra.mxu1 %v14513_v52  ;;  %9972 = vmatprep.subr.bf16.mxu0 %v14518_v43  ;;  %v14575_v52 = vld [vmem:[%s21346_s7 + $0xd0c] ss:$16 sps:$4 sm:$0xff]   ;;  %v14570_v43 = vld [vmem:[%s21346_s7 + $0xd00] ss:$16 sps:$4 sm:$0xff]  }
 0x601   :  { %10628 = vmatprep.subr.bf16.mxu1 %v14521_v25  ;;  %v14578_v25 = vld [vmem:[%s21346_s7 + $0xd24] ss:$16 sps:$4 sm:$0xff]  }
 0x603   :  { %9973 = vmatpush1.bf16.msra.mxu0 %v14516_v1  ;;  %v14576_v1 = vld [vmem:[%s21346_s7 + $0xd20] ss:$16 sps:$4 sm:$0xff]  }
 0x604   :  { %10629 = vmatpush1.bf16.msra.mxu1 %v14519_v32  ;;  %9983 = vmatprep.subr.bf16.mxu0 %v14524_v44  ;;  %v14579_v32 = vld [vmem:[%s21346_s7 + $0xd28] ss:$16 sps:$4 sm:$0xff]   ;;  %v14584_v44 = vld [vmem:[%s21346_s7 + $0xd44] ss:$16 sps:$4 sm:$0xff]  }
 0x605   :  { %10639 = vmatprep.subr.bf16.mxu1 %v14527_v22  ;;  %v14582_v22 = vld [vmem:[%s21346_s7 + $0xd40] ss:$16 sps:$4 sm:$0xff]  }
 0x606   :  { %9975 = vmatmul.mubr.bf16.vlgmr.msra.gmra.mrb[96].mxu0 %v3549_v30 }
 0x607   :  { %10631 = vmatmul.mubr.bf16.vlgmr.msra.gmra.mrb[80].mxu1 %v3549_v30  ;;  %9984 = vmatpush1.bf16.msra.mxu0 %v14522_v14  ;;  %v14585_v14 = vld [vmem:[%s21346_s7 + $0xd48] ss:$16 sps:$4 sm:$0xff]   ;;  %v14593_v30 = vld [vmem:[%s21346_s7 + $0xd6c] ss:$16 sps:$4 sm:$0xff]  }
 0x608   :  { %10015 = vmatprep.mubr.bf16.mxu0 %v3552_v50  ;;  %10640 = vmatpush1.bf16.msra.mxu1 %v14525_v19  ;;  %v14588_v19 = vld [vmem:[%s21346_s7 + $0xd60] ss:$16 sps:$4 sm:$0xff]  }
 0x609   :  { %10671 = vmatprep.mubr.bf16.mxu1 %v3552_v50  ;;  %9985 = vmatprep.subr.bf16.mxu0 %v14530_v41  ;;  %v14591_v41 = vld [vmem:[%s21346_s7 + $0xd68] ss:$16 sps:$4 sm:$0xff]   ;;  %v14596_v50 = vld [vmem:[%s21346_s7 + $0xd84] ss:$16 sps:$4 sm:$0xff]  }
 0x60a   :  { %10641 = vmatprep.subr.bf16.mxu1 %v14533_v11  ;;  %v14599_v11 = vld [vmem:[%s21346_s7 + $0xd8c] ss:$16 sps:$4 sm:$0xff]  }
 0x60b   :  { %9986 = vmatpush1.bf16.msra.mxu0 %v14528_v47  ;;  %v14594_v47 = vld [vmem:[%s21346_s7 + $0xd80] ss:$16 sps:$4 sm:$0xff]  }
 0x60c   :  { %10642 = vmatpush1.bf16.msra.mxu1 %v14531_v20  ;;  %9987 = vmatprep.subr.bf16.mxu0 %v14536_v3  ;;  %v14597_v20 = vld [vmem:[%s21346_s7 + $0xd88] ss:$16 sps:$4 sm:$0xff]   ;;  %v14602_v3 = vld [vmem:[%s21346_s7 + $0xda4] ss:$16 sps:$4 sm:$0xff]  }
 0x60d   :  { %10643 = vmatprep.subr.bf16.mxu1 %v14539_v60  ;;  %v14605_v60 = vld [vmem:[%s21346_s7 + $0xdac] ss:$16 sps:$4 sm:$0xff]  }
 0x60f   :  { %9988 = vmatpush1.bf16.msra.mxu0 %v14534_v28  ;;  %v14600_v28 = vld [vmem:[%s21346_s7 + $0xda0] ss:$16 sps:$4 sm:$0xff]  }
 0x610   :  { %10644 = vmatpush1.bf16.msra.mxu1 %v14537_v57  ;;  %9989 = vmatprep.subr.bf16.mxu0 %v14542_v2  ;;  %v14603_v57 = vld [vmem:[%s21346_s7 + $0xda8] ss:$16 sps:$4 sm:$0xff]   ;;  %v14608_v2 = vld [vmem:[%s21346_s7 + $0xdc4] ss:$16 sps:$4 sm:$0xff]  }
 0x611   :  { %10645 = vmatprep.subr.bf16.mxu1 %v14545_v34  ;;  %v14611_v34 = vld [vmem:[%s21346_s7 + $0xdcc] ss:$16 sps:$4 sm:$0xff]  }
 0x613   :  { %9990 = vmatpush1.bf16.msra.mxu0 %v14540_v33  ;;  %v14606_v33 = vld [vmem:[%s21346_s7 + $0xdc0] ss:$16 sps:$4 sm:$0xff]  }
 0x614   :  { %10646 = vmatpush1.bf16.msra.mxu1 %v14543_v48  ;;  %9991 = vmatprep.subr.bf16.mxu0 %v14548_v26  ;;  %v19311_v48 = vpop.permute.xlu1 %13902  ;;  %v14609_v26 = vld [vmem:[%s21346_s7 + $0xdc8] ss:$16 sps:$4 sm:$0xff]  }
 0x615   :  { %10647 = vmatprep.subr.bf16.mxu1 %v14551_v29  ;;  %v14614_v29 = vld [vmem:[%s21346_s7 + $0xde4] ss:$16 sps:$4 sm:$0xff]  }
 0x617   :  { %9992 = vmatpush1.bf16.msra.mxu0 %v14546_v40  ;;  %v13900_v40 = vunpack.i.h.bf16 %v19111_v58  ;;  %v14620_v58 = vld [vmem:[%s21346_s7 + $0xe04] ss:$16 sps:$4 sm:$0xff]  }
 0x618   :  { %10648 = vmatpush1.bf16.msra.mxu1 %v14549_v17  ;;  %9993 = vmatprep.subr.bf16.mxu0 %v14554_v59  ;;  %v14617_v17 = vld [vmem:[%s21346_s7 + $0xdec] ss:$16 sps:$4 sm:$0xff]   ;;  %v13904_v59 = vunpack.i.l.bf16 %v19311_v48 }
 0x619   :  { %10649 = vmatprep.subr.bf16.mxu1 %v14557_v23  ;;  %v14612_v23 = vld [vmem:[%s21346_s7 + $0xde0] ss:$16 sps:$4 sm:$0xff]  }
 0x61b   :  { %9994 = vmatpush1.bf16.msra.mxu0 %v14552_v62  ;;  %v14615_v62 = vld [vmem:[%s21346_s7 + $0xde8] ss:$16 sps:$4 sm:$0xff]  }
 0x61c   :  { %10650 = vmatpush1.bf16.msra.mxu1 %v14555_v4  ;;  %9995 = vmatprep.subr.bf16.mxu0 %v14560_v35  ;;  %v3359_v4 = vsel %vm1530_vm2, %v17984_v24, %v13900_v40  ;;  %v14623_v35 = vld [vmem:[%s21346_s7 + $0xe0c] ss:$16 sps:$4 sm:$0xff]   ;;  %v14621_v24 = vld [vmem:[%s21346_s7 + $0xe08] ss:$16 sps:$4 sm:$0xff]  }
 0x61d   :  { %10651 = vmatprep.subr.bf16.mxu1 %v14563_v31  ;;  %v14618_v31 = vld [vmem:[%s21346_s7 + $0xe00] ss:$16 sps:$4 sm:$0xff]   ;;  %v14677_v40 = vld [vmem:[%s21346_s7 + $0xf2c] ss:$16 sps:$4 sm:$0xff]  }
 0x61f   :  { %9996 = vmatpush1.bf16.msra.mxu0 %v14558_v54  ;;  %v3362_v54 = vsel %vm1530_vm2, %v18093_v56, %v13904_v59  ;;  %v14624_v56 = vld [vmem:[%s21346_s7 + $0xe20] ss:$16 sps:$4 sm:$0xff]   ;;  %v14675_v59 = vld [vmem:[%s21346_s7 + $0xf28] ss:$16 sps:$4 sm:$0xff]  }
 0x620   :  { %10652 = vmatpush1.bf16.msra.mxu1 %v14561_v45  ;;  %9997 = vmatprep.subr.bf16.mxu0 %v14566_v37  ;;  %v3551_v45 = vpack.c.bf16 %v3359_v4, %v3359_v4  ;;  %v14626_v37 = vld [vmem:[%s21346_s7 + $0xe24] ss:$16 sps:$4 sm:$0xff]   ;;  %v14681_v4 = vld [vmem:[%s21346_s7 + $0xf48] ss:$16 sps:$4 sm:$0xff]  }
 0x621   :  { %10653 = vmatprep.subr.bf16.mxu1 %v14569_v39  ;;  %v3554_v39 = vpack.c.bf16 %v3362_v54, %v3362_v54  ;;  %v14684_v54 = vld [vmem:[%s21346_s7 + $0xf60] ss:$16 sps:$4 sm:$0xff]  }
 0x623   :  { %9998 = vmatpush1.bf16.msra.mxu0 %v14564_v10  ;;  %v14629_v10 = vld [vmem:[%s21346_s7 + $0xe2c] ss:$16 sps:$4 sm:$0xff]  }
 0x624   :  { %10654 = vmatpush1.bf16.msra.mxu1 %v14567_v46  ;;  %9999 = vmatprep.subr.bf16.mxu0 %v14572_v61  ;;  %v14627_v46 = vld [vmem:[%s21346_s7 + $0xe28] ss:$16 sps:$4 sm:$0xff]   ;;  %v14632_v61 = vld [vmem:[%s21346_s7 + $0xe44] ss:$16 sps:$4 sm:$0xff]  }
 0x625   :  { %10655 = vmatprep.subr.bf16.mxu1 %v14575_v52  ;;  %v14635_v52 = vld [vmem:[%s21346_s7 + $0xe4c] ss:$16 sps:$4 sm:$0xff]  }
 0x627   :  { %10000 = vmatpush1.bf16.msra.mxu0 %v14570_v43  ;;  %v14630_v43 = vld [vmem:[%s21346_s7 + $0xe40] ss:$16 sps:$4 sm:$0xff]  }
 0x628   :  { %10656 = vmatpush1.bf16.msra.mxu1 %v14573_v21  ;;  %10001 = vmatprep.subr.bf16.mxu0 %v14578_v25  ;;  %v14633_v21 = vld [vmem:[%s21346_s7 + $0xe48] ss:$16 sps:$4 sm:$0xff]   ;;  %v14638_v25 = vld [vmem:[%s21346_s7 + $0xe64] ss:$16 sps:$4 sm:$0xff]  }
 0x629   :  { %10657 = vmatprep.subr.bf16.mxu1 %v14581_v16  ;;  %v14641_v16 = vld [vmem:[%s21346_s7 + $0xe6c] ss:$16 sps:$4 sm:$0xff]  }
 0x62b   :  { %10002 = vmatpush1.bf16.msra.mxu0 %v14576_v1  ;;  %v14636_v1 = vld [vmem:[%s21346_s7 + $0xe60] ss:$16 sps:$4 sm:$0xff]  }
 0x62c   :  { %10658 = vmatpush1.bf16.msra.mxu1 %v14579_v32  ;;  %10003 = vmatprep.subr.bf16.mxu0 %v14584_v44  ;;  %v14639_v32 = vld [vmem:[%s21346_s7 + $0xe68] ss:$16 sps:$4 sm:$0xff]   ;;  %v14644_v44 = vld [vmem:[%s21346_s7 + $0xe84] ss:$16 sps:$4 sm:$0xff]  }
 0x62d   :  { %10659 = vmatprep.subr.bf16.mxu1 %v14587_v0  ;;  %v14647_v0 = vld [vmem:[%s21346_s7 + $0xe8c] ss:$16 sps:$4 sm:$0xff]  }
 0x62f   :  { %10004 = vmatpush1.bf16.msra.mxu0 %v14582_v22  ;;  %v14642_v22 = vld [vmem:[%s21346_s7 + $0xe80] ss:$16 sps:$4 sm:$0xff]  }
 0x630   :  { %10660 = vmatpush1.bf16.msra.mxu1 %v14585_v14  ;;  %10005 = vmatprep.subr.bf16.mxu0 %v14590_v51  ;;  %v14645_v14 = vld [vmem:[%s21346_s7 + $0xe88] ss:$16 sps:$4 sm:$0xff]   ;;  %v14650_v51 = vld [vmem:[%s21346_s7 + $0xea4] ss:$16 sps:$4 sm:$0xff]  }
 0x631   :  { %10661 = vmatprep.subr.bf16.mxu1 %v14593_v30  ;;  %v14653_v30 = vld [vmem:[%s21346_s7 + $0xeac] ss:$16 sps:$4 sm:$0xff]  }
 0x633   :  { %10006 = vmatpush1.bf16.msra.mxu0 %v14588_v19  ;;  %v14648_v19 = vld [vmem:[%s21346_s7 + $0xea0] ss:$16 sps:$4 sm:$0xff]  }
 0x634   :  { %10662 = vmatpush1.bf16.msra.mxu1 %v14591_v41  ;;  %10007 = vmatprep.subr.bf16.mxu0 %v14596_v50  ;;  %v14651_v41 = vld [vmem:[%s21346_s7 + $0xea8] ss:$16 sps:$4 sm:$0xff]   ;;  %v14656_v50 = vld [vmem:[%s21346_s7 + $0xec4] ss:$16 sps:$4 sm:$0xff]  }
 0x635   :  { %10663 = vmatprep.subr.bf16.mxu1 %v14599_v11  ;;  %v14659_v11 = vld [vmem:[%s21346_s7 + $0xecc] ss:$16 sps:$4 sm:$0xff]  }
 0x637   :  { %10008 = vmatpush1.bf16.msra.mxu0 %v14594_v47  ;;  %v14654_v47 = vld [vmem:[%s21346_s7 + $0xec0] ss:$16 sps:$4 sm:$0xff]  }
 0x638   :  { %10664 = vmatpush1.bf16.msra.mxu1 %v14597_v20  ;;  %10009 = vmatprep.subr.bf16.mxu0 %v14602_v3  ;;  %v14657_v20 = vld [vmem:[%s21346_s7 + $0xec8] ss:$16 sps:$4 sm:$0xff]   ;;  %v14662_v3 = vld [vmem:[%s21346_s7 + $0xee4] ss:$16 sps:$4 sm:$0xff]  }
 0x639   :  { %10665 = vmatprep.subr.bf16.mxu1 %v14605_v60  ;;  %v14665_v60 = vld [vmem:[%s21346_s7 + $0xeec] ss:$16 sps:$4 sm:$0xff]  }
 0x63b   :  { %10010 = vmatpush1.bf16.msra.mxu0 %v14600_v28  ;;  %v14660_v28 = vld [vmem:[%s21346_s7 + $0xee0] ss:$16 sps:$4 sm:$0xff]  }
 0x63c   :  { %10666 = vmatpush1.bf16.msra.mxu1 %v14603_v57  ;;  %10011 = vmatprep.subr.bf16.mxu0 %v14608_v2  ;;  %v14663_v57 = vld [vmem:[%s21346_s7 + $0xee8] ss:$16 sps:$4 sm:$0xff]   ;;  %v14668_v2 = vld [vmem:[%s21346_s7 + $0xf04] ss:$16 sps:$4 sm:$0xff]  }
 0x63d   :  { %10667 = vmatprep.subr.bf16.mxu1 %v14611_v34  ;;  %v14671_v34 = vld [vmem:[%s21346_s7 + $0xf0c] ss:$16 sps:$4 sm:$0xff]  }
 0x63f   :  { %10012 = vmatpush1.bf16.msra.mxu0 %v14606_v33  ;;  %v14666_v33 = vld [vmem:[%s21346_s7 + $0xf00] ss:$16 sps:$4 sm:$0xff]  }
 0x640   :  { %10668 = vmatpush1.bf16.msra.mxu1 %v14609_v26  ;;  %10013 = vmatprep.subr.bf16.mxu0 %v14614_v29  ;;  %v14669_v26 = vld [vmem:[%s21346_s7 + $0xf08] ss:$16 sps:$4 sm:$0xff]   ;;  %v14674_v29 = vld [vmem:[%s21346_s7 + $0xf24] ss:$16 sps:$4 sm:$0xff]  }
 0x641   :  { %10669 = vmatprep.subr.bf16.mxu1 %v14617_v17  ;;  %v14672_v17 = vld [vmem:[%s21346_s7 + $0xf20] ss:$16 sps:$4 sm:$0xff]  }
 0x643   :  { %10014 = vmatpush1.bf16.msra.mxu0 %v14612_v23  ;;  %v14680_v23 = vld [vmem:[%s21346_s7 + $0xf44] ss:$16 sps:$4 sm:$0xff]  }
 0x644   :  { %10670 = vmatpush1.bf16.msra.mxu1 %v14615_v62  ;;  %10024 = vmatprep.subr.bf16.mxu0 %v14620_v58  ;;  %v14683_v62 = vld [vmem:[%s21346_s7 + $0xf4c] ss:$16 sps:$4 sm:$0xff]   ;;  %v14678_v58 = vld [vmem:[%s21346_s7 + $0xf40] ss:$16 sps:$4 sm:$0xff]  }
 0x645   :  { %10680 = vmatprep.subr.bf16.mxu1 %v14623_v35  ;;  %v14686_v35 = vld [vmem:[%s21346_s7 + $0xf64] ss:$16 sps:$4 sm:$0xff]  }
 0x646   :  { %10016 = vmatmul.mubr.bf16.vlgmr.msra.gmra.mrb[96].mxu0 %v3551_v45 }
 0x647   :  { %10672 = vmatmul.mubr.bf16.vlgmr.msra.gmra.mrb[80].mxu1 %v3551_v45  ;;  %10025 = vmatpush1.bf16.msra.mxu0 %v14618_v31  ;;  %v14689_v31 = vld [vmem:[%s21346_s7 + $0xf6c] ss:$16 sps:$4 sm:$0xff]   ;;  %v14687_v45 = vld [vmem:[%s21346_s7 + $0xf68] ss:$16 sps:$4 sm:$0xff]  }
 0x648   :  { %10056 = vmatprep.mubr.bf16.mxu0 %v3554_v39  ;;  %10681 = vmatpush1.bf16.msra.mxu1 %v14621_v24  ;;  %v14692_v24 = vld [vmem:[%s21346_s7 + $0xf84] ss:$16 sps:$4 sm:$0xff]  }
 0x649   :  { %10712 = vmatprep.mubr.bf16.mxu1 %v3554_v39  ;;  %10026 = vmatprep.subr.bf16.mxu0 %v14626_v37  ;;  %v14695_v37 = vld [vmem:[%s21346_s7 + $0xf8c] ss:$16 sps:$4 sm:$0xff]   ;;  %v14690_v39 = vld [vmem:[%s21346_s7 + $0xf80] ss:$16 sps:$4 sm:$0xff]  }
 0x64a   :  { %10682 = vmatprep.subr.bf16.mxu1 %v14629_v10  ;;  %v14693_v10 = vld [vmem:[%s21346_s7 + $0xf88] ss:$16 sps:$4 sm:$0xff]  }
 0x64b   :  { %10027 = vmatpush1.bf16.msra.mxu0 %v14624_v56  ;;  %v14698_v56 = vld [vmem:[%s21346_s7 + $0xfa4] ss:$16 sps:$4 sm:$0xff]  }
 0x64c   :  { %10683 = vmatpush1.bf16.msra.mxu1 %v14627_v46  ;;  %10028 = vmatprep.subr.bf16.mxu0 %v14632_v61  ;;  %v14701_v46 = vld [vmem:[%s21346_s7 + $0xfac] ss:$16 sps:$4 sm:$0xff]   ;;  %v14696_v61 = vld [vmem:[%s21346_s7 + $0xfa0] ss:$16 sps:$4 sm:$0xff]  }
 0x64d   :  { %10684 = vmatprep.subr.bf16.mxu1 %v14635_v52  ;;  %v14699_v52 = vld [vmem:[%s21346_s7 + $0xfa8] ss:$16 sps:$4 sm:$0xff]  }
 0x64f   :  { %10029 = vmatpush1.bf16.msra.mxu0 %v14630_v43  ;;  %v14704_v43 = vld [vmem:[%s21346_s7 + $0xfc4] ss:$16 sps:$4 sm:$0xff]  }
 0x650   :  { %10685 = vmatpush1.bf16.msra.mxu1 %v14633_v21  ;;  %10030 = vmatprep.subr.bf16.mxu0 %v14638_v25  ;;  %v14707_v21 = vld [vmem:[%s21346_s7 + $0xfcc] ss:$16 sps:$4 sm:$0xff]   ;;  %v14702_v25 = vld [vmem:[%s21346_s7 + $0xfc0] ss:$16 sps:$4 sm:$0xff]  }
 0x651   :  { %10686 = vmatprep.subr.bf16.mxu1 %v14641_v16  ;;  %v19511_v16 = vpop.permute.xlu0 %13907 }
 0x653   :  { %10031 = vmatpush1.bf16.msra.mxu0 %v14636_v1  ;;  %v14705_v1 = vld [vmem:[%s21346_s7 + $0xfc8] ss:$16 sps:$4 sm:$0xff]  }
 0x654   :  { %10687 = vmatpush1.bf16.msra.mxu1 %v14639_v32  ;;  %10032 = vmatprep.subr.bf16.mxu0 %v14644_v44  ;;  %v14710_v32 = vld [vmem:[%s21346_s7 + $0xfe4] ss:$16 sps:$4 sm:$0xff]   ;;  %v13905_v44 = vunpack.i.h.bf16 %v19311_v48 }
 0x655   :  { %10688 = vmatprep.subr.bf16.mxu1 %v14647_v0  ;;  %v14713_v0 = vld [vmem:[%s21346_s7 + $0xfec] ss:$16 sps:$4 sm:$0xff]   ;;  %v14716_v48 = vld [vmem:[%s21346_s7 + $0x1004] ss:$16 sps:$4 sm:$0xff]  }
 0x657   :  { %10033 = vmatpush1.bf16.msra.mxu0 %v14642_v22  ;;  %v13909_v22 = vunpack.i.l.bf16 %v19511_v16 }
 0x658   :  { %10689 = vmatpush1.bf16.msra.mxu1 %v14645_v14  ;;  %10034 = vmatprep.subr.bf16.mxu0 %v14650_v51  ;;  %v14708_v14 = vld [vmem:[%s21346_s7 + $0xfe0] ss:$16 sps:$4 sm:$0xff]   ;;  %v14711_v51 = vld [vmem:[%s21346_s7 + $0xfe8] ss:$16 sps:$4 sm:$0xff]  }
 0x659   :  { %10690 = vmatprep.subr.bf16.mxu1 %v14653_v30  ;;  %v3361_v30 = vsel %vm1530_vm2, %v17961_v18, %v13905_v44  ;;  %v14717_v18 = vld [vmem:[%s21346_s7 + $0x1008] ss:$16 sps:$4 sm:$0xff]  }
 0x65a   :  { %v14771_v44 = vld [vmem:[%s21346_s7 + $0x1128] ss:$16 sps:$4 sm:$0xff]  }
 0x65b   :  { %10035 = vmatpush1.bf16.msra.mxu0 %v14648_v19  ;;  %v14719_v19 = vld [vmem:[%s21346_s7 + $0x100c] ss:$16 sps:$4 sm:$0xff]  }
 0x65c   :  { %10691 = vmatpush1.bf16.msra.mxu1 %v14651_v41  ;;  %10036 = vmatprep.subr.bf16.mxu0 %v14656_v50  ;;  %v14714_v41 = vld [vmem:[%s21346_s7 + $0x1000] ss:$16 sps:$4 sm:$0xff]   ;;  %v3444_v50 = vsel %vm1530_vm2, %v18096_v53, %v13909_v22  ;;  %v14779_v22 = vld [vmem:[%s21346_s7 + $0x114c] ss:$16 sps:$4 sm:$0xff]  }
 0x65d   :  { %10692 = vmatprep.subr.bf16.mxu1 %v14659_v11  ;;  %v3553_v11 = vpack.c.bf16 %v3361_v30, %v3361_v30  ;;  %v14720_v53 = vld [vmem:[%s21346_s7 + $0x1020] ss:$16 sps:$4 sm:$0xff]   ;;  %v14785_v30 = vld [vmem:[%s21346_s7 + $0x116c] ss:$16 sps:$4 sm:$0xff]  }
 0x65f   :  { %10037 = vmatpush1.bf16.msra.mxu0 %v14654_v47  ;;  %v14722_v47 = vld [vmem:[%s21346_s7 + $0x1024] ss:$16 sps:$4 sm:$0xff]  }
 0x660   :  { %10693 = vmatpush1.bf16.msra.mxu1 %v14657_v20  ;;  %10038 = vmatprep.subr.bf16.mxu0 %v14662_v3  ;;  %v3556_v20 = vpack.c.bf16 %v3444_v50, %v3444_v50  ;;  %v14725_v3 = vld [vmem:[%s21346_s7 + $0x102c] ss:$16 sps:$4 sm:$0xff]   ;;  %v14788_v50 = vld [vmem:[%s21346_s7 + $0x1184] ss:$16 sps:$4 sm:$0xff]  }
 0x661   :  { %10694 = vmatprep.subr.bf16.mxu1 %v14665_v60  ;;  %v14723_v60 = vld [vmem:[%s21346_s7 + $0x1028] ss:$16 sps:$4 sm:$0xff]  }
 0x663   :  { %10039 = vmatpush1.bf16.msra.mxu0 %v14660_v28  ;;  %v14728_v28 = vld [vmem:[%s21346_s7 + $0x1044] ss:$16 sps:$4 sm:$0xff]  }
 0x664   :  { %10695 = vmatpush1.bf16.msra.mxu1 %v14663_v57  ;;  %10040 = vmatprep.subr.bf16.mxu0 %v14668_v2  ;;  %v14731_v57 = vld [vmem:[%s21346_s7 + $0x104c] ss:$16 sps:$4 sm:$0xff]   ;;  %v14726_v2 = vld [vmem:[%s21346_s7 + $0x1040] ss:$16 sps:$4 sm:$0xff]  }
 0x665   :  { %10696 = vmatprep.subr.bf16.mxu1 %v14671_v34  ;;  %v14729_v34 = vld [vmem:[%s21346_s7 + $0x1048] ss:$16 sps:$4 sm:$0xff]  }
 0x667   :  { %10041 = vmatpush1.bf16.msra.mxu0 %v14666_v33  ;;  %v14734_v33 = vld [vmem:[%s21346_s7 + $0x1064] ss:$16 sps:$4 sm:$0xff]  }
 0x668   :  { %10697 = vmatpush1.bf16.msra.mxu1 %v14669_v26  ;;  %10042 = vmatprep.subr.bf16.mxu0 %v14674_v29  ;;  %v14737_v26 = vld [vmem:[%s21346_s7 + $0x106c] ss:$16 sps:$4 sm:$0xff]   ;;  %v14732_v29 = vld [vmem:[%s21346_s7 + $0x1060] ss:$16 sps:$4 sm:$0xff]  }
 0x669   :  { %10698 = vmatprep.subr.bf16.mxu1 %v14677_v40  ;;  %v14735_v40 = vld [vmem:[%s21346_s7 + $0x1068] ss:$16 sps:$4 sm:$0xff]  }
 0x66b   :  { %10043 = vmatpush1.bf16.msra.mxu0 %v14672_v17  ;;  %v14740_v17 = vld [vmem:[%s21346_s7 + $0x1084] ss:$16 sps:$4 sm:$0xff]  }
 0x66c   :  { %10699 = vmatpush1.bf16.msra.mxu1 %v14675_v59  ;;  %10044 = vmatprep.subr.bf16.mxu0 %v14680_v23  ;;  %v14743_v59 = vld [vmem:[%s21346_s7 + $0x108c] ss:$16 sps:$4 sm:$0xff]   ;;  %v14738_v23 = vld [vmem:[%s21346_s7 + $0x1080] ss:$16 sps:$4 sm:$0xff]  }
 0x66d   :  { %10700 = vmatprep.subr.bf16.mxu1 %v14683_v62  ;;  %v14741_v62 = vld [vmem:[%s21346_s7 + $0x1088] ss:$16 sps:$4 sm:$0xff]  }
 0x66f   :  { %10045 = vmatpush1.bf16.msra.mxu0 %v14678_v58  ;;  %v14746_v58 = vld [vmem:[%s21346_s7 + $0x10a4] ss:$16 sps:$4 sm:$0xff]  }
 0x670   :  { %10701 = vmatpush1.bf16.msra.mxu1 %v14681_v4  ;;  %10046 = vmatprep.subr.bf16.mxu0 %v14686_v35  ;;  %v14749_v4 = vld [vmem:[%s21346_s7 + $0x10ac] ss:$16 sps:$4 sm:$0xff]   ;;  %v14744_v35 = vld [vmem:[%s21346_s7 + $0x10a0] ss:$16 sps:$4 sm:$0xff]  }
 0x671   :  { %10702 = vmatprep.subr.bf16.mxu1 %v14689_v31  ;;  %v14747_v31 = vld [vmem:[%s21346_s7 + $0x10a8] ss:$16 sps:$4 sm:$0xff]  }
 0x673   :  { %10047 = vmatpush1.bf16.msra.mxu0 %v14684_v54  ;;  %v14752_v54 = vld [vmem:[%s21346_s7 + $0x10c4] ss:$16 sps:$4 sm:$0xff]  }
 0x674   :  { %10703 = vmatpush1.bf16.msra.mxu1 %v14687_v45  ;;  %10048 = vmatprep.subr.bf16.mxu0 %v14692_v24  ;;  %v14755_v45 = vld [vmem:[%s21346_s7 + $0x10cc] ss:$16 sps:$4 sm:$0xff]   ;;  %v14750_v24 = vld [vmem:[%s21346_s7 + $0x10c0] ss:$16 sps:$4 sm:$0xff]  }
 0x675   :  { %10704 = vmatprep.subr.bf16.mxu1 %v14695_v37  ;;  %v14753_v37 = vld [vmem:[%s21346_s7 + $0x10c8] ss:$16 sps:$4 sm:$0xff]  }
 0x677   :  { %10049 = vmatpush1.bf16.msra.mxu0 %v14690_v39  ;;  %v14758_v39 = vld [vmem:[%s21346_s7 + $0x10e4] ss:$16 sps:$4 sm:$0xff]  }
 0x678   :  { %10705 = vmatpush1.bf16.msra.mxu1 %v14693_v10  ;;  %10050 = vmatprep.subr.bf16.mxu0 %v14698_v56  ;;  %v14761_v10 = vld [vmem:[%s21346_s7 + $0x10ec] ss:$16 sps:$4 sm:$0xff]   ;;  %v14756_v56 = vld [vmem:[%s21346_s7 + $0x10e0] ss:$16 sps:$4 sm:$0xff]  }
 0x679   :  { %10706 = vmatprep.subr.bf16.mxu1 %v14701_v46  ;;  %v14759_v46 = vld [vmem:[%s21346_s7 + $0x10e8] ss:$16 sps:$4 sm:$0xff]  }
 0x67b   :  { %10051 = vmatpush1.bf16.msra.mxu0 %v14696_v61  ;;  %v14764_v61 = vld [vmem:[%s21346_s7 + $0x1104] ss:$16 sps:$4 sm:$0xff]  }
 0x67c   :  { %10707 = vmatpush1.bf16.msra.mxu1 %v14699_v52  ;;  %10052 = vmatprep.subr.bf16.mxu0 %v14704_v43  ;;  %v14767_v52 = vld [vmem:[%s21346_s7 + $0x110c] ss:$16 sps:$4 sm:$0xff]   ;;  %v14762_v43 = vld [vmem:[%s21346_s7 + $0x1100] ss:$16 sps:$4 sm:$0xff]  }
 0x67d   :  { %10708 = vmatprep.subr.bf16.mxu1 %v14707_v21  ;;  %v14765_v21 = vld [vmem:[%s21346_s7 + $0x1108] ss:$16 sps:$4 sm:$0xff]  }
 0x67f   :  { %10053 = vmatpush1.bf16.msra.mxu0 %v14702_v25  ;;  %v14770_v25 = vld [vmem:[%s21346_s7 + $0x1124] ss:$16 sps:$4 sm:$0xff]  }
 0x680   :  { %10709 = vmatpush1.bf16.msra.mxu1 %v14705_v1  ;;  %10054 = vmatprep.subr.bf16.mxu0 %v14710_v32  ;;  %v14773_v1 = vld [vmem:[%s21346_s7 + $0x112c] ss:$16 sps:$4 sm:$0xff]   ;;  %v14768_v32 = vld [vmem:[%s21346_s7 + $0x1120] ss:$16 sps:$4 sm:$0xff]  }
 0x681   :  { %10710 = vmatprep.subr.bf16.mxu1 %v14713_v0  ;;  %v14776_v0 = vld [vmem:[%s21346_s7 + $0x1144] ss:$16 sps:$4 sm:$0xff]  }
 0x683   :  { %10055 = vmatpush1.bf16.msra.mxu0 %v14708_v14  ;;  %v14774_v14 = vld [vmem:[%s21346_s7 + $0x1140] ss:$16 sps:$4 sm:$0xff]  }
 0x684   :  { %10711 = vmatpush1.bf16.msra.mxu1 %v14711_v51  ;;  %10065 = vmatprep.subr.bf16.mxu0 %v14716_v48  ;;  %v14777_v51 = vld [vmem:[%s21346_s7 + $0x1148] ss:$16 sps:$4 sm:$0xff]   ;;  %v14782_v48 = vld [vmem:[%s21346_s7 + $0x1164] ss:$16 sps:$4 sm:$0xff]  }
 0x685   :  { %10721 = vmatprep.subr.bf16.mxu1 %v14719_v19  ;;  %v14780_v19 = vld [vmem:[%s21346_s7 + $0x1160] ss:$16 sps:$4 sm:$0xff]  }
 0x686   :  { %10057 = vmatmul.mubr.bf16.vlgmr.msra.gmra.mrb[96].mxu0 %v3553_v11 }
 0x687   :  { %10713 = vmatmul.mubr.bf16.vlgmr.msra.gmra.mrb[80].mxu1 %v3553_v11  ;;  %10066 = vmatpush1.bf16.msra.mxu0 %v14714_v41  ;;  %v14783_v41 = vld [vmem:[%s21346_s7 + $0x1168] ss:$16 sps:$4 sm:$0xff]   ;;  %v14791_v11 = vld [vmem:[%s21346_s7 + $0x118c] ss:$16 sps:$4 sm:$0xff]  }
 0x688   :  { %10097 = vmatprep.mubr.bf16.mxu0 %v3556_v20  ;;  %10722 = vmatpush1.bf16.msra.mxu1 %v14717_v18  ;;  %v14786_v18 = vld [vmem:[%s21346_s7 + $0x1180] ss:$16 sps:$4 sm:$0xff]  }
 0x689   :  { %10753 = vmatprep.mubr.bf16.mxu1 %v3556_v20  ;;  %10067 = vmatprep.subr.bf16.mxu0 %v14722_v47  ;;  %v14789_v47 = vld [vmem:[%s21346_s7 + $0x1188] ss:$16 sps:$4 sm:$0xff]   ;;  %v14794_v20 = vld [vmem:[%s21346_s7 + $0x11a4] ss:$16 sps:$4 sm:$0xff]  }
 0x68a   :  { %10723 = vmatprep.subr.bf16.mxu1 %v14725_v3  ;;  %v14797_v3 = vld [vmem:[%s21346_s7 + $0x11ac] ss:$16 sps:$4 sm:$0xff]  }
 0x68b   :  { %10068 = vmatpush1.bf16.msra.mxu0 %v14720_v53  ;;  %v14792_v53 = vld [vmem:[%s21346_s7 + $0x11a0] ss:$16 sps:$4 sm:$0xff]  }
 0x68c   :  { %10724 = vmatpush1.bf16.msra.mxu1 %v14723_v60  ;;  %10069 = vmatprep.subr.bf16.mxu0 %v14728_v28  ;;  %v14795_v60 = vld [vmem:[%s21346_s7 + $0x11a8] ss:$16 sps:$4 sm:$0xff]   ;;  %v14800_v28 = vld [vmem:[%s21346_s7 + $0x11c4] ss:$16 sps:$4 sm:$0xff]  }
 0x68d   :  { %10725 = vmatprep.subr.bf16.mxu1 %v14731_v57  ;;  %v14803_v57 = vld [vmem:[%s21346_s7 + $0x11cc] ss:$16 sps:$4 sm:$0xff]  }
 0x68f   :  { %10070 = vmatpush1.bf16.msra.mxu0 %v14726_v2  ;;  %v14798_v2 = vld [vmem:[%s21346_s7 + $0x11c0] ss:$16 sps:$4 sm:$0xff]  }
 0x690   :  { %10726 = vmatpush1.bf16.msra.mxu1 %v14729_v34  ;;  %10071 = vmatprep.subr.bf16.mxu0 %v14734_v33  ;;  %v19711_v34 = vpop.permute.xlu1 %13912  ;;  %v14801_v33 = vld [vmem:[%s21346_s7 + $0x11c8] ss:$16 sps:$4 sm:$0xff]  }
 0x691   :  { %10727 = vmatprep.subr.bf16.mxu1 %v14737_v26  ;;  %v14806_v26 = vld [vmem:[%s21346_s7 + $0x11e4] ss:$16 sps:$4 sm:$0xff]  }
 0x693   :  { %10072 = vmatpush1.bf16.msra.mxu0 %v14732_v29  ;;  %v13910_v29 = vunpack.i.h.bf16 %v19511_v16  ;;  %v14812_v16 = vld [vmem:[%s21346_s7 + $0x1204] ss:$16 sps:$4 sm:$0xff]  }
 0x694   :  { %10728 = vmatpush1.bf16.msra.mxu1 %v14735_v40  ;;  %10073 = vmatprep.subr.bf16.mxu0 %v14740_v17  ;;  %v14809_v40 = vld [vmem:[%s21346_s7 + $0x11ec] ss:$16 sps:$4 sm:$0xff]   ;;  %v13914_v17 = vunpack.i.l.bf16 %v19711_v34 }
 0x695   :  { %10729 = vmatprep.subr.bf16.mxu1 %v14743_v59  ;;  %v14804_v59 = vld [vmem:[%s21346_s7 + $0x11e0] ss:$16 sps:$4 sm:$0xff]  }
 0x697   :  { %10074 = vmatpush1.bf16.msra.mxu0 %v14738_v23  ;;  %v14807_v23 = vld [vmem:[%s21346_s7 + $0x11e8] ss:$16 sps:$4 sm:$0xff]  }
 0x698   :  { %10730 = vmatpush1.bf16.msra.mxu1 %v14741_v62  ;;  %10075 = vmatprep.subr.bf16.mxu0 %v14746_v58  ;;  %v3443_v62 = vsel %vm1530_vm2, %v18016_v38, %v13910_v29  ;;  %v14815_v58 = vld [vmem:[%s21346_s7 + $0x120c] ss:$16 sps:$4 sm:$0xff]   ;;  %v14813_v38 = vld [vmem:[%s21346_s7 + $0x1208] ss:$16 sps:$4 sm:$0xff]  }
 0x699   :  { %10731 = vmatprep.subr.bf16.mxu1 %v14749_v4  ;;  %v14810_v4 = vld [vmem:[%s21346_s7 + $0x1200] ss:$16 sps:$4 sm:$0xff]   ;;  %v14875_v29 = vld [vmem:[%s21346_s7 + $0x134c] ss:$16 sps:$4 sm:$0xff]  }
 0x69b   :  { %10076 = vmatpush1.bf16.msra.mxu0 %v14744_v35  ;;  %v3446_v35 = vsel %vm1530_vm2, %v18101_v42, %v13914_v17  ;;  %v14816_v42 = vld [vmem:[%s21346_s7 + $0x1220] ss:$16 sps:$4 sm:$0xff]   ;;  %v14873_v17 = vld [vmem:[%s21346_s7 + $0x1348] ss:$16 sps:$4 sm:$0xff]  }
 0x69c   :  { %10732 = vmatpush1.bf16.msra.mxu1 %v14747_v31  ;;  %10077 = vmatprep.subr.bf16.mxu0 %v14752_v54  ;;  %v3555_v31 = vpack.c.bf16 %v3443_v62, %v3443_v62  ;;  %v14818_v54 = vld [vmem:[%s21346_s7 + $0x1224] ss:$16 sps:$4 sm:$0xff]   ;;  %v14879_v62 = vld [vmem:[%s21346_s7 + $0x1368] ss:$16 sps:$4 sm:$0xff]  }
 0x69d   :  { %10733 = vmatprep.subr.bf16.mxu1 %v14755_v45  ;;  %v3558_v45 = vpack.c.bf16 %v3446_v35, %v3446_v35  ;;  %v14882_v35 = vld [vmem:[%s21346_s7 + $0x1380] ss:$16 sps:$4 sm:$0xff]  }
 0x69f   :  { %10078 = vmatpush1.bf16.msra.mxu0 %v14750_v24  ;;  %v14821_v24 = vld [vmem:[%s21346_s7 + $0x122c] ss:$16 sps:$4 sm:$0xff]  }
 0x6a0   :  { %10734 = vmatpush1.bf16.msra.mxu1 %v14753_v37  ;;  %10079 = vmatprep.subr.bf16.mxu0 %v14758_v39  ;;  %v14819_v37 = vld [vmem:[%s21346_s7 + $0x1228] ss:$16 sps:$4 sm:$0xff]   ;;  %v14824_v39 = vld [vmem:[%s21346_s7 + $0x1244] ss:$16 sps:$4 sm:$0xff]  }
 0x6a1   :  { %10735 = vmatprep.subr.bf16.mxu1 %v14761_v10  ;;  %v14827_v10 = vld [vmem:[%s21346_s7 + $0x124c] ss:$16 sps:$4 sm:$0xff]  }
 0x6a3   :  { %10080 = vmatpush1.bf16.msra.mxu0 %v14756_v56  ;;  %v14822_v56 = vld [vmem:[%s21346_s7 + $0x1240] ss:$16 sps:$4 sm:$0xff]  }
 0x6a4   :  { %10736 = vmatpush1.bf16.msra.mxu1 %v14759_v46  ;;  %10081 = vmatprep.subr.bf16.mxu0 %v14764_v61  ;;  %v14825_v46 = vld [vmem:[%s21346_s7 + $0x1248] ss:$16 sps:$4 sm:$0xff]   ;;  %v14830_v61 = vld [vmem:[%s21346_s7 + $0x1264] ss:$16 sps:$4 sm:$0xff]  }
 0x6a5   :  { %10737 = vmatprep.subr.bf16.mxu1 %v14767_v52  ;;  %v14833_v52 = vld [vmem:[%s21346_s7 + $0x126c] ss:$16 sps:$4 sm:$0xff]  }
 0x6a7   :  { %10082 = vmatpush1.bf16.msra.mxu0 %v14762_v43  ;;  %v14828_v43 = vld [vmem:[%s21346_s7 + $0x1260] ss:$16 sps:$4 sm:$0xff]  }
 0x6a8   :  { %10738 = vmatpush1.bf16.msra.mxu1 %v14765_v21  ;;  %10083 = vmatprep.subr.bf16.mxu0 %v14770_v25  ;;  %v14831_v21 = vld [vmem:[%s21346_s7 + $0x1268] ss:$16 sps:$4 sm:$0xff]   ;;  %v14836_v25 = vld [vmem:[%s21346_s7 + $0x1284] ss:$16 sps:$4 sm:$0xff]  }
 0x6a9   :  { %10739 = vmatprep.subr.bf16.mxu1 %v14773_v1  ;;  %v14839_v1 = vld [vmem:[%s21346_s7 + $0x128c] ss:$16 sps:$4 sm:$0xff]  }
 0x6ab   :  { %10084 = vmatpush1.bf16.msra.mxu0 %v14768_v32  ;;  %v14834_v32 = vld [vmem:[%s21346_s7 + $0x1280] ss:$16 sps:$4 sm:$0xff]  }
 0x6ac   :  { %10740 = vmatpush1.bf16.msra.mxu1 %v14771_v44  ;;  %10085 = vmatprep.subr.bf16.mxu0 %v14776_v0  ;;  %v14837_v44 = vld [vmem:[%s21346_s7 + $0x1288] ss:$16 sps:$4 sm:$0xff]   ;;  %v14842_v0 = vld [vmem:[%s21346_s7 + $0x12a4] ss:$16 sps:$4 sm:$0xff]  }
 0x6ad   :  { %10741 = vmatprep.subr.bf16.mxu1 %v14779_v22  ;;  %v14845_v22 = vld [vmem:[%s21346_s7 + $0x12ac] ss:$16 sps:$4 sm:$0xff]  }
 0x6af   :  { %10086 = vmatpush1.bf16.msra.mxu0 %v14774_v14  ;;  %v14840_v14 = vld [vmem:[%s21346_s7 + $0x12a0] ss:$16 sps:$4 sm:$0xff]  }
 0x6b0   :  { %10742 = vmatpush1.bf16.msra.mxu1 %v14777_v51  ;;  %10087 = vmatprep.subr.bf16.mxu0 %v14782_v48  ;;  %v14843_v51 = vld [vmem:[%s21346_s7 + $0x12a8] ss:$16 sps:$4 sm:$0xff]   ;;  %v14848_v48 = vld [vmem:[%s21346_s7 + $0x12c4] ss:$16 sps:$4 sm:$0xff]  }
 0x6b1   :  { %10743 = vmatprep.subr.bf16.mxu1 %v14785_v30  ;;  %v14851_v30 = vld [vmem:[%s21346_s7 + $0x12cc] ss:$16 sps:$4 sm:$0xff]  }
 0x6b3   :  { %10088 = vmatpush1.bf16.msra.mxu0 %v14780_v19  ;;  %v14846_v19 = vld [vmem:[%s21346_s7 + $0x12c0] ss:$16 sps:$4 sm:$0xff]  }
 0x6b4   :  { %10744 = vmatpush1.bf16.msra.mxu1 %v14783_v41  ;;  %10089 = vmatprep.subr.bf16.mxu0 %v14788_v50  ;;  %v14849_v41 = vld [vmem:[%s21346_s7 + $0x12c8] ss:$16 sps:$4 sm:$0xff]   ;;  %v14854_v50 = vld [vmem:[%s21346_s7 + $0x12e4] ss:$16 sps:$4 sm:$0xff]  }
 0x6b5   :  { %10745 = vmatprep.subr.bf16.mxu1 %v14791_v11  ;;  %v14857_v11 = vld [vmem:[%s21346_s7 + $0x12ec] ss:$16 sps:$4 sm:$0xff]  }
 0x6b7   :  { %10090 = vmatpush1.bf16.msra.mxu0 %v14786_v18  ;;  %v14852_v18 = vld [vmem:[%s21346_s7 + $0x12e0] ss:$16 sps:$4 sm:$0xff]  }
 0x6b8   :  { %10746 = vmatpush1.bf16.msra.mxu1 %v14789_v47  ;;  %10091 = vmatprep.subr.bf16.mxu0 %v14794_v20  ;;  %v14855_v47 = vld [vmem:[%s21346_s7 + $0x12e8] ss:$16 sps:$4 sm:$0xff]   ;;  %v14860_v20 = vld [vmem:[%s21346_s7 + $0x1304] ss:$16 sps:$4 sm:$0xff]  }
 0x6b9   :  { %10747 = vmatprep.subr.bf16.mxu1 %v14797_v3  ;;  %v14863_v3 = vld [vmem:[%s21346_s7 + $0x130c] ss:$16 sps:$4 sm:$0xff]  }
 0x6bb   :  { %10092 = vmatpush1.bf16.msra.mxu0 %v14792_v53  ;;  %v14858_v53 = vld [vmem:[%s21346_s7 + $0x1300] ss:$16 sps:$4 sm:$0xff]  }
 0x6bc   :  { %10748 = vmatpush1.bf16.msra.mxu1 %v14795_v60  ;;  %10093 = vmatprep.subr.bf16.mxu0 %v14800_v28  ;;  %v14861_v60 = vld [vmem:[%s21346_s7 + $0x1308] ss:$16 sps:$4 sm:$0xff]   ;;  %v14866_v28 = vld [vmem:[%s21346_s7 + $0x1324] ss:$16 sps:$4 sm:$0xff]  }
 0x6bd   :  { %10749 = vmatprep.subr.bf16.mxu1 %v14803_v57  ;;  %v14869_v57 = vld [vmem:[%s21346_s7 + $0x132c] ss:$16 sps:$4 sm:$0xff]  }
 0x6bf   :  { %10094 = vmatpush1.bf16.msra.mxu0 %v14798_v2  ;;  %v14864_v2 = vld [vmem:[%s21346_s7 + $0x1320] ss:$16 sps:$4 sm:$0xff]  }
 0x6c0   :  { %10750 = vmatpush1.bf16.msra.mxu1 %v14801_v33  ;;  %10095 = vmatprep.subr.bf16.mxu0 %v14806_v26  ;;  %v14867_v33 = vld [vmem:[%s21346_s7 + $0x1328] ss:$16 sps:$4 sm:$0xff]   ;;  %v14872_v26 = vld [vmem:[%s21346_s7 + $0x1344] ss:$16 sps:$4 sm:$0xff]  }
 0x6c1   :  { %10751 = vmatprep.subr.bf16.mxu1 %v14809_v40  ;;  %v14870_v40 = vld [vmem:[%s21346_s7 + $0x1340] ss:$16 sps:$4 sm:$0xff]  }
 0x6c3   :  { %10096 = vmatpush1.bf16.msra.mxu0 %v14804_v59  ;;  %v14878_v59 = vld [vmem:[%s21346_s7 + $0x1364] ss:$16 sps:$4 sm:$0xff]  }
 0x6c4   :  { %10752 = vmatpush1.bf16.msra.mxu1 %v14807_v23  ;;  %10106 = vmatprep.subr.bf16.mxu0 %v14812_v16  ;;  %v14881_v23 = vld [vmem:[%s21346_s7 + $0x136c] ss:$16 sps:$4 sm:$0xff]   ;;  %v14876_v16 = vld [vmem:[%s21346_s7 + $0x1360] ss:$16 sps:$4 sm:$0xff]  }
 0x6c5   :  { %10762 = vmatprep.subr.bf16.mxu1 %v14815_v58  ;;  %v14884_v58 = vld [vmem:[%s21346_s7 + $0x1384] ss:$16 sps:$4 sm:$0xff]  }
 0x6c6   :  { %10098 = vmatmul.mubr.bf16.vlgmr.msra.gmra.mrb[96].mxu0 %v3555_v31 }
 0x6c7   :  { %10754 = vmatmul.mubr.bf16.vlgmr.msra.gmra.mrb[80].mxu1 %v3555_v31  ;;  %10107 = vmatpush1.bf16.msra.mxu0 %v14810_v4  ;;  %v14887_v4 = vld [vmem:[%s21346_s7 + $0x138c] ss:$16 sps:$4 sm:$0xff]   ;;  %v14885_v31 = vld [vmem:[%s21346_s7 + $0x1388] ss:$16 sps:$4 sm:$0xff]  }
 0x6c8   :  { %10138 = vmatprep.mubr.bf16.mxu0 %v3558_v45  ;;  %10763 = vmatpush1.bf16.msra.mxu1 %v14813_v38  ;;  %v14890_v38 = vld [vmem:[%s21346_s7 + $0x13a4] ss:$16 sps:$4 sm:$0xff]  }
 0x6c9   :  { %10794 = vmatprep.mubr.bf16.mxu1 %v3558_v45  ;;  %10108 = vmatprep.subr.bf16.mxu0 %v14818_v54  ;;  %v14893_v54 = vld [vmem:[%s21346_s7 + $0x13ac] ss:$16 sps:$4 sm:$0xff]   ;;  %v14888_v45 = vld [vmem:[%s21346_s7 + $0x13a0] ss:$16 sps:$4 sm:$0xff]  }
 0x6ca   :  { %10764 = vmatprep.subr.bf16.mxu1 %v14821_v24  ;;  %v14891_v24 = vld [vmem:[%s21346_s7 + $0x13a8] ss:$16 sps:$4 sm:$0xff]  }
 0x6cb   :  { %10109 = vmatpush1.bf16.msra.mxu0 %v14816_v42  ;;  %v14896_v42 = vld [vmem:[%s21346_s7 + $0x13c4] ss:$16 sps:$4 sm:$0xff]  }
 0x6cc   :  { %10765 = vmatpush1.bf16.msra.mxu1 %v14819_v37  ;;  %10110 = vmatprep.subr.bf16.mxu0 %v14824_v39  ;;  %v14899_v37 = vld [vmem:[%s21346_s7 + $0x13cc] ss:$16 sps:$4 sm:$0xff]   ;;  %v14894_v39 = vld [vmem:[%s21346_s7 + $0x13c0] ss:$16 sps:$4 sm:$0xff]  }
 0x6cd   :  { %10766 = vmatprep.subr.bf16.mxu1 %v14827_v10  ;;  %v19911_v10 = vpop.permute.xlu0 %13917 }
 0x6cf   :  { %10111 = vmatpush1.bf16.msra.mxu0 %v14822_v56  ;;  %v14897_v56 = vld [vmem:[%s21346_s7 + $0x13c8] ss:$16 sps:$4 sm:$0xff]  }
 0x6d0   :  { %10767 = vmatpush1.bf16.msra.mxu1 %v14825_v46  ;;  %10112 = vmatprep.subr.bf16.mxu0 %v14830_v61  ;;  %v14902_v46 = vld [vmem:[%s21346_s7 + $0x13e4] ss:$16 sps:$4 sm:$0xff]   ;;  %v13915_v61 = vunpack.i.h.bf16 %v19711_v34 }
 0x6d1   :  { %10768 = vmatprep.subr.bf16.mxu1 %v14833_v52  ;;  %v14905_v52 = vld [vmem:[%s21346_s7 + $0x13ec] ss:$16 sps:$4 sm:$0xff]   ;;  %v14908_v34 = vld [vmem:[%s21346_s7 + $0x1404] ss:$16 sps:$4 sm:$0xff]  }
 0x6d3   :  { %10113 = vmatpush1.bf16.msra.mxu0 %v14828_v43  ;;  %v13919_v43 = vunpack.i.l.bf16 %v19911_v10 }
 0x6d4   :  { %10769 = vmatpush1.bf16.msra.mxu1 %v14831_v21  ;;  %10114 = vmatprep.subr.bf16.mxu0 %v14836_v25  ;;  %v14900_v21 = vld [vmem:[%s21346_s7 + $0x13e0] ss:$16 sps:$4 sm:$0xff]   ;;  %v14903_v25 = vld [vmem:[%s21346_s7 + $0x13e8] ss:$16 sps:$4 sm:$0xff]  }
 0x6d5   :  { %10770 = vmatprep.subr.bf16.mxu1 %v14839_v1  ;;  %v3445_v1 = vsel %vm1530_vm2, %v17996_v27, %v13915_v61  ;;  %v14909_v27 = vld [vmem:[%s21346_s7 + $0x1408] ss:$16 sps:$4 sm:$0xff]  }
 0x6d6   :  { %v14969_v61 = vld [vmem:[%s21346_s7 + $0x1548] ss:$16 sps:$4 sm:$0xff]  }
 0x6d7   :  { %10115 = vmatpush1.bf16.msra.mxu0 %v14834_v32  ;;  %v14911_v32 = vld [vmem:[%s21346_s7 + $0x140c] ss:$16 sps:$4 sm:$0xff]  }
 0x6d8   :  { %10771 = vmatpush1.bf16.msra.mxu1 %v14837_v44  ;;  %10116 = vmatprep.subr.bf16.mxu0 %v14842_v0  ;;  %v14906_v44 = vld [vmem:[%s21346_s7 + $0x1400] ss:$16 sps:$4 sm:$0xff]   ;;  %v3448_v0 = vsel %vm1530_vm2, %v18107_v8, %v13919_v43  ;;  %v14977_v43 = vld [vmem:[%s21346_s7 + $0x156c] ss:$16 sps:$4 sm:$0xff]  }
 0x6d9   :  { %10772 = vmatprep.subr.bf16.mxu1 %v14845_v22  ;;  %v3557_v22 = vpack.c.bf16 %v3445_v1, %v3445_v1  ;;  %v14912_v8 = vld [vmem:[%s21346_s7 + $0x1420] ss:$16 sps:$4 sm:$0xff]   ;;  %v14983_v1 = vld [vmem:[%s21346_s7 + $0x158c] ss:$16 sps:$4 sm:$0xff]  }
 0x6db   :  { %10117 = vmatpush1.bf16.msra.mxu0 %v14840_v14  ;;  %v14914_v14 = vld [vmem:[%s21346_s7 + $0x1424] ss:$16 sps:$4 sm:$0xff]  }
 0x6dc   :  { %10773 = vmatpush1.bf16.msra.mxu1 %v14843_v51  ;;  %10118 = vmatprep.subr.bf16.mxu0 %v14848_v48  ;;  %v3560_v51 = vpack.c.bf16 %v3448_v0, %v3448_v0  ;;  %v14917_v48 = vld [vmem:[%s21346_s7 + $0x142c] ss:$16 sps:$4 sm:$0xff]   ;;  %v14986_v0 = vld [vmem:[%s21346_s7 + $0x15a4] ss:$16 sps:$4 sm:$0xff]  }
 0x6dd   :  { %10774 = vmatprep.subr.bf16.mxu1 %v14851_v30  ;;  %v14915_v30 = vld [vmem:[%s21346_s7 + $0x1428] ss:$16 sps:$4 sm:$0xff]  }
 0x6df   :  { %10119 = vmatpush1.bf16.msra.mxu0 %v14846_v19  ;;  %v14920_v19 = vld [vmem:[%s21346_s7 + $0x1444] ss:$16 sps:$4 sm:$0xff]  }
 0x6e0   :  { %10775 = vmatpush1.bf16.msra.mxu1 %v14849_v41  ;;  %10120 = vmatprep.subr.bf16.mxu0 %v14854_v50  ;;  %v14923_v41 = vld [vmem:[%s21346_s7 + $0x144c] ss:$16 sps:$4 sm:$0xff]   ;;  %v14918_v50 = vld [vmem:[%s21346_s7 + $0x1440] ss:$16 sps:$4 sm:$0xff]  }
 0x6e1   :  { %10776 = vmatprep.subr.bf16.mxu1 %v14857_v11  ;;  %v14921_v11 = vld [vmem:[%s21346_s7 + $0x1448] ss:$16 sps:$4 sm:$0xff]  }
 0x6e3   :  { %10121 = vmatpush1.bf16.msra.mxu0 %v14852_v18  ;;  %v14926_v18 = vld [vmem:[%s21346_s7 + $0x1464] ss:$16 sps:$4 sm:$0xff]  }
 0x6e4   :  { %10777 = vmatpush1.bf16.msra.mxu1 %v14855_v47  ;;  %10122 = vmatprep.subr.bf16.mxu0 %v14860_v20  ;;  %v14929_v47 = vld [vmem:[%s21346_s7 + $0x146c] ss:$16 sps:$4 sm:$0xff]   ;;  %v14924_v20 = vld [vmem:[%s21346_s7 + $0x1460] ss:$16 sps:$4 sm:$0xff]  }
 0x6e5   :  { %10778 = vmatprep.subr.bf16.mxu1 %v14863_v3  ;;  %v14927_v3 = vld [vmem:[%s21346_s7 + $0x1468] ss:$16 sps:$4 sm:$0xff]  }
 0x6e7   :  { %10123 = vmatpush1.bf16.msra.mxu0 %v14858_v53  ;;  %v14932_v53 = vld [vmem:[%s21346_s7 + $0x1484] ss:$16 sps:$4 sm:$0xff]  }
 0x6e8   :  { %10779 = vmatpush1.bf16.msra.mxu1 %v14861_v60  ;;  %10124 = vmatprep.subr.bf16.mxu0 %v14866_v28  ;;  %v14935_v60 = vld [vmem:[%s21346_s7 + $0x148c] ss:$16 sps:$4 sm:$0xff]   ;;  %v14930_v28 = vld [vmem:[%s21346_s7 + $0x1480] ss:$16 sps:$4 sm:$0xff]  }
 0x6e9   :  { %10780 = vmatprep.subr.bf16.mxu1 %v14869_v57  ;;  %v14933_v57 = vld [vmem:[%s21346_s7 + $0x1488] ss:$16 sps:$4 sm:$0xff]  }
 0x6eb   :  { %10125 = vmatpush1.bf16.msra.mxu0 %v14864_v2  ;;  %v14938_v2 = vld [vmem:[%s21346_s7 + $0x14a4] ss:$16 sps:$4 sm:$0xff]  }
 0x6ec   :  { %10781 = vmatpush1.bf16.msra.mxu1 %v14867_v33  ;;  %10126 = vmatprep.subr.bf16.mxu0 %v14872_v26  ;;  %v14941_v33 = vld [vmem:[%s21346_s7 + $0x14ac] ss:$16 sps:$4 sm:$0xff]   ;;  %v14936_v26 = vld [vmem:[%s21346_s7 + $0x14a0] ss:$16 sps:$4 sm:$0xff]  }
 0x6ed   :  { %10782 = vmatprep.subr.bf16.mxu1 %v14875_v29  ;;  %v14939_v29 = vld [vmem:[%s21346_s7 + $0x14a8] ss:$16 sps:$4 sm:$0xff]  }
 0x6ef   :  { %10127 = vmatpush1.bf16.msra.mxu0 %v14870_v40  ;;  %v14944_v40 = vld [vmem:[%s21346_s7 + $0x14c4] ss:$16 sps:$4 sm:$0xff]  }
 0x6f0   :  { %10783 = vmatpush1.bf16.msra.mxu1 %v14873_v17  ;;  %10128 = vmatprep.subr.bf16.mxu0 %v14878_v59  ;;  %v14947_v17 = vld [vmem:[%s21346_s7 + $0x14cc] ss:$16 sps:$4 sm:$0xff]   ;;  %v14942_v59 = vld [vmem:[%s21346_s7 + $0x14c0] ss:$16 sps:$4 sm:$0xff]  }
 0x6f1   :  { %10784 = vmatprep.subr.bf16.mxu1 %v14881_v23  ;;  %v14945_v23 = vld [vmem:[%s21346_s7 + $0x14c8] ss:$16 sps:$4 sm:$0xff]  }
 0x6f3   :  { %10129 = vmatpush1.bf16.msra.mxu0 %v14876_v16  ;;  %v14950_v16 = vld [vmem:[%s21346_s7 + $0x14e4] ss:$16 sps:$4 sm:$0xff]  }
 0x6f4   :  { %10785 = vmatpush1.bf16.msra.mxu1 %v14879_v62  ;;  %10130 = vmatprep.subr.bf16.mxu0 %v14884_v58  ;;  %v14953_v62 = vld [vmem:[%s21346_s7 + $0x14ec] ss:$16 sps:$4 sm:$0xff]   ;;  %v14948_v58 = vld [vmem:[%s21346_s7 + $0x14e0] ss:$16 sps:$4 sm:$0xff]  }
 0x6f5   :  { %10786 = vmatprep.subr.bf16.mxu1 %v14887_v4  ;;  %v14951_v4 = vld [vmem:[%s21346_s7 + $0x14e8] ss:$16 sps:$4 sm:$0xff]  }
 0x6f7   :  { %10131 = vmatpush1.bf16.msra.mxu0 %v14882_v35  ;;  %v14956_v35 = vld [vmem:[%s21346_s7 + $0x1504] ss:$16 sps:$4 sm:$0xff]  }
 0x6f8   :  { %10787 = vmatpush1.bf16.msra.mxu1 %v14885_v31  ;;  %10132 = vmatprep.subr.bf16.mxu0 %v14890_v38  ;;  %v14959_v31 = vld [vmem:[%s21346_s7 + $0x150c] ss:$16 sps:$4 sm:$0xff]   ;;  %v14954_v38 = vld [vmem:[%s21346_s7 + $0x1500] ss:$16 sps:$4 sm:$0xff]  }
 0x6f9   :  { %10788 = vmatprep.subr.bf16.mxu1 %v14893_v54  ;;  %v14957_v54 = vld [vmem:[%s21346_s7 + $0x1508] ss:$16 sps:$4 sm:$0xff]  }
 0x6fb   :  { %10133 = vmatpush1.bf16.msra.mxu0 %v14888_v45  ;;  %v14962_v45 = vld [vmem:[%s21346_s7 + $0x1524] ss:$16 sps:$4 sm:$0xff]  }
 0x6fc   :  { %10789 = vmatpush1.bf16.msra.mxu1 %v14891_v24  ;;  %10134 = vmatprep.subr.bf16.mxu0 %v14896_v42  ;;  %v14965_v24 = vld [vmem:[%s21346_s7 + $0x152c] ss:$16 sps:$4 sm:$0xff]   ;;  %v14960_v42 = vld [vmem:[%s21346_s7 + $0x1520] ss:$16 sps:$4 sm:$0xff]  }
 0x6fd   :  { %10790 = vmatprep.subr.bf16.mxu1 %v14899_v37  ;;  %v14963_v37 = vld [vmem:[%s21346_s7 + $0x1528] ss:$16 sps:$4 sm:$0xff]  }
 0x6ff   :  { %10135 = vmatpush1.bf16.msra.mxu0 %v14894_v39  ;;  %v14968_v39 = vld [vmem:[%s21346_s7 + $0x1544] ss:$16 sps:$4 sm:$0xff]  }
 0x700   :  { %10791 = vmatpush1.bf16.msra.mxu1 %v14897_v56  ;;  %10136 = vmatprep.subr.bf16.mxu0 %v14902_v46  ;;  %v14971_v56 = vld [vmem:[%s21346_s7 + $0x154c] ss:$16 sps:$4 sm:$0xff]   ;;  %v14966_v46 = vld [vmem:[%s21346_s7 + $0x1540] ss:$16 sps:$4 sm:$0xff]  }
 0x701   :  { %10792 = vmatprep.subr.bf16.mxu1 %v14905_v52  ;;  %v14974_v52 = vld [vmem:[%s21346_s7 + $0x1564] ss:$16 sps:$4 sm:$0xff]  }
 0x703   :  { %10137 = vmatpush1.bf16.msra.mxu0 %v14900_v21  ;;  %v14972_v21 = vld [vmem:[%s21346_s7 + $0x1560] ss:$16 sps:$4 sm:$0xff]  }
 0x704   :  { %10793 = vmatpush1.bf16.msra.mxu1 %v14903_v25  ;;  %10147 = vmatprep.subr.bf16.mxu0 %v14908_v34  ;;  %v14975_v25 = vld [vmem:[%s21346_s7 + $0x1568] ss:$16 sps:$4 sm:$0xff]   ;;  %v14980_v34 = vld [vmem:[%s21346_s7 + $0x1584] ss:$16 sps:$4 sm:$0xff]  }
 0x705   :  { %10803 = vmatprep.subr.bf16.mxu1 %v14911_v32  ;;  %v14978_v32 = vld [vmem:[%s21346_s7 + $0x1580] ss:$16 sps:$4 sm:$0xff]  }
 0x706   :  { %10139 = vmatmul.mubr.bf16.vlgmr.msra.gmra.mrb[96].mxu0 %v3557_v22 }
 0x707   :  { %10795 = vmatmul.mubr.bf16.vlgmr.msra.gmra.mrb[80].mxu1 %v3557_v22  ;;  %10148 = vmatpush1.bf16.msra.mxu0 %v14906_v44  ;;  %v14981_v44 = vld [vmem:[%s21346_s7 + $0x1588] ss:$16 sps:$4 sm:$0xff]   ;;  %v14989_v22 = vld [vmem:[%s21346_s7 + $0x15ac] ss:$16 sps:$4 sm:$0xff]  }
 0x708   :  { %10179 = vmatprep.mubr.bf16.mxu0 %v3560_v51  ;;  %10804 = vmatpush1.bf16.msra.mxu1 %v14909_v27  ;;  %v14984_v27 = vld [vmem:[%s21346_s7 + $0x15a0] ss:$16 sps:$4 sm:$0xff]  }
 0x709   :  { %10835 = vmatprep.mubr.bf16.mxu1 %v3560_v51  ;;  %10149 = vmatprep.subr.bf16.mxu0 %v14914_v14  ;;  %v14987_v14 = vld [vmem:[%s21346_s7 + $0x15a8] ss:$16 sps:$4 sm:$0xff]   ;;  %v14992_v51 = vld [vmem:[%s21346_s7 + $0x15c4] ss:$16 sps:$4 sm:$0xff]  }
 0x70a   :  { %10805 = vmatprep.subr.bf16.mxu1 %v14917_v48  ;;  %v14995_v48 = vld [vmem:[%s21346_s7 + $0x15cc] ss:$16 sps:$4 sm:$0xff]  }
 0x70b   :  { %10150 = vmatpush1.bf16.msra.mxu0 %v14912_v8  ;;  %v14990_v8 = vld [vmem:[%s21346_s7 + $0x15c0] ss:$16 sps:$4 sm:$0xff]  }
 0x70c   :  { %10806 = vmatpush1.bf16.msra.mxu1 %v14915_v30  ;;  %10151 = vmatprep.subr.bf16.mxu0 %v14920_v19  ;;  %v20111_v30 = vpop.permute.xlu1 %13922  ;;  %v14993_v19 = vld [vmem:[%s21346_s7 + $0x15c8] ss:$16 sps:$4 sm:$0xff]  }
 0x70d   :  { %10807 = vmatprep.subr.bf16.mxu1 %v14923_v41  ;;  %v14998_v41 = vld [vmem:[%s21346_s7 + $0x15e4] ss:$16 sps:$4 sm:$0xff]  }
 0x70f   :  { %10152 = vmatpush1.bf16.msra.mxu0 %v14918_v50  ;;  %v13920_v50 = vunpack.i.h.bf16 %v19911_v10  ;;  %v15004_v10 = vld [vmem:[%s21346_s7 + $0x1604] ss:$16 sps:$4 sm:$0xff]  }
 0x710   :  { %10808 = vmatpush1.bf16.msra.mxu1 %v14921_v11  ;;  %10153 = vmatprep.subr.bf16.mxu0 %v14926_v18  ;;  %v15001_v11 = vld [vmem:[%s21346_s7 + $0x15ec] ss:$16 sps:$4 sm:$0xff]   ;;  %v13924_v18 = vunpack.i.l.bf16 %v20111_v30 }
 0x711   :  { %10809 = vmatprep.subr.bf16.mxu1 %v14929_v47  ;;  %v14996_v47 = vld [vmem:[%s21346_s7 + $0x15e0] ss:$16 sps:$4 sm:$0xff]  }
 0x713   :  { %10154 = vmatpush1.bf16.msra.mxu0 %v14924_v20  ;;  %v14999_v20 = vld [vmem:[%s21346_s7 + $0x15e8] ss:$16 sps:$4 sm:$0xff]  }
 0x714   :  { %10810 = vmatpush1.bf16.msra.mxu1 %v14927_v3  ;;  %10155 = vmatprep.subr.bf16.mxu0 %v14932_v53  ;;  %v3447_v3 = vsel %vm1530_vm2, %v18033_v55, %v13920_v50  ;;  %v15007_v53 = vld [vmem:[%s21346_s7 + $0x160c] ss:$16 sps:$4 sm:$0xff]   ;;  %v15005_v55 = vld [vmem:[%s21346_s7 + $0x1608] ss:$16 sps:$4 sm:$0xff]  }
 0x715   :  { %10811 = vmatprep.subr.bf16.mxu1 %v14935_v60  ;;  %v15002_v60 = vld [vmem:[%s21346_s7 + $0x1600] ss:$16 sps:$4 sm:$0xff]   ;;  %v15073_v50 = vld [vmem:[%s21346_s7 + $0x176c] ss:$16 sps:$4 sm:$0xff]  }
 0x717   :  { %10156 = vmatpush1.bf16.msra.mxu0 %v14930_v28  ;;  %v3450_v28 = vsel %vm1530_vm2, %v18113_v63, %v13924_v18  ;;  %v15008_v63 = vld [vmem:[%s21346_s7 + $0x1620] ss:$16 sps:$4 sm:$0xff]   ;;  %v15071_v18 = vld [vmem:[%s21346_s7 + $0x1768] ss:$16 sps:$4 sm:$0xff]  }
 0x718   :  { %10812 = vmatpush1.bf16.msra.mxu1 %v14933_v57  ;;  %10157 = vmatprep.subr.bf16.mxu0 %v14938_v2  ;;  %v3559_v57 = vpack.c.bf16 %v3447_v3, %v3447_v3  ;;  %v15010_v2 = vld [vmem:[%s21346_s7 + $0x1624] ss:$16 sps:$4 sm:$0xff]   ;;  %v15077_v3 = vld [vmem:[%s21346_s7 + $0x1788] ss:$16 sps:$4 sm:$0xff]  }
 0x719   :  { %10813 = vmatprep.subr.bf16.mxu1 %v14941_v33  ;;  %v3562_v33 = vpack.c.bf16 %v3450_v28, %v3450_v28  ;;  %v15080_v28 = vld [vmem:[%s21346_s7 + $0x17a0] ss:$16 sps:$4 sm:$0xff]  }
 0x71b   :  { %10158 = vmatpush1.bf16.msra.mxu0 %v14936_v26  ;;  %v15013_v26 = vld [vmem:[%s21346_s7 + $0x162c] ss:$16 sps:$4 sm:$0xff]  }
 0x71c   :  { %10814 = vmatpush1.bf16.msra.mxu1 %v14939_v29  ;;  %10159 = vmatprep.subr.bf16.mxu0 %v14944_v40  ;;  %v15011_v29 = vld [vmem:[%s21346_s7 + $0x1628] ss:$16 sps:$4 sm:$0xff]   ;;  %v15016_v40 = vld [vmem:[%s21346_s7 + $0x1644] ss:$16 sps:$4 sm:$0xff]  }
 0x71d   :  { %10815 = vmatprep.subr.bf16.mxu1 %v14947_v17  ;;  %v15019_v17 = vld [vmem:[%s21346_s7 + $0x164c] ss:$16 sps:$4 sm:$0xff]  }
 0x71f   :  { %10160 = vmatpush1.bf16.msra.mxu0 %v14942_v59  ;;  %v15014_v59 = vld [vmem:[%s21346_s7 + $0x1640] ss:$16 sps:$4 sm:$0xff]  }
 0x720   :  { %10816 = vmatpush1.bf16.msra.mxu1 %v14945_v23  ;;  %10161 = vmatprep.subr.bf16.mxu0 %v14950_v16  ;;  %v15017_v23 = vld [vmem:[%s21346_s7 + $0x1648] ss:$16 sps:$4 sm:$0xff]   ;;  %v15022_v16 = vld [vmem:[%s21346_s7 + $0x1664] ss:$16 sps:$4 sm:$0xff]  }
 0x721   :  { %10817 = vmatprep.subr.bf16.mxu1 %v14953_v62  ;;  %v15025_v62 = vld [vmem:[%s21346_s7 + $0x166c] ss:$16 sps:$4 sm:$0xff]  }
 0x723   :  { %10162 = vmatpush1.bf16.msra.mxu0 %v14948_v58  ;;  %v15020_v58 = vld [vmem:[%s21346_s7 + $0x1660] ss:$16 sps:$4 sm:$0xff]  }
 0x724   :  { %10818 = vmatpush1.bf16.msra.mxu1 %v14951_v4  ;;  %10163 = vmatprep.subr.bf16.mxu0 %v14956_v35  ;;  %v15023_v4 = vld [vmem:[%s21346_s7 + $0x1668] ss:$16 sps:$4 sm:$0xff]   ;;  %v15028_v35 = vld [vmem:[%s21346_s7 + $0x1684] ss:$16 sps:$4 sm:$0xff]  }
 0x725   :  { %10819 = vmatprep.subr.bf16.mxu1 %v14959_v31  ;;  %v15031_v31 = vld [vmem:[%s21346_s7 + $0x168c] ss:$16 sps:$4 sm:$0xff]  }
 0x727   :  { %10164 = vmatpush1.bf16.msra.mxu0 %v14954_v38  ;;  %v15026_v38 = vld [vmem:[%s21346_s7 + $0x1680] ss:$16 sps:$4 sm:$0xff]  }
 0x728   :  { %10820 = vmatpush1.bf16.msra.mxu1 %v14957_v54  ;;  %10165 = vmatprep.subr.bf16.mxu0 %v14962_v45  ;;  %v15029_v54 = vld [vmem:[%s21346_s7 + $0x1688] ss:$16 sps:$4 sm:$0xff]   ;;  %v15034_v45 = vld [vmem:[%s21346_s7 + $0x16a4] ss:$16 sps:$4 sm:$0xff]  }
 0x729   :  { %10821 = vmatprep.subr.bf16.mxu1 %v14965_v24  ;;  %v15037_v24 = vld [vmem:[%s21346_s7 + $0x16ac] ss:$16 sps:$4 sm:$0xff]  }
 0x72b   :  { %10166 = vmatpush1.bf16.msra.mxu0 %v14960_v42  ;;  %v15032_v42 = vld [vmem:[%s21346_s7 + $0x16a0] ss:$16 sps:$4 sm:$0xff]  }
 0x72c   :  { %10822 = vmatpush1.bf16.msra.mxu1 %v14963_v37  ;;  %10167 = vmatprep.subr.bf16.mxu0 %v14968_v39  ;;  %v15035_v37 = vld [vmem:[%s21346_s7 + $0x16a8] ss:$16 sps:$4 sm:$0xff]   ;;  %v15040_v39 = vld [vmem:[%s21346_s7 + $0x16c4] ss:$16 sps:$4 sm:$0xff]  }
 0x72d   :  { %10823 = vmatprep.subr.bf16.mxu1 %v14971_v56  ;;  %v15043_v56 = vld [vmem:[%s21346_s7 + $0x16cc] ss:$16 sps:$4 sm:$0xff]  }
 0x72f   :  { %10168 = vmatpush1.bf16.msra.mxu0 %v14966_v46  ;;  %v15038_v46 = vld [vmem:[%s21346_s7 + $0x16c0] ss:$16 sps:$4 sm:$0xff]  }
 0x730   :  { %10824 = vmatpush1.bf16.msra.mxu1 %v14969_v61  ;;  %10169 = vmatprep.subr.bf16.mxu0 %v14974_v52  ;;  %v15041_v61 = vld [vmem:[%s21346_s7 + $0x16c8] ss:$16 sps:$4 sm:$0xff]   ;;  %v15046_v52 = vld [vmem:[%s21346_s7 + $0x16e4] ss:$16 sps:$4 sm:$0xff]  }
 0x731   :  { %10825 = vmatprep.subr.bf16.mxu1 %v14977_v43  ;;  %v15049_v43 = vld [vmem:[%s21346_s7 + $0x16ec] ss:$16 sps:$4 sm:$0xff]  }
 0x733   :  { %10170 = vmatpush1.bf16.msra.mxu0 %v14972_v21  ;;  %v15044_v21 = vld [vmem:[%s21346_s7 + $0x16e0] ss:$16 sps:$4 sm:$0xff]  }
 0x734   :  { %10826 = vmatpush1.bf16.msra.mxu1 %v14975_v25  ;;  %10171 = vmatprep.subr.bf16.mxu0 %v14980_v34  ;;  %v15047_v25 = vld [vmem:[%s21346_s7 + $0x16e8] ss:$16 sps:$4 sm:$0xff]   ;;  %v15052_v34 = vld [vmem:[%s21346_s7 + $0x1704] ss:$16 sps:$4 sm:$0xff]  }
 0x735   :  { %10827 = vmatprep.subr.bf16.mxu1 %v14983_v1  ;;  %v15055_v1 = vld [vmem:[%s21346_s7 + $0x170c] ss:$16 sps:$4 sm:$0xff]  }
 0x737   :  { %10172 = vmatpush1.bf16.msra.mxu0 %v14978_v32  ;;  %v15050_v32 = vld [vmem:[%s21346_s7 + $0x1700] ss:$16 sps:$4 sm:$0xff]  }
 0x738   :  { %10828 = vmatpush1.bf16.msra.mxu1 %v14981_v44  ;;  %10173 = vmatprep.subr.bf16.mxu0 %v14986_v0  ;;  %v15053_v44 = vld [vmem:[%s21346_s7 + $0x1708] ss:$16 sps:$4 sm:$0xff]   ;;  %v15058_v0 = vld [vmem:[%s21346_s7 + $0x1724] ss:$16 sps:$4 sm:$0xff]  }
 0x739   :  { %10829 = vmatprep.subr.bf16.mxu1 %v14989_v22  ;;  %v15061_v22 = vld [vmem:[%s21346_s7 + $0x172c] ss:$16 sps:$4 sm:$0xff]  }
 0x73b   :  { %10174 = vmatpush1.bf16.msra.mxu0 %v14984_v27  ;;  %v15056_v27 = vld [vmem:[%s21346_s7 + $0x1720] ss:$16 sps:$4 sm:$0xff]  }
 0x73c   :  { %10830 = vmatpush1.bf16.msra.mxu1 %v14987_v14  ;;  %10175 = vmatprep.subr.bf16.mxu0 %v14992_v51  ;;  %v15059_v14 = vld [vmem:[%s21346_s7 + $0x1728] ss:$16 sps:$4 sm:$0xff]   ;;  %v15064_v51 = vld [vmem:[%s21346_s7 + $0x1744] ss:$16 sps:$4 sm:$0xff]  }
 0x73d   :  { %10831 = vmatprep.subr.bf16.mxu1 %v14995_v48  ;;  %v15067_v48 = vld [vmem:[%s21346_s7 + $0x174c] ss:$16 sps:$4 sm:$0xff]  }
 0x73f   :  { %10176 = vmatpush1.bf16.msra.mxu0 %v14990_v8  ;;  %v15062_v8 = vld [vmem:[%s21346_s7 + $0x1740] ss:$16 sps:$4 sm:$0xff]  }
 0x740   :  { %10832 = vmatpush1.bf16.msra.mxu1 %v14993_v19  ;;  %10177 = vmatprep.subr.bf16.mxu0 %v14998_v41  ;;  %v15065_v19 = vld [vmem:[%s21346_s7 + $0x1748] ss:$16 sps:$4 sm:$0xff]   ;;  %v15070_v41 = vld [vmem:[%s21346_s7 + $0x1764] ss:$16 sps:$4 sm:$0xff]  }
 0x741   :  { %10833 = vmatprep.subr.bf16.mxu1 %v15001_v11  ;;  %v15068_v11 = vld [vmem:[%s21346_s7 + $0x1760] ss:$16 sps:$4 sm:$0xff]  }
 0x743   :  { %10178 = vmatpush1.bf16.msra.mxu0 %v14996_v47  ;;  %v15076_v47 = vld [vmem:[%s21346_s7 + $0x1784] ss:$16 sps:$4 sm:$0xff]  }
 0x744   :  { %10834 = vmatpush1.bf16.msra.mxu1 %v14999_v20  ;;  %10188 = vmatprep.subr.bf16.mxu0 %v15004_v10  ;;  %v15079_v20 = vld [vmem:[%s21346_s7 + $0x178c] ss:$16 sps:$4 sm:$0xff]   ;;  %v15074_v10 = vld [vmem:[%s21346_s7 + $0x1780] ss:$16 sps:$4 sm:$0xff]  }
 0x745   :  { %10844 = vmatprep.subr.bf16.mxu1 %v15007_v53  ;;  %v15082_v53 = vld [vmem:[%s21346_s7 + $0x17a4] ss:$16 sps:$4 sm:$0xff]  }
 0x746   :  { %10180 = vmatmul.mubr.bf16.vlgmr.msra.gmra.mrb[96].mxu0 %v3559_v57 }
 0x747   :  { %10836 = vmatmul.mubr.bf16.vlgmr.msra.gmra.mrb[80].mxu1 %v3559_v57  ;;  %10189 = vmatpush1.bf16.msra.mxu0 %v15002_v60  ;;  %v15085_v60 = vld [vmem:[%s21346_s7 + $0x17ac] ss:$16 sps:$4 sm:$0xff]   ;;  %v15083_v57 = vld [vmem:[%s21346_s7 + $0x17a8] ss:$16 sps:$4 sm:$0xff]  }
 0x748   :  { %10220 = vmatprep.mubr.bf16.mxu0 %v3562_v33  ;;  %10845 = vmatpush1.bf16.msra.mxu1 %v15005_v55  ;;  %v15088_v55 = vld [vmem:[%s21346_s7 + $0x17c4] ss:$16 sps:$4 sm:$0xff]  }
 0x749   :  { %10876 = vmatprep.mubr.bf16.mxu1 %v3562_v33  ;;  %10190 = vmatprep.subr.bf16.mxu0 %v15010_v2  ;;  %v15091_v2 = vld [vmem:[%s21346_s7 + $0x17cc] ss:$16 sps:$4 sm:$0xff]   ;;  %v15086_v33 = vld [vmem:[%s21346_s7 + $0x17c0] ss:$16 sps:$4 sm:$0xff]  }
 0x74a   :  { %10846 = vmatprep.subr.bf16.mxu1 %v15013_v26  ;;  %v20311_v26 = vpop.permute.xlu0 %13927 }
 0x74b   :  { %10191 = vmatpush1.bf16.msra.mxu0 %v15008_v63  ;;  %v15089_v63 = vld [vmem:[%s21346_s7 + $0x17c8] ss:$16 sps:$4 sm:$0xff]  }
 0x74c   :  { %10847 = vmatpush1.bf16.msra.mxu1 %v15011_v29  ;;  %10192 = vmatprep.subr.bf16.mxu0 %v15016_v40  ;;  %v15094_v29 = vld [vmem:[%s21346_s7 + $0x17e4] ss:$16 sps:$4 sm:$0xff]   ;;  %v13925_v40 = vunpack.i.h.bf16 %v20111_v30 }
 0x74d   :  { %10848 = vmatprep.subr.bf16.mxu1 %v15019_v17  ;;  %v15097_v17 = vld [vmem:[%s21346_s7 + $0x17ec] ss:$16 sps:$4 sm:$0xff]   ;;  %v15100_v30 = vld [vmem:[%s21346_s7 + $0x1804] ss:$16 sps:$4 sm:$0xff]  }
 0x74f   :  { %10193 = vmatpush1.bf16.msra.mxu0 %v15014_v59  ;;  %v13929_v59 = vunpack.i.l.bf16 %v20311_v26 }
 0x750   :  { %10849 = vmatpush1.bf16.msra.mxu1 %v15017_v23  ;;  %10194 = vmatprep.subr.bf16.mxu0 %v15022_v16  ;;  %v15092_v23 = vld [vmem:[%s21346_s7 + $0x17e0] ss:$16 sps:$4 sm:$0xff]   ;;  %v15095_v16 = vld [vmem:[%s21346_s7 + $0x17e8] ss:$16 sps:$4 sm:$0xff]  }
 0x751   :  { %10850 = vmatprep.subr.bf16.mxu1 %v15025_v62  ;;  %v3449_v62 = vsel %vm1530_vm2, %v18021_v15, %v13925_v40  ;;  %v15101_v15 = vld [vmem:[%s21346_s7 + $0x1808] ss:$16 sps:$4 sm:$0xff]  }
 0x752   :  { %v15167_v40 = vld [vmem:[%s21346_s7 + $0x1968] ss:$16 sps:$4 sm:$0xff]  }
 0x753   :  { %10195 = vmatpush1.bf16.msra.mxu0 %v15020_v58  ;;  %v15103_v58 = vld [vmem:[%s21346_s7 + $0x180c] ss:$16 sps:$4 sm:$0xff]  }
 0x754   :  { %10851 = vmatpush1.bf16.msra.mxu1 %v15023_v4  ;;  %10196 = vmatprep.subr.bf16.mxu0 %v15028_v35  ;;  %v15098_v4 = vld [vmem:[%s21346_s7 + $0x1800] ss:$16 sps:$4 sm:$0xff]   ;;  %v3532_v35 = vsel %vm1530_vm2, %v18118_v7, %v13929_v59  ;;  %v15175_v59 = vld [vmem:[%s21346_s7 + $0x198c] ss:$16 sps:$4 sm:$0xff]  }
 0x755   :  { %10852 = vmatprep.subr.bf16.mxu1 %v15031_v31  ;;  %v3561_v31 = vpack.c.bf16 %v3449_v62, %v3449_v62  ;;  %v15104_v7 = vld [vmem:[%s21346_s7 + $0x1820] ss:$16 sps:$4 sm:$0xff]   ;;  %v15181_v62 = vld [vmem:[%s21346_s7 + $0x19ac] ss:$16 sps:$4 sm:$0xff]  }
 0x757   :  { %10197 = vmatpush1.bf16.msra.mxu0 %v15026_v38  ;;  %v15106_v38 = vld [vmem:[%s21346_s7 + $0x1824] ss:$16 sps:$4 sm:$0xff]  }
 0x758   :  { %10853 = vmatpush1.bf16.msra.mxu1 %v15029_v54  ;;  %10198 = vmatprep.subr.bf16.mxu0 %v15034_v45  ;;  %v3564_v54 = vpack.c.bf16 %v3532_v35, %v3532_v35  ;;  %v15109_v45 = vld [vmem:[%s21346_s7 + $0x182c] ss:$16 sps:$4 sm:$0xff]   ;;  %v15184_v35 = vld [vmem:[%s21346_s7 + $0x19c4] ss:$16 sps:$4 sm:$0xff]  }
 0x759   :  { %10854 = vmatprep.subr.bf16.mxu1 %v15037_v24  ;;  %v15107_v24 = vld [vmem:[%s21346_s7 + $0x1828] ss:$16 sps:$4 sm:$0xff]  }
 0x75b   :  { %10199 = vmatpush1.bf16.msra.mxu0 %v15032_v42  ;;  %v15112_v42 = vld [vmem:[%s21346_s7 + $0x1844] ss:$16 sps:$4 sm:$0xff]  }
 0x75c   :  { %10855 = vmatpush1.bf16.msra.mxu1 %v15035_v37  ;;  %10200 = vmatprep.subr.bf16.mxu0 %v15040_v39  ;;  %v15115_v37 = vld [vmem:[%s21346_s7 + $0x184c] ss:$16 sps:$4 sm:$0xff]   ;;  %v15110_v39 = vld [vmem:[%s21346_s7 + $0x1840] ss:$16 sps:$4 sm:$0xff]  }
 0x75d   :  { %10856 = vmatprep.subr.bf16.mxu1 %v15043_v56  ;;  %v15113_v56 = vld [vmem:[%s21346_s7 + $0x1848] ss:$16 sps:$4 sm:$0xff]  }
 0x75f   :  { %10201 = vmatpush1.bf16.msra.mxu0 %v15038_v46  ;;  %v15118_v46 = vld [vmem:[%s21346_s7 + $0x1864] ss:$16 sps:$4 sm:$0xff]  }
 0x760   :  { %10857 = vmatpush1.bf16.msra.mxu1 %v15041_v61  ;;  %10202 = vmatprep.subr.bf16.mxu0 %v15046_v52  ;;  %v15121_v61 = vld [vmem:[%s21346_s7 + $0x186c] ss:$16 sps:$4 sm:$0xff]   ;;  %v15116_v52 = vld [vmem:[%s21346_s7 + $0x1860] ss:$16 sps:$4 sm:$0xff]  }
 0x761   :  { %10858 = vmatprep.subr.bf16.mxu1 %v15049_v43  ;;  %v15119_v43 = vld [vmem:[%s21346_s7 + $0x1868] ss:$16 sps:$4 sm:$0xff]  }
 0x763   :  { %10203 = vmatpush1.bf16.msra.mxu0 %v15044_v21  ;;  %v15124_v21 = vld [vmem:[%s21346_s7 + $0x1884] ss:$16 sps:$4 sm:$0xff]  }
 0x764   :  { %10859 = vmatpush1.bf16.msra.mxu1 %v15047_v25  ;;  %10204 = vmatprep.subr.bf16.mxu0 %v15052_v34  ;;  %v15127_v25 = vld [vmem:[%s21346_s7 + $0x188c] ss:$16 sps:$4 sm:$0xff]   ;;  %v15122_v34 = vld [vmem:[%s21346_s7 + $0x1880] ss:$16 sps:$4 sm:$0xff]  }
 0x765   :  { %10860 = vmatprep.subr.bf16.mxu1 %v15055_v1  ;;  %v15125_v1 = vld [vmem:[%s21346_s7 + $0x1888] ss:$16 sps:$4 sm:$0xff]  }
 0x767   :  { %10205 = vmatpush1.bf16.msra.mxu0 %v15050_v32  ;;  %v15130_v32 = vld [vmem:[%s21346_s7 + $0x18a4] ss:$16 sps:$4 sm:$0xff]  }
 0x768   :  { %10861 = vmatpush1.bf16.msra.mxu1 %v15053_v44  ;;  %10206 = vmatprep.subr.bf16.mxu0 %v15058_v0  ;;  %v15133_v44 = vld [vmem:[%s21346_s7 + $0x18ac] ss:$16 sps:$4 sm:$0xff]   ;;  %v15128_v0 = vld [vmem:[%s21346_s7 + $0x18a0] ss:$16 sps:$4 sm:$0xff]  }
 0x769   :  { %10862 = vmatprep.subr.bf16.mxu1 %v15061_v22  ;;  %v15131_v22 = vld [vmem:[%s21346_s7 + $0x18a8] ss:$16 sps:$4 sm:$0xff]  }
 0x76b   :  { %10207 = vmatpush1.bf16.msra.mxu0 %v15056_v27  ;;  %v15136_v27 = vld [vmem:[%s21346_s7 + $0x18c4] ss:$16 sps:$4 sm:$0xff]  }
 0x76c   :  { %10863 = vmatpush1.bf16.msra.mxu1 %v15059_v14  ;;  %10208 = vmatprep.subr.bf16.mxu0 %v15064_v51  ;;  %v15139_v14 = vld [vmem:[%s21346_s7 + $0x18cc] ss:$16 sps:$4 sm:$0xff]   ;;  %v15134_v51 = vld [vmem:[%s21346_s7 + $0x18c0] ss:$16 sps:$4 sm:$0xff]  }
 0x76d   :  { %10864 = vmatprep.subr.bf16.mxu1 %v15067_v48  ;;  %v15137_v48 = vld [vmem:[%s21346_s7 + $0x18c8] ss:$16 sps:$4 sm:$0xff]  }
 0x76f   :  { %10209 = vmatpush1.bf16.msra.mxu0 %v15062_v8  ;;  %v15142_v8 = vld [vmem:[%s21346_s7 + $0x18e4] ss:$16 sps:$4 sm:$0xff]  }
 0x770   :  { %10865 = vmatpush1.bf16.msra.mxu1 %v15065_v19  ;;  %10210 = vmatprep.subr.bf16.mxu0 %v15070_v41  ;;  %v15145_v19 = vld [vmem:[%s21346_s7 + $0x18ec] ss:$16 sps:$4 sm:$0xff]   ;;  %v15140_v41 = vld [vmem:[%s21346_s7 + $0x18e0] ss:$16 sps:$4 sm:$0xff]  }
 0x771   :  { %10866 = vmatprep.subr.bf16.mxu1 %v15073_v50  ;;  %v15143_v50 = vld [vmem:[%s21346_s7 + $0x18e8] ss:$16 sps:$4 sm:$0xff]  }
 0x773   :  { %10211 = vmatpush1.bf16.msra.mxu0 %v15068_v11  ;;  %v15148_v11 = vld [vmem:[%s21346_s7 + $0x1904] ss:$16 sps:$4 sm:$0xff]  }
 0x774   :  { %10867 = vmatpush1.bf16.msra.mxu1 %v15071_v18  ;;  %10212 = vmatprep.subr.bf16.mxu0 %v15076_v47  ;;  %v15151_v18 = vld [vmem:[%s21346_s7 + $0x190c] ss:$16 sps:$4 sm:$0xff]   ;;  %v15146_v47 = vld [vmem:[%s21346_s7 + $0x1900] ss:$16 sps:$4 sm:$0xff]  }
 0x775   :  { %10868 = vmatprep.subr.bf16.mxu1 %v15079_v20  ;;  %v15149_v20 = vld [vmem:[%s21346_s7 + $0x1908] ss:$16 sps:$4 sm:$0xff]  }
 0x777   :  { %10213 = vmatpush1.bf16.msra.mxu0 %v15074_v10  ;;  %v15154_v10 = vld [vmem:[%s21346_s7 + $0x1924] ss:$16 sps:$4 sm:$0xff]  }
 0x778   :  { %10869 = vmatpush1.bf16.msra.mxu1 %v15077_v3  ;;  %10214 = vmatprep.subr.bf16.mxu0 %v15082_v53  ;;  %v15157_v3 = vld [vmem:[%s21346_s7 + $0x192c] ss:$16 sps:$4 sm:$0xff]   ;;  %v15152_v53 = vld [vmem:[%s21346_s7 + $0x1920] ss:$16 sps:$4 sm:$0xff]  }
 0x779   :  { %10870 = vmatprep.subr.bf16.mxu1 %v15085_v60  ;;  %v15155_v60 = vld [vmem:[%s21346_s7 + $0x1928] ss:$16 sps:$4 sm:$0xff]  }
 0x77b   :  { %10215 = vmatpush1.bf16.msra.mxu0 %v15080_v28  ;;  %v15160_v28 = vld [vmem:[%s21346_s7 + $0x1944] ss:$16 sps:$4 sm:$0xff]  }
 0x77c   :  { %10871 = vmatpush1.bf16.msra.mxu1 %v15083_v57  ;;  %10216 = vmatprep.subr.bf16.mxu0 %v15088_v55  ;;  %v15163_v57 = vld [vmem:[%s21346_s7 + $0x194c] ss:$16 sps:$4 sm:$0xff]   ;;  %v15158_v55 = vld [vmem:[%s21346_s7 + $0x1940] ss:$16 sps:$4 sm:$0xff]  }
 0x77d   :  { %10872 = vmatprep.subr.bf16.mxu1 %v15091_v2  ;;  %v15161_v2 = vld [vmem:[%s21346_s7 + $0x1948] ss:$16 sps:$4 sm:$0xff]  }
 0x77f   :  { %10217 = vmatpush1.bf16.msra.mxu0 %v15086_v33  ;;  %v15166_v33 = vld [vmem:[%s21346_s7 + $0x1964] ss:$16 sps:$4 sm:$0xff]  }
 0x780   :  { %10873 = vmatpush1.bf16.msra.mxu1 %v15089_v63  ;;  %10218 = vmatprep.subr.bf16.mxu0 %v15094_v29  ;;  %v15169_v63 = vld [vmem:[%s21346_s7 + $0x196c] ss:$16 sps:$4 sm:$0xff]   ;;  %v15164_v29 = vld [vmem:[%s21346_s7 + $0x1960] ss:$16 sps:$4 sm:$0xff]  }
 0x781   :  { %10874 = vmatprep.subr.bf16.mxu1 %v15097_v17  ;;  %v15172_v17 = vld [vmem:[%s21346_s7 + $0x1984] ss:$16 sps:$4 sm:$0xff]  }
 0x783   :  { %10219 = vmatpush1.bf16.msra.mxu0 %v15092_v23  ;;  %v15170_v23 = vld [vmem:[%s21346_s7 + $0x1980] ss:$16 sps:$4 sm:$0xff]  }
 0x784   :  { %10875 = vmatpush1.bf16.msra.mxu1 %v15095_v16  ;;  %10229 = vmatprep.subr.bf16.mxu0 %v15100_v30  ;;  %v15173_v16 = vld [vmem:[%s21346_s7 + $0x1988] ss:$16 sps:$4 sm:$0xff]   ;;  %v15178_v30 = vld [vmem:[%s21346_s7 + $0x19a4] ss:$16 sps:$4 sm:$0xff]  }
 0x785   :  { %10885 = vmatprep.subr.bf16.mxu1 %v15103_v58  ;;  %v15176_v58 = vld [vmem:[%s21346_s7 + $0x19a0] ss:$16 sps:$4 sm:$0xff]  }
 0x786   :  { %10221 = vmatmul.mubr.bf16.vlgmr.msra.gmra.mrb[96].mxu0 %v3561_v31 }
 0x787   :  { %10877 = vmatmul.mubr.bf16.vlgmr.msra.gmra.mrb[80].mxu1 %v3561_v31  ;;  %10230 = vmatpush1.bf16.msra.mxu0 %v15098_v4  ;;  %v15179_v4 = vld [vmem:[%s21346_s7 + $0x19a8] ss:$16 sps:$4 sm:$0xff]   ;;  %v15187_v31 = vld [vmem:[%s21346_s7 + $0x19cc] ss:$16 sps:$4 sm:$0xff]  }
 0x788   :  { %10261 = vmatprep.mubr.bf16.mxu0 %v3564_v54  ;;  %10886 = vmatpush1.bf16.msra.mxu1 %v15101_v15  ;;  %v15182_v15 = vld [vmem:[%s21346_s7 + $0x19c0] ss:$16 sps:$4 sm:$0xff]  }
 0x789   :  { %10917 = vmatprep.mubr.bf16.mxu1 %v3564_v54  ;;  %10231 = vmatprep.subr.bf16.mxu0 %v15106_v38  ;;  %v20511_v38 = vpop.permute.xlu1 %13932  ;;  %v15185_v54 = vld [vmem:[%s21346_s7 + $0x19c8] ss:$16 sps:$4 sm:$0xff]  }
 0x78a   :  { %10887 = vmatprep.subr.bf16.mxu1 %v15109_v45  ;;  %v15190_v45 = vld [vmem:[%s21346_s7 + $0x19e4] ss:$16 sps:$4 sm:$0xff]  }
 0x78b   :  { %10232 = vmatpush1.bf16.msra.mxu0 %v15104_v7  ;;  %v13930_v7 = vunpack.i.h.bf16 %v20311_v26  ;;  %v15196_v26 = vld [vmem:[%s21346_s7 + $0x1a04] ss:$16 sps:$4 sm:$0xff]  }
 0x78c   :  { %10888 = vmatpush1.bf16.msra.mxu1 %v15107_v24  ;;  %10233 = vmatprep.subr.bf16.mxu0 %v15112_v42  ;;  %v15193_v24 = vld [vmem:[%s21346_s7 + $0x19ec] ss:$16 sps:$4 sm:$0xff]   ;;  %v13934_v42 = vunpack.i.l.bf16 %v20511_v38 }
 0x78d   :  { %10889 = vmatprep.subr.bf16.mxu1 %v15115_v37  ;;  %v15188_v37 = vld [vmem:[%s21346_s7 + $0x19e0] ss:$16 sps:$4 sm:$0xff]  }
 0x78f   :  { %10234 = vmatpush1.bf16.msra.mxu0 %v15110_v39  ;;  %v15191_v39 = vld [vmem:[%s21346_s7 + $0x19e8] ss:$16 sps:$4 sm:$0xff]  }
 0x790   :  { %10890 = vmatpush1.bf16.msra.mxu1 %v15113_v56  ;;  %10235 = vmatprep.subr.bf16.mxu0 %v15118_v46  ;;  %v3531_v56 = vsel %vm1530_vm2, %v18050_v5, %v13930_v7  ;;  %v15199_v46 = vld [vmem:[%s21346_s7 + $0x1a0c] ss:$16 sps:$4 sm:$0xff]   ;;  %v15197_v5 = vld [vmem:[%s21346_s7 + $0x1a08] ss:$16 sps:$4 sm:$0xff]  }
 0x791   :  { %10891 = vmatprep.subr.bf16.mxu1 %v15121_v61  ;;  %v15194_v61 = vld [vmem:[%s21346_s7 + $0x1a00] ss:$16 sps:$4 sm:$0xff]   ;;  %v15271_v7 = vld [vmem:[%s21346_s7 + $0x1b8c] ss:$16 sps:$4 sm:$0xff]  }
 0x793   :  { %10236 = vmatpush1.bf16.msra.mxu0 %v15116_v52  ;;  %v3534_v52 = vsel %vm1530_vm2, %v18121_v12, %v13934_v42  ;;  %v15200_v12 = vld [vmem:[%s21346_s7 + $0x1a20] ss:$16 sps:$4 sm:$0xff]   ;;  %v15269_v42 = vld [vmem:[%s21346_s7 + $0x1b88] ss:$16 sps:$4 sm:$0xff]  }
 0x794   :  { %10892 = vmatpush1.bf16.msra.mxu1 %v15119_v43  ;;  %10237 = vmatprep.subr.bf16.mxu0 %v15124_v21  ;;  %v3563_v43 = vpack.c.bf16 %v3531_v56, %v3531_v56  ;;  %v15202_v21 = vld [vmem:[%s21346_s7 + $0x1a24] ss:$16 sps:$4 sm:$0xff]   ;;  %v15275_v56 = vld [vmem:[%s21346_s7 + $0x1ba8] ss:$16 sps:$4 sm:$0xff]  }
 0x795   :  { %10893 = vmatprep.subr.bf16.mxu1 %v15127_v25  ;;  %v3566_v25 = vpack.c.bf16 %v3534_v52, %v3534_v52  ;;  %v15278_v52 = vld [vmem:[%s21346_s7 + $0x1bc0] ss:$16 sps:$4 sm:$0xff]  }
 0x797   :  { %10238 = vmatpush1.bf16.msra.mxu0 %v15122_v34  ;;  %v15205_v34 = vld [vmem:[%s21346_s7 + $0x1a2c] ss:$16 sps:$4 sm:$0xff]  }
 0x798   :  { %10894 = vmatpush1.bf16.msra.mxu1 %v15125_v1  ;;  %10239 = vmatprep.subr.bf16.mxu0 %v15130_v32  ;;  %v15203_v1 = vld [vmem:[%s21346_s7 + $0x1a28] ss:$16 sps:$4 sm:$0xff]   ;;  %v15208_v32 = vld [vmem:[%s21346_s7 + $0x1a44] ss:$16 sps:$4 sm:$0xff]  }
 0x799   :  { %10895 = vmatprep.subr.bf16.mxu1 %v15133_v44  ;;  %v15211_v44 = vld [vmem:[%s21346_s7 + $0x1a4c] ss:$16 sps:$4 sm:$0xff]  }
 0x79b   :  { %10240 = vmatpush1.bf16.msra.mxu0 %v15128_v0  ;;  %v15206_v0 = vld [vmem:[%s21346_s7 + $0x1a40] ss:$16 sps:$4 sm:$0xff]  }
 0x79c   :  { %10896 = vmatpush1.bf16.msra.mxu1 %v15131_v22  ;;  %10241 = vmatprep.subr.bf16.mxu0 %v15136_v27  ;;  %v15209_v22 = vld [vmem:[%s21346_s7 + $0x1a48] ss:$16 sps:$4 sm:$0xff]   ;;  %v15214_v27 = vld [vmem:[%s21346_s7 + $0x1a64] ss:$16 sps:$4 sm:$0xff]  }
 0x79d   :  { %10897 = vmatprep.subr.bf16.mxu1 %v15139_v14  ;;  %v15217_v14 = vld [vmem:[%s21346_s7 + $0x1a6c] ss:$16 sps:$4 sm:$0xff]  }
 0x79f   :  { %10242 = vmatpush1.bf16.msra.mxu0 %v15134_v51  ;;  %v15212_v51 = vld [vmem:[%s21346_s7 + $0x1a60] ss:$16 sps:$4 sm:$0xff]  }
 0x7a0   :  { %10898 = vmatpush1.bf16.msra.mxu1 %v15137_v48  ;;  %10243 = vmatprep.subr.bf16.mxu0 %v15142_v8  ;;  %v15215_v48 = vld [vmem:[%s21346_s7 + $0x1a68] ss:$16 sps:$4 sm:$0xff]   ;;  %v15220_v8 = vld [vmem:[%s21346_s7 + $0x1a84] ss:$16 sps:$4 sm:$0xff]  }
 0x7a1   :  { %10899 = vmatprep.subr.bf16.mxu1 %v15145_v19  ;;  %v15223_v19 = vld [vmem:[%s21346_s7 + $0x1a8c] ss:$16 sps:$4 sm:$0xff]  }
 0x7a3   :  { %10244 = vmatpush1.bf16.msra.mxu0 %v15140_v41  ;;  %v15218_v41 = vld [vmem:[%s21346_s7 + $0x1a80] ss:$16 sps:$4 sm:$0xff]  }
 0x7a4   :  { %10900 = vmatpush1.bf16.msra.mxu1 %v15143_v50  ;;  %10245 = vmatprep.subr.bf16.mxu0 %v15148_v11  ;;  %v15221_v50 = vld [vmem:[%s21346_s7 + $0x1a88] ss:$16 sps:$4 sm:$0xff]   ;;  %v15226_v11 = vld [vmem:[%s21346_s7 + $0x1aa4] ss:$16 sps:$4 sm:$0xff]  }
 0x7a5   :  { %10901 = vmatprep.subr.bf16.mxu1 %v15151_v18  ;;  %v15229_v18 = vld [vmem:[%s21346_s7 + $0x1aac] ss:$16 sps:$4 sm:$0xff]  }
 0x7a7   :  { %10246 = vmatpush1.bf16.msra.mxu0 %v15146_v47  ;;  %v15224_v47 = vld [vmem:[%s21346_s7 + $0x1aa0] ss:$16 sps:$4 sm:$0xff]  }
 0x7a8   :  { %10902 = vmatpush1.bf16.msra.mxu1 %v15149_v20  ;;  %10247 = vmatprep.subr.bf16.mxu0 %v15154_v10  ;;  %v15227_v20 = vld [vmem:[%s21346_s7 + $0x1aa8] ss:$16 sps:$4 sm:$0xff]   ;;  %v15232_v10 = vld [vmem:[%s21346_s7 + $0x1ac4] ss:$16 sps:$4 sm:$0xff]  }
 0x7a9   :  { %10903 = vmatprep.subr.bf16.mxu1 %v15157_v3  ;;  %v15235_v3 = vld [vmem:[%s21346_s7 + $0x1acc] ss:$16 sps:$4 sm:$0xff]  }
 0x7ab   :  { %10248 = vmatpush1.bf16.msra.mxu0 %v15152_v53  ;;  %v15230_v53 = vld [vmem:[%s21346_s7 + $0x1ac0] ss:$16 sps:$4 sm:$0xff]  }
 0x7ac   :  { %10904 = vmatpush1.bf16.msra.mxu1 %v15155_v60  ;;  %10249 = vmatprep.subr.bf16.mxu0 %v15160_v28  ;;  %v15233_v60 = vld [vmem:[%s21346_s7 + $0x1ac8] ss:$16 sps:$4 sm:$0xff]   ;;  %v15238_v28 = vld [vmem:[%s21346_s7 + $0x1ae4] ss:$16 sps:$4 sm:$0xff]  }
 0x7ad   :  { %10905 = vmatprep.subr.bf16.mxu1 %v15163_v57  ;;  %v15241_v57 = vld [vmem:[%s21346_s7 + $0x1aec] ss:$16 sps:$4 sm:$0xff]  }
 0x7af   :  { %10250 = vmatpush1.bf16.msra.mxu0 %v15158_v55  ;;  %v15236_v55 = vld [vmem:[%s21346_s7 + $0x1ae0] ss:$16 sps:$4 sm:$0xff]  }
 0x7b0   :  { %10906 = vmatpush1.bf16.msra.mxu1 %v15161_v2  ;;  %10251 = vmatprep.subr.bf16.mxu0 %v15166_v33  ;;  %v15239_v2 = vld [vmem:[%s21346_s7 + $0x1ae8] ss:$16 sps:$4 sm:$0xff]   ;;  %v15244_v33 = vld [vmem:[%s21346_s7 + $0x1b04] ss:$16 sps:$4 sm:$0xff]  }
 0x7b1   :  { %10907 = vmatprep.subr.bf16.mxu1 %v15169_v63  ;;  %v15247_v63 = vld [vmem:[%s21346_s7 + $0x1b0c] ss:$16 sps:$4 sm:$0xff]  }
 0x7b3   :  { %10252 = vmatpush1.bf16.msra.mxu0 %v15164_v29  ;;  %v15242_v29 = vld [vmem:[%s21346_s7 + $0x1b00] ss:$16 sps:$4 sm:$0xff]  }
 0x7b4   :  { %10908 = vmatpush1.bf16.msra.mxu1 %v15167_v40  ;;  %10253 = vmatprep.subr.bf16.mxu0 %v15172_v17  ;;  %v15245_v40 = vld [vmem:[%s21346_s7 + $0x1b08] ss:$16 sps:$4 sm:$0xff]   ;;  %v15250_v17 = vld [vmem:[%s21346_s7 + $0x1b24] ss:$16 sps:$4 sm:$0xff]  }
 0x7b5   :  { %10909 = vmatprep.subr.bf16.mxu1 %v15175_v59  ;;  %v15253_v59 = vld [vmem:[%s21346_s7 + $0x1b2c] ss:$16 sps:$4 sm:$0xff]  }
 0x7b7   :  { %10254 = vmatpush1.bf16.msra.mxu0 %v15170_v23  ;;  %v15248_v23 = vld [vmem:[%s21346_s7 + $0x1b20] ss:$16 sps:$4 sm:$0xff]  }
 0x7b8   :  { %10910 = vmatpush1.bf16.msra.mxu1 %v15173_v16  ;;  %10255 = vmatprep.subr.bf16.mxu0 %v15178_v30  ;;  %v15251_v16 = vld [vmem:[%s21346_s7 + $0x1b28] ss:$16 sps:$4 sm:$0xff]   ;;  %v15256_v30 = vld [vmem:[%s21346_s7 + $0x1b44] ss:$16 sps:$4 sm:$0xff]  }
 0x7b9   :  { %10911 = vmatprep.subr.bf16.mxu1 %v15181_v62  ;;  %v15259_v62 = vld [vmem:[%s21346_s7 + $0x1b4c] ss:$16 sps:$4 sm:$0xff]  }
 0x7bb   :  { %10256 = vmatpush1.bf16.msra.mxu0 %v15176_v58  ;;  %v15254_v58 = vld [vmem:[%s21346_s7 + $0x1b40] ss:$16 sps:$4 sm:$0xff]  }
 0x7bc   :  { %10912 = vmatpush1.bf16.msra.mxu1 %v15179_v4  ;;  %10257 = vmatprep.subr.bf16.mxu0 %v15184_v35  ;;  %v15257_v4 = vld [vmem:[%s21346_s7 + $0x1b48] ss:$16 sps:$4 sm:$0xff]   ;;  %v15262_v35 = vld [vmem:[%s21346_s7 + $0x1b64] ss:$16 sps:$4 sm:$0xff]  }
 0x7bd   :  { %10913 = vmatprep.subr.bf16.mxu1 %v15187_v31  ;;  %v15265_v31 = vld [vmem:[%s21346_s7 + $0x1b6c] ss:$16 sps:$4 sm:$0xff]  }
 0x7bf   :  { %10258 = vmatpush1.bf16.msra.mxu0 %v15182_v15  ;;  %v15260_v15 = vld [vmem:[%s21346_s7 + $0x1b60] ss:$16 sps:$4 sm:$0xff]  }
 0x7c0   :  { %10914 = vmatpush1.bf16.msra.mxu1 %v15185_v54  ;;  %10259 = vmatprep.subr.bf16.mxu0 %v15190_v45  ;;  %v15263_v54 = vld [vmem:[%s21346_s7 + $0x1b68] ss:$16 sps:$4 sm:$0xff]   ;;  %v15268_v45 = vld [vmem:[%s21346_s7 + $0x1b84] ss:$16 sps:$4 sm:$0xff]  }
 0x7c1   :  { %10915 = vmatprep.subr.bf16.mxu1 %v15193_v24  ;;  %v15266_v24 = vld [vmem:[%s21346_s7 + $0x1b80] ss:$16 sps:$4 sm:$0xff]  }
 0x7c3   :  { %10260 = vmatpush1.bf16.msra.mxu0 %v15188_v37  ;;  %v15274_v37 = vld [vmem:[%s21346_s7 + $0x1ba4] ss:$16 sps:$4 sm:$0xff]  }
 0x7c4   :  { %10916 = vmatpush1.bf16.msra.mxu1 %v15191_v39  ;;  %10270 = vmatprep.subr.bf16.mxu0 %v15196_v26  ;;  %v15277_v39 = vld [vmem:[%s21346_s7 + $0x1bac] ss:$16 sps:$4 sm:$0xff]   ;;  %v15272_v26 = vld [vmem:[%s21346_s7 + $0x1ba0] ss:$16 sps:$4 sm:$0xff]  }
 0x7c5   :  { %10926 = vmatprep.subr.bf16.mxu1 %v15199_v46  ;;  %v15280_v46 = vld [vmem:[%s21346_s7 + $0x1bc4] ss:$16 sps:$4 sm:$0xff]  }
 0x7c6   :  { %10262 = vmatmul.mubr.bf16.vlgmr.msra.gmra.mrb[96].mxu0 %v3563_v43 }
 0x7c7   :  { %10918 = vmatmul.mubr.bf16.vlgmr.msra.gmra.mrb[80].mxu1 %v3563_v43  ;;  %10271 = vmatpush1.bf16.msra.mxu0 %v15194_v61  ;;  %v15283_v61 = vld [vmem:[%s21346_s7 + $0x1bcc] ss:$16 sps:$4 sm:$0xff]   ;;  %v20711_v43 = vpop.permute.xlu0 %13937 }
 0x7c8   :  { %10302 = vmatprep.mubr.bf16.mxu0 %v3566_v25  ;;  %10927 = vmatpush1.bf16.msra.mxu1 %v15197_v5  ;;  %v15281_v5 = vld [vmem:[%s21346_s7 + $0x1bc8] ss:$16 sps:$4 sm:$0xff]  }
 0x7c9   :  { %10958 = vmatprep.mubr.bf16.mxu1 %v3566_v25  ;;  %10272 = vmatprep.subr.bf16.mxu0 %v15202_v21  ;;  %v15286_v21 = vld [vmem:[%s21346_s7 + $0x1be4] ss:$16 sps:$4 sm:$0xff]   ;;  %v13935_v25 = vunpack.i.h.bf16 %v20511_v38 }
 0x7ca   :  { %10928 = vmatprep.subr.bf16.mxu1 %v15205_v34  ;;  %v15289_v34 = vld [vmem:[%s21346_s7 + $0x1bec] ss:$16 sps:$4 sm:$0xff]   ;;  %v15292_v38 = vld [vmem:[%s21346_s7 + $0x1c04] ss:$16 sps:$4 sm:$0xff]  }
 0x7cb   :  { %10273 = vmatpush1.bf16.msra.mxu0 %v15200_v12  ;;  %v13939_v12 = vunpack.i.l.bf16 %v20711_v43 }
 0x7cc   :  { %10929 = vmatpush1.bf16.msra.mxu1 %v15203_v1  ;;  %10274 = vmatprep.subr.bf16.mxu0 %v15208_v32  ;;  %v15284_v1 = vld [vmem:[%s21346_s7 + $0x1be0] ss:$16 sps:$4 sm:$0xff]   ;;  %v15287_v32 = vld [vmem:[%s21346_s7 + $0x1be8] ss:$16 sps:$4 sm:$0xff]  }
 0x7cd   :  { %10930 = vmatprep.subr.bf16.mxu1 %v15211_v44  ;;  %v3533_v44 = vsel %vm1530_vm2, %v18044_v13, %v13935_v25  ;;  %v15293_v13 = vld [vmem:[%s21346_s7 + $0x1c08] ss:$16 sps:$4 sm:$0xff]  }
 0x7ce   :  { %v15365_v25 = vld [vmem:[%s21346_s7 + $0x1d88] ss:$16 sps:$4 sm:$0xff]  }
 0x7cf   :  { %10275 = vmatpush1.bf16.msra.mxu0 %v15206_v0  ;;  %v15295_v0 = vld [vmem:[%s21346_s7 + $0x1c0c] ss:$16 sps:$4 sm:$0xff]  }
 0x7d0   :  { %10931 = vmatpush1.bf16.msra.mxu1 %v15209_v22  ;;  %10276 = vmatprep.subr.bf16.mxu0 %v15214_v27  ;;  %v15290_v22 = vld [vmem:[%s21346_s7 + $0x1c00] ss:$16 sps:$4 sm:$0xff]   ;;  %v3536_v27 = vsel %vm1530_vm2, %v18126_v9, %v13939_v12  ;;  %v15373_v12 = vld [vmem:[%s21346_s7 + $0x1dac] ss:$16 sps:$4 sm:$0xff]  }
 0x7d1   :  { %10932 = vmatprep.subr.bf16.mxu1 %v15217_v14  ;;  %v3565_v14 = vpack.c.bf16 %v3533_v44, %v3533_v44  ;;  %v15296_v9 = vld [vmem:[%s21346_s7 + $0x1c20] ss:$16 sps:$4 sm:$0xff]   ;;  %v15379_v44 = vld [vmem:[%s21346_s7 + $0x1dcc] ss:$16 sps:$4 sm:$0xff]  }
 0x7d3   :  { %10277 = vmatpush1.bf16.msra.mxu0 %v15212_v51  ;;  %v15298_v51 = vld [vmem:[%s21346_s7 + $0x1c24] ss:$16 sps:$4 sm:$0xff]  }
 0x7d4   :  { %10933 = vmatpush1.bf16.msra.mxu1 %v15215_v48  ;;  %10278 = vmatprep.subr.bf16.mxu0 %v15220_v8  ;;  %v3568_v48 = vpack.c.bf16 %v3536_v27, %v3536_v27  ;;  %v15301_v8 = vld [vmem:[%s21346_s7 + $0x1c2c] ss:$16 sps:$4 sm:$0xff]   ;;  %v15377_v27 = vld [vmem:[%s21346_s7 + $0x1dc8] ss:$16 sps:$4 sm:$0xff]  }
 0x7d5   :  { %10934 = vmatprep.subr.bf16.mxu1 %v15223_v19  ;;  %v15299_v19 = vld [vmem:[%s21346_s7 + $0x1c28] ss:$16 sps:$4 sm:$0xff]  }
 0x7d7   :  { %10279 = vmatpush1.bf16.msra.mxu0 %v15218_v41  ;;  %v15304_v41 = vld [vmem:[%s21346_s7 + $0x1c44] ss:$16 sps:$4 sm:$0xff]  }
 0x7d8   :  { %10935 = vmatpush1.bf16.msra.mxu1 %v15221_v50  ;;  %10280 = vmatprep.subr.bf16.mxu0 %v15226_v11  ;;  %v15307_v50 = vld [vmem:[%s21346_s7 + $0x1c4c] ss:$16 sps:$4 sm:$0xff]   ;;  %v15302_v11 = vld [vmem:[%s21346_s7 + $0x1c40] ss:$16 sps:$4 sm:$0xff]  }
 0x7d9   :  { %10936 = vmatprep.subr.bf16.mxu1 %v15229_v18  ;;  %v15305_v18 = vld [vmem:[%s21346_s7 + $0x1c48] ss:$16 sps:$4 sm:$0xff]  }
 0x7db   :  { %10281 = vmatpush1.bf16.msra.mxu0 %v15224_v47  ;;  %v15310_v47 = vld [vmem:[%s21346_s7 + $0x1c64] ss:$16 sps:$4 sm:$0xff]  }
 0x7dc   :  { %10937 = vmatpush1.bf16.msra.mxu1 %v15227_v20  ;;  %10282 = vmatprep.subr.bf16.mxu0 %v15232_v10  ;;  %v15313_v20 = vld [vmem:[%s21346_s7 + $0x1c6c] ss:$16 sps:$4 sm:$0xff]   ;;  %v15308_v10 = vld [vmem:[%s21346_s7 + $0x1c60] ss:$16 sps:$4 sm:$0xff]  }
 0x7dd   :  { %10938 = vmatprep.subr.bf16.mxu1 %v15235_v3  ;;  %v15311_v3 = vld [vmem:[%s21346_s7 + $0x1c68] ss:$16 sps:$4 sm:$0xff]  }
 0x7df   :  { %10283 = vmatpush1.bf16.msra.mxu0 %v15230_v53  ;;  %v15316_v53 = vld [vmem:[%s21346_s7 + $0x1c84] ss:$16 sps:$4 sm:$0xff]  }
 0x7e0   :  { %10939 = vmatpush1.bf16.msra.mxu1 %v15233_v60  ;;  %10284 = vmatprep.subr.bf16.mxu0 %v15238_v28  ;;  %v15319_v60 = vld [vmem:[%s21346_s7 + $0x1c8c] ss:$16 sps:$4 sm:$0xff]   ;;  %v15314_v28 = vld [vmem:[%s21346_s7 + $0x1c80] ss:$16 sps:$4 sm:$0xff]  }
 0x7e1   :  { %10940 = vmatprep.subr.bf16.mxu1 %v15241_v57  ;;  %v15317_v57 = vld [vmem:[%s21346_s7 + $0x1c88] ss:$16 sps:$4 sm:$0xff]  }
 0x7e3   :  { %10285 = vmatpush1.bf16.msra.mxu0 %v15236_v55  ;;  %v15322_v55 = vld [vmem:[%s21346_s7 + $0x1ca4] ss:$16 sps:$4 sm:$0xff]  }
 0x7e4   :  { %10941 = vmatpush1.bf16.msra.mxu1 %v15239_v2  ;;  %10286 = vmatprep.subr.bf16.mxu0 %v15244_v33  ;;  %v15325_v2 = vld [vmem:[%s21346_s7 + $0x1cac] ss:$16 sps:$4 sm:$0xff]   ;;  %v15320_v33 = vld [vmem:[%s21346_s7 + $0x1ca0] ss:$16 sps:$4 sm:$0xff]  }
 0x7e5   :  { %10942 = vmatprep.subr.bf16.mxu1 %v15247_v63  ;;  %v15323_v63 = vld [vmem:[%s21346_s7 + $0x1ca8] ss:$16 sps:$4 sm:$0xff]  }
 0x7e7   :  { %10287 = vmatpush1.bf16.msra.mxu0 %v15242_v29  ;;  %v15328_v29 = vld [vmem:[%s21346_s7 + $0x1cc4] ss:$16 sps:$4 sm:$0xff]  }
 0x7e8   :  { %10943 = vmatpush1.bf16.msra.mxu1 %v15245_v40  ;;  %10288 = vmatprep.subr.bf16.mxu0 %v15250_v17  ;;  %v15331_v40 = vld [vmem:[%s21346_s7 + $0x1ccc] ss:$16 sps:$4 sm:$0xff]   ;;  %v15326_v17 = vld [vmem:[%s21346_s7 + $0x1cc0] ss:$16 sps:$4 sm:$0xff]  }
 0x7e9   :  { %10944 = vmatprep.subr.bf16.mxu1 %v15253_v59  ;;  %v15329_v59 = vld [vmem:[%s21346_s7 + $0x1cc8] ss:$16 sps:$4 sm:$0xff]  }
 0x7eb   :  { %10289 = vmatpush1.bf16.msra.mxu0 %v15248_v23  ;;  %v15334_v23 = vld [vmem:[%s21346_s7 + $0x1ce4] ss:$16 sps:$4 sm:$0xff]  }
 0x7ec   :  { %10945 = vmatpush1.bf16.msra.mxu1 %v15251_v16  ;;  %10290 = vmatprep.subr.bf16.mxu0 %v15256_v30  ;;  %v15337_v16 = vld [vmem:[%s21346_s7 + $0x1cec] ss:$16 sps:$4 sm:$0xff]   ;;  %v15332_v30 = vld [vmem:[%s21346_s7 + $0x1ce0] ss:$16 sps:$4 sm:$0xff]  }
 0x7ed   :  { %10946 = vmatprep.subr.bf16.mxu1 %v15259_v62  ;;  %v15335_v62 = vld [vmem:[%s21346_s7 + $0x1ce8] ss:$16 sps:$4 sm:$0xff]  }
 0x7ef   :  { %10291 = vmatpush1.bf16.msra.mxu0 %v15254_v58  ;;  %v15340_v58 = vld [vmem:[%s21346_s7 + $0x1d04] ss:$16 sps:$4 sm:$0xff]  }
 0x7f0   :  { %10947 = vmatpush1.bf16.msra.mxu1 %v15257_v4  ;;  %10292 = vmatprep.subr.bf16.mxu0 %v15262_v35  ;;  %v15343_v4 = vld [vmem:[%s21346_s7 + $0x1d0c] ss:$16 sps:$4 sm:$0xff]   ;;  %v15338_v35 = vld [vmem:[%s21346_s7 + $0x1d00] ss:$16 sps:$4 sm:$0xff]  }
 0x7f1   :  { %10948 = vmatprep.subr.bf16.mxu1 %v15265_v31  ;;  %v15341_v31 = vld [vmem:[%s21346_s7 + $0x1d08] ss:$16 sps:$4 sm:$0xff]  }
 0x7f3   :  { %10293 = vmatpush1.bf16.msra.mxu0 %v15260_v15  ;;  %v15346_v15 = vld [vmem:[%s21346_s7 + $0x1d24] ss:$16 sps:$4 sm:$0xff]  }
 0x7f4   :  { %10949 = vmatpush1.bf16.msra.mxu1 %v15263_v54  ;;  %10294 = vmatprep.subr.bf16.mxu0 %v15268_v45  ;;  %v15349_v54 = vld [vmem:[%s21346_s7 + $0x1d2c] ss:$16 sps:$4 sm:$0xff]   ;;  %v15344_v45 = vld [vmem:[%s21346_s7 + $0x1d20] ss:$16 sps:$4 sm:$0xff]  }
 0x7f5   :  { %10950 = vmatprep.subr.bf16.mxu1 %v15271_v7  ;;  %v15347_v7 = vld [vmem:[%s21346_s7 + $0x1d28] ss:$16 sps:$4 sm:$0xff]  }
 0x7f7   :  { %10295 = vmatpush1.bf16.msra.mxu0 %v15266_v24  ;;  %v15352_v24 = vld [vmem:[%s21346_s7 + $0x1d44] ss:$16 sps:$4 sm:$0xff]  }
 0x7f8   :  { %10951 = vmatpush1.bf16.msra.mxu1 %v15269_v42  ;;  %10296 = vmatprep.subr.bf16.mxu0 %v15274_v37  ;;  %v15355_v42 = vld [vmem:[%s21346_s7 + $0x1d4c] ss:$16 sps:$4 sm:$0xff]   ;;  %v15350_v37 = vld [vmem:[%s21346_s7 + $0x1d40] ss:$16 sps:$4 sm:$0xff]  }
 0x7f9   :  { %10952 = vmatprep.subr.bf16.mxu1 %v15277_v39  ;;  %v15353_v39 = vld [vmem:[%s21346_s7 + $0x1d48] ss:$16 sps:$4 sm:$0xff]  }
 0x7fb   :  { %10297 = vmatpush1.bf16.msra.mxu0 %v15272_v26  ;;  %v15358_v26 = vld [vmem:[%s21346_s7 + $0x1d64] ss:$16 sps:$4 sm:$0xff]  }
 0x7fc   :  { %10953 = vmatpush1.bf16.msra.mxu1 %v15275_v56  ;;  %10298 = vmatprep.subr.bf16.mxu0 %v15280_v46  ;;  %v15361_v56 = vld [vmem:[%s21346_s7 + $0x1d6c] ss:$16 sps:$4 sm:$0xff]   ;;  %v15356_v46 = vld [vmem:[%s21346_s7 + $0x1d60] ss:$16 sps:$4 sm:$0xff]  }
 0x7fd   :  { %10954 = vmatprep.subr.bf16.mxu1 %v15283_v61  ;;  %v15359_v61 = vld [vmem:[%s21346_s7 + $0x1d68] ss:$16 sps:$4 sm:$0xff]  }
 0x7ff   :  { %10299 = vmatpush1.bf16.msra.mxu0 %v15278_v52  ;;  %v15364_v52 = vld [vmem:[%s21346_s7 + $0x1d84] ss:$16 sps:$4 sm:$0xff]  }
 0x800   :  { %10955 = vmatpush1.bf16.msra.mxu1 %v15281_v5  ;;  %10300 = vmatprep.subr.bf16.mxu0 %v15286_v21  ;;  %v15367_v5 = vld [vmem:[%s21346_s7 + $0x1d8c] ss:$16 sps:$4 sm:$0xff]   ;;  %v15362_v21 = vld [vmem:[%s21346_s7 + $0x1d80] ss:$16 sps:$4 sm:$0xff]  }
 0x801   :  { %10956 = vmatprep.subr.bf16.mxu1 %v15289_v34  ;;  %v15370_v34 = vld [vmem:[%s21346_s7 + $0x1da4] ss:$16 sps:$4 sm:$0xff]  }
 0x803   :  { %10301 = vmatpush1.bf16.msra.mxu0 %v15284_v1  ;;  %v15368_v1 = vld [vmem:[%s21346_s7 + $0x1da0] ss:$16 sps:$4 sm:$0xff]  }
 0x804   :  { %10957 = vmatpush1.bf16.msra.mxu1 %v15287_v32  ;;  %10311 = vmatprep.subr.bf16.mxu0 %v15292_v38  ;;  %v15371_v32 = vld [vmem:[%s21346_s7 + $0x1da8] ss:$16 sps:$4 sm:$0xff]   ;;  %v15376_v38 = vld [vmem:[%s21346_s7 + $0x1dc4] ss:$16 sps:$4 sm:$0xff]  }
 0x805   :  { %10967 = vmatprep.subr.bf16.mxu1 %v15295_v0  ;;  %v15374_v0 = vld [vmem:[%s21346_s7 + $0x1dc0] ss:$16 sps:$4 sm:$0xff]  }
 0x806   :  { %10303 = vmatmul.mubr.bf16.vlgmr.msra.gmra.mrb[96].mxu0 %v3565_v14 }
 0x807   :  { %10959 = vmatmul.mubr.bf16.vlgmr.msra.gmra.mrb[80].mxu1 %v3565_v14  ;;  %10312 = vmatpush1.bf16.msra.mxu0 %v15290_v22  ;;  %v20911_v22 = vpop.permute.xlu1 %13942  ;;  %v15382_v14 = vld [vmem:[%s21346_s7 + $0x1de4] ss:$16 sps:$4 sm:$0xff]  }
 0x808   :  { %10343 = vmatprep.mubr.bf16.mxu0 %v3568_v48  ;;  %10968 = vmatpush1.bf16.msra.mxu1 %v15293_v13  ;;  %v13940_v13 = vunpack.i.h.bf16 %v20711_v43  ;;  %v15388_v43 = vld [vmem:[%s21346_s7 + $0x1e04] ss:$16 sps:$4 sm:$0xff]  }
 0x809   :  { %10999 = vmatprep.mubr.bf16.mxu1 %v3568_v48  ;;  %10313 = vmatprep.subr.bf16.mxu0 %v15298_v51  ;;  %v15385_v51 = vld [vmem:[%s21346_s7 + $0x1dec] ss:$16 sps:$4 sm:$0xff]   ;;  %v13944_v48 = vunpack.i.l.bf16 %v20911_v22 }
 0x80a   :  { %10969 = vmatprep.subr.bf16.mxu1 %v15301_v8  ;;  %v15380_v8 = vld [vmem:[%s21346_s7 + $0x1de0] ss:$16 sps:$4 sm:$0xff]  }
 0x80b   :  { %10314 = vmatpush1.bf16.msra.mxu0 %v15296_v9  ;;  %v15383_v9 = vld [vmem:[%s21346_s7 + $0x1de8] ss:$16 sps:$4 sm:$0xff]  }
 0x80c   :  { %10970 = vmatpush1.bf16.msra.mxu1 %v15299_v19  ;;  %10315 = vmatprep.subr.bf16.mxu0 %v15304_v41  ;;  %v3535_v19 = vsel %vm1530_vm2, %v18061_v49, %v13940_v13  ;;  %v15391_v41 = vld [vmem:[%s21346_s7 + $0x1e0c] ss:$16 sps:$4 sm:$0xff]   ;;  %v15389_v49 = vld [vmem:[%s21346_s7 + $0x1e08] ss:$16 sps:$4 sm:$0xff]  }
 0x80d   :  { %10971 = vmatprep.subr.bf16.mxu1 %v15307_v50  ;;  %v15386_v50 = vld [vmem:[%s21346_s7 + $0x1e00] ss:$16 sps:$4 sm:$0xff]   ;;  %v15469_v13 = vld [vmem:[%s21346_s7 + $0x1fac] ss:$16 sps:$4 sm:$0xff]  }
 0x80f   :  { %10316 = vmatpush1.bf16.msra.mxu0 %v15302_v11  ;;  %v3538_v11 = vsel %vm1530_vm2, %v18129_v6, %v13944_v48  ;;  %v15392_v6 = vld [vmem:[%s21346_s7 + $0x1e20] ss:$16 sps:$4 sm:$0xff]   ;;  %v15467_v48 = vld [vmem:[%s21346_s7 + $0x1fa8] ss:$16 sps:$4 sm:$0xff]  }
 0x810   :  { %10972 = vmatpush1.bf16.msra.mxu1 %v15305_v18  ;;  %10317 = vmatprep.subr.bf16.mxu0 %v15310_v47  ;;  %v3567_v18 = vpack.c.bf16 %v3535_v19, %v3535_v19  ;;  %v15394_v47 = vld [vmem:[%s21346_s7 + $0x1e24] ss:$16 sps:$4 sm:$0xff]   ;;  %v15473_v19 = vld [vmem:[%s21346_s7 + $0x1fc8] ss:$16 sps:$4 sm:$0xff]  }
 0x811   :  { %10973 = vmatprep.subr.bf16.mxu1 %v15313_v20  ;;  %v3570_v20 = vpack.c.bf16 %v3538_v11, %v3538_v11  ;;  %v15481_v11 = vld [vmem:[%s21346_s7 + $0x1fec] ss:$16 sps:$4 sm:$0xff]  }
 0x813   :  { %10318 = vmatpush1.bf16.msra.mxu0 %v15308_v10  ;;  %v15397_v10 = vld [vmem:[%s21346_s7 + $0x1e2c] ss:$16 sps:$4 sm:$0xff]  }
 0x814   :  { %10974 = vmatpush1.bf16.msra.mxu1 %v15311_v3  ;;  %10319 = vmatprep.subr.bf16.mxu0 %v15316_v53  ;;  %v15395_v3 = vld [vmem:[%s21346_s7 + $0x1e28] ss:$16 sps:$4 sm:$0xff]   ;;  %v15400_v53 = vld [vmem:[%s21346_s7 + $0x1e44] ss:$16 sps:$4 sm:$0xff]  }
 0x815   :  { %10975 = vmatprep.subr.bf16.mxu1 %v15319_v60  ;;  %v15403_v60 = vld [vmem:[%s21346_s7 + $0x1e4c] ss:$16 sps:$4 sm:$0xff]  }
 0x817   :  { %10320 = vmatpush1.bf16.msra.mxu0 %v15314_v28  ;;  %v15398_v28 = vld [vmem:[%s21346_s7 + $0x1e40] ss:$16 sps:$4 sm:$0xff]  }
 0x818   :  { %10976 = vmatpush1.bf16.msra.mxu1 %v15317_v57  ;;  %10321 = vmatprep.subr.bf16.mxu0 %v15322_v55  ;;  %v15401_v57 = vld [vmem:[%s21346_s7 + $0x1e48] ss:$16 sps:$4 sm:$0xff]   ;;  %v15406_v55 = vld [vmem:[%s21346_s7 + $0x1e64] ss:$16 sps:$4 sm:$0xff]  }
 0x819   :  { %10977 = vmatprep.subr.bf16.mxu1 %v15325_v2  ;;  %v15409_v2 = vld [vmem:[%s21346_s7 + $0x1e6c] ss:$16 sps:$4 sm:$0xff]  }
 0x81b   :  { %10322 = vmatpush1.bf16.msra.mxu0 %v15320_v33  ;;  %v15404_v33 = vld [vmem:[%s21346_s7 + $0x1e60] ss:$16 sps:$4 sm:$0xff]  }
 0x81c   :  { %10978 = vmatpush1.bf16.msra.mxu1 %v15323_v63  ;;  %10323 = vmatprep.subr.bf16.mxu0 %v15328_v29  ;;  %v15407_v63 = vld [vmem:[%s21346_s7 + $0x1e68] ss:$16 sps:$4 sm:$0xff]   ;;  %v15412_v29 = vld [vmem:[%s21346_s7 + $0x1e84] ss:$16 sps:$4 sm:$0xff]  }
 0x81d   :  { %10979 = vmatprep.subr.bf16.mxu1 %v15331_v40  ;;  %v15415_v40 = vld [vmem:[%s21346_s7 + $0x1e8c] ss:$16 sps:$4 sm:$0xff]  }
 0x81f   :  { %10324 = vmatpush1.bf16.msra.mxu0 %v15326_v17  ;;  %v15410_v17 = vld [vmem:[%s21346_s7 + $0x1e80] ss:$16 sps:$4 sm:$0xff]  }
 0x820   :  { %10980 = vmatpush1.bf16.msra.mxu1 %v15329_v59  ;;  %10325 = vmatprep.subr.bf16.mxu0 %v15334_v23  ;;  %v15413_v59 = vld [vmem:[%s21346_s7 + $0x1e88] ss:$16 sps:$4 sm:$0xff]   ;;  %v15418_v23 = vld [vmem:[%s21346_s7 + $0x1ea4] ss:$16 sps:$4 sm:$0xff]  }
 0x821   :  { %10981 = vmatprep.subr.bf16.mxu1 %v15337_v16  ;;  %v15421_v16 = vld [vmem:[%s21346_s7 + $0x1eac] ss:$16 sps:$4 sm:$0xff]  }
 0x823   :  { %10326 = vmatpush1.bf16.msra.mxu0 %v15332_v30  ;;  %v15416_v30 = vld [vmem:[%s21346_s7 + $0x1ea0] ss:$16 sps:$4 sm:$0xff]  }
 0x824   :  { %10982 = vmatpush1.bf16.msra.mxu1 %v15335_v62  ;;  %10327 = vmatprep.subr.bf16.mxu0 %v15340_v58  ;;  %v15419_v62 = vld [vmem:[%s21346_s7 + $0x1ea8] ss:$16 sps:$4 sm:$0xff]   ;;  %v15424_v58 = vld [vmem:[%s21346_s7 + $0x1ec4] ss:$16 sps:$4 sm:$0xff]  }
 0x825   :  { %10983 = vmatprep.subr.bf16.mxu1 %v15343_v4  ;;  %v15427_v4 = vld [vmem:[%s21346_s7 + $0x1ecc] ss:$16 sps:$4 sm:$0xff]  }
 0x827   :  { %10328 = vmatpush1.bf16.msra.mxu0 %v15338_v35  ;;  %v15422_v35 = vld [vmem:[%s21346_s7 + $0x1ec0] ss:$16 sps:$4 sm:$0xff]  }
 0x828   :  { %10984 = vmatpush1.bf16.msra.mxu1 %v15341_v31  ;;  %10329 = vmatprep.subr.bf16.mxu0 %v15346_v15  ;;  %v15425_v31 = vld [vmem:[%s21346_s7 + $0x1ec8] ss:$16 sps:$4 sm:$0xff]   ;;  %v15430_v15 = vld [vmem:[%s21346_s7 + $0x1ee4] ss:$16 sps:$4 sm:$0xff]  }
 0x829   :  { %10985 = vmatprep.subr.bf16.mxu1 %v15349_v54  ;;  %v15433_v54 = vld [vmem:[%s21346_s7 + $0x1eec] ss:$16 sps:$4 sm:$0xff]  }
 0x82b   :  { %10330 = vmatpush1.bf16.msra.mxu0 %v15344_v45  ;;  %v15428_v45 = vld [vmem:[%s21346_s7 + $0x1ee0] ss:$16 sps:$4 sm:$0xff]  }
 0x82c   :  { %10986 = vmatpush1.bf16.msra.mxu1 %v15347_v7  ;;  %10331 = vmatprep.subr.bf16.mxu0 %v15352_v24  ;;  %v15431_v7 = vld [vmem:[%s21346_s7 + $0x1ee8] ss:$16 sps:$4 sm:$0xff]   ;;  %v15436_v24 = vld [vmem:[%s21346_s7 + $0x1f04] ss:$16 sps:$4 sm:$0xff]  }
 0x82d   :  { %10987 = vmatprep.subr.bf16.mxu1 %v15355_v42  ;;  %v15439_v42 = vld [vmem:[%s21346_s7 + $0x1f0c] ss:$16 sps:$4 sm:$0xff]  }
 0x82f   :  { %10332 = vmatpush1.bf16.msra.mxu0 %v15350_v37  ;;  %v15434_v37 = vld [vmem:[%s21346_s7 + $0x1f00] ss:$16 sps:$4 sm:$0xff]  }
 0x830   :  { %10988 = vmatpush1.bf16.msra.mxu1 %v15353_v39  ;;  %10333 = vmatprep.subr.bf16.mxu0 %v15358_v26  ;;  %v15437_v39 = vld [vmem:[%s21346_s7 + $0x1f08] ss:$16 sps:$4 sm:$0xff]   ;;  %v15442_v26 = vld [vmem:[%s21346_s7 + $0x1f24] ss:$16 sps:$4 sm:$0xff]  }
 0x831   :  { %10989 = vmatprep.subr.bf16.mxu1 %v15361_v56  ;;  %v15445_v56 = vld [vmem:[%s21346_s7 + $0x1f2c] ss:$16 sps:$4 sm:$0xff]  }
 0x833   :  { %10334 = vmatpush1.bf16.msra.mxu0 %v15356_v46  ;;  %v15440_v46 = vld [vmem:[%s21346_s7 + $0x1f20] ss:$16 sps:$4 sm:$0xff]  }
 0x834   :  { %10990 = vmatpush1.bf16.msra.mxu1 %v15359_v61  ;;  %10335 = vmatprep.subr.bf16.mxu0 %v15364_v52  ;;  %v15443_v61 = vld [vmem:[%s21346_s7 + $0x1f28] ss:$16 sps:$4 sm:$0xff]   ;;  %v15448_v52 = vld [vmem:[%s21346_s7 + $0x1f44] ss:$16 sps:$4 sm:$0xff]  }
 0x835   :  { %10991 = vmatprep.subr.bf16.mxu1 %v15367_v5  ;;  %v15451_v5 = vld [vmem:[%s21346_s7 + $0x1f4c] ss:$16 sps:$4 sm:$0xff]  }
 0x837   :  { %10336 = vmatpush1.bf16.msra.mxu0 %v15362_v21  ;;  %v15446_v21 = vld [vmem:[%s21346_s7 + $0x1f40] ss:$16 sps:$4 sm:$0xff]  }
 0x838   :  { %10992 = vmatpush1.bf16.msra.mxu1 %v15365_v25  ;;  %10337 = vmatprep.subr.bf16.mxu0 %v15370_v34  ;;  %v15449_v25 = vld [vmem:[%s21346_s7 + $0x1f48] ss:$16 sps:$4 sm:$0xff]   ;;  %v15454_v34 = vld [vmem:[%s21346_s7 + $0x1f64] ss:$16 sps:$4 sm:$0xff]  }
 0x839   :  { %10993 = vmatprep.subr.bf16.mxu1 %v15373_v12  ;;  %v15457_v12 = vld [vmem:[%s21346_s7 + $0x1f6c] ss:$16 sps:$4 sm:$0xff]  }
 0x83b   :  { %10338 = vmatpush1.bf16.msra.mxu0 %v15368_v1  ;;  %v15452_v1 = vld [vmem:[%s21346_s7 + $0x1f60] ss:$16 sps:$4 sm:$0xff]  }
 0x83c   :  { %10994 = vmatpush1.bf16.msra.mxu1 %v15371_v32  ;;  %10339 = vmatprep.subr.bf16.mxu0 %v15376_v38  ;;  %v15455_v32 = vld [vmem:[%s21346_s7 + $0x1f68] ss:$16 sps:$4 sm:$0xff]   ;;  %v15460_v38 = vld [vmem:[%s21346_s7 + $0x1f84] ss:$16 sps:$4 sm:$0xff]  }
 0x83d   :  { %10995 = vmatprep.subr.bf16.mxu1 %v15379_v44  ;;  %v15463_v44 = vld [vmem:[%s21346_s7 + $0x1f8c] ss:$16 sps:$4 sm:$0xff]  }
 0x83f   :  { %10340 = vmatpush1.bf16.msra.mxu0 %v15374_v0  ;;  %v15458_v0 = vld [vmem:[%s21346_s7 + $0x1f80] ss:$16 sps:$4 sm:$0xff]  }
 0x840   :  { %10996 = vmatpush1.bf16.msra.mxu1 %v15377_v27  ;;  %10341 = vmatprep.subr.bf16.mxu0 %v15382_v14  ;;  %v15461_v27 = vld [vmem:[%s21346_s7 + $0x1f88] ss:$16 sps:$4 sm:$0xff]   ;;  %v15466_v14 = vld [vmem:[%s21346_s7 + $0x1fa4] ss:$16 sps:$4 sm:$0xff]  }
 0x841   :  { %10997 = vmatprep.subr.bf16.mxu1 %v15385_v51  ;;  %v15464_v51 = vld [vmem:[%s21346_s7 + $0x1fa0] ss:$16 sps:$4 sm:$0xff]  }
 0x843   :  { %10342 = vmatpush1.bf16.msra.mxu0 %v15380_v8  ;;  %v15472_v8 = vld [vmem:[%s21346_s7 + $0x1fc4] ss:$16 sps:$4 sm:$0xff]  }
 0x844   :  { %10998 = vmatpush1.bf16.msra.mxu1 %v15383_v9  ;;  %10352 = vmatprep.subr.bf16.mxu0 %v15388_v43  ;;  %v15475_v9 = vld [vmem:[%s21346_s7 + $0x1fcc] ss:$16 sps:$4 sm:$0xff]   ;;  %v15470_v43 = vld [vmem:[%s21346_s7 + $0x1fc0] ss:$16 sps:$4 sm:$0xff]  }
 0x845   :  { %11008 = vmatprep.subr.bf16.mxu1 %v15391_v41  ;;  %v15478_v41 = vld [vmem:[%s21346_s7 + $0x1fe4] ss:$16 sps:$4 sm:$0xff]  }
 0x846   :  { %10344 = vmatmul.mubr.bf16.vlgmr.msra.gmra.mrb[96].mxu0 %v3567_v18 }
 0x847   :  { %11000 = vmatmul.mubr.bf16.vlgmr.msra.gmra.mrb[80].mxu1 %v3567_v18  ;;  %10353 = vmatpush1.bf16.msra.mxu0 %v15386_v50  ;;  %v13945_v50 = vunpack.i.h.bf16 %v20911_v22  ;;  %v11069_v18 = vld [vmem:[%s21348_s9 + $0x80] sm:$0xff]  ;;  %v11102_v22 = vld [vmem:[%s21348_s9 + $0x188] sm:$0xff] }
 0x848   :  { %10384 = vmatprep.mubr.bf16.mxu0 %v3570_v20  ;;  %11009 = vmatpush1.bf16.msra.mxu1 %v15389_v49  ;;  %v11070_v49 = vld [vmem:[%s21348_s9 + $0x88] sm:$0xff] }
 0x849   :  { %11040 = vmatprep.mubr.bf16.mxu1 %v3570_v20  ;;  %10354 = vmatprep.subr.bf16.mxu0 %v15394_v47  ;;  %v11101_v47 = vld [vmem:[%s21348_s9 + $0x180] sm:$0xff] }
 0x84a   :  { %11010 = vmatprep.subr.bf16.mxu1 %v15397_v10  ;;  %v15476_v20 = vld [vmem:[%s21346_s7 + $0x1fe0] ss:$16 sps:$4 sm:$0xff]   ;;  %v15479_v10 = vld [vmem:[%s21346_s7 + $0x1fe8] ss:$16 sps:$4 sm:$0xff]  }
 0x84b   :  { %10355 = vmatpush1.bf16.msra.mxu0 %v15392_v6  ;;  %v13033_v6 = vpack.c.bf16 %v11070_v49, %v11069_v18  ;;  %v11111_v18 = vld [vmem:[%s21348_s9 + $0x1d0] sm:$0xff]  ;;  %v11112_v49 = vld [vmem:[%s21348_s9 + $0x1d8] sm:$0xff] }
 0x84c   :  { %11011 = vmatpush1.bf16.msra.mxu1 %v15395_v3  ;;  %10356 = vmatprep.subr.bf16.mxu0 %v15400_v53  ;;  %v11053_v3 = vld [vmem:[%s21348_s9] sm:$0xff]  ;;  %v11054_v53 = vld [vmem:[%s21348_s9 + $0x8] sm:$0xff] }
 0x84d   :  { %11012 = vmatprep.subr.bf16.mxu1 %v15403_v60  ;;  %v11085_v60 = vld [vmem:[%s21348_s9 + $0x100] sm:$0xff] }
 0x84f   :  { %10357 = vmatpush1.bf16.msra.mxu0 %v15398_v28  ;;  %v3537_v28 = vsel %vm1530_vm2, %v18057_v36, %v13945_v50  ;;  %v11104_v36 = vld [vmem:[%s21348_s9 + $0x198] sm:$0xff]  ;;  %v11079_v50 = vld [vmem:[%s21348_s9 + $0xd0] sm:$0xff] }
 0x850   :  { %11013 = vmatpush1.bf16.msra.mxu1 %v15401_v57  ;;  %10358 = vmatprep.subr.bf16.mxu0 %v15406_v55  ;;  %v13065_v57 = vpack.c.bf16 %v11102_v22, %v11101_v47  ;;  %v11086_v55 = vld [vmem:[%s21348_s9 + $0x108] sm:$0xff] }
 0x851   :  { %11014 = vmatprep.subr.bf16.mxu1 %v15409_v2  ;;  %v11071_v2 = vld [vmem:[%s21348_s9 + $0x90] sm:$0xff] }
 0x853   :  { %10359 = vmatpush1.bf16.msra.mxu0 %v15404_v33  ;;  %v11072_v33 = vld [vmem:[%s21348_s9 + $0x98] sm:$0xff] }
 0x854   :  { %11015 = vmatpush1.bf16.msra.mxu1 %v15407_v63  ;;  %10360 = vmatprep.subr.bf16.mxu0 %v15412_v29  ;;  %v11103_v63 = vld [vmem:[%s21348_s9 + $0x190] sm:$0xff]  ;;  %v13035_v29 = vpack.c.bf16 %v11054_v53, %v11053_v3  ;;  %v13085_v53 = vpack.c.bf16 %v11112_v49, %v11111_v18  ;;  %v12322_v49 = vld [vmem:[%s21349_s10] ss:$0 sm:$0xff] }
 0x855   :  { %11016 = vmatprep.subr.bf16.mxu1 %v15415_v40  ;;  %v3569_v40 = vpack.c.bf16 %v3537_v28, %v3537_v28  ;;  %v11095_v3 = vld [vmem:[%s21348_s9 + $0x150] sm:$0xff]  ;;  %v11081_v28 = vld [vmem:[%s21348_s9 + $0xe0] sm:$0xff] }
 0x857   :  { %10361 = vmatpush1.bf16.msra.mxu0 %v15410_v17  ;;  %v13067_v17 = vpack.c.bf16 %v11086_v55, %v11085_v60  ;;  %v11096_v60 = vld [vmem:[%s21348_s9 + $0x158] sm:$0xff]  ;;  %v11113_v55 = vld [vmem:[%s21348_s9 + $0x1e0] sm:$0xff] }
 0x858   :  { %11017 = vmatpush1.bf16.msra.mxu1 %v15413_v59  ;;  %10362 = vmatprep.subr.bf16.mxu0 %v15418_v23  ;;  %v13037_v59 = vpack.c.bf16 %v11072_v33, %v11071_v2  ;;  %v11055_v23 = vld [vmem:[%s21348_s9 + $0x10] sm:$0xff]  ;;  %v11114_v2 = vld [vmem:[%s21348_s9 + $0x1e8] sm:$0xff] }
 0x859   :  { %11018 = vmatprep.subr.bf16.mxu1 %v15421_v16  ;;  %v11056_v16 = vld [vmem:[%s21348_s9 + $0x18] sm:$0xff] }
 0x85b   :  { %10363 = vmatpush1.bf16.msra.mxu0 %v15416_v30  ;;  %v11087_v30 = vld [vmem:[%s21348_s9 + $0x110] sm:$0xff] }
 0x85c   :  { %11019 = vmatpush1.bf16.msra.mxu1 %v15419_v62  ;;  %10364 = vmatprep.subr.bf16.mxu0 %v15424_v58  ;;  %v13069_v62 = vpack.c.bf16 %v11104_v36, %v11103_v63  ;;  %v11088_v58 = vld [vmem:[%s21348_s9 + $0x118] sm:$0xff]  ;;  %v13087_v63 = vpack.c.bf16 %v11096_v60, %v11095_v3 }
 0x85d   :  { %11020 = vmatprep.subr.bf16.mxu1 %v15427_v4  ;;  %v11073_v4 = vld [vmem:[%s21348_s9 + $0xa0] sm:$0xff] }
 0x85f   :  { %10365 = vmatpush1.bf16.msra.mxu0 %v15422_v35  ;;  %v11074_v35 = vld [vmem:[%s21348_s9 + $0xa8] sm:$0xff] }
 0x860   :  { %11021 = vmatpush1.bf16.msra.mxu1 %v15425_v31  ;;  %10366 = vmatprep.subr.bf16.mxu0 %v15430_v15  ;;  %v11105_v31 = vld [vmem:[%s21348_s9 + $0x1a0] sm:$0xff]  ;;  %v11106_v15 = vld [vmem:[%s21348_s9 + $0x1a8] sm:$0xff] }
 0x861   :  { %11022 = vmatprep.subr.bf16.mxu1 %v15433_v54  ;;  %v13039_v54 = vpack.c.bf16 %v11056_v16, %v11055_v23  ;;  %v11098_v16 = vld [vmem:[%s21348_s9 + $0x168] sm:$0xff] }
 0x863   :  { %10367 = vmatpush1.bf16.msra.mxu0 %v15428_v45  ;;  %v13071_v45 = vpack.c.bf16 %v11088_v58, %v11087_v30  ;;  %v11083_v30 = vld [vmem:[%s21348_s9 + $0xf0] sm:$0xff] }
 0x864   :  { %11023 = vmatpush1.bf16.msra.mxu1 %v15431_v7  ;;  %10368 = vmatprep.subr.bf16.mxu0 %v15436_v24  ;;  %v13041_v7 = vpack.c.bf16 %v11074_v35, %v11073_v4  ;;  %v11057_v24 = vld [vmem:[%s21348_s9 + $0x20] sm:$0xff]  ;;  %v11115_v35 = vld [vmem:[%s21348_s9 + $0x1f0] sm:$0xff] }
 0x865   :  { %11024 = vmatprep.subr.bf16.mxu1 %v15439_v42  ;;  %v11058_v42 = vld [vmem:[%s21348_s9 + $0x28] sm:$0xff] }
 0x867   :  { %10369 = vmatpush1.bf16.msra.mxu0 %v15434_v37  ;;  %v11089_v37 = vld [vmem:[%s21348_s9 + $0x120] sm:$0xff] }
 0x868   :  { %11025 = vmatpush1.bf16.msra.mxu1 %v15437_v39  ;;  %10370 = vmatprep.subr.bf16.mxu0 %v15442_v26  ;;  %v13073_v39 = vpack.c.bf16 %v11106_v15, %v11105_v31  ;;  %v11090_v26 = vld [vmem:[%s21348_s9 + $0x128] sm:$0xff]  ;;  %v11116_v31 = vld [vmem:[%s21348_s9 + $0x1f8] sm:$0xff]  ;;  %v11067_v15 = vld [vmem:[%s21348_s9 + $0x70] sm:$0xff] }
 0x869   :  { %11026 = vmatprep.subr.bf16.mxu1 %v15445_v56  ;;  %v11075_v56 = vld [vmem:[%s21348_s9 + $0xb0] sm:$0xff] }
 0x86b   :  { %10371 = vmatpush1.bf16.msra.mxu0 %v15440_v46  ;;  %v11076_v46 = vld [vmem:[%s21348_s9 + $0xb8] sm:$0xff] }
 0x86c   :  { %11027 = vmatpush1.bf16.msra.mxu1 %v15443_v61  ;;  %10372 = vmatprep.subr.bf16.mxu0 %v15448_v52  ;;  %v11107_v61 = vld [vmem:[%s21348_s9 + $0x1b0] sm:$0xff]  ;;  %v11108_v52 = vld [vmem:[%s21348_s9 + $0x1b8] sm:$0xff] }
 0x86d   :  { %11028 = vmatprep.subr.bf16.mxu1 %v15451_v5  ;;  %v13043_v5 = vpack.c.bf16 %v11058_v42, %v11057_v24  ;;  %v11100_v24 = vld [vmem:[%s21348_s9 + $0x178] sm:$0xff] }
 0x86f   :  { %10373 = vmatpush1.bf16.msra.mxu0 %v15446_v21  ;;  %v13075_v21 = vpack.c.bf16 %v11090_v26, %v11089_v37 }
 0x870   :  { %11029 = vmatpush1.bf16.msra.mxu1 %v15449_v25  ;;  %10374 = vmatprep.subr.bf16.mxu0 %v15454_v34  ;;  %v13045_v25 = vpack.c.bf16 %v11076_v46, %v11075_v56  ;;  %v11059_v34 = vld [vmem:[%s21348_s9 + $0x30] sm:$0xff]  ;;  %v4595_v46 = vld [vmem:[%s21347_s8] sm:$0xf] }
 0x871   :  { %11030 = vmatprep.subr.bf16.mxu1 %v15457_v12  ;;  %v11060_v12 = vld [vmem:[%s21348_s9 + $0x38] sm:$0xff] }
 0x873   :  { %10375 = vmatpush1.bf16.msra.mxu0 %v15452_v1  ;;  %v11091_v1 = vld [vmem:[%s21348_s9 + $0x130] sm:$0xff] }
 0x874   :  { %11031 = vmatpush1.bf16.msra.mxu1 %v15455_v32  ;;  %10376 = vmatprep.subr.bf16.mxu0 %v15460_v38  ;;  %v13077_v32 = vpack.c.bf16 %v11108_v52, %v11107_v61  ;;  %v11092_v38 = vld [vmem:[%s21348_s9 + $0x138] sm:$0xff] }
 0x875   :  { %11032 = vmatprep.subr.bf16.mxu1 %v15463_v44  ;;  %v11077_v44 = vld [vmem:[%s21348_s9 + $0xc0] sm:$0xff] }
 0x877   :  { %10377 = vmatpush1.bf16.msra.mxu0 %v15458_v0  ;;  %v11078_v0 = vld [vmem:[%s21348_s9 + $0xc8] sm:$0xff] }
 0x878   :  { %11033 = vmatpush1.bf16.msra.mxu1 %v15461_v27  ;;  %10378 = vmatprep.subr.bf16.mxu0 %v15466_v14  ;;  %v11109_v27 = vld [vmem:[%s21348_s9 + $0x1c0] sm:$0xff]  ;;  %v11110_v14 = vld [vmem:[%s21348_s9 + $0x1c8] sm:$0xff] }
 0x879   :  { %11034 = vmatprep.subr.bf16.mxu1 %v15469_v13  ;;  %v13047_v13 = vpack.c.bf16 %v11060_v12, %v11059_v34 }
 0x87b   :  { %10379 = vmatpush1.bf16.msra.mxu0 %v15464_v51  ;;  %v13079_v51 = vpack.c.bf16 %v11092_v38, %v11091_v1 }
 0x87c   :  { %11035 = vmatpush1.bf16.msra.mxu1 %v15467_v48  ;;  %10380 = vmatprep.subr.bf16.mxu0 %v15472_v8  ;;  %v13049_v48 = vpack.c.bf16 %v11078_v0, %v11077_v44  ;;  %v11061_v8 = vld [vmem:[%s21348_s9 + $0x40] sm:$0xff] }
 0x87d   :  { %11036 = vmatprep.subr.bf16.mxu1 %v15475_v9  ;;  %v11062_v9 = vld [vmem:[%s21348_s9 + $0x48] sm:$0xff] }
 0x87e   :  { %v13051_v47 = vpack.c.bf16 %v11062_v9, %v11061_v8 }
 0x87f   :  { %10381 = vmatpush1.bf16.msra.mxu0 %v15470_v43  ;;  %v11093_v43 = vld [vmem:[%s21348_s9 + $0x140] sm:$0xff] }
 0x880   :  { %11037 = vmatpush1.bf16.msra.mxu1 %v15473_v19  ;;  %10382 = vmatprep.subr.bf16.mxu0 %v15478_v41  ;;  %v13081_v19 = vpack.c.bf16 %v11110_v14, %v11109_v27  ;;  %v11094_v41 = vld [vmem:[%s21348_s9 + $0x148] sm:$0xff] }
 0x881   :  { %11038 = vmatprep.subr.bf16.mxu1 %v15481_v11  ;;  %v11080_v11 = vld [vmem:[%s21348_s9 + $0xd8] sm:$0xff]  ;;  %v13083_v22 = vpack.c.bf16 %v11094_v41, %v11093_v43 }
 0x883   :  { %10383 = vmatpush1.bf16.msra.mxu0 %v15476_v20  ;;  %v13053_v20 = vpack.c.bf16 %v11080_v11, %v11079_v50 }
 0x884   :  { %11039 = vmatpush1.bf16.msra.mxu1 %v15479_v10  ;;  %13034 = vmatprep.subr.bf16.mxu0 %v13033_v6  ;;  %v11063_v10 = vld [vmem:[%s21348_s9 + $0x50] sm:$0xff]  ;;  %v11064_v6 = vld [vmem:[%s21348_s9 + $0x58] sm:$0xff] }
 0x885   :  { %13066 = vmatprep.subr.bf16.mxu1 %v13065_v57  ;;  %v11082_v57 = vld [vmem:[%s21348_s9 + $0xe8] sm:$0xff]  ;;  %v13055_v33 = vpack.c.bf16 %v11064_v6, %v11063_v10 }
 0x886   :  { %10385 = vmatmul.mubr.bf16.vlgmr.msra.gmra.mrb[96].mxu0 %v3569_v40  ;;  %v13057_v36 = vpack.c.bf16 %v11082_v57, %v11081_v28 }
 0x887   :  { %11041 = vmatmul.mubr.bf16.vlgmr.msra.gmra.mrb[80].mxu1 %v3569_v40  ;;  %13036 = vmatpush3.bf16.msra.mxu0 %v13035_v29  ;;  %v13089_v29 = vpack.c.bf16 %v11114_v2, %v11113_v55  ;;  %v11065_v40 = vld [vmem:[%s21348_s9 + $0x60] sm:$0xff] }
 0x888   :  { %13068 = vmatpush3.bf16.msra.mxu1 %v13067_v17  ;;  %13038 = vmatprep.subr.bf16.mxu0 %v13037_v59  ;;  %v11066_v17 = vld [vmem:[%s21348_s9 + $0x68] sm:$0xff]  ;;  %v11097_v59 = vld [vmem:[%s21348_s9 + $0x160] sm:$0xff] }
 0x889   :  { %13070 = vmatprep.subr.bf16.mxu1 %v13069_v62  ;;  %v13059_v23 = vpack.c.bf16 %v11066_v17, %v11065_v40  ;;  %v11084_v62 = vld [vmem:[%s21348_s9 + $0xf8] sm:$0xff]  ;;  %v13091_v58 = vpack.c.bf16 %v11098_v16, %v11097_v59 }
 0x88a   :  { %v13061_v4 = vpack.c.bf16 %v11084_v62, %v11083_v30 }
 0x88b   :  { %13040 = vmatpush3.bf16.msra.mxu0 %v13039_v54  ;;  %v13093_v54 = vpack.c.bf16 %v11116_v31, %v11115_v35 }
 0x88c   :  { %13072 = vmatpush3.bf16.msra.mxu1 %v13071_v45  ;;  %13042 = vmatprep.subr.bf16.mxu0 %v13041_v7  ;;  %v11068_v45 = vld [vmem:[%s21348_s9 + $0x78] sm:$0xff]  ;;  %v11099_v7 = vld [vmem:[%s21348_s9 + $0x170] sm:$0xff] }
 0x88d   :  { %13074 = vmatprep.subr.bf16.mxu1 %v13073_v39  ;;  %v13063_v42 = vpack.c.bf16 %v11068_v45, %v11067_v15  ;;  %v13095_v37 = vpack.c.bf16 %v11100_v24, %v11099_v7  ;;  %v4597_v39 = vlaneseq }
 0x88f   :  { %13044 = vmatpush3.bf16.msra.mxu0 %v13043_v5  ;;  %v4598_v26 = vshrl.u32 %v4597_v39, 7 }
 0x890   :  { %13076 = vmatpush3.bf16.msra.mxu1 %v13075_v21  ;;  %13046 = vmatprep.subr.bf16.mxu0 %v13045_v25 }
 0x891   :  { %13078 = vmatprep.subr.bf16.mxu1 %v13077_v32  ;;  %v4599_v56 = vsub.s32 0, %v4598_v26  ;;  %v4607_v61 = vsub.s32 2, %v4598_v26  ;;  %v4603_v52 = vsub.s32 1, %v4598_v26  ;;  %v4611_v5 = vsub.s32 3, %v4598_v26 }
 0x893   :  { %13048 = vmatpush3.bf16.msra.mxu0 %v13047_v13  ;;  %v4600_v21 = vrot.slane %v4595_v46, %v4599_v56  ;;  %v4608_v25 = vrot.slane %v4595_v46, %v4607_v61  ;;  %v4604_v34 = vrot.slane %v4595_v46, %v4603_v52  ;;  %v4612_v12 = vrot.slane %v4595_v46, %v4611_v5 }
 0x894   :  { %13080 = vmatpush3.bf16.msra.mxu1 %v13079_v51  ;;  %13050 = vmatprep.subr.bf16.mxu0 %v13049_v48 }
 0x895   :  { %13082 = vmatprep.subr.bf16.mxu1 %v13081_v19 }
 0x897   :  { %13052 = vmatpush3.bf16.msra.mxu0 %v13051_v47 }
 0x898   :  { %13084 = vmatpush3.bf16.msra.mxu1 %v13083_v22  ;;  %13054 = vmatprep.subr.bf16.mxu0 %v13053_v20 }
 0x899   :  { %13086 = vmatprep.subr.bf16.mxu1 %v13085_v53 }
 0x89b   :  { %13056 = vmatpush3.bf16.msra.mxu0 %v13055_v33 }
 0x89c   :  { %13088 = vmatpush3.bf16.msra.mxu1 %v13087_v63  ;;  %13058 = vmatprep.subr.bf16.mxu0 %v13057_v36 }
 0x89d   :  { %13090 = vmatprep.subr.bf16.mxu1 %v13089_v29 }
 0x89f   :  { %13060 = vmatpush3.bf16.msra.mxu0 %v13059_v23 }
 0x8a0   :  { %13092 = vmatpush3.bf16.msra.mxu1 %v13091_v58  ;;  %13062 = vmatprep.subr.bf16.mxu0 %v13061_v4 }
 0x8a1   :  { %13094 = vmatprep.subr.bf16.mxu1 %v13093_v54 }
 0x8a3   :  { %13064 = vmatpush3.bf16.msra.mxu0 %v13063_v42 }
 0x8a4   :  { %13096 = vmatpush3.bf16.msra.mxu1 %v13095_v37 }
 0x959   :  { %v10386_v1 = vpop.f32.mrb[96].mxu0 }
 0x95a   :  { %v13097_v32 = vadd.f32 %v10386_v1, %v4600_v21  ;;  %v11042_v38 = vpop.f32.mrb[80].mxu1  ;;  %v10388_v44 = vpop.f32.mrb[97].mxu0 }
 0x95b   :  { %v13099_v0 = vadd.f32 %v11042_v38, %v4608_v25  ;;  %v13098_v27 = vadd.f32 %v10388_v44, %v4604_v34  ;;  %v11044_v14 = vpop.f32.mrb[81].mxu1  ;;  %v10390_v13 = vpop.f32.mrb[98].mxu0 }
 0x95c   :  { %v13100_v51 = vadd.f32 %v11044_v14, %v4612_v12  ;;  %v11046_v48 = vpop.f32.mrb[82].mxu1  ;;  %v10391_v8 = vpop.f32.mrb[99].mxu0  ;;  %v11049_v19 = vmax.f32 %v13097_v32, 0.0 }
 0x95d   :  { %v11050_v9 = vmax.f32 %v13098_v27, 0.0  ;;  %v11047_v43 = vpop.f32.mrb[83].mxu1  ;;  %v11051_v50 = vmax.f32 %v13099_v0, 0.0 }
 0x95e   :  { %v11052_v41 = vmax.f32 %v13100_v51, 0.0 }
 0x95f   :  { %11188 = vmatprep.mubr.f32.mxu0 %v11050_v9 }
 0x960   :  { %11258 = vmatprep.mubr.f32.mxu1 %v11052_v41  ;;  %11189 = vmatmul.mubr.f32.vlgmr.msra.gmra.mrb[100].mxu0 %v11049_v19 }
 0x961   :  { %11259 = vmatmul.mubr.f32.vlgmr.msra.gmra.mrb[84].mxu1 %v11051_v50 }
 0xa33   :  { %v12779_v11 = vpop.f32.mrb[100].mxu0 }
 0xa34   :  { %v12814_v18 = vpop.f32.mrb[84].mxu1  ;;  %v12780_v47 = vpop.f32.mrb[101].mxu0 }
 0xa35   :  { %v12781_v22 = vadd.f32 %v12780_v47, %v12779_v11  ;;  %v12815_v20 = vpop.f32.mrb[85].mxu1 }
 0xa36   :  { %v12816_v10 = vadd.f32 %v12815_v20, %v12814_v18 }
 0xa37   :  { %v11191_v6 = vadd.f32 %v12781_v22, %v12322_v49 }
 0xa39   :  { %v11261_v3 = vadd.f32 %v12816_v10, %v11191_v6 }
 0xa3b   :  { %11264 = vst [vmem:[#allocation4] sm:$0x3] %v11261_v3 }
 0xa3c   :  { %15495 = shalt.err (!%p15492_p4)
}
 0xa3d   :  { %s15496_s10 = scalar_lea.hbm %s21350_s11, 32 }
 0xa3e   :  { %p15497_p5 = scmp.ne.s32.totalorder %s21350_s11, %s15496_s10  ;;  %p15500_p6 = scmp.lt.u32.totalorder %s15496_s10, %s21350_s11 }
 0xa40   :  { %p15502_p7 = pnand %p15500_p6, %p15497_p5 }
 0xa42   :  { %15505 = shalt.err (!%p15502_p7)
}
 0xa43   :  { %11274 = dma.vmem_to_hbm [thread:$0]  %s11272_s5, 32, %s21350_s11, [#allocation5]  }
 0xa44   :  { %15506 = dma.done.wait [#allocation5], 32  }
 0xa45   :  { %15507 = vsyncadd [#allocation5], 4294967264 }
 0xa46   :  { %11278 = vsyncpa [#allocation5], 1 }

</bundles_post_ra>
